<compile_context>
chip_gen: v6e
topology: v6e:2x2x1
jax: 0.10.0
libtpu: 0.0.40
codegen_flags: <defaults>
</compile_context>

<pallas_src>
import functools

import jax
import jax.numpy as jnp
from jax.experimental import pallas as pl
from jax.experimental.pallas import tpu as pltpu

_VMEM_LIMIT = 32 * 1024 * 1024   # conservative: fits v7x (64 MiB phys / 32 MiB scoped)


def _round_up(x, m):
    return (x + m - 1) // m * m


# ----------------------------------------------------------------------------
# Wrapper-side im2col (PyTorch Conv2d(k, stride, padding=k//2) patch layout).
# K index = (ki*k + kj) * C + ci, matching w.reshape(k*k*C, Cout).
# ----------------------------------------------------------------------------
def _im2col(x_nhwc, k, stride):
    pad = k // 2
    B, H, W, C = x_nhwc.shape
    xp = jnp.pad(x_nhwc, ((0, 0), (pad, pad), (pad, pad), (0, 0)))
    Ho = (H + 2 * pad - k) // stride + 1
    Wo = (W + 2 * pad - k) // stride + 1
    cols = []
    for ki in range(k):
        for kj in range(k):
            cols.append(xp[:, ki:ki + stride * (Ho - 1) + 1:stride,
                              kj:kj + stride * (Wo - 1) + 1:stride, :])
    # TODO(synk): at real (large) resolutions this im2col should become an in-kernel
    #             tap accumulation to avoid the 9x HBM expansion; at 32x32 the stack
    #             is launch-bound, not HBM-bound.
    return jnp.concatenate(cols, axis=-1), Ho, Wo          # (B,Ho,Wo,k*k*C)


def _pad_weight_channels(w, b, cin_in, cout_pad_to=None):
    """Zero-pad weight Cin to match channel-padded activations; optionally pad Cout."""
    kh, kw, cin, cout = w.shape
    assert cin_in >= cin
    if cin_in > cin:
        w = jnp.pad(w, ((0, 0), (0, 0), (0, cin_in - cin), (0, 0)))
    if cout_pad_to is not None and cout_pad_to > cout:
        w = jnp.pad(w, ((0, 0), (0, 0), (0, 0), (0, cout_pad_to - cout)))
        b = jnp.pad(b, ((0, cout_pad_to - cout),))
    return w, b


# ----------------------------------------------------------------------------
# Pallas kernel 1: tiled fused  out = activation(A @ B + bias)   (bf16 in, f32 acc)
# ----------------------------------------------------------------------------
def _matmul_bias_act_kernel(a_ref, b_ref, bias_ref, o_ref, *, activation):
    acc = jnp.dot(a_ref[...], b_ref[...], preferred_element_type=jnp.float32)
    acc = acc + bias_ref[...]                       # (tm,N) + (1,N), f32
    if activation == "relu":
        acc = jnp.maximum(acc, 0.0)
    elif activation == "sigmoid":
        acc = jax.nn.sigmoid(acc)
    o_ref[...] = acc.astype(o_ref.dtype)


def pallas_matmul_bias_act(a, b, bias, activation=None,
                           out_dtype=jnp.bfloat16, tm=256):
    """C = act(A @ B + bias); M tiled with a parallel grid; MXU operands in bf16."""
    M, K = a.shape
    K2, N = b.shape
    assert K == K2
    a = a.astype(jnp.bfloat16)
    b = b.astype(jnp.bfloat16)
    bias2d = bias.reshape(1, N).astype(jnp.float32)

    tm_eff = min(tm, _round_up(M, 8))
    Mp = _round_up(M, tm_eff)
    if Mp != M:
        a = jnp.pad(a, ((0, Mp - M), (0, 0)))
    grid = (Mp // tm_eff,)

    out_bytes = 2 if out_dtype == jnp.bfloat16 else 4
    cost = pl.CostEstimate(
        flops=2 * Mp * K * N,
        transcendentals=(Mp * N if activation == "sigmoid" else 0),
        bytes_accessed=Mp * K * 2 + K * N * 2 + N * 4 + Mp * N * out_bytes)

    kernel = functools.partial(_matmul_bias_act_kernel, activation=activation)
    out = pl.pallas_call(
        kernel,
        grid=grid,
        in_specs=[
            pl.BlockSpec((tm_eff, K), lambda i: (i, 0)),
            pl.BlockSpec((K, N), lambda i: (0, 0)),
            pl.BlockSpec((1, N), lambda i: (0, 0)),
        ],
        out_specs=pl.BlockSpec((tm_eff, N), lambda i: (i, 0)),
        out_shape=jax.ShapeDtypeStruct((Mp, N), out_dtype),
        compiler_params=pltpu.CompilerParams(
            dimension_semantics=("parallel",),
            vmem_limit_bytes=_VMEM_LIMIT),
        cost_estimate=cost,
    )(a, b, bias2d)
    return out[:M] if Mp != M else out


# ----------------------------------------------------------------------------
# Conv2D built on the Pallas matmul.  Channel-padded (lane-dense) end-to-end.
# ----------------------------------------------------------------------------
def conv2d_pallas(x_nhwc, w, b, stride=1, activation="relu"):
    """PyTorch Conv2d(3, stride, padding=1) + act; Cout zero-padded to 128 multiple."""
    B, H, W, C = x_nhwc.shape
    kh, kw, cin, cout = w.shape
    coutp = _round_up(max(cout, 128), 128)          # lane-dense output, kept end-to-end
    w, b = _pad_weight_channels(w, b, C, cout_pad_to=coutp)

    patches, Ho, Wo = _im2col(x_nhwc.astype(jnp.bfloat16), kh, stride)
    K = kh * kw * C
    patches = patches.reshape(B * Ho * Wo, K)
    wmat = w.reshape(K, coutp)
    Kp = _round_up(K, 8)                            # pad conv1's K = 27 -> 32
    if Kp > K:
        patches = jnp.pad(patches, ((0, 0), (0, Kp - K)))
        wmat = jnp.pad(wmat, ((0, Kp - K), (0, 0)))

    out = pallas_matmul_bias_act(patches, wmat, b, activation,
                                 out_dtype=jnp.bfloat16)
    return out.reshape(B, Ho, Wo, coutp)


# ----------------------------------------------------------------------------
# Pallas kernel 2: decoder tail — Conv2D(s=2,relu) + AdaptiveAvgPool2d(1)
#                  + Dense(+ReLU) + Dense + Sigmoid, fused in ONE launch.
# Patches arrive as (S, B, K); s is the conv-output spatial position.
# ----------------------------------------------------------------------------
def _conv_pool_mlp_kernel(p_ref, wc_ref, bc_ref, w1_ref, b1_ref, w2_ref, b2_ref,
                          o_ref, *, n_spatial):
    B = p_ref.shape[1]
    Cc = wc_ref.shape[1]
    acc = jnp.zeros((B, Cc), jnp.float32)
    for s in range(n_spatial):                      # tiny static trip count -> unrolled
        h = jnp.dot(p_ref[s], wc_ref[...],
                    preferred_element_type=jnp.float32) + bc_ref[...]
        acc = acc + jnp.maximum(h, 0.0)             # conv ReLU, accumulated for the mean
    pooled = acc * (1.0 / n_spatial)                # AdaptiveAvgPool2d(1) + Flatten
    h1 = jnp.dot(pooled.astype(jnp.bfloat16), w1_ref[...],
                 preferred_element_type=jnp.float32) + b1_ref[...]
    h1 = jnp.maximum(h1, 0.0)                       # Dense(128,64)+ReLU
    o = jnp.dot(h1.astype(jnp.bfloat16), w2_ref[...],
                preferred_element_type=jnp.float32) + b2_ref[...]
    o_ref[...] = jax.nn.sigmoid(o).astype(o_ref.dtype)   # Dense(64,wm) + Sigmoid


def decoder_head_pallas(conv_in_nhwc, wc, bc, w1, b1, w2, b2):
    B, H, W, C = conv_in_nhwc.shape
    wc, bc = _pad_weight_channels(wc, bc, C)
    patches, Ho, Wo = _im2col(conv_in_nhwc.astype(jnp.bfloat16), 3, 2)
    S, K = Ho * Wo, 9 * C
    Cc = wc.shape[-1]
    p = jnp.transpose(patches.reshape(B, S, K), (1, 0, 2))     # (S, B, K)
    H1, N = w1.shape[1], w2.shape[1]
    kernel = functools.partial(_conv_pool_mlp_kernel, n_spatial=S)
    return pl.pallas_call(
        kernel,
        grid=(1,),
        in_specs=[
            pl.BlockSpec((S, B, K), lambda i: (0, 0, 0)),
            pl.BlockSpec((K, Cc), lambda i: (0, 0)),
            pl.BlockSpec((1, Cc), lambda i: (0, 0)),
            pl.BlockSpec((Cc, H1), lambda i: (0, 0)),
            pl.BlockSpec((1, H1), lambda i: (0, 0)),
            pl.BlockSpec((H1, N), lambda i: (0, 0)),
            pl.BlockSpec((1, N), lambda i: (0, 0)),
        ],
        out_specs=pl.BlockSpec((B, N), lambda i: (0, 0)),
        out_shape=jax.ShapeDtypeStruct((B, N), jnp.float32),
        compiler_params=pltpu.CompilerParams(
            dimension_semantics=("arbitrary",),
            vmem_limit_bytes=_VMEM_LIMIT),
    )(p, wc.reshape(K, Cc).astype(jnp.bfloat16),
      bc.reshape(1, Cc).astype(jnp.float32),
      w1.astype(jnp.bfloat16), b1.reshape(1, H1).astype(jnp.float32),
      w2.astype(jnp.bfloat16), b2.reshape(1, N).astype(jnp.float32))


# ----------------------------------------------------------------------------
# Pallas kernel 3: STN localization tail — Conv2D(s=2,relu) + AdaptiveAvgPool2d(4)
#                  (identity at 4x4) + Flatten + Dense(2048,128,relu) + Linear(128,6).
# The Dense(2048,128) weight is pre-split into (S=16, Cc=128, 128) spatial-major
# blocks so the NCHW flatten becomes a per-position matmul accumulation.
# ----------------------------------------------------------------------------
def _loc_head_kernel(p_ref, wc_ref, bc_ref, w1_ref, b1_ref, w2_ref, b2_ref,
                     o_ref, *, n_spatial):
    B = p_ref.shape[1]
    H1 = w1_ref.shape[2]
    acc = jnp.zeros((B, H1), jnp.float32)
    for s in range(n_spatial):
        h = jnp.dot(p_ref[s], wc_ref[...],
                    preferred_element_type=jnp.float32) + bc_ref[...]
        h = jnp.maximum(h, 0.0)                     # conv3 ReLU
        acc = acc + jnp.dot(h.astype(jnp.bfloat16), w1_ref[s],
                            preferred_element_type=jnp.float32)
    h1 = jnp.maximum(acc + b1_ref[...], 0.0)        # Dense(2048,128)+ReLU
    o = jnp.dot(h1.astype(jnp.bfloat16), w2_ref[...],
                preferred_element_type=jnp.float32) + b2_ref[...]
    o_ref[...] = o.astype(o_ref.dtype)              # nn.Linear(128,6), no activation


def loc_head_pallas(conv_in_nhwc, wc, bc, w1_blocks, b1, w2, b2):
    B, H, W, C = conv_in_nhwc.shape
    wc, bc = _pad_weight_channels(wc, bc, C)
    patches, Ho, Wo = _im2col(conv_in_nhwc.astype(jnp.bfloat16), 3, 2)
    # TODO(synk): AdaptiveAvgPool2d(4) is fused only as an identity (4x4 features,
    #             i.e. 32x32 inputs); other resolutions need a real adaptive pool.
    assert Ho == 4 and Wo == 4
    S, K = Ho * Wo, 9 * C
    Cc = wc.shape[-1]
    p = jnp.transpose(patches.reshape(B, S, K), (1, 0, 2))     # (S, B, K)
    H1, N = w1_blocks.shape[2], w2.shape[1]
    kernel = functools.partial(_loc_head_kernel, n_spatial=S)
    return pl.pallas_call(
        kernel,
        grid=(1,),
        in_specs=[
            pl.BlockSpec((S, B, K), lambda i: (0, 0, 0)),
            pl.BlockSpec((K, Cc), lambda i: (0, 0)),
            pl.BlockSpec((1, Cc), lambda i: (0, 0)),
            pl.BlockSpec((S, Cc, H1), lambda i: (0, 0, 0)),
            pl.BlockSpec((1, H1), lambda i: (0, 0)),
            pl.BlockSpec((H1, N), lambda i: (0, 0)),
            pl.BlockSpec((1, N), lambda i: (0, 0)),
        ],
        out_specs=pl.BlockSpec((B, N), lambda i: (0, 0)),
        out_shape=jax.ShapeDtypeStruct((B, N), jnp.float32),
        compiler_params=pltpu.CompilerParams(
            dimension_semantics=("arbitrary",),
            vmem_limit_bytes=_VMEM_LIMIT),
    )(p, wc.reshape(K, Cc).astype(jnp.bfloat16),
      bc.reshape(1, Cc).astype(jnp.float32),
      w1_blocks.astype(jnp.bfloat16), b1.reshape(1, H1).astype(jnp.float32),
      w2.astype(jnp.bfloat16), b2.reshape(1, N).astype(jnp.float32))


# ----------------------------------------------------------------------------
# F.affine_grid / F.grid_sample  (align_corners=False, zeros padding, bilinear)
# TODO(synk): data-dependent bilinear gather kept in plain JAX; no clean
#             rectangular-tile Pallas equivalent for grid_sample at this size.
# ----------------------------------------------------------------------------
def affine_grid(theta, H, W):
    xs = (2.0 * (jnp.arange(W, dtype=jnp.float32) + 0.5) / W) - 1.0
    ys = (2.0 * (jnp.arange(H, dtype=jnp.float32) + 0.5) / H) - 1.0
    xg, yg = jnp.meshgrid(xs, ys)                       # (H,W)
    base = jnp.stack([xg, yg, jnp.ones_like(xg)], -1)   # (H,W,3) -> [x, y, 1]
    return jnp.einsum("hwk,bjk->bhwj", base, theta)     # (B,H,W,2) = (x, y)


def grid_sample_bilinear(img_nhwc, grid):
    B, H, W, C = img_nhwc.shape
    gx, gy = grid[..., 0], grid[..., 1]
    ix = ((gx + 1.0) * W - 1.0) / 2.0
    iy = ((gy + 1.0) * H - 1.0) / 2.0
    ix0 = jnp.floor(ix); iy0 = jnp.floor(iy)
    ix1 = ix0 + 1.0;     iy1 = iy0 + 1.0
    wx1 = ix - ix0; wx0 = 1.0 - wx1
    wy1 = iy - iy0; wy0 = 1.0 - wy1
    b_idx = jnp.arange(B)[:, None, None]

    def gather(iy_, ix_):
        valid = (ix_ >= 0) & (ix_ <= W - 1) & (iy_ >= 0) & (iy_ <= H - 1)
        ixc = jnp.clip(ix_, 0, W - 1).astype(jnp.int32)
        iyc = jnp.clip(iy_, 0, H - 1).astype(jnp.int32)
        vals = img_nhwc[b_idx, iyc, ixc]                # (B,H,W,C)
        return vals * valid[..., None].astype(vals.dtype)

    return (gather(iy0, ix0) * (wy0 * wx0)[..., None]
            + gather(iy0, ix1) * (wy0 * wx1)[..., None]
            + gather(iy1, ix0) * (wy1 * wx0)[..., None]
            + gather(iy1, ix1) * (wy1 * wx1)[..., None])


# ----------------------------------------------------------------------------
# Deterministic parameter init (matching the module's layer shapes)
# ----------------------------------------------------------------------------
def _conv_init(key, k, cin, cout, scale=0.05):
    w = scale * jax.random.normal(key, (k, k, cin, cout), jnp.float32)
    return w, jnp.zeros((cout,), jnp.float32)


def _dense_init(key, din, dout, scale=0.05):
    w = scale * jax.random.normal(key, (din, dout), jnp.float32)
    return w, jnp.zeros((dout,), jnp.float32)


def init_params(key, watermark_size):
    keys = jax.random.split(key, 16)
    p = {}
    # SpatialTransformerNetwork.localization
    p["loc_conv1"] = _conv_init(keys[0], 3, 3, 32)
    p["loc_conv2"] = _conv_init(keys[1], 3, 32, 64)
    p["loc_conv3"] = _conv_init(keys[2], 3, 64, 128)
    # Dense(2048, 128): stored as (16, 128, 128) spatial-major blocks so the fused
    # localization head applies it without an in-kernel NCHW flatten.
    # Correspondence: w1_blocks[s, c, :] == W_module[c*16 + s, :].
    w1 = 0.05 * jax.random.normal(keys[3], (128 * 4 * 4, 128), jnp.float32)
    w1_blocks = jnp.transpose(w1.reshape(128, 16, 128), (1, 0, 2))
    p["loc_fc1"] = (w1_blocks, jnp.zeros((128,), jnp.float32))
    # nn.Linear(128, 6): weight.zero_(), bias = identity affine (as in __init__)
    p["loc_fc2"] = (jnp.zeros((128, 6), jnp.float32),
                    jnp.array([1., 0., 0., 0., 1., 0.], jnp.float32))
    # text decoder
    p["dec_conv1"] = _conv_init(keys[4], 3, 3, 32)
    p["dec_conv2"] = _conv_init(keys[5], 3, 32, 32)
    p["dec_conv3"] = _conv_init(keys[6], 3, 32, 64)
    p["dec_conv4"] = _conv_init(keys[7], 3, 64, 64)
    p["dec_conv5"] = _conv_init(keys[8], 3, 64, 64)
    p["dec_conv6"] = _conv_init(keys[9], 3, 64, 128)
    p["dec_conv7"] = _conv_init(keys[10], 3, 128, 128)
    p["dec_fc1"] = _dense_init(keys[11], 128, 64)
    p["dec_fc2"] = _dense_init(keys[12], 64, watermark_size)
    return p


# ----------------------------------------------------------------------------
# Decoder.forward (watermark_type == 'text')
# ----------------------------------------------------------------------------
def decoder_forward(params, image_nchw):
    p = params
    x = image_nchw.astype(jnp.float32) - 0.5            # Decoder: image - 0.5
    x = jnp.transpose(x, (0, 2, 3, 1))                  # NCHW -> NHWC
    B, H, W, _ = x.shape

    # ---- SpatialTransformerNetwork ----
    t = conv2d_pallas(x, *p["loc_conv1"], stride=2, activation="relu")
    t = conv2d_pallas(t, *p["loc_conv2"], stride=2, activation="relu")
    # fused: Conv2D(s=2,relu) + AdaptiveAvgPool2d(4) + Flatten + Dense(2048,128,relu)
    #        + Linear(128,6)  in ONE pallas_call
    theta = loc_head_pallas(t, *p["loc_conv3"], *p["loc_fc1"], *p["loc_fc2"])
    theta = theta.reshape(B, 2, 3)
    grid = affine_grid(theta, H, W)
    x = grid_sample_bilinear(x, grid)                   # transformed image

    # ---- text decoder head ----
    d = conv2d_pallas(x, *p["dec_conv1"], stride=2, activation="relu")
    d = conv2d_pallas(d, *p["dec_conv2"], stride=1, activation="relu")
    d = conv2d_pallas(d, *p["dec_conv3"], stride=2, activation="relu")
    d = conv2d_pallas(d, *p["dec_conv4"], stride=1, activation="relu")
    d = conv2d_pallas(d, *p["dec_conv5"], stride=2, activation="relu")
    d = conv2d_pallas(d, *p["dec_conv6"], stride=2, activation="relu")
    # fused: Conv2D(s=2,relu) + AdaptiveAvgPool2d(1) + Flatten + Dense(128,64,relu)
    #        + Dense(64,wm) + Sigmoid  in ONE pallas_call
    out = decoder_head_pallas(d, *p["dec_conv7"], *p["dec_fc1"], *p["dec_fc2"])
    return out


if __name__ == "__main__":
    key = jax.random.PRNGKey(0)
    k_img, k_par = jax.random.split(key)

    B, C, H, W = 2, 3, 32, 32
    watermark_size = 30

    image = jax.random.uniform(k_img, (B, C, H, W), jnp.float32)  # NCHW like PyTorch
    params = init_params(k_par, watermark_size)

    fwd = jax.jit(decoder_forward)
    out = fwd(params, image)
    out = jax.block_until_ready(out)

    assert out.shape == (B, watermark_size)
    assert bool(jnp.all(jnp.isfinite(out)))
    assert bool(jnp.all((out >= 0.0) & (out <= 1.0)))   # sigmoid output range
    print("KERNEL_OK")
</pallas_src>

<mosaic_0001>
module attributes {stable_mosaic.version = 11 : i64} {
  func.func @_matmul_bias_act_kernel(%arg0: i32, %arg1: memref<256x32xbf16, #tpu.memory_space<vmem>>, %arg2: memref<32x128xbf16, #tpu.memory_space<vmem>>, %arg3: memref<1x128xf32, #tpu.memory_space<vmem>>, %arg4: memref<256x128xbf16, #tpu.memory_space<vmem>>) attributes {dimension_semantics = [#tpu.dimension_semantics<parallel>], iteration_bounds = array<i64: 2>, scalar_prefetch = 0 : i64, scratch_operands = 0 : i64, tpu.core_type = #tpu.core_type<tc>, window_params = [{transform_indices = @transform_0, window_bounds = array<i64: 256, 32>}, {pipeline_mode = #tpu.pipeline_mode<synchronous>, transform_indices = @transform_1, window_bounds = array<i64: 32, 128>}, {pipeline_mode = #tpu.pipeline_mode<synchronous>, transform_indices = @transform_2, window_bounds = array<i64: 1, 128>}, {transform_indices = @transform_3, window_bounds = array<i64: 256, 128>}]} {
    %c0 = arith.constant 0 : index
    %c0_0 = arith.constant 0 : index
    %0 = vector.load %arg1[%c0, %c0_0] : memref<256x32xbf16, #tpu.memory_space<vmem>>, vector<256x32xbf16>
    %c0_1 = arith.constant 0 : index
    %c0_2 = arith.constant 0 : index
    %1 = vector.load %arg2[%c0_1, %c0_2] : memref<32x128xbf16, #tpu.memory_space<vmem>>, vector<32x128xbf16>
    %cst = arith.constant dense<0.000000e+00> : vector<256x128xf32>
    %2 = tpu.matmul %0, %1, %cst {dimension_numbers = #tpu.dot_dimension_numbers<[1], [0], [0], [1], [0, 0, 1, 1], [], []>} : vector<256x32xbf16>, vector<32x128xbf16>, vector<256x128xf32> -> vector<256x128xf32>
    %c0_3 = arith.constant 0 : index
    %c0_4 = arith.constant 0 : index
    %3 = vector.load %arg3[%c0_3, %c0_4] : memref<1x128xf32, #tpu.memory_space<vmem>>, vector<1x128xf32>
    %4 = vector.broadcast %3 : vector<1x128xf32> to vector<256x128xf32>
    %5 = arith.addf %2, %4 : vector<256x128xf32>
    %cst_5 = arith.constant 0.000000e+00 : f32
    %6 = vector.broadcast %cst_5 : f32 to vector<256x128xf32>
    %7 = arith.maximumf %5, %6 : vector<256x128xf32>
    %8 = arith.truncf %7 : vector<256x128xf32> to vector<256x128xbf16>
    %c0_6 = arith.constant 0 : index
    %c0_7 = arith.constant 0 : index
    %9 = vector.load %arg4[%c0_6, %c0_7] : memref<256x128xbf16, #tpu.memory_space<vmem>>, vector<256x128xbf16>
    tpu.vector_store %arg4[%c0_6, %c0_7], %8 {strides = array<i32>} : memref<256x128xbf16, #tpu.memory_space<vmem>>, vector<256x128xbf16>,
    return
  }
  func.func @transform_0(%arg0: i32) -> (i32, i32) {
    %c0_i32 = arith.constant 0 : i32
    %c0_i32_0 = arith.constant 0 : i32
    return %arg0, %c0_i32 : i32, i32
  }
  func.func @transform_1(%arg0: i32) -> (i32, i32) {
    %c0_i32 = arith.constant 0 : i32
    %c0_i32_0 = arith.constant 0 : i32
    %c0_i32_1 = arith.constant 0 : i32
    return %c0_i32, %c0_i32_0 : i32, i32
  }
  func.func @transform_2(%arg0: i32) -> (i32, i32) {
    %c0_i32 = arith.constant 0 : i32
    %c0_i32_0 = arith.constant 0 : i32
    %c0_i32_1 = arith.constant 0 : i32
    return %c0_i32, %c0_i32_0 : i32, i32
  }
  func.func @transform_3(%arg0: i32) -> (i32, i32) {
    %c0_i32 = arith.constant 0 : i32
    %c0_i32_0 = arith.constant 0 : i32
    return %arg0, %c0_i32 : i32, i32
  }
}

module attributes {stable_mosaic.version = 11 : i64} {
  func.func @_matmul_bias_act_kernel(%arg0: i32, %arg1: memref<128x1152xbf16, #tpu.memory_space<vmem>>, %arg2: memref<1152x128xbf16, #tpu.memory_space<vmem>>, %arg3: memref<1x128xf32, #tpu.memory_space<vmem>>, %arg4: memref<128x128xbf16, #tpu.memory_space<vmem>>) attributes {dimension_semantics = [#tpu.dimension_semantics<parallel>], iteration_bounds = array<i64: 1>, scalar_prefetch = 0 : i64, scratch_operands = 0 : i64, tpu.core_type = #tpu.core_type<tc>, window_params = [{transform_indices = @transform_0, window_bounds = array<i64: 128, 1152>}, {pipeline_mode = #tpu.pipeline_mode<synchronous>, transform_indices = @transform_1, window_bounds = array<i64: 1152, 128>}, {pipeline_mode = #tpu.pipeline_mode<synchronous>, transform_indices = @transform_2, window_bounds = array<i64: 1, 128>}, {transform_indices = @transform_3, window_bounds = array<i64: 128, 128>}]} {
    %c0 = arith.constant 0 : index
    %c0_0 = arith.constant 0 : index
    %0 = vector.load %arg1[%c0, %c0_0] : memref<128x1152xbf16, #tpu.memory_space<vmem>>, vector<128x1152xbf16>
    %c0_1 = arith.constant 0 : index
    %c0_2 = arith.constant 0 : index
    %1 = vector.load %arg2[%c0_1, %c0_2] : memref<1152x128xbf16, #tpu.memory_space<vmem>>, vector<1152x128xbf16>
    %cst = arith.constant dense<0.000000e+00> : vector<128x128xf32>
    %2 = tpu.matmul %0, %1, %cst {dimension_numbers = #tpu.dot_dimension_numbers<[1], [0], [0], [1], [0, 0, 1, 1], [], []>} : vector<128x1152xbf16>, vector<1152x128xbf16>, vector<128x128xf32> -> vector<128x128xf32>
    %c0_3 = arith.constant 0 : index
    %c0_4 = arith.constant 0 : index
    %3 = vector.load %arg3[%c0_3, %c0_4] : memref<1x128xf32, #tpu.memory_space<vmem>>, vector<1x128xf32>
    %4 = vector.broadcast %3 : vector<1x128xf32> to vector<128x128xf32>
    %5 = arith.addf %2, %4 : vector<128x128xf32>
    %cst_5 = arith.constant 0.000000e+00 : f32
    %6 = vector.broadcast %cst_5 : f32 to vector<128x128xf32>
    %7 = arith.maximumf %5, %6 : vector<128x128xf32>
    %8 = arith.truncf %7 : vector<128x128xf32> to vector<128x128xbf16>
    %c0_6 = arith.constant 0 : index
    %c0_7 = arith.constant 0 : index
    %9 = vector.load %arg4[%c0_6, %c0_7] : memref<128x128xbf16, #tpu.memory_space<vmem>>, vector<128x128xbf16>
    tpu.vector_store %arg4[%c0_6, %c0_7], %8 {strides = array<i32>} : memref<128x128xbf16, #tpu.memory_space<vmem>>, vector<128x128xbf16>,
    return
  }
  func.func @transform_0(%arg0: i32) -> (i32, i32) {
    %c0_i32 = arith.constant 0 : i32
    %c0_i32_0 = arith.constant 0 : i32
    return %arg0, %c0_i32 : i32, i32
  }
  func.func @transform_1(%arg0: i32) -> (i32, i32) {
    %c0_i32 = arith.constant 0 : i32
    %c0_i32_0 = arith.constant 0 : i32
    %c0_i32_1 = arith.constant 0 : i32
    return %c0_i32, %c0_i32_0 : i32, i32
  }
  func.func @transform_2(%arg0: i32) -> (i32, i32) {
    %c0_i32 = arith.constant 0 : i32
    %c0_i32_0 = arith.constant 0 : i32
    %c0_i32_1 = arith.constant 0 : i32
    return %c0_i32, %c0_i32_0 : i32, i32
  }
  func.func @transform_3(%arg0: i32) -> (i32, i32) {
    %c0_i32 = arith.constant 0 : i32
    %c0_i32_0 = arith.constant 0 : i32
    return %arg0, %c0_i32 : i32, i32
  }
}

module attributes {stable_mosaic.version = 11 : i64} {
  func.func @_loc_head_kernel(%arg0: i32, %arg1: memref<16x2x1152xbf16, #tpu.memory_space<vmem>>, %arg2: memref<1152x128xbf16, #tpu.memory_space<vmem>>, %arg3: memref<1x128xf32, #tpu.memory_space<vmem>>, %arg4: memref<16x128x128xbf16, #tpu.memory_space<vmem>>, %arg5: memref<1x128xf32, #tpu.memory_space<vmem>>, %arg6: memref<128x6xbf16, #tpu.memory_space<vmem>>, %arg7: memref<1x6xf32, #tpu.memory_space<vmem>>, %arg8: memref<2x6xf32, #tpu.memory_space<vmem>>) attributes {dimension_semantics = [#tpu.dimension_semantics<arbitrary>], iteration_bounds = array<i64: 1>, scalar_prefetch = 0 : i64, scratch_operands = 0 : i64, tpu.core_type = #tpu.core_type<tc>, window_params = [{pipeline_mode = #tpu.pipeline_mode<synchronous>, transform_indices = @transform_0, window_bounds = array<i64: 16, 2, 1152>}, {pipeline_mode = #tpu.pipeline_mode<synchronous>, transform_indices = @transform_1, window_bounds = array<i64: 1152, 128>}, {pipeline_mode = #tpu.pipeline_mode<synchronous>, transform_indices = @transform_2, window_bounds = array<i64: 1, 128>}, {pipeline_mode = #tpu.pipeline_mode<synchronous>, transform_indices = @transform_3, window_bounds = array<i64: 16, 128, 128>}, {pipeline_mode = #tpu.pipeline_mode<synchronous>, transform_indices = @transform_4, window_bounds = array<i64: 1, 128>}, {pipeline_mode = #tpu.pipeline_mode<synchronous>, transform_indices = @transform_5, window_bounds = array<i64: 128, 6>}, {pipeline_mode = #tpu.pipeline_mode<synchronous>, transform_indices = @transform_6, window_bounds = array<i64: 1, 6>}, {pipeline_mode = #tpu.pipeline_mode<synchronous>, transform_indices = @transform_7, window_bounds = array<i64: 2, 6>}]} {
    %cst = arith.constant 0.000000e+00 : f32
    %0 = vector.broadcast %cst : f32 to vector<2x128xf32>
    %c0 = arith.constant 0 : index
    %c0_0 = arith.constant 0 : index
    %c0_1 = arith.constant 0 : index
    %1 = vector.load %arg1[%c0, %c0_0, %c0_1] : memref<16x2x1152xbf16, #tpu.memory_space<vmem>>, vector<1x2x1152xbf16>
    %2 = vector.shape_cast %1 : vector<1x2x1152xbf16> to vector<2x1152xbf16>
    %c0_2 = arith.constant 0 : index
    %c0_3 = arith.constant 0 : index
    %3 = vector.load %arg2[%c0_2, %c0_3] : memref<1152x128xbf16, #tpu.memory_space<vmem>>, vector<1152x128xbf16>
    %cst_4 = arith.constant dense<0.000000e+00> : vector<2x128xf32>
    %4 = tpu.matmul %2, %3, %cst_4 {dimension_numbers = #tpu.dot_dimension_numbers<[1], [0], [0], [1], [0, 0, 1, 1], [], []>} : vector<2x1152xbf16>, vector<1152x128xbf16>, vector<2x128xf32> -> vector<2x128xf32>
    %c0_5 = arith.constant 0 : index
    %c0_6 = arith.constant 0 : index
    %5 = vector.load %arg3[%c0_5, %c0_6] : memref<1x128xf32, #tpu.memory_space<vmem>>, vector<1x128xf32>
    %6 = vector.broadcast %5 : vector<1x128xf32> to vector<2x128xf32>
    %7 = arith.addf %4, %6 : vector<2x128xf32>
    %cst_7 = arith.constant 0.000000e+00 : f32
    %8 = vector.broadcast %cst_7 : f32 to vector<2x128xf32>
    %9 = arith.maximumf %7, %8 : vector<2x128xf32>
    %10 = arith.truncf %9 : vector<2x128xf32> to vector<2x128xbf16>
    %c0_8 = arith.constant 0 : index
    %c0_9 = arith.constant 0 : index
    %c0_10 = arith.constant 0 : index
    %11 = vector.load %arg4[%c0_8, %c0_9, %c0_10] : memref<16x128x128xbf16, #tpu.memory_space<vmem>>, vector<1x128x128xbf16>
    %12 = vector.shape_cast %11 : vector<1x128x128xbf16> to vector<128x128xbf16>
    %cst_11 = arith.constant dense<0.000000e+00> : vector<2x128xf32>
    %13 = tpu.matmul %10, %12, %cst_11 {dimension_numbers = #tpu.dot_dimension_numbers<[1], [0], [0], [1], [0, 0, 1, 1], [], []>} : vector<2x128xbf16>, vector<128x128xbf16>, vector<2x128xf32> -> vector<2x128xf32>
    %14 = arith.addf %0, %13 : vector<2x128xf32>
    %c1 = arith.constant 1 : index
    %c0_12 = arith.constant 0 : index
    %c0_13 = arith.constant 0 : index
    %15 = vector.load %arg1[%c1, %c0_12, %c0_13] : memref<16x2x1152xbf16, #tpu.memory_space<vmem>>, vector<1x2x1152xbf16>
    %16 = vector.shape_cast %15 : vector<1x2x1152xbf16> to vector<2x1152xbf16>
    %c0_14 = arith.constant 0 : index
    %c0_15 = arith.constant 0 : index
    %17 = vector.load %arg2[%c0_14, %c0_15] : memref<1152x128xbf16, #tpu.memory_space<vmem>>, vector<1152x128xbf16>
    %cst_16 = arith.constant dense<0.000000e+00> : vector<2x128xf32>
    %18 = tpu.matmul %16, %17, %cst_16 {dimension_numbers = #tpu.dot_dimension_numbers<[1], [0], [0], [1], [0, 0, 1, 1], [], []>} : vector<2x1152xbf16>, vector<1152x128xbf16>, vector<2x128xf32> -> vector<2x128xf32>
    %c0_17 = arith.constant 0 : index
    %c0_18 = arith.constant 0 : index
    %19 = vector.load %arg3[%c0_17, %c0_18] : memref<1x128xf32, #tpu.memory_space<vmem>>, vector<1x128xf32>
    %20 = vector.broadcast %19 : vector<1x128xf32> to vector<2x128xf32>
    %21 = arith.addf %18, %20 : vector<2x128xf32>
    %cst_19 = arith.constant 0.000000e+00 : f32
    %22 = vector.broadcast %cst_19 : f32 to vector<2x128xf32>
    %23 = arith.maximumf %21, %22 : vector<2x128xf32>
    %24 = arith.truncf %23 : vector<2x128xf32> to vector<2x128xbf16>
    %c1_20 = arith.constant 1 : index
    %c0_21 = arith.constant 0 : index
    %c0_22 = arith.constant 0 : index
    %25 = vector.load %arg4[%c1_20, %c0_21, %c0_22] : memref<16x128x128xbf16, #tpu.memory_space<vmem>>, vector<1x128x128xbf16>
    %26 = vector.shape_cast %25 : vector<1x128x128xbf16> to vector<128x128xbf16>
    %cst_23 = arith.constant dense<0.000000e+00> : vector<2x128xf32>
    %27 = tpu.matmul %24, %26, %cst_23 {dimension_numbers = #tpu.dot_dimension_numbers<[1], [0], [0], [1], [0, 0, 1, 1], [], []>} : vector<2x128xbf16>, vector<128x128xbf16>, vector<2x128xf32> -> vector<2x128xf32>
    %28 = arith.addf %14, %27 : vector<2x128xf32>
    %c2 = arith.constant 2 : index
    %c0_24 = arith.constant 0 : index
    %c0_25 = arith.constant 0 : index
    %29 = vector.load %arg1[%c2, %c0_24, %c0_25] : memref<16x2x1152xbf16, #tpu.memory_space<vmem>>, vector<1x2x1152xbf16>
    %30 = vector.shape_cast %29 : vector<1x2x1152xbf16> to vector<2x1152xbf16>
    %c0_26 = arith.constant 0 : index
    %c0_27 = arith.constant 0 : index
    %31 = vector.load %arg2[%c0_26, %c0_27] : memref<1152x128xbf16, #tpu.memory_space<vmem>>, vector<1152x128xbf16>
    %cst_28 = arith.constant dense<0.000000e+00> : vector<2x128xf32>
    %32 = tpu.matmul %30, %31, %cst_28 {dimension_numbers = #tpu.dot_dimension_numbers<[1], [0], [0], [1], [0, 0, 1, 1], [], []>} : vector<2x1152xbf16>, vector<1152x128xbf16>, vector<2x128xf32> -> vector<2x128xf32>
    %c0_29 = arith.constant 0 : index
    %c0_30 = arith.constant 0 : index
    %33 = vector.load %arg3[%c0_29, %c0_30] : memref<1x128xf32, #tpu.memory_space<vmem>>, vector<1x128xf32>
    %34 = vector.broadcast %33 : vector<1x128xf32> to vector<2x128xf32>
    %35 = arith.addf %32, %34 : vector<2x128xf32>
    %cst_31 = arith.constant 0.000000e+00 : f32
    %36 = vector.broadcast %cst_31 : f32 to vector<2x128xf32>
    %37 = arith.maximumf %35, %36 : vector<2x128xf32>
    %38 = arith.truncf %37 : vector<2x128xf32> to vector<2x128xbf16>
    %c2_32 = arith.constant 2 : index
    %c0_33 = arith.constant 0 : index
    %c0_34 = arith.constant 0 : index
    %39 = vector.load %arg4[%c2_32, %c0_33, %c0_34] : memref<16x128x128xbf16, #tpu.memory_space<vmem>>, vector<1x128x128xbf16>
    %40 = vector.shape_cast %39 : vector<1x128x128xbf16> to vector<128x128xbf16>
    %cst_35 = arith.constant dense<0.000000e+00> : vector<2x128xf32>
    %41 = tpu.matmul %38, %40, %cst_35 {dimension_numbers = #tpu.dot_dimension_numbers<[1], [0], [0], [1], [0, 0, 1, 1], [], []>} : vector<2x128xbf16>, vector<128x128xbf16>, vector<2x128xf32> -> vector<2x128xf32>
    %42 = arith.addf %28, %41 : vector<2x128xf32>
    %c3 = arith.constant 3 : index
    %c0_36 = arith.constant 0 : index
    %c0_37 = arith.constant 0 : index
    %43 = vector.load %arg1[%c3, %c0_36, %c0_37] : memref<16x2x1152xbf16, #tpu.memory_space<vmem>>, vector<1x2x1152xbf16>
    %44 = vector.shape_cast %43 : vector<1x2x1152xbf16> to vector<2x1152xbf16>
    %c0_38 = arith.constant 0 : index
    %c0_39 = arith.constant 0 : index
    %45 = vector.load %arg2[%c0_38, %c0_39] : memref<1152x128xbf16, #tpu.memory_space<vmem>>, vector<1152x128xbf16>
    %cst_40 = arith.constant dense<0.000000e+00> : vector<2x128xf32>
    %46 = tpu.matmul %44, %45, %cst_40 {dimension_numbers = #tpu.dot_dimension_numbers<[1], [0], [0], [1], [0, 0, 1, 1], [], []>} : vector<2x1152xbf16>, vector<1152x128xbf16>, vector<2x128xf32> -> vector<2x128xf32>
    %c0_41 = arith.constant 0 : index
    %c0_42 = arith.constant 0 : index
    %47 = vector.load %arg3[%c0_41, %c0_42] : memref<1x128xf32, #tpu.memory_space<vmem>>, vector<1x128xf32>
    %48 = vector.broadcast %47 : vector<1x128xf32> to vector<2x128xf32>
    %49 = arith.addf %46, %48 : vector<2x128xf32>
    %cst_43 = arith.constant 0.000000e+00 : f32
    %50 = vector.broadcast %cst_43 : f32 to vector<2x128xf32>
    %51 = arith.maximumf %49, %50 : vector<2x128xf32>
    %52 = arith.truncf %51 : vector<2x128xf32> to vector<2x128xbf16>
    %c3_44 = arith.constant 3 : index
    %c0_45 = arith.constant 0 : index
    %c0_46 = arith.constant 0 : index
    %53 = vector.load %arg4[%c3_44, %c0_45, %c0_46] : memref<16x128x128xbf16, #tpu.memory_space<vmem>>, vector<1x128x128xbf16>
    %54 = vector.shape_cast %53 : vector<1x128x128xbf16> to vector<128x128xbf16>
    %cst_47 = arith.constant dense<0.000000e+00> : vector<2x128xf32>
    %55 = tpu.matmul %52, %54, %cst_47 {dimension_numbers = #tpu.dot_dimension_numbers<[1], [0], [0], [1], [0, 0, 1, 1], [], []>} : vector<2x128xbf16>, vector<128x128xbf16>, vector<2x128xf32> -> vector<2x128xf32>
    %56 = arith.addf %42, %55 : vector<2x128xf32>
    %c4 = arith.constant 4 : index
    %c0_48 = arith.constant 0 : index
    %c0_49 = arith.constant 0 : index
    %57 = vector.load %arg1[%c4, %c0_48, %c0_49] : memref<16x2x1152xbf16, #tpu.memory_space<vmem>>, vector<1x2x1152xbf16>
    %58 = vector.shape_cast %57 : vector<1x2x1152xbf16> to vector<2x1152xbf16>
    %c0_50 = arith.constant 0 : index
    %c0_51 = arith.constant 0 : index
    %59 = vector.load %arg2[%c0_50, %c0_51] : memref<1152x128xbf16, #tpu.memory_space<vmem>>, vector<1152x128xbf16>
    %cst_52 = arith.constant dense<0.000000e+00> : vector<2x128xf32>
    %60 = tpu.matmul %58, %59, %cst_52 {dimension_numbers = #tpu.dot_dimension_numbers<[1], [0], [0], [1], [0, 0, 1, 1], [], []>} : vector<2x1152xbf16>, vector<1152x128xbf16>, vector<2x128xf32> -> vector<2x128xf32>
    %c0_53 = arith.constant 0 : index
    %c0_54 = arith.constant 0 : index
    %61 = vector.load %arg3[%c0_53, %c0_54] : memref<1x128xf32, #tpu.memory_space<vmem>>, vector<1x128xf32>
    %62 = vector.broadcast %61 : vector<1x128xf32> to vector<2x128xf32>
    %63 = arith.addf %60, %62 : vector<2x128xf32>
    %cst_55 = arith.constant 0.000000e+00 : f32
    %64 = vector.broadcast %cst_55 : f32 to vector<2x128xf32>
    %65 = arith.maximumf %63, %64 : vector<2x128xf32>
    %66 = arith.truncf %65 : vector<2x128xf32> to vector<2x128xbf16>
    %c4_56 = arith.constant 4 : index
    %c0_57 = arith.constant 0 : index
    %c0_58 = arith.constant 0 : index
    %67 = vector.load %arg4[%c4_56, %c0_57, %c0_58] : memref<16x128x128xbf16, #tpu.memory_space<vmem>>, vector<1x128x128xbf16>
    %68 = vector.shape_cast %67 : vector<1x128x128xbf16> to vector<128x128xbf16>
    %cst_59 = arith.constant dense<0.000000e+00> : vector<2x128xf32>
    %69 = tpu.matmul %66, %68, %cst_59 {dimension_numbers = #tpu.dot_dimension_numbers<[1], [0], [0], [1], [0, 0, 1, 1], [], []>} : vector<2x128xbf16>, vector<128x128xbf16>, vector<2x128xf32> -> vector<2x128xf32>
    %70 = arith.addf %56, %69 : vector<2x128xf32>
    %c5 = arith.constant 5 : index
    %c0_60 = arith.constant 0 : index
    %c0_61 = arith.constant 0 : index
    %71 = vector.load %arg1[%c5, %c0_60, %c0_61] : memref<16x2x1152xbf16, #tpu.memory_space<vmem>>, vector<1x2x1152xbf16>
    %72 = vector.shape_cast %71 : vector<1x2x1152xbf16> to vector<2x1152xbf16>
    %c0_62 = arith.constant 0 : index
    %c0_63 = arith.constant 0 : index
    %73 = vector.load %arg2[%c0_62, %c0_63] : memref<1152x128xbf16, #tpu.memory_space<vmem>>, vector<1152x128xbf16>
    %cst_64 = arith.constant dense<0.000000e+00> : vector<2x128xf32>
    %74 = tpu.matmul %72, %73, %cst_64 {dimension_numbers = #tpu.dot_dimension_numbers<[1], [0], [0], [1], [0, 0, 1, 1], [], []>} : vector<2x1152xbf16>, vector<1152x128xbf16>, vector<2x128xf32> -> vector<2x128xf32>
    %c0_65 = arith.constant 0 : index
    %c0_66 = arith.constant 0 : index
    %75 = vector.load %arg3[%c0_65, %c0_66] : memref<1x128xf32, #tpu.memory_space<vmem>>, vector<1x128xf32>
    %76 = vector.broadcast %75 : vector<1x128xf32> to vector<2x128xf32>
    %77 = arith.addf %74, %76 : vector<2x128xf32>
    %cst_67 = arith.constant 0.000000e+00 : f32
    %78 = vector.broadcast %cst_67 : f32 to vector<2x128xf32>
    %79 = arith.maximumf %77, %78 : vector<2x128xf32>
    %80 = arith.truncf %79 : vector<2x128xf32> to vector<2x128xbf16>
    %c5_68 = arith.constant 5 : index
    %c0_69 = arith.constant 0 : index
    %c0_70 = arith.constant 0 : index
    %81 = vector.load %arg4[%c5_68, %c0_69, %c0_70] : memref<16x128x128xbf16, #tpu.memory_space<vmem>>, vector<1x128x128xbf16>
    %82 = vector.shape_cast %81 : vector<1x128x128xbf16> to vector<128x128xbf16>
    %cst_71 = arith.constant dense<0.000000e+00> : vector<2x128xf32>
    %83 = tpu.matmul %80, %82, %cst_71 {dimension_numbers = #tpu.dot_dimension_numbers<[1], [0], [0], [1], [0, 0, 1, 1], [], []>} : vector<2x128xbf16>, vector<128x128xbf16>, vector<2x128xf32> -> vector<2x128xf32>
    %84 = arith.addf %70, %83 : vector<2x128xf32>
    %c6 = arith.constant 6 : index
    %c0_72 = arith.constant 0 : index
    %c0_73 = arith.constant 0 : index
    %85 = vector.load %arg1[%c6, %c0_72, %c0_73] : memref<16x2x1152xbf16, #tpu.memory_space<vmem>>, vector<1x2x1152xbf16>
    %86 = vector.shape_cast %85 : vector<1x2x1152xbf16> to vector<2x1152xbf16>
    %c0_74 = arith.constant 0 : index
    %c0_75 = arith.constant 0 : index
    %87 = vector.load %arg2[%c0_74, %c0_75] : memref<1152x128xbf16, #tpu.memory_space<vmem>>, vector<1152x128xbf16>
    %cst_76 = arith.constant dense<0.000000e+00> : vector<2x128xf32>
    %88 = tpu.matmul %86, %87, %cst_76 {dimension_numbers = #tpu.dot_dimension_numbers<[1], [0], [0], [1], [0, 0, 1, 1], [], []>} : vector<2x1152xbf16>, vector<1152x128xbf16>, vector<2x128xf32> -> vector<2x128xf32>
    %c0_77 = arith.constant 0 : index
    %c0_78 = arith.constant 0 : index
    %89 = vector.load %arg3[%c0_77, %c0_78] : memref<1x128xf32, #tpu.memory_space<vmem>>, vector<1x128xf32>
    %90 = vector.broadcast %89 : vector<1x128xf32> to vector<2x128xf32>
    %91 = arith.addf %88, %90 : vector<2x128xf32>
    %cst_79 = arith.constant 0.000000e+00 : f32
    %92 = vector.broadcast %cst_79 : f32 to vector<2x128xf32>
    %93 = arith.maximumf %91, %92 : vector<2x128xf32>
    %94 = arith.truncf %93 : vector<2x128xf32> to vector<2x128xbf16>
    %c6_80 = arith.constant 6 : index
    %c0_81 = arith.constant 0 : index
    %c0_82 = arith.constant 0 : index
    %95 = vector.load %arg4[%c6_80, %c0_81, %c0_82] : memref<16x128x128xbf16, #tpu.memory_space<vmem>>, vector<1x128x128xbf16>
    %96 = vector.shape_cast %95 : vector<1x128x128xbf16> to vector<128x128xbf16>
    %cst_83 = arith.constant dense<0.000000e+00> : vector<2x128xf32>
    %97 = tpu.matmul %94, %96, %cst_83 {dimension_numbers = #tpu.dot_dimension_numbers<[1], [0], [0], [1], [0, 0, 1, 1], [], []>} : vector<2x128xbf16>, vector<128x128xbf16>, vector<2x128xf32> -> vector<2x128xf32>
    %98 = arith.addf %84, %97 : vector<2x128xf32>
    %c7 = arith.constant 7 : index
    %c0_84 = arith.constant 0 : index
    %c0_85 = arith.constant 0 : index
    %99 = vector.load %arg1[%c7, %c0_84, %c0_85] : memref<16x2x1152xbf16, #tpu.memory_space<vmem>>, vector<1x2x1152xbf16>
    %100 = vector.shape_cast %99 : vector<1x2x1152xbf16> to vector<2x1152xbf16>
    %c0_86 = arith.constant 0 : index
    %c0_87 = arith.constant 0 : index
    %101 = vector.load %arg2[%c0_86, %c0_87] : memref<1152x128xbf16, #tpu.memory_space<vmem>>, vector<1152x128xbf16>
    %cst_88 = arith.constant dense<0.000000e+00> : vector<2x128xf32>
    %102 = tpu.matmul %100, %101, %cst_88 {dimension_numbers = #tpu.dot_dimension_numbers<[1], [0], [0], [1], [0, 0, 1, 1], [], []>} : vector<2x1152xbf16>, vector<1152x128xbf16>, vector<2x128xf32> -> vector<2x128xf32>
    %c0_89 = arith.constant 0 : index
    %c0_90 = arith.constant 0 : index
    %103 = vector.load %arg3[%c0_89, %c0_90] : memref<1x128xf32, #tpu.memory_space<vmem>>, vector<1x128xf32>
    %104 = vector.broadcast %103 : vector<1x128xf32> to vector<2x128xf32>
    %105 = arith.addf %102, %104 : vector<2x128xf32>
    %cst_91 = arith.constant 0.000000e+00 : f32
    %106 = vector.broadcast %cst_91 : f32 to vector<2x128xf32>
    %107 = arith.maximumf %105, %106 : vector<2x128xf32>
    %108 = arith.truncf %107 : vector<2x128xf32> to vector<2x128xbf16>
    %c7_92 = arith.constant 7 : index
    %c0_93 = arith.constant 0 : index
    %c0_94 = arith.constant 0 : index
    %109 = vector.load %arg4[%c7_92, %c0_93, %c0_94] : memref<16x128x128xbf16, #tpu.memory_space<vmem>>, vector<1x128x128xbf16>
    %110 = vector.shape_cast %109 : vector<1x128x128xbf16> to vector<128x128xbf16>
    %cst_95 = arith.constant dense<0.000000e+00> : vector<2x128xf32>
    %111 = tpu.matmul %108, %110, %cst_95 {dimension_numbers = #tpu.dot_dimension_numbers<[1], [0], [0], [1], [0, 0, 1, 1], [], []>} : vector<2x128xbf16>, vector<128x128xbf16>, vector<2x128xf32> -> vector<2x128xf32>
    %112 = arith.addf %98, %111 : vector<2x128xf32>
    %c8 = arith.constant 8 : index
    %c0_96 = arith.constant 0 : index
    %c0_97 = arith.constant 0 : index
    %113 = vector.load %arg1[%c8, %c0_96, %c0_97] : memref<16x2x1152xbf16, #tpu.memory_space<vmem>>, vector<1x2x1152xbf16>
    %114 = vector.shape_cast %113 : vector<1x2x1152xbf16> to vector<2x1152xbf16>
    %c0_98 = arith.constant 0 : index
    %c0_99 = arith.constant 0 : index
    %115 = vector.load %arg2[%c0_98, %c0_99] : memref<1152x128xbf16, #tpu.memory_space<vmem>>, vector<1152x128xbf16>
    %cst_100 = arith.constant dense<0.000000e+00> : vector<2x128xf32>
    %116 = tpu.matmul %114, %115, %cst_100 {dimension_numbers = #tpu.dot_dimension_numbers<[1], [0], [0], [1], [0, 0, 1, 1], [], []>} : vector<2x1152xbf16>, vector<1152x128xbf16>, vector<2x128xf32> -> vector<2x128xf32>
    %c0_101 = arith.constant 0 : index
    %c0_102 = arith.constant 0 : index
    %117 = vector.load %arg3[%c0_101, %c0_102] : memref<1x128xf32, #tpu.memory_space<vmem>>, vector<1x128xf32>
    %118 = vector.broadcast %117 : vector<1x128xf32> to vector<2x128xf32>
    %119 = arith.addf %116, %118 : vector<2x128xf32>
    %cst_103 = arith.constant 0.000000e+00 : f32
    %120 = vector.broadcast %cst_103 : f32 to vector<2x128xf32>
    %121 = arith.maximumf %119, %120 : vector<2x128xf32>
    %122 = arith.truncf %121 : vector<2x128xf32> to vector<2x128xbf16>
    %c8_104 = arith.constant 8 : index
    %c0_105 = arith.constant 0 : index
    %c0_106 = arith.constant 0 : index
    %123 = vector.load %arg4[%c8_104, %c0_105, %c0_106] : memref<16x128x128xbf16, #tpu.memory_space<vmem>>, vector<1x128x128xbf16>
    %124 = vector.shape_cast %123 : vector<1x128x128xbf16> to vector<128x128xbf16>
    %cst_107 = arith.constant dense<0.000000e+00> : vector<2x128xf32>
    %125 = tpu.matmul %122, %124, %cst_107 {dimension_numbers = #tpu.dot_dimension_numbers<[1], [0], [0], [1], [0, 0, 1, 1], [], []>} : vector<2x128xbf16>, vector<128x128xbf16>, vector<2x128xf32> -> vector<2x128xf32>
    %126 = arith.addf %112, %125 : vector<2x128xf32>
    %c9 = arith.constant 9 : index
    %c0_108 = arith.constant 0 : index
    %c0_109 = arith.constant 0 : index
    %127 = vector.load %arg1[%c9, %c0_108, %c0_109] : memref<16x2x1152xbf16, #tpu.memory_space<vmem>>, vector<1x2x1152xbf16>
    %128 = vector.shape_cast %127 : vector<1x2x1152xbf16> to vector<2x1152xbf16>
    %c0_110 = arith.constant 0 : index
    %c0_111 = arith.constant 0 : index
    %129 = vector.load %arg2[%c0_110, %c0_111] : memref<1152x128xbf16, #tpu.memory_space<vmem>>, vector<1152x128xbf16>
    %cst_112 = arith.constant dense<0.000000e+00> : vector<2x128xf32>
    %130 = tpu.matmul %128, %129, %cst_112 {dimension_numbers = #tpu.dot_dimension_numbers<[1], [0], [0], [1], [0, 0, 1, 1], [], []>} : vector<2x1152xbf16>, vector<1152x128xbf16>, vector<2x128xf32> -> vector<2x128xf32>
    %c0_113 = arith.constant 0 : index
    %c0_114 = arith.constant 0 : index
    %131 = vector.load %arg3[%c0_113, %c0_114] : memref<1x128xf32, #tpu.memory_space<vmem>>, vector<1x128xf32>
    %132 = vector.broadcast %131 : vector<1x128xf32> to vector<2x128xf32>
    %133 = arith.addf %130, %132 : vector<2x128xf32>
    %cst_115 = arith.constant 0.000000e+00 : f32
    %134 = vector.broadcast %cst_115 : f32 to vector<2x128xf32>
    %135 = arith.maximumf %133, %134 : vector<2x128xf32>
    %136 = arith.truncf %135 : vector<2x128xf32> to vector<2x128xbf16>
    %c9_116 = arith.constant 9 : index
    %c0_117 = arith.constant 0 : index
    %c0_118 = arith.constant 0 : index
    %137 = vector.load %arg4[%c9_116, %c0_117, %c0_118] : memref<16x128x128xbf16, #tpu.memory_space<vmem>>, vector<1x128x128xbf16>
    %138 = vector.shape_cast %137 : vector<1x128x128xbf16> to vector<128x128xbf16>
    %cst_119 = arith.constant dense<0.000000e+00> : vector<2x128xf32>
    %139 = tpu.matmul %136, %138, %cst_119 {dimension_numbers = #tpu.dot_dimension_numbers<[1], [0], [0], [1], [0, 0, 1, 1], [], []>} : vector<2x128xbf16>, vector<128x128xbf16>, vector<2x128xf32> -> vector<2x128xf32>
    %140 = arith.addf %126, %139 : vector<2x128xf32>
    %c10 = arith.constant 10 : index
    %c0_120 = arith.constant 0 : index
    %c0_121 = arith.constant 0 : index
    %141 = vector.load %arg1[%c10, %c0_120, %c0_121] : memref<16x2x1152xbf16, #tpu.memory_space<vmem>>, vector<1x2x1152xbf16>
    %142 = vector.shape_cast %141 : vector<1x2x1152xbf16> to vector<2x1152xbf16>
    %c0_122 = arith.constant 0 : index
    %c0_123 = arith.constant 0 : index
    %143 = vector.load %arg2[%c0_122, %c0_123] : memref<1152x128xbf16, #tpu.memory_space<vmem>>, vector<1152x128xbf16>
    %cst_124 = arith.constant dense<0.000000e+00> : vector<2x128xf32>
    %144 = tpu.matmul %142, %143, %cst_124 {dimension_numbers = #tpu.dot_dimension_numbers<[1], [0], [0], [1], [0, 0, 1, 1], [], []>} : vector<2x1152xbf16>, vector<1152x128xbf16>, vector<2x128xf32> -> vector<2x128xf32>
    %c0_125 = arith.constant 0 : index
    %c0_126 = arith.constant 0 : index
    %145 = vector.load %arg3[%c0_125, %c0_126] : memref<1x128xf32, #tpu.memory_space<vmem>>, vector<1x128xf32>
    %146 = vector.broadcast %145 : vector<1x128xf32> to vector<2x128xf32>
    %147 = arith.addf %144, %146 : vector<2x128xf32>
    %cst_127 = arith.constant 0.000000e+00 : f32
    %148 = vector.broadcast %cst_127 : f32 to vector<2x128xf32>
    %149 = arith.maximumf %147, %148 : vector<2x128xf32>
    %150 = arith.truncf %149 : vector<2x128xf32> to vector<2x128xbf16>
    %c10_128 = arith.constant 10 : index
    %c0_129 = arith.constant 0 : index
    %c0_130 = arith.constant 0 : index
    %151 = vector.load %arg4[%c10_128, %c0_129, %c0_130] : memref<16x128x128xbf16, #tpu.memory_space<vmem>>, vector<1x128x128xbf16>
    %152 = vector.shape_cast %151 : vector<1x128x128xbf16> to vector<128x128xbf16>
    %cst_131 = arith.constant dense<0.000000e+00> : vector<2x128xf32>
    %153 = tpu.matmul %150, %152, %cst_131 {dimension_numbers = #tpu.dot_dimension_numbers<[1], [0], [0], [1], [0, 0, 1, 1], [], []>} : vector<2x128xbf16>, vector<128x128xbf16>, vector<2x128xf32> -> vector<2x128xf32>
    %154 = arith.addf %140, %153 : vector<2x128xf32>
    %c11 = arith.constant 11 : index
    %c0_132 = arith.constant 0 : index
    %c0_133 = arith.constant 0 : index
    %155 = vector.load %arg1[%c11, %c0_132, %c0_133] : memref<16x2x1152xbf16, #tpu.memory_space<vmem>>, vector<1x2x1152xbf16>
    %156 = vector.shape_cast %155 : vector<1x2x1152xbf16> to vector<2x1152xbf16>
    %c0_134 = arith.constant 0 : index
    %c0_135 = arith.constant 0 : index
    %157 = vector.load %arg2[%c0_134, %c0_135] : memref<1152x128xbf16, #tpu.memory_space<vmem>>, vector<1152x128xbf16>
    %cst_136 = arith.constant dense<0.000000e+00> : vector<2x128xf32>
    %158 = tpu.matmul %156, %157, %cst_136 {dimension_numbers = #tpu.dot_dimension_numbers<[1], [0], [0], [1], [0, 0, 1, 1], [], []>} : vector<2x1152xbf16>, vector<1152x128xbf16>, vector<2x128xf32> -> vector<2x128xf32>
    %c0_137 = arith.constant 0 : index
    %c0_138 = arith.constant 0 : index
    %159 = vector.load %arg3[%c0_137, %c0_138] : memref<1x128xf32, #tpu.memory_space<vmem>>, vector<1x128xf32>
    %160 = vector.broadcast %159 : vector<1x128xf32> to vector<2x128xf32>
    %161 = arith.addf %158, %160 : vector<2x128xf32>
    %cst_139 = arith.constant 0.000000e+00 : f32
    %162 = vector.broadcast %cst_139 : f32 to vector<2x128xf32>
    %163 = arith.maximumf %161, %162 : vector<2x128xf32>
    %164 = arith.truncf %163 : vector<2x128xf32> to vector<2x128xbf16>
    %c11_140 = arith.constant 11 : index
    %c0_141 = arith.constant 0 : index
    %c0_142 = arith.constant 0 : index
    %165 = vector.load %arg4[%c11_140, %c0_141, %c0_142] : memref<16x128x128xbf16, #tpu.memory_space<vmem>>, vector<1x128x128xbf16>
    %166 = vector.shape_cast %165 : vector<1x128x128xbf16> to vector<128x128xbf16>
    %cst_143 = arith.constant dense<0.000000e+00> : vector<2x128xf32>
    %167 = tpu.matmul %164, %166, %cst_143 {dimension_numbers = #tpu.dot_dimension_numbers<[1], [0], [0], [1], [0, 0, 1, 1], [], []>} : vector<2x128xbf16>, vector<128x128xbf16>, vector<2x128xf32> -> vector<2x128xf32>
    %168 = arith.addf %154, %167 : vector<2x128xf32>
    %c12 = arith.constant 12 : index
    %c0_144 = arith.constant 0 : index
    %c0_145 = arith.constant 0 : index
    %169 = vector.load %arg1[%c12, %c0_144, %c0_145] : memref<16x2x1152xbf16, #tpu.memory_space<vmem>>, vector<1x2x1152xbf16>
    %170 = vector.shape_cast %169 : vector<1x2x1152xbf16> to vector<2x1152xbf16>
    %c0_146 = arith.constant 0 : index
    %c0_147 = arith.constant 0 : index
    %171 = vector.load %arg2[%c0_146, %c0_147] : memref<1152x128xbf16, #tpu.memory_space<vmem>>, vector<1152x128xbf16>
    %cst_148 = arith.constant dense<0.000000e+00> : vector<2x128xf32>
    %172 = tpu.matmul %170, %171, %cst_148 {dimension_numbers = #tpu.dot_dimension_numbers<[1], [0], [0], [1], [0, 0, 1, 1], [], []>} : vector<2x1152xbf16>, vector<1152x128xbf16>, vector<2x128xf32> -> vector<2x128xf32>
    %c0_149 = arith.constant 0 : index
    %c0_150 = arith.constant 0 : index
    %173 = vector.load %arg3[%c0_149, %c0_150] : memref<1x128xf32, #tpu.memory_space<vmem>>, vector<1x128xf32>
    %174 = vector.broadcast %173 : vector<1x128xf32> to vector<2x128xf32>
    %175 = arith.addf %172, %174 : vector<2x128xf32>
    %cst_151 = arith.constant 0.000000e+00 : f32
    %176 = vector.broadcast %cst_151 : f32 to vector<2x128xf32>
    %177 = arith.maximumf %175, %176 : vector<2x128xf32>
    %178 = arith.truncf %177 : vector<2x128xf32> to vector<2x128xbf16>
    %c12_152 = arith.constant 12 : index
    %c0_153 = arith.constant 0 : index
    %c0_154 = arith.constant 0 : index
    %179 = vector.load %arg4[%c12_152, %c0_153, %c0_154] : memref<16x128x128xbf16, #tpu.memory_space<vmem>>, vector<1x128x128xbf16>
    %180 = vector.shape_cast %179 : vector<1x128x128xbf16> to vector<128x128xbf16>
    %cst_155 = arith.constant dense<0.000000e+00> : vector<2x128xf32>
    %181 = tpu.matmul %178, %180, %cst_155 {dimension_numbers = #tpu.dot_dimension_numbers<[1], [0], [0], [1], [0, 0, 1, 1], [], []>} : vector<2x128xbf16>, vector<128x128xbf16>, vector<2x128xf32> -> vector<2x128xf32>
    %182 = arith.addf %168, %181 : vector<2x128xf32>
    %c13 = arith.constant 13 : index
    %c0_156 = arith.constant 0 : index
    %c0_157 = arith.constant 0 : index
    %183 = vector.load %arg1[%c13, %c0_156, %c0_157] : memref<16x2x1152xbf16, #tpu.memory_space<vmem>>, vector<1x2x1152xbf16>
    %184 = vector.shape_cast %183 : vector<1x2x1152xbf16> to vector<2x1152xbf16>
    %c0_158 = arith.constant 0 : index
    %c0_159 = arith.constant 0 : index
    %185 = vector.load %arg2[%c0_158, %c0_159] : memref<1152x128xbf16, #tpu.memory_space<vmem>>, vector<1152x128xbf16>
    %cst_160 = arith.constant dense<0.000000e+00> : vector<2x128xf32>
    %186 = tpu.matmul %184, %185, %cst_160 {dimension_numbers = #tpu.dot_dimension_numbers<[1], [0], [0], [1], [0, 0, 1, 1], [], []>} : vector<2x1152xbf16>, vector<1152x128xbf16>, vector<2x128xf32> -> vector<2x128xf32>
    %c0_161 = arith.constant 0 : index
    %c0_162 = arith.constant 0 : index
    %187 = vector.load %arg3[%c0_161, %c0_162] : memref<1x128xf32, #tpu.memory_space<vmem>>, vector<1x128xf32>
    %188 = vector.broadcast %187 : vector<1x128xf32> to vector<2x128xf32>
    %189 = arith.addf %186, %188 : vector<2x128xf32>
    %cst_163 = arith.constant 0.000000e+00 : f32
    %190 = vector.broadcast %cst_163 : f32 to vector<2x128xf32>
    %191 = arith.maximumf %189, %190 : vector<2x128xf32>
    %192 = arith.truncf %191 : vector<2x128xf32> to vector<2x128xbf16>
    %c13_164 = arith.constant 13 : index
    %c0_165 = arith.constant 0 : index
    %c0_166 = arith.constant 0 : index
    %193 = vector.load %arg4[%c13_164, %c0_165, %c0_166] : memref<16x128x128xbf16, #tpu.memory_space<vmem>>, vector<1x128x128xbf16>
    %194 = vector.shape_cast %193 : vector<1x128x128xbf16> to vector<128x128xbf16>
    %cst_167 = arith.constant dense<0.000000e+00> : vector<2x128xf32>
    %195 = tpu.matmul %192, %194, %cst_167 {dimension_numbers = #tpu.dot_dimension_numbers<[1], [0], [0], [1], [0, 0, 1, 1], [], []>} : vector<2x128xbf16>, vector<128x128xbf16>, vector<2x128xf32> -> vector<2x128xf32>
    %196 = arith.addf %182, %195 : vector<2x128xf32>
    %c14 = arith.constant 14 : index
    %c0_168 = arith.constant 0 : index
    %c0_169 = arith.constant 0 : index
    %197 = vector.load %arg1[%c14, %c0_168, %c0_169] : memref<16x2x1152xbf16, #tpu.memory_space<vmem>>, vector<1x2x1152xbf16>
    %198 = vector.shape_cast %197 : vector<1x2x1152xbf16> to vector<2x1152xbf16>
    %c0_170 = arith.constant 0 : index
    %c0_171 = arith.constant 0 : index
    %199 = vector.load %arg2[%c0_170, %c0_171] : memref<1152x128xbf16, #tpu.memory_space<vmem>>, vector<1152x128xbf16>
    %cst_172 = arith.constant dense<0.000000e+00> : vector<2x128xf32>
    %200 = tpu.matmul %198, %199, %cst_172 {dimension_numbers = #tpu.dot_dimension_numbers<[1], [0], [0], [1], [0, 0, 1, 1], [], []>} : vector<2x1152xbf16>, vector<1152x128xbf16>, vector<2x128xf32> -> vector<2x128xf32>
    %c0_173 = arith.constant 0 : index
    %c0_174 = arith.constant 0 : index
    %201 = vector.load %arg3[%c0_173, %c0_174] : memref<1x128xf32, #tpu.memory_space<vmem>>, vector<1x128xf32>
    %202 = vector.broadcast %201 : vector<1x128xf32> to vector<2x128xf32>
    %203 = arith.addf %200, %202 : vector<2x128xf32>
    %cst_175 = arith.constant 0.000000e+00 : f32
    %204 = vector.broadcast %cst_175 : f32 to vector<2x128xf32>
    %205 = arith.maximumf %203, %204 : vector<2x128xf32>
    %206 = arith.truncf %205 : vector<2x128xf32> to vector<2x128xbf16>
    %c14_176 = arith.constant 14 : index
    %c0_177 = arith.constant 0 : index
    %c0_178 = arith.constant 0 : index
    %207 = vector.load %arg4[%c14_176, %c0_177, %c0_178] : memref<16x128x128xbf16, #tpu.memory_space<vmem>>, vector<1x128x128xbf16>
    %208 = vector.shape_cast %207 : vector<1x128x128xbf16> to vector<128x128xbf16>
    %cst_179 = arith.constant dense<0.000000e+00> : vector<2x128xf32>
    %209 = tpu.matmul %206, %208, %cst_179 {dimension_numbers = #tpu.dot_dimension_numbers<[1], [0], [0], [1], [0, 0, 1, 1], [], []>} : vector<2x128xbf16>, vector<128x128xbf16>, vector<2x128xf32> -> vector<2x128xf32>
    %210 = arith.addf %196, %209 : vector<2x128xf32>
    %c15 = arith.constant 15 : index
    %c0_180 = arith.constant 0 : index
    %c0_181 = arith.constant 0 : index
    %211 = vector.load %arg1[%c15, %c0_180, %c0_181] : memref<16x2x1152xbf16, #tpu.memory_space<vmem>>, vector<1x2x1152xbf16>
    %212 = vector.shape_cast %211 : vector<1x2x1152xbf16> to vector<2x1152xbf16>
    %c0_182 = arith.constant 0 : index
    %c0_183 = arith.constant 0 : index
    %213 = vector.load %arg2[%c0_182, %c0_183] : memref<1152x128xbf16, #tpu.memory_space<vmem>>, vector<1152x128xbf16>
    %cst_184 = arith.constant dense<0.000000e+00> : vector<2x128xf32>
    %214 = tpu.matmul %212, %213, %cst_184 {dimension_numbers = #tpu.dot_dimension_numbers<[1], [0], [0], [1], [0, 0, 1, 1], [], []>} : vector<2x1152xbf16>, vector<1152x128xbf16>, vector<2x128xf32> -> vector<2x128xf32>
    %c0_185 = arith.constant 0 : index
    %c0_186 = arith.constant 0 : index
    %215 = vector.load %arg3[%c0_185, %c0_186] : memref<1x128xf32, #tpu.memory_space<vmem>>, vector<1x128xf32>
    %216 = vector.broadcast %215 : vector<1x128xf32> to vector<2x128xf32>
    %217 = arith.addf %214, %216 : vector<2x128xf32>
    %cst_187 = arith.constant 0.000000e+00 : f32
    %218 = vector.broadcast %cst_187 : f32 to vector<2x128xf32>
    %219 = arith.maximumf %217, %218 : vector<2x128xf32>
    %220 = arith.truncf %219 : vector<2x128xf32> to vector<2x128xbf16>
    %c15_188 = arith.constant 15 : index
    %c0_189 = arith.constant 0 : index
    %c0_190 = arith.constant 0 : index
    %221 = vector.load %arg4[%c15_188, %c0_189, %c0_190] : memref<16x128x128xbf16, #tpu.memory_space<vmem>>, vector<1x128x128xbf16>
    %222 = vector.shape_cast %221 : vector<1x128x128xbf16> to vector<128x128xbf16>
    %cst_191 = arith.constant dense<0.000000e+00> : vector<2x128xf32>
    %223 = tpu.matmul %220, %222, %cst_191 {dimension_numbers = #tpu.dot_dimension_numbers<[1], [0], [0], [1], [0, 0, 1, 1], [], []>} : vector<2x128xbf16>, vector<128x128xbf16>, vector<2x128xf32> -> vector<2x128xf32>
    %224 = arith.addf %210, %223 : vector<2x128xf32>
    %c0_192 = arith.constant 0 : index
    %c0_193 = arith.constant 0 : index
    %225 = vector.load %arg5[%c0_192, %c0_193] : memref<1x128xf32, #tpu.memory_space<vmem>>, vector<1x128xf32>
    %226 = vector.broadcast %225 : vector<1x128xf32> to vector<2x128xf32>
    %227 = arith.addf %224, %226 : vector<2x128xf32>
    %cst_194 = arith.constant 0.000000e+00 : f32
    %228 = vector.broadcast %cst_194 : f32 to vector<2x128xf32>
    %229 = arith.maximumf %227, %228 : vector<2x128xf32>
    %230 = arith.truncf %229 : vector<2x128xf32> to vector<2x128xbf16>
    %c0_195 = arith.constant 0 : index
    %c0_196 = arith.constant 0 : index
    %231 = vector.load %arg6[%c0_195, %c0_196] : memref<128x6xbf16, #tpu.memory_space<vmem>>, vector<128x6xbf16>
    %cst_197 = arith.constant dense<0.000000e+00> : vector<2x6xf32>
    %232 = tpu.matmul %230, %231, %cst_197 {dimension_numbers = #tpu.dot_dimension_numbers<[1], [0], [0], [1], [0, 0, 1, 1], [], []>} : vector<2x128xbf16>, vector<128x6xbf16>, vector<2x6xf32> -> vector<2x6xf32>
    %c0_198 = arith.constant 0 : index
    %c0_199 = arith.constant 0 : index
    %233 = vector.load %arg7[%c0_198, %c0_199] : memref<1x6xf32, #tpu.memory_space<vmem>>, vector<1x6xf32>
    %234 = vector.broadcast %233 : vector<1x6xf32> to vector<2x6xf32>
    %235 = arith.addf %232, %234 : vector<2x6xf32>
    %c0_200 = arith.constant 0 : index
    %c0_201 = arith.constant 0 : index
    %236 = vector.load %arg8[%c0_200, %c0_201] : memref<2x6xf32, #tpu.memory_space<vmem>>, vector<2x6xf32>
    tpu.vector_store %arg8[%c0_200, %c0_201], %235 {strides = array<i32>} : memref<2x6xf32, #tpu.memory_space<vmem>>, vector<2x6xf32>,
    return
  }
  func.func @transform_0(%arg0: i32) -> (i32, i32, i32) {
    %c0_i32 = arith.constant 0 : i32
    %c0_i32_0 = arith.constant 0 : i32
    %c0_i32_1 = arith.constant 0 : i32
    %c0_i32_2 = arith.constant 0 : i32
    return %c0_i32, %c0_i32_0, %c0_i32_1 : i32, i32, i32
  }
  func.func @transform_1(%arg0: i32) -> (i32, i32) {
    %c0_i32 = arith.constant 0 : i32
    %c0_i32_0 = arith.constant 0 : i32
    %c0_i32_1 = arith.constant 0 : i32
    return %c0_i32, %c0_i32_0 : i32, i32
  }
  func.func @transform_2(%arg0: i32) -> (i32, i32) {
    %c0_i32 = arith.constant 0 : i32
    %c0_i32_0 = arith.constant 0 : i32
    %c0_i32_1 = arith.constant 0 : i32
    return %c0_i32, %c0_i32_0 : i32, i32
  }
  func.func @transform_3(%arg0: i32) -> (i32, i32, i32) {
    %c0_i32 = arith.constant 0 : i32
    %c0_i32_0 = arith.constant 0 : i32
    %c0_i32_1 = arith.constant 0 : i32
    %c0_i32_2 = arith.constant 0 : i32
    return %c0_i32, %c0_i32_0, %c0_i32_1 : i32, i32, i32
  }
  func.func @transform_4(%arg0: i32) -> (i32, i32) {
    %c0_i32 = arith.constant 0 : i32
    %c0_i32_0 = arith.constant 0 : i32
    %c0_i32_1 = arith.constant 0 : i32
    return %c0_i32, %c0_i32_0 : i32, i32
  }
  func.func @transform_5(%arg0: i32) -> (i32, i32) {
    %c0_i32 = arith.constant 0 : i32
    %c0_i32_0 = arith.constant 0 : i32
    %c0_i32_1 = arith.constant 0 : i32
    return %c0_i32, %c0_i32_0 : i32, i32
  }
  func.func @transform_6(%arg0: i32) -> (i32, i32) {
    %c0_i32 = arith.constant 0 : i32
    %c0_i32_0 = arith.constant 0 : i32
    %c0_i32_1 = arith.constant 0 : i32
    return %c0_i32, %c0_i32_0 : i32, i32
  }
  func.func @transform_7(%arg0: i32) -> (i32, i32) {
    %c0_i32 = arith.constant 0 : i32
    %c0_i32_0 = arith.constant 0 : i32
    %c0_i32_1 = arith.constant 0 : i32
    return %c0_i32, %c0_i32_0 : i32, i32
  }
}

module attributes {stable_mosaic.version = 11 : i64} {
  func.func @_matmul_bias_act_kernel(%arg0: i32, %arg1: memref<256x1152xbf16, #tpu.memory_space<vmem>>, %arg2: memref<1152x128xbf16, #tpu.memory_space<vmem>>, %arg3: memref<1x128xf32, #tpu.memory_space<vmem>>, %arg4: memref<256x128xbf16, #tpu.memory_space<vmem>>) attributes {dimension_semantics = [#tpu.dimension_semantics<parallel>], iteration_bounds = array<i64: 2>, scalar_prefetch = 0 : i64, scratch_operands = 0 : i64, tpu.core_type = #tpu.core_type<tc>, window_params = [{transform_indices = @transform_0, window_bounds = array<i64: 256, 1152>}, {pipeline_mode = #tpu.pipeline_mode<synchronous>, transform_indices = @transform_1, window_bounds = array<i64: 1152, 128>}, {pipeline_mode = #tpu.pipeline_mode<synchronous>, transform_indices = @transform_2, window_bounds = array<i64: 1, 128>}, {transform_indices = @transform_3, window_bounds = array<i64: 256, 128>}]} {
    %c0 = arith.constant 0 : index
    %c0_0 = arith.constant 0 : index
    %0 = vector.load %arg1[%c0, %c0_0] : memref<256x1152xbf16, #tpu.memory_space<vmem>>, vector<256x1152xbf16>
    %c0_1 = arith.constant 0 : index
    %c0_2 = arith.constant 0 : index
    %1 = vector.load %arg2[%c0_1, %c0_2] : memref<1152x128xbf16, #tpu.memory_space<vmem>>, vector<1152x128xbf16>
    %cst = arith.constant dense<0.000000e+00> : vector<256x128xf32>
    %2 = tpu.matmul %0, %1, %cst {dimension_numbers = #tpu.dot_dimension_numbers<[1], [0], [0], [1], [0, 0, 1, 1], [], []>} : vector<256x1152xbf16>, vector<1152x128xbf16>, vector<256x128xf32> -> vector<256x128xf32>
    %c0_3 = arith.constant 0 : index
    %c0_4 = arith.constant 0 : index
    %3 = vector.load %arg3[%c0_3, %c0_4] : memref<1x128xf32, #tpu.memory_space<vmem>>, vector<1x128xf32>
    %4 = vector.broadcast %3 : vector<1x128xf32> to vector<256x128xf32>
    %5 = arith.addf %2, %4 : vector<256x128xf32>
    %cst_5 = arith.constant 0.000000e+00 : f32
    %6 = vector.broadcast %cst_5 : f32 to vector<256x128xf32>
    %7 = arith.maximumf %5, %6 : vector<256x128xf32>
    %8 = arith.truncf %7 : vector<256x128xf32> to vector<256x128xbf16>
    %c0_6 = arith.constant 0 : index
    %c0_7 = arith.constant 0 : index
    %9 = vector.load %arg4[%c0_6, %c0_7] : memref<256x128xbf16, #tpu.memory_space<vmem>>, vector<256x128xbf16>
    tpu.vector_store %arg4[%c0_6, %c0_7], %8 {strides = array<i32>} : memref<256x128xbf16, #tpu.memory_space<vmem>>, vector<256x128xbf16>,
    return
  }
  func.func @transform_0(%arg0: i32) -> (i32, i32) {
    %c0_i32 = arith.constant 0 : i32
    %c0_i32_0 = arith.constant 0 : i32
    return %arg0, %c0_i32 : i32, i32
  }
  func.func @transform_1(%arg0: i32) -> (i32, i32) {
    %c0_i32 = arith.constant 0 : i32
    %c0_i32_0 = arith.constant 0 : i32
    %c0_i32_1 = arith.constant 0 : i32
    return %c0_i32, %c0_i32_0 : i32, i32
  }
  func.func @transform_2(%arg0: i32) -> (i32, i32) {
    %c0_i32 = arith.constant 0 : i32
    %c0_i32_0 = arith.constant 0 : i32
    %c0_i32_1 = arith.constant 0 : i32
    return %c0_i32, %c0_i32_0 : i32, i32
  }
  func.func @transform_3(%arg0: i32) -> (i32, i32) {
    %c0_i32 = arith.constant 0 : i32
    %c0_i32_0 = arith.constant 0 : i32
    return %arg0, %c0_i32 : i32, i32
  }
}

module attributes {stable_mosaic.version = 11 : i64} {
  func.func @_matmul_bias_act_kernel(%arg0: i32, %arg1: memref<32x1152xbf16, #tpu.memory_space<vmem>>, %arg2: memref<1152x128xbf16, #tpu.memory_space<vmem>>, %arg3: memref<1x128xf32, #tpu.memory_space<vmem>>, %arg4: memref<32x128xbf16, #tpu.memory_space<vmem>>) attributes {dimension_semantics = [#tpu.dimension_semantics<parallel>], iteration_bounds = array<i64: 1>, scalar_prefetch = 0 : i64, scratch_operands = 0 : i64, tpu.core_type = #tpu.core_type<tc>, window_params = [{transform_indices = @transform_0, window_bounds = array<i64: 32, 1152>}, {pipeline_mode = #tpu.pipeline_mode<synchronous>, transform_indices = @transform_1, window_bounds = array<i64: 1152, 128>}, {pipeline_mode = #tpu.pipeline_mode<synchronous>, transform_indices = @transform_2, window_bounds = array<i64: 1, 128>}, {transform_indices = @transform_3, window_bounds = array<i64: 32, 128>}]} {
    %c0 = arith.constant 0 : index
    %c0_0 = arith.constant 0 : index
    %0 = vector.load %arg1[%c0, %c0_0] : memref<32x1152xbf16, #tpu.memory_space<vmem>>, vector<32x1152xbf16>
    %c0_1 = arith.constant 0 : index
    %c0_2 = arith.constant 0 : index
    %1 = vector.load %arg2[%c0_1, %c0_2] : memref<1152x128xbf16, #tpu.memory_space<vmem>>, vector<1152x128xbf16>
    %cst = arith.constant dense<0.000000e+00> : vector<32x128xf32>
    %2 = tpu.matmul %0, %1, %cst {dimension_numbers = #tpu.dot_dimension_numbers<[1], [0], [0], [1], [0, 0, 1, 1], [], []>} : vector<32x1152xbf16>, vector<1152x128xbf16>, vector<32x128xf32> -> vector<32x128xf32>
    %c0_3 = arith.constant 0 : index
    %c0_4 = arith.constant 0 : index
    %3 = vector.load %arg3[%c0_3, %c0_4] : memref<1x128xf32, #tpu.memory_space<vmem>>, vector<1x128xf32>
    %4 = vector.broadcast %3 : vector<1x128xf32> to vector<32x128xf32>
    %5 = arith.addf %2, %4 : vector<32x128xf32>
    %cst_5 = arith.constant 0.000000e+00 : f32
    %6 = vector.broadcast %cst_5 : f32 to vector<32x128xf32>
    %7 = arith.maximumf %5, %6 : vector<32x128xf32>
    %8 = arith.truncf %7 : vector<32x128xf32> to vector<32x128xbf16>
    %c0_6 = arith.constant 0 : index
    %c0_7 = arith.constant 0 : index
    %9 = vector.load %arg4[%c0_6, %c0_7] : memref<32x128xbf16, #tpu.memory_space<vmem>>, vector<32x128xbf16>
    tpu.vector_store %arg4[%c0_6, %c0_7], %8 {strides = array<i32>} : memref<32x128xbf16, #tpu.memory_space<vmem>>, vector<32x128xbf16>,
    return
  }
  func.func @transform_0(%arg0: i32) -> (i32, i32) {
    %c0_i32 = arith.constant 0 : i32
    %c0_i32_0 = arith.constant 0 : i32
    return %arg0, %c0_i32 : i32, i32
  }
  func.func @transform_1(%arg0: i32) -> (i32, i32) {
    %c0_i32 = arith.constant 0 : i32
    %c0_i32_0 = arith.constant 0 : i32
    %c0_i32_1 = arith.constant 0 : i32
    return %c0_i32, %c0_i32_0 : i32, i32
  }
  func.func @transform_2(%arg0: i32) -> (i32, i32) {
    %c0_i32 = arith.constant 0 : i32
    %c0_i32_0 = arith.constant 0 : i32
    %c0_i32_1 = arith.constant 0 : i32
    return %c0_i32, %c0_i32_0 : i32, i32
  }
  func.func @transform_3(%arg0: i32) -> (i32, i32) {
    %c0_i32 = arith.constant 0 : i32
    %c0_i32_0 = arith.constant 0 : i32
    return %arg0, %c0_i32 : i32, i32
  }
}

module attributes {stable_mosaic.version = 11 : i64} {
  func.func @_matmul_bias_act_kernel(%arg0: i32, %arg1: memref<8x1152xbf16, #tpu.memory_space<vmem>>, %arg2: memref<1152x128xbf16, #tpu.memory_space<vmem>>, %arg3: memref<1x128xf32, #tpu.memory_space<vmem>>, %arg4: memref<8x128xbf16, #tpu.memory_space<vmem>>) attributes {dimension_semantics = [#tpu.dimension_semantics<parallel>], iteration_bounds = array<i64: 1>, scalar_prefetch = 0 : i64, scratch_operands = 0 : i64, tpu.core_type = #tpu.core_type<tc>, window_params = [{transform_indices = @transform_0, window_bounds = array<i64: 8, 1152>}, {pipeline_mode = #tpu.pipeline_mode<synchronous>, transform_indices = @transform_1, window_bounds = array<i64: 1152, 128>}, {pipeline_mode = #tpu.pipeline_mode<synchronous>, transform_indices = @transform_2, window_bounds = array<i64: 1, 128>}, {transform_indices = @transform_3, window_bounds = array<i64: 8, 128>}]} {
    %c0 = arith.constant 0 : index
    %c0_0 = arith.constant 0 : index
    %0 = vector.load %arg1[%c0, %c0_0] : memref<8x1152xbf16, #tpu.memory_space<vmem>>, vector<8x1152xbf16>
    %c0_1 = arith.constant 0 : index
    %c0_2 = arith.constant 0 : index
    %1 = vector.load %arg2[%c0_1, %c0_2] : memref<1152x128xbf16, #tpu.memory_space<vmem>>, vector<1152x128xbf16>
    %cst = arith.constant dense<0.000000e+00> : vector<8x128xf32>
    %2 = tpu.matmul %0, %1, %cst {dimension_numbers = #tpu.dot_dimension_numbers<[1], [0], [0], [1], [0, 0, 1, 1], [], []>} : vector<8x1152xbf16>, vector<1152x128xbf16>, vector<8x128xf32> -> vector<8x128xf32>
    %c0_3 = arith.constant 0 : index
    %c0_4 = arith.constant 0 : index
    %3 = vector.load %arg3[%c0_3, %c0_4] : memref<1x128xf32, #tpu.memory_space<vmem>>, vector<1x128xf32>
    %4 = vector.broadcast %3 : vector<1x128xf32> to vector<8x128xf32>
    %5 = arith.addf %2, %4 : vector<8x128xf32>
    %cst_5 = arith.constant 0.000000e+00 : f32
    %6 = vector.broadcast %cst_5 : f32 to vector<8x128xf32>
    %7 = arith.maximumf %5, %6 : vector<8x128xf32>
    %8 = arith.truncf %7 : vector<8x128xf32> to vector<8x128xbf16>
    %c0_6 = arith.constant 0 : index
    %c0_7 = arith.constant 0 : index
    %9 = vector.load %arg4[%c0_6, %c0_7] : memref<8x128xbf16, #tpu.memory_space<vmem>>, vector<8x128xbf16>
    tpu.vector_store %arg4[%c0_6, %c0_7], %8 {strides = array<i32>} : memref<8x128xbf16, #tpu.memory_space<vmem>>, vector<8x128xbf16>,
    return
  }
  func.func @transform_0(%arg0: i32) -> (i32, i32) {
    %c0_i32 = arith.constant 0 : i32
    %c0_i32_0 = arith.constant 0 : i32
    return %arg0, %c0_i32 : i32, i32
  }
  func.func @transform_1(%arg0: i32) -> (i32, i32) {
    %c0_i32 = arith.constant 0 : i32
    %c0_i32_0 = arith.constant 0 : i32
    %c0_i32_1 = arith.constant 0 : i32
    return %c0_i32, %c0_i32_0 : i32, i32
  }
  func.func @transform_2(%arg0: i32) -> (i32, i32) {
    %c0_i32 = arith.constant 0 : i32
    %c0_i32_0 = arith.constant 0 : i32
    %c0_i32_1 = arith.constant 0 : i32
    return %c0_i32, %c0_i32_0 : i32, i32
  }
  func.func @transform_3(%arg0: i32) -> (i32, i32) {
    %c0_i32 = arith.constant 0 : i32
    %c0_i32_0 = arith.constant 0 : i32
    return %arg0, %c0_i32 : i32, i32
  }
}

module attributes {stable_mosaic.version = 11 : i64} {
  func.func @_conv_pool_mlp_kernel(%arg0: i32, %arg1: memref<1x2x1152xbf16, #tpu.memory_space<vmem>>, %arg2: memref<1152x128xbf16, #tpu.memory_space<vmem>>, %arg3: memref<1x128xf32, #tpu.memory_space<vmem>>, %arg4: memref<128x64xbf16, #tpu.memory_space<vmem>>, %arg5: memref<1x64xf32, #tpu.memory_space<vmem>>, %arg6: memref<64x30xbf16, #tpu.memory_space<vmem>>, %arg7: memref<1x30xf32, #tpu.memory_space<vmem>>, %arg8: memref<2x30xf32, #tpu.memory_space<vmem>>) attributes {dimension_semantics = [#tpu.dimension_semantics<arbitrary>], iteration_bounds = array<i64: 1>, scalar_prefetch = 0 : i64, scratch_operands = 0 : i64, tpu.core_type = #tpu.core_type<tc>, window_params = [{pipeline_mode = #tpu.pipeline_mode<synchronous>, transform_indices = @transform_0, window_bounds = array<i64: 1, 2, 1152>}, {pipeline_mode = #tpu.pipeline_mode<synchronous>, transform_indices = @transform_1, window_bounds = array<i64: 1152, 128>}, {pipeline_mode = #tpu.pipeline_mode<synchronous>, transform_indices = @transform_2, window_bounds = array<i64: 1, 128>}, {pipeline_mode = #tpu.pipeline_mode<synchronous>, transform_indices = @transform_3, window_bounds = array<i64: 128, 64>}, {pipeline_mode = #tpu.pipeline_mode<synchronous>, transform_indices = @transform_4, window_bounds = array<i64: 1, 64>}, {pipeline_mode = #tpu.pipeline_mode<synchronous>, transform_indices = @transform_5, window_bounds = array<i64: 64, 30>}, {pipeline_mode = #tpu.pipeline_mode<synchronous>, transform_indices = @transform_6, window_bounds = array<i64: 1, 30>}, {pipeline_mode = #tpu.pipeline_mode<synchronous>, transform_indices = @transform_7, window_bounds = array<i64: 2, 30>}]} {
    %cst = arith.constant 0.000000e+00 : f32
    %0 = vector.broadcast %cst : f32 to vector<2x128xf32>
    %c0 = arith.constant 0 : index
    %c0_0 = arith.constant 0 : index
    %c0_1 = arith.constant 0 : index
    %1 = vector.load %arg1[%c0, %c0_0, %c0_1] : memref<1x2x1152xbf16, #tpu.memory_space<vmem>>, vector<1x2x1152xbf16>
    %2 = vector.shape_cast %1 : vector<1x2x1152xbf16> to vector<2x1152xbf16>
    %c0_2 = arith.constant 0 : index
    %c0_3 = arith.constant 0 : index
    %3 = vector.load %arg2[%c0_2, %c0_3] : memref<1152x128xbf16, #tpu.memory_space<vmem>>, vector<1152x128xbf16>
    %cst_4 = arith.constant dense<0.000000e+00> : vector<2x128xf32>
    %4 = tpu.matmul %2, %3, %cst_4 {dimension_numbers = #tpu.dot_dimension_numbers<[1], [0], [0], [1], [0, 0, 1, 1], [], []>} : vector<2x1152xbf16>, vector<1152x128xbf16>, vector<2x128xf32> -> vector<2x128xf32>
    %c0_5 = arith.constant 0 : index
    %c0_6 = arith.constant 0 : index
    %5 = vector.load %arg3[%c0_5, %c0_6] : memref<1x128xf32, #tpu.memory_space<vmem>>, vector<1x128xf32>
    %6 = vector.broadcast %5 : vector<1x128xf32> to vector<2x128xf32>
    %7 = arith.addf %4, %6 : vector<2x128xf32>
    %cst_7 = arith.constant 0.000000e+00 : f32
    %8 = vector.broadcast %cst_7 : f32 to vector<2x128xf32>
    %9 = arith.maximumf %7, %8 : vector<2x128xf32>
    %10 = arith.addf %0, %9 : vector<2x128xf32>
    %cst_8 = arith.constant 1.000000e+00 : f32
    %11 = vector.broadcast %cst_8 : f32 to vector<2x128xf32>
    %12 = arith.mulf %10, %11 : vector<2x128xf32>
    %13 = arith.truncf %12 : vector<2x128xf32> to vector<2x128xbf16>
    %c0_9 = arith.constant 0 : index
    %c0_10 = arith.constant 0 : index
    %14 = vector.load %arg4[%c0_9, %c0_10] : memref<128x64xbf16, #tpu.memory_space<vmem>>, vector<128x64xbf16>
    %cst_11 = arith.constant dense<0.000000e+00> : vector<2x64xf32>
    %15 = tpu.matmul %13, %14, %cst_11 {dimension_numbers = #tpu.dot_dimension_numbers<[1], [0], [0], [1], [0, 0, 1, 1], [], []>} : vector<2x128xbf16>, vector<128x64xbf16>, vector<2x64xf32> -> vector<2x64xf32>
    %c0_12 = arith.constant 0 : index
    %c0_13 = arith.constant 0 : index
    %16 = vector.load %arg5[%c0_12, %c0_13] : memref<1x64xf32, #tpu.memory_space<vmem>>, vector<1x64xf32>
    %17 = vector.broadcast %16 : vector<1x64xf32> to vector<2x64xf32>
    %18 = arith.addf %15, %17 : vector<2x64xf32>
    %cst_14 = arith.constant 0.000000e+00 : f32
    %19 = vector.broadcast %cst_14 : f32 to vector<2x64xf32>
    %20 = arith.maximumf %18, %19 : vector<2x64xf32>
    %21 = arith.truncf %20 : vector<2x64xf32> to vector<2x64xbf16>
    %c0_15 = arith.constant 0 : index
    %c0_16 = arith.constant 0 : index
    %22 = vector.load %arg6[%c0_15, %c0_16] : memref<64x30xbf16, #tpu.memory_space<vmem>>, vector<64x30xbf16>
    %cst_17 = arith.constant dense<0.000000e+00> : vector<2x30xf32>
    %23 = tpu.matmul %21, %22, %cst_17 {dimension_numbers = #tpu.dot_dimension_numbers<[1], [0], [0], [1], [0, 0, 1, 1], [], []>} : vector<2x64xbf16>, vector<64x30xbf16>, vector<2x30xf32> -> vector<2x30xf32>
    %c0_18 = arith.constant 0 : index
    %c0_19 = arith.constant 0 : index
    %24 = vector.load %arg7[%c0_18, %c0_19] : memref<1x30xf32, #tpu.memory_space<vmem>>, vector<1x30xf32>
    %25 = vector.broadcast %24 : vector<1x30xf32> to vector<2x30xf32>
    %26 = arith.addf %23, %25 : vector<2x30xf32>
    %27 = arith.negf %26 : vector<2x30xf32>
    %28 = math.exp %27 : vector<2x30xf32>
    %cst_20 = arith.constant 1.000000e+00 : f32
    %29 = vector.broadcast %cst_20 : f32 to vector<2x30xf32>
    %30 = arith.addf %29, %28 : vector<2x30xf32>
    %31 = arith.divf %29, %30 : vector<2x30xf32>
    %c0_21 = arith.constant 0 : index
    %c0_22 = arith.constant 0 : index
    %32 = vector.load %arg8[%c0_21, %c0_22] : memref<2x30xf32, #tpu.memory_space<vmem>>, vector<2x30xf32>
    tpu.vector_store %arg8[%c0_21, %c0_22], %31 {strides = array<i32>} : memref<2x30xf32, #tpu.memory_space<vmem>>, vector<2x30xf32>,
    return
  }
  func.func @transform_0(%arg0: i32) -> (i32, i32, i32) {
    %c0_i32 = arith.constant 0 : i32
    %c0_i32_0 = arith.constant 0 : i32
    %c0_i32_1 = arith.constant 0 : i32
    %c0_i32_2 = arith.constant 0 : i32
    return %c0_i32, %c0_i32_0, %c0_i32_1 : i32, i32, i32
  }
  func.func @transform_1(%arg0: i32) -> (i32, i32) {
    %c0_i32 = arith.constant 0 : i32
    %c0_i32_0 = arith.constant 0 : i32
    %c0_i32_1 = arith.constant 0 : i32
    return %c0_i32, %c0_i32_0 : i32, i32
  }
  func.func @transform_2(%arg0: i32) -> (i32, i32) {
    %c0_i32 = arith.constant 0 : i32
    %c0_i32_0 = arith.constant 0 : i32
    %c0_i32_1 = arith.constant 0 : i32
    return %c0_i32, %c0_i32_0 : i32, i32
  }
  func.func @transform_3(%arg0: i32) -> (i32, i32) {
    %c0_i32 = arith.constant 0 : i32
    %c0_i32_0 = arith.constant 0 : i32
    %c0_i32_1 = arith.constant 0 : i32
    return %c0_i32, %c0_i32_0 : i32, i32
  }
  func.func @transform_4(%arg0: i32) -> (i32, i32) {
    %c0_i32 = arith.constant 0 : i32
    %c0_i32_0 = arith.constant 0 : i32
    %c0_i32_1 = arith.constant 0 : i32
    return %c0_i32, %c0_i32_0 : i32, i32
  }
  func.func @transform_5(%arg0: i32) -> (i32, i32) {
    %c0_i32 = arith.constant 0 : i32
    %c0_i32_0 = arith.constant 0 : i32
    %c0_i32_1 = arith.constant 0 : i32
    return %c0_i32, %c0_i32_0 : i32, i32
  }
  func.func @transform_6(%arg0: i32) -> (i32, i32) {
    %c0_i32 = arith.constant 0 : i32
    %c0_i32_0 = arith.constant 0 : i32
    %c0_i32_1 = arith.constant 0 : i32
    return %c0_i32, %c0_i32_0 : i32, i32
  }
  func.func @transform_7(%arg0: i32) -> (i32, i32) {
    %c0_i32 = arith.constant 0 : i32
    %c0_i32_0 = arith.constant 0 : i32
    %c0_i32_1 = arith.constant 0 : i32
    return %c0_i32, %c0_i32_0 : i32, i32
  }
}

</mosaic_0001>

<bundles_post_ra>
// kernel: decoder_forward.10
= control target key start
LH: loop header
LB: loop body
LE: loop exit
PB: predicated region body
PF: predicated region fallthrough
CT: control target
= control target key end

     0   :  { %s1085_s12 = smov 0   ;;  %s1204_s0 = inlined_call_operand.vmem [shape: bf16[512,32], index: 0, kind: input, shape index: {}]   ;;  %s1205_s1 = inlined_call_operand.vmem [shape: bf16[32,128], index: 1, kind: input, shape index: {}]   ;;  %s1206_s2 = inlined_call_operand.vmem [shape: f32[1,128], index: 2, kind: input, shape index: {}]   ;;  %s1207_s3 = inlined_call_operand.vmem [shape: bf16[512,128], index: 3, kind: output, shape index: {}]  }
   0x1 LB: > { %s768_s13 = sadd.s32 4294967295, %s1063_s12   ;;  %p772_p0 = scmp.ge.s32.totalorder %s1063_s12, 1  ;;  %s1063_s12 = sphi %s1085_s12, %s13_s12  }
   0x2   : > { %p138_p1 = scmp.lt.s32.totalorder %s1063_s12, 3 }
   0x4   : > { %p139_p2 = pnand %p772_p0, %p138_p1 }
   0x5   : > { %s773_s16 = sshll.u32 (!%p139_p2), %s768_s13, 5 }
   0x6   : > { %142 = sbr.rel (%p139_p2) target bundleno = 250 (0xfa), region = 32  ;;  %p163_p3 = scmp.lt.s32.totalorder (!%p139_p2), %s773_s16, 63 }
   0xb   : > { %v1039_v0 = vld [vmem:[%s1205_s1 + $0x8] sm:$0xff]   ;;  %v1040_v1 = vld [vmem:[%s1205_s1] sm:$0xff]   ;;  %s1209_s16 = smov (!%p163_p3, %s773_s16), 63  ;;  %vm310_vm0 = vcmask 261120  }
   0xc   : > { %991 = vmatprep.subr.bf16.mxu0 %v1039_v0  ;;  %1027 = vmatprep.subr.bf16.mxu1 %v1039_v0  ;;  %s774_s19 = sshll.u32 %s1209_s16, 2  ;;  %v1144_v19 = vld [vmem:[%s1206_s2] ss:$0 sm:$0xff] }
   0xd   : > { %992 = vmatpush3.bf16.msra.mxu0 %v1039_v0  ;;  %1029 = vmatpush3.bf16.msra.mxu1 %v1039_v0  ;;  %s1107_s22 = scalar_lea.vmem %s1204_s0, %s774_s19  ;;  %s1158_s27 = scalar_lea.vmem %s1207_s3, %s774_s19 }
   0xe   : > { %993 = vmatprep.subr.bf16.mxu0 %v1040_v1  ;;  %1028 = vmatprep.subr.bf16.mxu1 %v1040_v1  ;;  %v1041_v2 = vld [vmem:[%s1107_s22] sm:$0xff]   ;;  %v1043_v4 = vld [vmem:[%s1107_s22 + $0x8] sm:$0xff]   ;;  %v1045_v6 = vld [vmem:[%s1107_s22 + $0x10] sm:$0xff]  }
   0xf   : > { %v1042_v3 = vld [vmem:[%s1107_s22 + $0x40] sm:$0xff]   ;;  %995 = vmatprep.mubr.msk.bf16.mxu0 %vm310_vm0, %v1041_v2  ;;  %v1044_v5 = vld [vmem:[%s1107_s22 + $0x48] sm:$0xff]   ;;  %v1046_v7 = vld [vmem:[%s1107_s22 + $0x50] sm:$0xff]  }
  0x10   : > { %1011 = vmatprep.mubr.msk.bf16.mxu1 %vm310_vm0, %v1042_v3  ;;  %v1047_v8 = vld [vmem:[%s1107_s22 + $0x18] sm:$0xff]   ;;  %v1049_v10 = vld [vmem:[%s1107_s22 + $0x20] sm:$0xff]   ;;  %v1051_v12 = vld [vmem:[%s1107_s22 + $0x28] sm:$0xff]  }
  0x11   : > { %994 = vmatpush3.bf16.msra.mxu0 %v1040_v1  ;;  %1030 = vmatpush3.bf16.msra.mxu1 %v1040_v1  ;;  %v1048_v9 = vld [vmem:[%s1107_s22 + $0x58] sm:$0xff]   ;;  %v1050_v11 = vld [vmem:[%s1107_s22 + $0x60] sm:$0xff]   ;;  %v1052_v13 = vld [vmem:[%s1107_s22 + $0x68] sm:$0xff]  }
  0x12   : > { %v1053_v14 = vld [vmem:[%s1107_s22 + $0x30] sm:$0xff]   ;;  %v1055_v16 = vld [vmem:[%s1107_s22 + $0x38] sm:$0xff]  }
  0x13   : > { %v1054_v15 = vld [vmem:[%s1107_s22 + $0x70] sm:$0xff]   ;;  %v1056_v17 = vld [vmem:[%s1107_s22 + $0x78] sm:$0xff]  }
  0x14   : > { %996 = vmatmul.mubr.msk.bf16.vlgmr.msra.gmra.mxu0 %vm310_vm0, %v1043_v4  ;;  %1012 = vmatmul.mubr.msk.bf16.vlgmr.msra.gmra.mxu1 %vm310_vm0, %v1044_v5 }
  0x15   : > { %999 = vmatprep.mubr.msk.bf16.mxu0 %vm310_vm0, %v1045_v6  ;;  %1015 = vmatprep.mubr.msk.bf16.mxu1 %vm310_vm0, %v1046_v7 }
  0x1c   : > { %1000 = vmatmul.mubr.msk.bf16.gmra.mxu0 %vm310_vm0, %v1047_v8  ;;  %1016 = vmatmul.mubr.msk.bf16.gmra.mxu1 %vm310_vm0, %v1048_v9 }
  0x1d   : > { %1003 = vmatprep.mubr.msk.bf16.mxu0 %vm310_vm0, %v1049_v10  ;;  %1019 = vmatprep.mubr.msk.bf16.mxu1 %vm310_vm0, %v1050_v11 }
  0x24   : > { %1004 = vmatmul.mubr.msk.bf16.gmra.mxu0 %vm310_vm0, %v1051_v12  ;;  %1020 = vmatmul.mubr.msk.bf16.gmra.mxu1 %vm310_vm0, %v1052_v13 }
  0x25   : > { %1007 = vmatprep.mubr.msk.bf16.mxu0 %vm310_vm0, %v1053_v14  ;;  %1023 = vmatprep.mubr.msk.bf16.mxu1 %vm310_vm0, %v1054_v15 }
  0x2c   : > { %1008 = vmatmul.mubr.msk.bf16.gmra.mxu0 %vm310_vm0, %v1055_v16  ;;  %1024 = vmatmul.mubr.msk.bf16.gmra.mxu1 %vm310_vm0, %v1056_v17 }
  0xd4   : > { %v997_v18 = vpop.f32.mrf.mxu0  ;;  %v1013_v20 = vpop.f32.mrf.mxu1 }
  0xd5   : > { %v402_v22 = vadd.f32 %v997_v18, %v1144_v19  ;;  %v466_v24 = vadd.f32 %v1013_v20, %v1144_v19 }
  0xd6   : > { %v393_v21 = vpop.f32.mrf.mxu0  ;;  %v457_v23 = vpop.f32.mrf.mxu1 }
  0xd7   : > { %v394_v26 = vadd.f32 %v1144_v19, %v393_v21  ;;  %v458_v29 = vadd.f32 %v1144_v19, %v457_v23  ;;  %v522_v32 = vmax.f32 %v402_v22, 0.0  ;;  %v538_v36 = vmax.f32 %v466_v24, 0.0 }
  0xd8   : > { %v998_v25 = vpop.f32.mrf.mxu0  ;;  %v1014_v28 = vpop.f32.mrf.mxu1 }
  0xd9   : > { %v405_v27 = vadd.f32 %v998_v25, %v1144_v19  ;;  %v469_v30 = vadd.f32 %v1014_v28, %v1144_v19  ;;  %v520_v40 = vmax.f32 %v394_v26, 0.0  ;;  %v536_v44 = vmax.f32 %v458_v29, 0.0 }
  0xda   : > { %v396_v31 = vpop.f32.mrf.mxu0  ;;  %v460_v35 = vpop.f32.mrf.mxu1 }
  0xdb   : > { %v523_v33 = vmax.f32 %v405_v27, 0.0  ;;  %v397_v34 = vadd.f32 %v1144_v19, %v396_v31  ;;  %v539_v37 = vmax.f32 %v469_v30, 0.0  ;;  %v461_v38 = vadd.f32 %v1144_v19, %v460_v35 }
  0xdc   : > { %v1001_v39 = vpop.f32.mrf.mxu0  ;;  %v1017_v43 = vpop.f32.mrf.mxu1 }
  0xdd   : > { %v886_v41 = vpack.c.bf16 %v523_v33, %v522_v32  ;;  %v521_v42 = vmax.f32 %v397_v34, 0.0  ;;  %v926_v45 = vpack.c.bf16 %v539_v37, %v538_v36  ;;  %v537_v46 = vmax.f32 %v461_v38, 0.0 }
  0xde   : > { %v409_v47 = vpop.f32.mrf.mxu0  ;;  %v418_v49 = vadd.f32 %v1001_v39, %v1144_v19  ;;  %v473_v50 = vpop.f32.mrf.mxu1  ;;  %v482_v52 = vadd.f32 %v1017_v43, %v1144_v19 }
  0xdf   : > { %958 = vst [vmem:[%s1158_s27 + $0x8] sm:$0xff] %v886_v41   ;;  %v881_v48 = vpack.c.bf16 %v521_v42, %v520_v40  ;;  %966 = vst [vmem:[%s1158_s27 + $0x48] sm:$0xff] %v926_v45   ;;  %v921_v51 = vpack.c.bf16 %v537_v46, %v536_v44  ;;  %v410_v54 = vadd.f32 %v1144_v19, %v409_v47 }
  0xe0   : > { %v1002_v53 = vpop.f32.mrf.mxu0  ;;  %v1018_v56 = vpop.f32.mrf.mxu1  ;;  %v474_v57 = vadd.f32 %v1144_v19, %v473_v50  ;;  %v526_v60 = vmax.f32 %v418_v49, 0.0  ;;  %v542_v0 = vmax.f32 %v482_v52, 0.0 }
  0xe1   : > { %882 = vst [vmem:[%s1158_s27] sm:$0xff] %v881_v48   ;;  %v421_v55 = vadd.f32 %v1002_v53, %v1144_v19  ;;  %965 = vst [vmem:[%s1158_s27 + $0x40] sm:$0xff] %v921_v51   ;;  %v485_v58 = vadd.f32 %v1018_v56, %v1144_v19  ;;  %v524_v4 = vmax.f32 %v410_v54, 0.0 }
  0xe2   : > { %v412_v59 = vpop.f32.mrf.mxu0  ;;  %v476_v63 = vpop.f32.mrf.mxu1  ;;  %v540_v8 = vmax.f32 %v474_v57, 0.0 }
  0xe3   : > { %v527_v61 = vmax.f32 %v421_v55, 0.0  ;;  %v413_v62 = vadd.f32 %v1144_v19, %v412_v59  ;;  %v543_v1 = vmax.f32 %v485_v58, 0.0  ;;  %v477_v2 = vadd.f32 %v1144_v19, %v476_v63 }
  0xe4   : > { %v1005_v3 = vpop.f32.mrf.mxu0  ;;  %v1021_v7 = vpop.f32.mrf.mxu1 }
  0xe5   : > { %v896_v5 = vpack.c.bf16 %v527_v61, %v526_v60  ;;  %v525_v6 = vmax.f32 %v413_v62, 0.0  ;;  %v936_v9 = vpack.c.bf16 %v543_v1, %v542_v0  ;;  %v541_v10 = vmax.f32 %v477_v2, 0.0 }
  0xe6   : > { %v425_v11 = vpop.f32.mrf.mxu0  ;;  %v434_v13 = vadd.f32 %v1005_v3, %v1144_v19  ;;  %v489_v14 = vpop.f32.mrf.mxu1  ;;  %v498_v16 = vadd.f32 %v1021_v7, %v1144_v19 }
  0xe7   : > { %960 = vst [vmem:[%s1158_s27 + $0x18] sm:$0xff] %v896_v5   ;;  %v891_v12 = vpack.c.bf16 %v525_v6, %v524_v4  ;;  %968 = vst [vmem:[%s1158_s27 + $0x58] sm:$0xff] %v936_v9   ;;  %v931_v15 = vpack.c.bf16 %v541_v10, %v540_v8  ;;  %v426_v18 = vadd.f32 %v1144_v19, %v425_v11 }
  0xe8   : > { %v1006_v17 = vpop.f32.mrf.mxu0  ;;  %v1022_v21 = vpop.f32.mrf.mxu1  ;;  %v490_v22 = vadd.f32 %v1144_v19, %v489_v14  ;;  %v530_v25 = vmax.f32 %v434_v13, 0.0  ;;  %v546_v29 = vmax.f32 %v498_v16, 0.0 }
  0xe9   : > { %959 = vst [vmem:[%s1158_s27 + $0x10] sm:$0xff] %v891_v12   ;;  %v437_v20 = vadd.f32 %v1006_v17, %v1144_v19  ;;  %967 = vst [vmem:[%s1158_s27 + $0x50] sm:$0xff] %v931_v15   ;;  %v501_v23 = vadd.f32 %v1022_v21, %v1144_v19  ;;  %v528_v33 = vmax.f32 %v426_v18, 0.0 }
  0xea   : > { %v428_v24 = vpop.f32.mrf.mxu0  ;;  %v492_v28 = vpop.f32.mrf.mxu1  ;;  %v544_v37 = vmax.f32 %v490_v22, 0.0 }
  0xeb   : > { %v531_v26 = vmax.f32 %v437_v20, 0.0  ;;  %v429_v27 = vadd.f32 %v1144_v19, %v428_v24  ;;  %v547_v30 = vmax.f32 %v501_v23, 0.0  ;;  %v493_v31 = vadd.f32 %v1144_v19, %v492_v28 }
  0xec   : > { %v1009_v32 = vpop.f32.mrf.mxu0  ;;  %v1025_v36 = vpop.f32.mrf.mxu1 }
  0xed   : > { %v906_v34 = vpack.c.bf16 %v531_v26, %v530_v25  ;;  %v529_v35 = vmax.f32 %v429_v27, 0.0  ;;  %v946_v38 = vpack.c.bf16 %v547_v30, %v546_v29  ;;  %v545_v39 = vmax.f32 %v493_v31, 0.0 }
  0xee   : > { %v441_v40 = vpop.f32.mrf.mxu0  ;;  %v450_v42 = vadd.f32 %v1009_v32, %v1144_v19  ;;  %v505_v43 = vpop.f32.mrf.mxu1  ;;  %v514_v45 = vadd.f32 %v1025_v36, %v1144_v19 }
  0xef   : > { %962 = vst [vmem:[%s1158_s27 + $0x28] sm:$0xff] %v906_v34   ;;  %v901_v41 = vpack.c.bf16 %v529_v35, %v528_v33  ;;  %970 = vst [vmem:[%s1158_s27 + $0x68] sm:$0xff] %v946_v38   ;;  %v941_v44 = vpack.c.bf16 %v545_v39, %v544_v37  ;;  %v442_v47 = vadd.f32 %v1144_v19, %v441_v40 }
  0xf0   : > { %v1010_v46 = vpop.f32.mrf.mxu0  ;;  %v1026_v49 = vpop.f32.mrf.mxu1  ;;  %v506_v50 = vadd.f32 %v1144_v19, %v505_v43  ;;  %v534_v53 = vmax.f32 %v450_v42, 0.0  ;;  %v550_v57 = vmax.f32 %v514_v45, 0.0 }
  0xf1   : > { %961 = vst [vmem:[%s1158_s27 + $0x20] sm:$0xff] %v901_v41   ;;  %v453_v48 = vadd.f32 %v1010_v46, %v1144_v19  ;;  %969 = vst [vmem:[%s1158_s27 + $0x60] sm:$0xff] %v941_v44   ;;  %v517_v51 = vadd.f32 %v1026_v49, %v1144_v19  ;;  %v532_v60 = vmax.f32 %v442_v47, 0.0 }
  0xf2   : > { %v444_v52 = vpop.f32.mrf.mxu0  ;;  %v508_v56 = vpop.f32.mrf.mxu1  ;;  %v548_v63 = vmax.f32 %v506_v50, 0.0 }
  0xf3   : > { %v535_v54 = vmax.f32 %v453_v48, 0.0  ;;  %v445_v55 = vadd.f32 %v1144_v19, %v444_v52  ;;  %v551_v58 = vmax.f32 %v517_v51, 0.0  ;;  %v509_v59 = vadd.f32 %v1144_v19, %v508_v56 }
  0xf5   : > { %v916_v61 = vpack.c.bf16 %v535_v54, %v534_v53  ;;  %v533_v62 = vmax.f32 %v445_v55, 0.0  ;;  %v956_v0 = vpack.c.bf16 %v551_v58, %v550_v57  ;;  %v549_v1 = vmax.f32 %v509_v59, 0.0 }
  0xf7   : > { %964 = vst [vmem:[%s1158_s27 + $0x38] sm:$0xff] %v916_v61   ;;  %v911_v2 = vpack.c.bf16 %v533_v62, %v532_v60  ;;  %972 = vst [vmem:[%s1158_s27 + $0x78] sm:$0xff] %v956_v0   ;;  %v951_v3 = vpack.c.bf16 %v549_v1, %v548_v63 }
  0xf9   : > { %963 = vst [vmem:[%s1158_s27 + $0x30] sm:$0xff] %v911_v2   ;;  %971 = vst [vmem:[%s1158_s27 + $0x70] sm:$0xff] %v951_v3  }
  0xfa PF: > { %s13_s12 = sadd.s32 1, %s1063_s12  }
  0xfb   : > { %p10_p4 = scmp.ge.s32.totalorder %s13_s12, 4  }
  0xfd   :  { %12 = sbr.rel (!%p10_p4) target bundleno = 1 (0x1), region = 62 }

// kernel: decoder_forward.11
= control target key start
LH: loop header
LB: loop body
LE: loop exit
PB: predicated region body
PF: predicated region fallthrough
CT: control target
= control target key end

     0   :  { %s2950_s1 = inlined_call_operand.vmem [shape: bf16[1152,128], index: 1, kind: input, shape index: {}]   ;;  %s2951_s0 = inlined_call_operand.vmem [shape: bf16[128,1152], index: 0, kind: input, shape index: {}]   ;;  %s2952_s2 = inlined_call_operand.vmem [shape: f32[1,128], index: 2, kind: input, shape index: {}]   ;;  %s2953_s3 = inlined_call_operand.vmem [shape: bf16[128,128], index: 3, kind: output, shape index: {}]  }
   0x1   :  { %v2175_v0 = vld [vmem:[%s2950_s1 + $0x78] sm:$0xff]   ;;  %v2179_v4 = vld [vmem:[%s2950_s1 + $0x70] sm:$0xff]   ;;  %v2183_v8 = vld [vmem:[%s2950_s1 + $0x68] sm:$0xff]  }
   0x2   :  { %v2176_v1 = vld [vmem:[%s2950_s1 + $0xf8] sm:$0xff]   ;;  %1855 = vmatprep.subr.bf16.mxu0 %v2175_v0  ;;  %v2180_v5 = vld [vmem:[%s2950_s1 + $0xf0] sm:$0xff]   ;;  %v2184_v9 = vld [vmem:[%s2950_s1 + $0xe8] sm:$0xff]  }
   0x3   :  { %v2177_v2 = vld [vmem:[%s2950_s1 + $0x38] sm:$0xff]   ;;  %1919 = vmatprep.subr.bf16.mxu1 %v2176_v1  ;;  %v2181_v6 = vld [vmem:[%s2950_s1 + $0x30] sm:$0xff]   ;;  %v2185_v10 = vld [vmem:[%s2950_s1 + $0x28] sm:$0xff]  }
   0x4   :  { %v2178_v3 = vld [vmem:[%s2950_s1 + $0xb8] sm:$0xff]   ;;  %1856 = vmatpush3.bf16.msra.mxu0 %v2177_v2  ;;  %v2182_v7 = vld [vmem:[%s2950_s1 + $0xb0] sm:$0xff]   ;;  %v2186_v11 = vld [vmem:[%s2950_s1 + $0xa8] sm:$0xff]  }
   0x5   :  { %1920 = vmatpush3.bf16.msra.mxu1 %v2178_v3  ;;  %1857 = vmatprep.subr.bf16.mxu0 %v2179_v4  ;;  %v2187_v12 = vld [vmem:[%s2950_s1 + $0x60] sm:$0xff]   ;;  %v2191_v16 = vld [vmem:[%s2950_s1 + $0x58] sm:$0xff]   ;;  %v2195_v20 = vld [vmem:[%s2950_s1 + $0x50] sm:$0xff]  }
   0x6   :  { %1921 = vmatprep.subr.bf16.mxu1 %v2180_v5  ;;  %v2188_v13 = vld [vmem:[%s2950_s1 + $0xe0] sm:$0xff]   ;;  %v2192_v17 = vld [vmem:[%s2950_s1 + $0xd8] sm:$0xff]   ;;  %v2196_v21 = vld [vmem:[%s2950_s1 + $0xd0] sm:$0xff]  }
   0x7   :  { %v2189_v14 = vld [vmem:[%s2950_s1 + $0x20] sm:$0xff]   ;;  %v2193_v18 = vld [vmem:[%s2950_s1 + $0x18] sm:$0xff]   ;;  %v2197_v22 = vld [vmem:[%s2950_s1 + $0x10] sm:$0xff]  }
   0x8   :  { %1858 = vmatpush3.bf16.msra.mxu0 %v2181_v6  ;;  %v2190_v15 = vld [vmem:[%s2950_s1 + $0xa0] sm:$0xff]   ;;  %v2194_v19 = vld [vmem:[%s2950_s1 + $0x98] sm:$0xff]   ;;  %v2198_v23 = vld [vmem:[%s2950_s1 + $0x90] sm:$0xff]  }
   0x9   :  { %1922 = vmatpush3.bf16.msra.mxu1 %v2182_v7  ;;  %1859 = vmatprep.subr.bf16.mxu0 %v2183_v8  ;;  %v2199_v24 = vld [vmem:[%s2950_s1 + $0x48] sm:$0xff]   ;;  %v2203_v28 = vld [vmem:[%s2950_s1 + $0x40] sm:$0xff]   ;;  %v2213_v36 = vld [vmem:[%s2950_s1 + $0x178] sm:$0xff]  }
   0xa   :  { %1923 = vmatprep.subr.bf16.mxu1 %v2184_v9  ;;  %v2200_v25 = vld [vmem:[%s2950_s1 + $0xc8] sm:$0xff]   ;;  %v2204_v29 = vld [vmem:[%s2950_s1 + $0xc0] sm:$0xff]   ;;  %v2214_v37 = vld [vmem:[%s2950_s1 + $0x1f8] sm:$0xff]  }
   0xb   :  { %v2201_v26 = vld [vmem:[%s2950_s1 + $0x8] sm:$0xff]   ;;  %v2205_v30 = vld [vmem:[%s2950_s1] sm:$0xff]   ;;  %v2215_v38 = vld [vmem:[%s2950_s1 + $0x138] sm:$0xff]  }
   0xc   :  { %1860 = vmatpush3.bf16.msra.mxu0 %v2185_v10  ;;  %v2202_v27 = vld [vmem:[%s2950_s1 + $0x88] sm:$0xff]   ;;  %v2206_v31 = vld [vmem:[%s2950_s1 + $0x80] sm:$0xff]   ;;  %v2216_v39 = vld [vmem:[%s2950_s1 + $0x1b8] sm:$0xff]  }
   0xd   :  { %1924 = vmatpush3.bf16.msra.mxu1 %v2186_v11  ;;  %1861 = vmatprep.subr.bf16.mxu0 %v2187_v12  ;;  %v2207_v32 = vld [vmem:[%s2951_s0] ss:$36 sps:$4 sm:$0xff]   ;;  %v2210_v34 = vld [vmem:[%s2951_s0 + $0x8] ss:$36 sps:$4 sm:$0xff]   ;;  %v2219_v41 = vld [vmem:[%s2951_s0 + $0x54] ss:$36 sps:$4 sm:$0xff]  }
   0xe   :  { %1925 = vmatprep.subr.bf16.mxu1 %v2188_v13  ;;  %v2209_v33 = vld [vmem:[%s2951_s0 + $0x4] ss:$36 sps:$4 sm:$0xff]   ;;  %v2212_v35 = vld [vmem:[%s2951_s0 + $0xc] ss:$36 sps:$4 sm:$0xff]   ;;  %v2227_v48 = vld [vmem:[%s2951_s0 + $0x94] ss:$36 sps:$4 sm:$0xff]  }
   0xf   :  { %1078 = vmatprep.mubr.bf16.mxu0 %v2209_v33  ;;  %1175 = vmatprep.mubr.bf16.mxu1 %v2212_v35  ;;  %v2217_v40 = vld [vmem:[%s2951_s0 + $0x4c] ss:$36 sps:$4 sm:$0xff]   ;;  %v2229_v49 = vld [vmem:[%s2951_s0 + $0x9c] ss:$36 sps:$4 sm:$0xff]   ;;  %v2239_v57 = vld [vmem:[%s2951_s0 + $0xe4] ss:$36 sps:$4 sm:$0xff]  }
  0x10   :  { %1862 = vmatpush3.bf16.msra.mxu0 %v2189_v14  ;;  %v2221_v42 = vld [vmem:[%s2951_s0 + $0x48] ss:$36 sps:$4 sm:$0xff]   ;;  %v2222_v43 = vld [vmem:[%s2951_s0 + $0x50] ss:$36 sps:$4 sm:$0xff]   ;;  %v2232_v51 = vld [vmem:[%s2951_s0 + $0x98] ss:$36 sps:$4 sm:$0xff]  }
  0x11   :  { %1926 = vmatpush3.bf16.msra.mxu1 %v2190_v15  ;;  %1863 = vmatprep.subr.bf16.mxu0 %v2191_v16  ;;  %v2223_v44 = vld [vmem:[%s2950_s1 + $0x170] sm:$0xff]   ;;  %v2233_v52 = vld [vmem:[%s2950_s1 + $0x168] sm:$0xff]   ;;  %v2237_v56 = vld [vmem:[%s2951_s0 + $0xdc] ss:$36 sps:$4 sm:$0xff]  }
  0x12   :  { %1927 = vmatprep.subr.bf16.mxu1 %v2192_v17  ;;  %v2224_v45 = vld [vmem:[%s2950_s1 + $0x1f0] sm:$0xff]   ;;  %v2234_v53 = vld [vmem:[%s2950_s1 + $0x1e8] sm:$0xff]   ;;  %v2241_v58 = vld [vmem:[%s2951_s0 + $0xd8] ss:$36 sps:$4 sm:$0xff]  }
  0x13   :  { %v2225_v46 = vld [vmem:[%s2950_s1 + $0x130] sm:$0xff]   ;;  %v2235_v54 = vld [vmem:[%s2950_s1 + $0x128] sm:$0xff]   ;;  %v2242_v59 = vld [vmem:[%s2951_s0 + $0xe0] ss:$36 sps:$4 sm:$0xff]  }
  0x14   :  { %1864 = vmatpush3.bf16.msra.mxu0 %v2193_v18  ;;  %v2226_v47 = vld [vmem:[%s2950_s1 + $0x1b0] sm:$0xff]   ;;  %v2236_v55 = vld [vmem:[%s2950_s1 + $0x1a8] sm:$0xff]   ;;  %v2243_v60 = vld [vmem:[%s2950_s1 + $0x160] sm:$0xff]  }
  0x15   :  { %1928 = vmatpush3.bf16.msra.mxu1 %v2194_v19  ;;  %1865 = vmatprep.subr.bf16.mxu0 %v2195_v20  ;;  %v2231_v50 = vld [vmem:[%s2951_s0 + $0x90] ss:$36 sps:$4 sm:$0xff]   ;;  %v2244_v61 = vld [vmem:[%s2950_s1 + $0x1e0] sm:$0xff]   ;;  %v2253_v3 = vld [vmem:[%s2950_s1 + $0x158] sm:$0xff]  }
  0x16   :  { %1929 = vmatprep.subr.bf16.mxu1 %v2196_v21  ;;  %v2245_v62 = vld [vmem:[%s2950_s1 + $0x120] sm:$0xff]   ;;  %v2249_v1 = vld [vmem:[%s2951_s0 + $0x12c] ss:$36 sps:$4 sm:$0xff]   ;;  %v2254_v5 = vld [vmem:[%s2950_s1 + $0x1d8] sm:$0xff]  }
  0x17   :  { %v2246_v63 = vld [vmem:[%s2950_s1 + $0x1a0] sm:$0xff]   ;;  %v2252_v4 = vld [vmem:[%s2951_s0 + $0x128] ss:$36 sps:$4 sm:$0xff]   ;;  %v2255_v6 = vld [vmem:[%s2950_s1 + $0x118] sm:$0xff]  }
  0x18   :  { %1866 = vmatpush3.bf16.msra.mxu0 %v2197_v22  ;;  %v2247_v0 = vld [vmem:[%s2951_s0 + $0x124] ss:$36 sps:$4 sm:$0xff]   ;;  %v2256_v7 = vld [vmem:[%s2950_s1 + $0x198] sm:$0xff]   ;;  %v2257_v8 = vld [vmem:[%s2951_s0 + $0x16c] ss:$36 sps:$4 sm:$0xff]  }
  0x19   :  { %1930 = vmatpush3.bf16.msra.mxu1 %v2198_v23  ;;  %1867 = vmatprep.subr.bf16.mxu0 %v2199_v24  ;;  %v2251_v2 = vld [vmem:[%s2951_s0 + $0x120] ss:$36 sps:$4 sm:$0xff]   ;;  %v2259_v9 = vld [vmem:[%s2951_s0 + $0x174] ss:$36 sps:$4 sm:$0xff]   ;;  %v2261_v12 = vld [vmem:[%s2951_s0 + $0x168] ss:$36 sps:$4 sm:$0xff]  }
  0x1a   :  { %1931 = vmatprep.subr.bf16.mxu1 %v2200_v25  ;;  %v2263_v10 = vld [vmem:[%s2950_s1 + $0x150] sm:$0xff]   ;;  %v2269_v17 = vld [vmem:[%s2951_s0 + $0x1bc] ss:$36 sps:$4 sm:$0xff]   ;;  %v2273_v18 = vld [vmem:[%s2950_s1 + $0x148] sm:$0xff]  }
  0x1b   :  { %v2264_v11 = vld [vmem:[%s2950_s1 + $0x1d0] sm:$0xff]   ;;  %v2274_v19 = vld [vmem:[%s2950_s1 + $0x1c8] sm:$0xff]   ;;  %v2272_v23 = vld [vmem:[%s2951_s0 + $0x1b8] ss:$36 sps:$4 sm:$0xff]  }
  0x1c   :  { %1868 = vmatpush3.bf16.msra.mxu0 %v2201_v26  ;;  %v2265_v13 = vld [vmem:[%s2950_s1 + $0x110] sm:$0xff]   ;;  %v2275_v20 = vld [vmem:[%s2950_s1 + $0x108] sm:$0xff]   ;;  %v2277_v24 = vld [vmem:[%s2951_s0 + $0x1fc] ss:$36 sps:$4 sm:$0xff]  }
  0x1d   :  { %1932 = vmatpush3.bf16.msra.mxu1 %v2202_v27  ;;  %1869 = vmatprep.subr.bf16.mxu0 %v2203_v28  ;;  %v2266_v14 = vld [vmem:[%s2950_s1 + $0x190] sm:$0xff]   ;;  %v2276_v21 = vld [vmem:[%s2950_s1 + $0x188] sm:$0xff]   ;;  %v2283_v26 = vld [vmem:[%s2950_s1 + $0x140] sm:$0xff]  }
  0x1e   :  { %1933 = vmatprep.subr.bf16.mxu1 %v2204_v29  ;;  %v2262_v15 = vld [vmem:[%s2951_s0 + $0x170] ss:$36 sps:$4 sm:$0xff]   ;;  %v2279_v25 = vld [vmem:[%s2951_s0 + $0x204] ss:$36 sps:$4 sm:$0xff]  }
  0x1f   :  { %v2267_v16 = vld [vmem:[%s2951_s0 + $0x1b4] ss:$36 sps:$4 sm:$0xff]   ;;  %v2284_v27 = vld [vmem:[%s2950_s1 + $0x1c0] sm:$0xff]  }
  0x20   :  { %1870 = vmatpush3.bf16.msra.mxu0 %v2205_v30  ;;  %v2271_v22 = vld [vmem:[%s2951_s0 + $0x1b0] ss:$36 sps:$4 sm:$0xff]   ;;  %v2285_v28 = vld [vmem:[%s2950_s1 + $0x100] sm:$0xff]   ;;  %v2281_v30 = vld [vmem:[%s2951_s0 + $0x1f8] ss:$36 sps:$4 sm:$0xff]  }
  0x21   :  { %1934 = vmatpush3.bf16.msra.mxu1 %v2206_v31  ;;  %1983 = vmatprep.subr.bf16.mxu0 %v2213_v36  ;;  %v2286_v29 = vld [vmem:[%s2950_s1 + $0x180] sm:$0xff]   ;;  %v2289_v33 = vld [vmem:[%s2951_s0 + $0x14] ss:$36 sps:$4 sm:$0xff]  }
  0x22   :  { %2047 = vmatprep.subr.bf16.mxu1 %v2214_v37  ;;  %v2282_v31 = vld [vmem:[%s2951_s0 + $0x200] ss:$36 sps:$4 sm:$0xff]   ;;  %v2287_v35 = vld [vmem:[%s2951_s0 + $0x10] ss:$36 sps:$4 sm:$0xff]   ;;  %v2290_v36 = vld [vmem:[%s2951_s0 + $0x18] ss:$36 sps:$4 sm:$0xff]  }
  0x23   :  { %1079 = vmatmul.mubr.bf16.vlgmr.msra.gmra.mxu0 %v2207_v32  ;;  %v2293_v32 = vld [vmem:[%s2950_s1 + $0x238] sm:$0xff]  }
  0x24   :  { %1176 = vmatmul.mubr.bf16.vlgmr.msra.gmra.mxu1 %v2210_v34  ;;  %1984 = vmatpush3.bf16.msra.mxu0 %v2215_v38  ;;  %v2292_v34 = vld [vmem:[%s2951_s0 + $0x1c] ss:$36 sps:$4 sm:$0xff]   ;;  %v2296_v38 = vld [vmem:[%s2951_s0 + $0x64] ss:$36 sps:$4 sm:$0xff]  }
  0x25   :  { %2048 = vmatpush3.bf16.msra.mxu1 %v2216_v39  ;;  %1086 = vmatprep.mubr.bf16.mxu0 %v2217_v40  ;;  %v2294_v37 = vld [vmem:[%s2951_s0 + $0x5c] ss:$36 sps:$4 sm:$0xff]   ;;  %v2300_v39 = vld [vmem:[%s2950_s1 + $0x230] sm:$0xff]   ;;  %v2307_v40 = vld [vmem:[%s2950_s1 + $0x228] sm:$0xff]  }
  0x26   :  { %1183 = vmatprep.mubr.bf16.mxu1 %v2219_v41  ;;  %1985 = vmatprep.subr.bf16.mxu0 %v2223_v44  ;;  %v2298_v41 = vld [vmem:[%s2951_s0 + $0x58] ss:$36 sps:$4 sm:$0xff]   ;;  %v2303_v44 = vld [vmem:[%s2951_s0 + $0xac] ss:$36 sps:$4 sm:$0xff]  }
  0x27   :  { %2049 = vmatprep.subr.bf16.mxu1 %v2224_v45  ;;  %v2314_v45 = vld [vmem:[%s2950_s1 + $0x220] sm:$0xff]  }
  0x28   :  { %1986 = vmatpush3.bf16.msra.mxu0 %v2225_v46  ;;  %v2321_v46 = vld [vmem:[%s2950_s1 + $0x218] sm:$0xff]  }
  0x29   :  { %2050 = vmatpush3.bf16.msra.mxu1 %v2226_v47  ;;  %1987 = vmatprep.subr.bf16.mxu0 %v2233_v52  ;;  %v2305_v47 = vld [vmem:[%s2951_s0 + $0xa0] ss:$36 sps:$4 sm:$0xff]   ;;  %v2312_v52 = vld [vmem:[%s2951_s0 + $0xe8] ss:$36 sps:$4 sm:$0xff]  }
  0x2a   :  { %2051 = vmatprep.subr.bf16.mxu1 %v2234_v53  ;;  %v2335_v53 = vld [vmem:[%s2950_s1 + $0x208] sm:$0xff]  }
  0x2b   :  { %1087 = vmatmul.mubr.bf16.gmra.mxu0 %v2221_v42  ;;  %v2299_v42 = vld [vmem:[%s2951_s0 + $0x60] ss:$36 sps:$4 sm:$0xff]  }
  0x2c   :  { %1184 = vmatmul.mubr.bf16.gmra.mxu1 %v2222_v43  ;;  %1094 = vmatprep.mubr.bf16.mxu0 %v2227_v48  ;;  %v2301_v43 = vld [vmem:[%s2951_s0 + $0xa4] ss:$36 sps:$4 sm:$0xff]  }
  0x2d   :  { %1191 = vmatprep.mubr.bf16.mxu1 %v2229_v49  ;;  %1988 = vmatpush3.bf16.msra.mxu0 %v2235_v54  ;;  %v2306_v48 = vld [vmem:[%s2951_s0 + $0xa8] ss:$36 sps:$4 sm:$0xff]   ;;  %v2313_v54 = vld [vmem:[%s2951_s0 + $0xf0] ss:$36 sps:$4 sm:$0xff]  }
  0x2e   :  { %2052 = vmatpush3.bf16.msra.mxu1 %v2236_v55  ;;  %1989 = vmatprep.subr.bf16.mxu0 %v2243_v60  ;;  %v2308_v49 = vld [vmem:[%s2951_s0 + $0xec] ss:$36 sps:$4 sm:$0xff]   ;;  %v2315_v55 = vld [vmem:[%s2951_s0 + $0x134] ss:$36 sps:$4 sm:$0xff]   ;;  %v2322_v60 = vld [vmem:[%s2951_s0 + $0x17c] ss:$36 sps:$4 sm:$0xff]  }
  0x2f   :  { %2053 = vmatprep.subr.bf16.mxu1 %v2244_v61  ;;  %v2324_v61 = vld [vmem:[%s2951_s0 + $0x184] ss:$36 sps:$4 sm:$0xff]  }
  0x31   :  { %1990 = vmatpush3.bf16.msra.mxu0 %v2245_v62  ;;  %v2326_v62 = vld [vmem:[%s2951_s0 + $0x178] ss:$36 sps:$4 sm:$0xff]  }
  0x32   :  { %2054 = vmatpush3.bf16.msra.mxu1 %v2246_v63  ;;  %1991 = vmatprep.subr.bf16.mxu0 %v2253_v3  ;;  %v2327_v63 = vld [vmem:[%s2951_s0 + $0x180] ss:$36 sps:$4 sm:$0xff]   ;;  %v2334_v3 = vld [vmem:[%s2951_s0 + $0x1c8] ss:$36 sps:$4 sm:$0xff]  }
  0x33   :  { %1095 = vmatmul.mubr.bf16.gmra.mxu0 %v2231_v50  ;;  %2055 = vmatprep.subr.bf16.mxu1 %v2254_v5  ;;  %v2310_v50 = vld [vmem:[%s2951_s0 + $0xf4] ss:$36 sps:$4 sm:$0xff]  }
  0x34   :  { %1192 = vmatmul.mubr.bf16.gmra.mxu1 %v2232_v51  ;;  %1102 = vmatprep.mubr.bf16.mxu0 %v2237_v56  ;;  %v2328_v51 = vld [vmem:[%s2950_s1 + $0x210] sm:$0xff]   ;;  %v2317_v56 = vld [vmem:[%s2951_s0 + $0x13c] ss:$36 sps:$4 sm:$0xff]  }
  0x35   :  { %1199 = vmatprep.mubr.bf16.mxu1 %v2239_v57  ;;  %1992 = vmatpush3.bf16.msra.mxu0 %v2255_v6  ;;  %v2342_v57 = vld [vmem:[%s2950_s1 + $0x200] sm:$0xff]   ;;  %v2338_v5 = vld [vmem:[%s2951_s0 + $0x214] ss:$36 sps:$4 sm:$0xff]   ;;  %v2340_v6 = vld [vmem:[%s2951_s0 + $0x208] ss:$36 sps:$4 sm:$0xff]  }
  0x36   :  { %2056 = vmatpush3.bf16.msra.mxu1 %v2256_v7  ;;  %1993 = vmatprep.subr.bf16.mxu0 %v2263_v10  ;;  %v2341_v7 = vld [vmem:[%s2951_s0 + $0x210] ss:$36 sps:$4 sm:$0xff]   ;;  %v2345_v10 = vld [vmem:[%s2951_s0 + $0x68] ss:$36 sps:$4 sm:$0xff]  }
  0x37   :  { %2057 = vmatprep.subr.bf16.mxu1 %v2264_v11  ;;  %v2346_v11 = vld [vmem:[%s2951_s0 + $0x188] ss:$36 sps:$4 sm:$0xff]  }
  0x39   :  { %1994 = vmatpush3.bf16.msra.mxu0 %v2265_v13  ;;  %v2348_v13 = vld [vmem:[%s2951_s0 + $0x1d0] ss:$36 sps:$4 sm:$0xff]  }
  0x3a   :  { %2058 = vmatpush3.bf16.msra.mxu1 %v2266_v14  ;;  %1995 = vmatprep.subr.bf16.mxu0 %v2273_v18  ;;  %v2349_v14 = vld [vmem:[%s2951_s0 + $0xf8] ss:$36 sps:$4 sm:$0xff]   ;;  %v2806_v18 = vld [vmem:[%s2952_s2] ss:$0 sm:$0xff] }
  0x3b   :  { %1103 = vmatmul.mubr.bf16.gmra.mxu0 %v2241_v58  ;;  %2059 = vmatprep.subr.bf16.mxu1 %v2274_v19  ;;  %v2319_v58 = vld [vmem:[%s2951_s0 + $0x130] ss:$36 sps:$4 sm:$0xff]  }
  0x3c   :  { %1200 = vmatmul.mubr.bf16.gmra.mxu1 %v2242_v59  ;;  %1110 = vmatprep.mubr.bf16.mxu0 %v2247_v0  ;;  %v2320_v59 = vld [vmem:[%s2951_s0 + $0x138] ss:$36 sps:$4 sm:$0xff]   ;;  %v2329_v0 = vld [vmem:[%s2951_s0 + $0x1c4] ss:$36 sps:$4 sm:$0xff]  }
  0x3d   :  { %1207 = vmatprep.mubr.bf16.mxu1 %v2249_v1  ;;  %1996 = vmatpush3.bf16.msra.mxu0 %v2275_v20  ;;  %v2331_v1 = vld [vmem:[%s2951_s0 + $0x1cc] ss:$36 sps:$4 sm:$0xff]  }
  0x3e   :  { %2060 = vmatpush3.bf16.msra.mxu1 %v2276_v21  ;;  %1997 = vmatprep.subr.bf16.mxu0 %v2283_v26 }
  0x3f   :  { %2061 = vmatprep.subr.bf16.mxu1 %v2284_v27 }
  0x41   :  { %1998 = vmatpush3.bf16.msra.mxu0 %v2285_v28 }
  0x42   :  { %2062 = vmatpush3.bf16.msra.mxu1 %v2286_v29  ;;  %2127 = vmatprep.subr.bf16.mxu0 %v2293_v32 }
  0x43   :  { %1111 = vmatmul.mubr.bf16.gmra.mxu0 %v2251_v2  ;;  %2159 = vmatprep.subr.bf16.mxu1 %v2293_v32  ;;  %v2333_v2 = vld [vmem:[%s2951_s0 + $0x1c0] ss:$36 sps:$4 sm:$0xff]  }
  0x44   :  { %1208 = vmatmul.mubr.bf16.gmra.mxu1 %v2252_v4  ;;  %1118 = vmatprep.mubr.bf16.mxu0 %v2257_v8  ;;  %v2336_v4 = vld [vmem:[%s2951_s0 + $0x20c] ss:$36 sps:$4 sm:$0xff]   ;;  %v2343_v8 = vld [vmem:[%s2951_s0 + $0x20] ss:$36 sps:$4 sm:$0xff]  }
  0x45   :  { %1215 = vmatprep.mubr.bf16.mxu1 %v2259_v9  ;;  %v2344_v9 = vld [vmem:[%s2951_s0 + $0x140] ss:$36 sps:$4 sm:$0xff]  }
  0x4b   :  { %1119 = vmatmul.mubr.bf16.gmra.mxu0 %v2261_v12  ;;  %v2347_v12 = vld [vmem:[%s2951_s0 + $0xb0] ss:$36 sps:$4 sm:$0xff]  }
  0x4c   :  { %1216 = vmatmul.mubr.bf16.gmra.mxu1 %v2262_v15  ;;  %1126 = vmatprep.mubr.bf16.mxu0 %v2267_v16  ;;  %v2350_v15 = vld [vmem:[%s2951_s0 + $0x218] ss:$36 sps:$4 sm:$0xff]  }
  0x4d   :  { %1223 = vmatprep.mubr.bf16.mxu1 %v2269_v17 }
  0x53   :  { %1127 = vmatmul.mubr.bf16.gmra.mxu0 %v2271_v22 }
  0x54   :  { %1224 = vmatmul.mubr.bf16.gmra.mxu1 %v2272_v23  ;;  %1134 = vmatprep.mubr.bf16.mxu0 %v2277_v24 }
  0x55   :  { %1231 = vmatprep.mubr.bf16.mxu1 %v2279_v25 }
  0x5b   :  { %1135 = vmatmul.mubr.bf16.gmra.mxu0 %v2281_v30 }
  0x5c   :  { %1232 = vmatmul.mubr.bf16.gmra.mxu1 %v2282_v31  ;;  %1272 = vmatprep.mubr.bf16.mxu0 %v2289_v33 }
  0x5d   :  { %1369 = vmatprep.mubr.bf16.mxu1 %v2292_v34 }
  0x63   :  { %1273 = vmatmul.mubr.bf16.vlgmr.msra.gmra.mxu0 %v2287_v35 }
  0x64   :  { %1370 = vmatmul.mubr.bf16.vlgmr.msra.gmra.mxu1 %v2290_v36  ;;  %2128 = vmatpush3.bf16.msra.mxu0 %v2293_v32 }
  0x65   :  { %2167 = vmatpush3.bf16.msra.mxu1 %v2293_v32  ;;  %1280 = vmatprep.mubr.bf16.mxu0 %v2294_v37 }
  0x66   :  { %1377 = vmatprep.mubr.bf16.mxu1 %v2296_v38  ;;  %2129 = vmatprep.subr.bf16.mxu0 %v2300_v39 }
  0x67   :  { %2160 = vmatprep.subr.bf16.mxu1 %v2300_v39 }
  0x68   :  { %2130 = vmatpush3.bf16.msra.mxu0 %v2300_v39 }
  0x69   :  { %2168 = vmatpush3.bf16.msra.mxu1 %v2300_v39  ;;  %2131 = vmatprep.subr.bf16.mxu0 %v2307_v40 }
  0x6a   :  { %2161 = vmatprep.subr.bf16.mxu1 %v2307_v40 }
  0x6b   :  { %1281 = vmatmul.mubr.bf16.gmra.mxu0 %v2298_v41 }
  0x6c   :  { %1378 = vmatmul.mubr.bf16.gmra.mxu1 %v2299_v42  ;;  %1288 = vmatprep.mubr.bf16.mxu0 %v2301_v43 }
  0x6d   :  { %1385 = vmatprep.mubr.bf16.mxu1 %v2303_v44  ;;  %2132 = vmatpush3.bf16.msra.mxu0 %v2307_v40 }
  0x6e   :  { %2169 = vmatpush3.bf16.msra.mxu1 %v2307_v40  ;;  %2133 = vmatprep.subr.bf16.mxu0 %v2314_v45 }
  0x6f   :  { %2162 = vmatprep.subr.bf16.mxu1 %v2314_v45 }
  0x71   :  { %2134 = vmatpush3.bf16.msra.mxu0 %v2314_v45 }
  0x72   :  { %2170 = vmatpush3.bf16.msra.mxu1 %v2314_v45  ;;  %2135 = vmatprep.subr.bf16.mxu0 %v2321_v46 }
  0x73   :  { %1289 = vmatmul.mubr.bf16.gmra.mxu0 %v2305_v47  ;;  %2163 = vmatprep.subr.bf16.mxu1 %v2321_v46 }
  0x74   :  { %1386 = vmatmul.mubr.bf16.gmra.mxu1 %v2306_v48  ;;  %1296 = vmatprep.mubr.bf16.mxu0 %v2308_v49 }
  0x75   :  { %1393 = vmatprep.mubr.bf16.mxu1 %v2310_v50  ;;  %2136 = vmatpush3.bf16.msra.mxu0 %v2321_v46 }
  0x76   :  { %2171 = vmatpush3.bf16.msra.mxu1 %v2321_v46  ;;  %2137 = vmatprep.subr.bf16.mxu0 %v2328_v51 }
  0x77   :  { %2164 = vmatprep.subr.bf16.mxu1 %v2328_v51 }
  0x79   :  { %2138 = vmatpush3.bf16.msra.mxu0 %v2328_v51 }
  0x7a   :  { %2172 = vmatpush3.bf16.msra.mxu1 %v2328_v51  ;;  %2139 = vmatprep.subr.bf16.mxu0 %v2335_v53 }
  0x7b   :  { %1297 = vmatmul.mubr.bf16.gmra.mxu0 %v2312_v52  ;;  %2165 = vmatprep.subr.bf16.mxu1 %v2335_v53 }
  0x7c   :  { %1394 = vmatmul.mubr.bf16.gmra.mxu1 %v2313_v54  ;;  %1304 = vmatprep.mubr.bf16.mxu0 %v2315_v55 }
  0x7d   :  { %1401 = vmatprep.mubr.bf16.mxu1 %v2317_v56  ;;  %2140 = vmatpush3.bf16.msra.mxu0 %v2335_v53 }
  0x7e   :  { %2173 = vmatpush3.bf16.msra.mxu1 %v2335_v53  ;;  %2141 = vmatprep.subr.bf16.mxu0 %v2342_v57 }
  0x7f   :  { %2166 = vmatprep.subr.bf16.mxu1 %v2342_v57 }
  0x81   :  { %2142 = vmatpush3.bf16.msra.mxu0 %v2342_v57 }
  0x82   :  { %2174 = vmatpush3.bf16.msra.mxu1 %v2342_v57 }
  0x83   :  { %1305 = vmatmul.mubr.bf16.gmra.mxu0 %v2319_v58 }
  0x84   :  { %1402 = vmatmul.mubr.bf16.gmra.mxu1 %v2320_v59  ;;  %1312 = vmatprep.mubr.bf16.mxu0 %v2322_v60 }
  0x85   :  { %1409 = vmatprep.mubr.bf16.mxu1 %v2324_v61 }
  0x8b   :  { %1313 = vmatmul.mubr.bf16.gmra.mxu0 %v2326_v62 }
  0x8c   :  { %1410 = vmatmul.mubr.bf16.gmra.mxu1 %v2327_v63  ;;  %1320 = vmatprep.mubr.bf16.mxu0 %v2329_v0 }
  0x8d   :  { %1417 = vmatprep.mubr.bf16.mxu1 %v2331_v1 }
  0x93   :  { %1321 = vmatmul.mubr.bf16.gmra.mxu0 %v2333_v2 }
  0x94   :  { %1418 = vmatmul.mubr.bf16.gmra.mxu1 %v2334_v3  ;;  %1328 = vmatprep.mubr.bf16.mxu0 %v2336_v4 }
  0x95   :  { %1425 = vmatprep.mubr.bf16.mxu1 %v2338_v5 }
  0x9b   :  { %1329 = vmatmul.mubr.bf16.gmra.mxu0 %v2340_v6 }
  0x9c   :  { %1426 = vmatmul.mubr.bf16.gmra.mxu1 %v2341_v7  ;;  %2143 = vmatprep.mubr.bf16.mxu0 %v2343_v8 }
  0x9d   :  { %2151 = vmatprep.mubr.bf16.mxu1 %v2344_v9 }
  0xa3   :  { %2144 = vmatmul.mubr.bf16.vlgmr.msra.gmra.mxu0 %v2345_v10 }
  0xa4   :  { %2152 = vmatmul.mubr.bf16.vlgmr.msra.gmra.mxu1 %v2346_v11  ;;  %2147 = vmatprep.mubr.bf16.mxu0 %v2347_v12 }
  0xa5   :  { %2155 = vmatprep.mubr.bf16.mxu1 %v2348_v13 }
  0xab   :  { %2148 = vmatmul.mubr.bf16.gmra.mxu0 %v2349_v14 }
  0xac   :  { %2156 = vmatmul.mubr.bf16.gmra.mxu1 %v2350_v15 }
  0xe3   :  { %v1871_v16 = vpop.f32.mrf.mxu0 }
  0xe4   :  { %v1935_v17 = vpop.f32.mrf.mxu1 }
  0xe5   :  { %v1872_v19 = vpop.f32.mrf.mxu0 }
  0xe6   :  { %v1873_v20 = vadd.f32 %v1872_v19, %v1871_v16  ;;  %v1936_v21 = vpop.f32.mrf.mxu1 }
  0xe7   :  { %v1937_v22 = vadd.f32 %v1936_v21, %v1935_v17  ;;  %v1874_v23 = vpop.f32.mrf.mxu0 }
  0xe8   :  { %v1081_v24 = vadd.f32 %v1873_v20, %v2806_v18  ;;  %v1938_v25 = vpop.f32.mrf.mxu1 }
  0xe9   :  { %v1875_v26 = vpop.f32.mrf.mxu0 }
  0xea   :  { %v2809_v27 = vadd.f32 %v1937_v22, %v1081_v24  ;;  %v1876_v28 = vadd.f32 %v1875_v26, %v1874_v23  ;;  %v1939_v29 = vpop.f32.mrf.mxu1 }
  0xeb   :  { %v1940_v30 = vadd.f32 %v1939_v29, %v1938_v25  ;;  %v1877_v31 = vpop.f32.mrf.mxu0 }
  0xec   :  { %v1084_v32 = vadd.f32 %v1876_v28, %v2806_v18  ;;  %v1941_v33 = vpop.f32.mrf.mxu1 }
  0xed   :  { %v1878_v34 = vpop.f32.mrf.mxu0 }
  0xee   :  { %v2812_v35 = vadd.f32 %v1940_v30, %v1084_v32  ;;  %v1879_v36 = vadd.f32 %v1878_v34, %v1877_v31  ;;  %v1942_v37 = vpop.f32.mrf.mxu1 }
  0xef   :  { %v1943_v38 = vadd.f32 %v1942_v37, %v1941_v33  ;;  %v1880_v39 = vpop.f32.mrf.mxu0 }
  0xf0   :  { %v1089_v40 = vadd.f32 %v1879_v36, %v2806_v18  ;;  %v1944_v41 = vpop.f32.mrf.mxu1 }
  0xf1   :  { %v1881_v42 = vpop.f32.mrf.mxu0 }
  0xf2   :  { %v2815_v43 = vadd.f32 %v1943_v38, %v1089_v40  ;;  %v1882_v44 = vadd.f32 %v1881_v42, %v1880_v39  ;;  %v1945_v45 = vpop.f32.mrf.mxu1 }
  0xf3   :  { %v1946_v46 = vadd.f32 %v1945_v45, %v1944_v41  ;;  %v1883_v47 = vpop.f32.mrf.mxu0 }
  0xf4   :  { %v1092_v48 = vadd.f32 %v1882_v44, %v2806_v18  ;;  %v1947_v49 = vpop.f32.mrf.mxu1 }
  0xf5   :  { %v1884_v50 = vpop.f32.mrf.mxu0 }
  0xf6   :  { %v2818_v51 = vadd.f32 %v1946_v46, %v1092_v48  ;;  %v1885_v52 = vadd.f32 %v1884_v50, %v1883_v47  ;;  %v1948_v53 = vpop.f32.mrf.mxu1 }
  0xf7   :  { %v1949_v54 = vadd.f32 %v1948_v53, %v1947_v49  ;;  %v1886_v55 = vpop.f32.mrf.mxu0 }
  0xf8   :  { %v1097_v56 = vadd.f32 %v1885_v52, %v2806_v18  ;;  %v1950_v57 = vpop.f32.mrf.mxu1 }
  0xf9   :  { %v1887_v58 = vpop.f32.mrf.mxu0 }
  0xfa   :  { %v2821_v59 = vadd.f32 %v1949_v54, %v1097_v56  ;;  %v1888_v60 = vadd.f32 %v1887_v58, %v1886_v55  ;;  %v1951_v61 = vpop.f32.mrf.mxu1 }
  0xfb   :  { %v1952_v62 = vadd.f32 %v1951_v61, %v1950_v57  ;;  %v1889_v63 = vpop.f32.mrf.mxu0 }
  0xfc   :  { %v1100_v0 = vadd.f32 %v1888_v60, %v2806_v18  ;;  %v1953_v1 = vpop.f32.mrf.mxu1 }
  0xfd   :  { %v1890_v2 = vpop.f32.mrf.mxu0 }
  0xfe   :  { %v2824_v3 = vadd.f32 %v1952_v62, %v1100_v0  ;;  %v1891_v4 = vadd.f32 %v1890_v2, %v1889_v63  ;;  %v1954_v5 = vpop.f32.mrf.mxu1 }
  0xff   :  { %v1955_v6 = vadd.f32 %v1954_v5, %v1953_v1  ;;  %v1892_v7 = vpop.f32.mrf.mxu0 }
 0x100   :  { %2954 = vst [vmem:[#allocation2_spill] sm:$0xff] %v2824_v3  ;;  %v1105_v8 = vadd.f32 %v1891_v4, %v2806_v18  ;;  %v1956_v9 = vpop.f32.mrf.mxu1 }
 0x101   :  { %v1893_v10 = vpop.f32.mrf.mxu0 }
 0x102   :  { %v2827_v11 = vadd.f32 %v1955_v6, %v1105_v8  ;;  %v1894_v12 = vadd.f32 %v1893_v10, %v1892_v7  ;;  %v1957_v13 = vpop.f32.mrf.mxu1 }
 0x103   :  { %v1958_v14 = vadd.f32 %v1957_v13, %v1956_v9  ;;  %v1895_v15 = vpop.f32.mrf.mxu0 }
 0x104   :  { %v1108_v16 = vadd.f32 %v1894_v12, %v2806_v18  ;;  %v1959_v17 = vpop.f32.mrf.mxu1 }
 0x105   :  { %v1896_v19 = vpop.f32.mrf.mxu0 }
 0x106   :  { %v2830_v20 = vadd.f32 %v1958_v14, %v1108_v16  ;;  %v1897_v21 = vadd.f32 %v1896_v19, %v1895_v15  ;;  %v1960_v22 = vpop.f32.mrf.mxu1 }
 0x107   :  { %v1961_v23 = vadd.f32 %v1960_v22, %v1959_v17  ;;  %v1898_v24 = vpop.f32.mrf.mxu0 }
 0x108   :  { %2955 = vst [vmem:[#allocation3_spill] sm:$0xff] %v2830_v20  ;;  %v1113_v25 = vadd.f32 %v1897_v21, %v2806_v18  ;;  %v1962_v26 = vpop.f32.mrf.mxu1 }
 0x109   :  { %v1899_v28 = vpop.f32.mrf.mxu0 }
 0x10a   :  { %v2833_v29 = vadd.f32 %v1961_v23, %v1113_v25  ;;  %v1900_v30 = vadd.f32 %v1899_v28, %v1898_v24  ;;  %v1963_v31 = vpop.f32.mrf.mxu1 }
 0x10b   :  { %v1964_v32 = vadd.f32 %v1963_v31, %v1962_v26  ;;  %v1901_v33 = vpop.f32.mrf.mxu0 }
 0x10c   :  { %v1116_v34 = vadd.f32 %v1900_v30, %v2806_v18  ;;  %v1965_v36 = vpop.f32.mrf.mxu1 }
 0x10d   :  { %v1902_v37 = vpop.f32.mrf.mxu0 }
 0x10e   :  { %v2836_v38 = vadd.f32 %v1964_v32, %v1116_v34  ;;  %v1903_v39 = vadd.f32 %v1902_v37, %v1901_v33  ;;  %v1966_v40 = vpop.f32.mrf.mxu1 }
 0x10f   :  { %v1967_v41 = vadd.f32 %v1966_v40, %v1965_v36  ;;  %v1904_v42 = vpop.f32.mrf.mxu0 }
 0x110   :  { %2956 = vst [vmem:[#allocation4_spill] sm:$0xff] %v2836_v38  ;;  %v1121_v44 = vadd.f32 %v1903_v39, %v2806_v18  ;;  %v1968_v45 = vpop.f32.mrf.mxu1 }
 0x111   :  { %v1905_v46 = vpop.f32.mrf.mxu0 }
 0x112   :  { %v2839_v47 = vadd.f32 %v1967_v41, %v1121_v44  ;;  %v1906_v48 = vadd.f32 %v1905_v46, %v1904_v42  ;;  %v1969_v49 = vpop.f32.mrf.mxu1 }
 0x113   :  { %v1970_v50 = vadd.f32 %v1969_v49, %v1968_v45  ;;  %v1907_v52 = vpop.f32.mrf.mxu0 }
 0x114   :  { %v1124_v53 = vadd.f32 %v1906_v48, %v2806_v18  ;;  %v1971_v54 = vpop.f32.mrf.mxu1 }
 0x115   :  { %v1908_v55 = vpop.f32.mrf.mxu0 }
 0x116   :  { %v2842_v56 = vadd.f32 %v1970_v50, %v1124_v53  ;;  %v1909_v57 = vadd.f32 %v1908_v55, %v1907_v52  ;;  %v1972_v58 = vpop.f32.mrf.mxu1 }
 0x117   :  { %v1973_v60 = vadd.f32 %v1972_v58, %v1971_v54  ;;  %v1910_v61 = vpop.f32.mrf.mxu0 }
 0x118   :  { %2957 = vst [vmem:[#allocation5_spill] sm:$0xff] %v2842_v56  ;;  %v1129_v62 = vadd.f32 %v1909_v57, %v2806_v18  ;;  %v1974_v63 = vpop.f32.mrf.mxu1 }
 0x119   :  { %v1911_v0 = vpop.f32.mrf.mxu0 }
 0x11a   :  { %v2845_v1 = vadd.f32 %v1973_v60, %v1129_v62  ;;  %v1912_v2 = vadd.f32 %v1911_v0, %v1910_v61  ;;  %v1975_v4 = vpop.f32.mrf.mxu1 }
 0x11b   :  { %v1976_v5 = vadd.f32 %v1975_v4, %v1974_v63  ;;  %v1913_v6 = vpop.f32.mrf.mxu0 }
 0x11c   :  { %2958 = vst [vmem:[#allocation6_spill] sm:$0xff] %v2845_v1  ;;  %v1132_v7 = vadd.f32 %v1912_v2, %v2806_v18  ;;  %v1977_v8 = vpop.f32.mrf.mxu1 }
 0x11d   :  { %v1914_v9 = vpop.f32.mrf.mxu0 }
 0x11e   :  { %v2848_v10 = vadd.f32 %v1976_v5, %v1132_v7  ;;  %v1915_v12 = vadd.f32 %v1914_v9, %v1913_v6  ;;  %v1978_v13 = vpop.f32.mrf.mxu1 }
 0x11f   :  { %v1979_v14 = vadd.f32 %v1978_v13, %v1977_v8  ;;  %v1916_v15 = vpop.f32.mrf.mxu0 }
 0x120   :  { %2959 = vst [vmem:[#allocation7_spill] sm:$0xff] %v2848_v10  ;;  %v1137_v16 = vadd.f32 %v1915_v12, %v2806_v18  ;;  %v1980_v17 = vpop.f32.mrf.mxu1 }
 0x121   :  { %v1917_v19 = vpop.f32.mrf.mxu0 }
 0x122   :  { %v2851_v21 = vadd.f32 %v1979_v14, %v1137_v16  ;;  %v1918_v22 = vadd.f32 %v1917_v19, %v1916_v15  ;;  %v1981_v23 = vpop.f32.mrf.mxu1 }
 0x123   :  { %v1982_v24 = vadd.f32 %v1981_v23, %v1980_v17  ;;  %v1999_v25 = vpop.f32.mrf.mxu0 }
 0x124   :  { %2960 = vst [vmem:[#allocation8_spill] sm:$0xff] %v2851_v21  ;;  %v1140_v26 = vadd.f32 %v1918_v22, %v2806_v18  ;;  %v2063_v28 = vpop.f32.mrf.mxu1 }
 0x125   :  { %v2000_v30 = vpop.f32.mrf.mxu0 }
 0x126   :  { %v2854_v31 = vadd.f32 %v1982_v24, %v1140_v26  ;;  %v2001_v32 = vadd.f32 %v2000_v30, %v1999_v25  ;;  %v2064_v33 = vpop.f32.mrf.mxu1 }
 0x127   :  { %v2002_v34 = vpop.f32.mrf.mxu0  ;;  %v2065_v37 = vadd.f32 %v2064_v33, %v2063_v28 }
 0x128   :  { %2961 = vst [vmem:[#allocation9_spill] sm:$0xff] %v2854_v31  ;;  %v1275_v36 = vadd.f32 %v2001_v32, %v2809_v27  ;;  %v2857_v39 = vpop.f32.mrf.mxu1 }
 0x129   :  { %v2003_v40 = vpop.f32.mrf.mxu0 }
 0x12a   :  { %v2859_v41 = vpop.f32.mrf.mxu1  ;;  %v2861_v42 = vadd.f32 %v2065_v37, %v1275_v36  ;;  %v2004_v10 = vadd.f32 %v2003_v40, %v2002_v34 }
 0x12b   :  { %v2005_v44 = vpop.f32.mrf.mxu0 }
 0x12c   :  { %2962 = vst [vmem:[#allocation10_spill] sm:$0xff] %v2861_v42  ;;  %v2069_v45 = vpop.f32.mrf.mxu1  ;;  %v1278_v56 = vadd.f32 %v2004_v10, %v2812_v35 }
 0x12d   :  { %v2006_v18 = vpop.f32.mrf.mxu0 }
 0x12e   :  { %v2070_v46 = vpop.f32.mrf.mxu1  ;;  %v2007_v42 = vadd.f32 %v2006_v18, %v2005_v44  ;;  %v2068_v44 = vadd.f32 %v2859_v41, %v2857_v39 }
 0x12f   :  { %v2008_v48 = vpop.f32.mrf.mxu0  ;;  %v2071_v18 = vadd.f32 %v2070_v46, %v2069_v45 }
 0x130   :  { %v2072_v49 = vpop.f32.mrf.mxu1 }
 0x131   :  { %v2009_v50 = vpop.f32.mrf.mxu0 }
 0x132   :  { %v2073_v52 = vpop.f32.mrf.mxu1  ;;  %v2010_v21 = vadd.f32 %v2009_v50, %v2008_v48 }
 0x133   :  { %v2011_v53 = vpop.f32.mrf.mxu0  ;;  %v2074_v48 = vadd.f32 %v2073_v52, %v2072_v49 }
 0x134   :  { %v2075_v54 = vpop.f32.mrf.mxu1 }
 0x135   :  { %v2012_v55 = vpop.f32.mrf.mxu0 }
 0x136   :  { %v2076_v27 = vpop.f32.mrf.mxu1 }
 0x137   :  { %v2014_v57 = vpop.f32.mrf.mxu0 }
 0x138   :  { %v2863_v58 = vpop.f32.mrf.mxu1 }
 0x139   :  { %v2015_v60 = vpop.f32.mrf.mxu0 }
 0x13a   :  { %v2865_v61 = vpop.f32.mrf.mxu1  ;;  %v2016_v35 = vadd.f32 %v2015_v60, %v2014_v57 }
 0x13b   :  { %v2017_v62 = vpop.f32.mrf.mxu0  ;;  %v2899_v41 = vadd.f32 %v2865_v61, %v2863_v58 }
 0x13c   :  { %v2867_v63 = vpop.f32.mrf.mxu1 }
 0x13d   :  { %v2018_v0 = vpop.f32.mrf.mxu0 }
 0x13e   :  { %v2082_v2 = vpop.f32.mrf.mxu1  ;;  %v2019_v38 = vadd.f32 %v2018_v0, %v2017_v62 }
 0x13f   :  { %v2020_v4 = vpop.f32.mrf.mxu0  ;;  %v2083_v45 = vadd.f32 %v2082_v2, %v2867_v63 }
 0x140   :  { %v2869_v5 = vpop.f32.mrf.mxu1 }
 0x141   :  { %2963 = vst [vmem:[#allocation11_spill] sm:$0xff] %v2869_v5  ;;  %v2021_v6 = vpop.f32.mrf.mxu0 }
 0x142   :  { %v2871_v7 = vpop.f32.mrf.mxu1  ;;  %v2022_v46 = vadd.f32 %v2021_v6, %v2020_v4 }
 0x143   :  { %2964 = vst [vmem:[#allocation12_spill] sm:$0xff] %v2871_v7  ;;  %v2023_v8 = vpop.f32.mrf.mxu0  ;;  %v2013_v7 = vadd.f32 %v2012_v55, %v2011_v53  ;;  %v2077_v55 = vadd.f32 %v2076_v27, %v2075_v54  ;;  %v2971_v27 = vld [vmem:[#allocation5_spill] sm:$0xff] }
 0x144   :  { %v2873_v9 = vpop.f32.mrf.mxu1 }
 0x145   :  { %2965 = vst [vmem:[#allocation13_spill] sm:$0xff] %v2873_v9  ;;  %v2024_v12 = vpop.f32.mrf.mxu0  ;;  %v1291_v34 = vadd.f32 %v2013_v7, %v2821_v59 }
 0x146   :  { %v2088_v13 = vpop.f32.mrf.mxu1  ;;  %v2025_v50 = vadd.f32 %v2024_v12, %v2023_v8 }
 0x147   :  { %v2026_v14 = vpop.f32.mrf.mxu0  ;;  %v2895_v39 = vadd.f32 %v2077_v55, %v1291_v34  ;;  %v2981_v55 = vld [vmem:[#allocation7_spill] sm:$0xff] }
 0x148   :  { %v2090_v15 = vpop.f32.mrf.mxu1  ;;  %v1307_v49 = vadd.f32 %v2025_v50, %v2833_v29 }
 0x149   :  { %v2027_v16 = vpop.f32.mrf.mxu0 }
 0x14a   :  { %v2091_v17 = vpop.f32.mrf.mxu1  ;;  %v2028_v10 = vadd.f32 %v2027_v16, %v2026_v14 }
 0x14b   :  { %v2029_v19 = vpop.f32.mrf.mxu0  ;;  %v2092_v14 = vadd.f32 %v2091_v17, %v2090_v15 }
 0x14c   :  { %v2093_v22 = vpop.f32.mrf.mxu1  ;;  %v2972_v8 = vld [vmem:[#allocation13_spill] sm:$0xff] }
 0x14d   :  { %v2030_v23 = vpop.f32.mrf.mxu0  ;;  %v2089_v12 = vadd.f32 %v2088_v13, %v2972_v8 }
 0x14e   :  { %v2094_v24 = vpop.f32.mrf.mxu1  ;;  %v2031_v40 = vadd.f32 %v2030_v23, %v2029_v19  ;;  %v2973_v23 = vld [vmem:[#allocation3_spill] sm:$0xff] }
 0x14f   :  { %v2032_v25 = vpop.f32.mrf.mxu0  ;;  %v2095_v54 = vadd.f32 %v2094_v24, %v2093_v22  ;;  %v1404_v24 = vadd.f32 %v2089_v12, %v1307_v49 }
 0x150   :  { %v2096_v26 = vpop.f32.mrf.mxu1  ;;  %v1315_v59 = vadd.f32 %v2031_v40, %v2839_v47 }
 0x151   :  { %v2033_v28 = vpop.f32.mrf.mxu0 }
 0x152   :  { %v2097_v30 = vpop.f32.mrf.mxu1  ;;  %v2034_v62 = vadd.f32 %v2033_v28, %v2032_v25  ;;  %v1412_v29 = vadd.f32 %v2095_v54, %v1315_v59  ;;  %v1302_v25 = vadd.f32 %v2022_v46, %v2973_v23  ;;  %v2974_v28 = vld [vmem:[#allocation11_spill] sm:$0xff]  ;;  %v2982_v46 = vld [vmem:[#allocation9_spill] sm:$0xff] }
 0x153   :  { %v2035_v32 = vpop.f32.mrf.mxu0  ;;  %v2098_v63 = vadd.f32 %v2097_v30, %v2096_v26  ;;  %v2978_v30 = vld [vmem:[#allocation8_spill] sm:$0xff] }
 0x154   :  { %v2875_v33 = vpop.f32.mrf.mxu1  ;;  %v1318_v57 = vadd.f32 %v2034_v62, %v2971_v27 }
 0x155   :  { %2966 = vst [vmem:[#allocation14_spill] sm:$0xff] %v2875_v33  ;;  %v2036_v36 = vpop.f32.mrf.mxu0  ;;  %v1283_v33 = vadd.f32 %v2007_v42, %v2815_v43  ;;  %v1299_v43 = vadd.f32 %v2019_v38, %v2827_v11  ;;  %v2969_v38 = vld [vmem:[#allocation2_spill] sm:$0xff] }
 0x156   :  { %v2877_v37 = vpop.f32.mrf.mxu1  ;;  %v2904_v52 = vadd.f32 %v2016_v35, %v2969_v38  ;;  %v2037_v2 = vadd.f32 %v2036_v36, %v2035_v32  ;;  %v1415_v15 = vadd.f32 %v2098_v63, %v1318_v57 }
 0x157   :  { %2967 = vst [vmem:[#allocation15_spill] sm:$0xff] %v2877_v37  ;;  %v2038_v31 = vpop.f32.mrf.mxu0  ;;  %v1286_v37 = vadd.f32 %v2010_v21, %v2818_v51  ;;  %v1375_v51 = vadd.f32 %v2068_v44, %v1278_v56  ;;  %v1380_v7 = vadd.f32 %v2071_v18, %v1283_v33  ;;  %v2970_v56 = vld [vmem:[#allocation4_spill] sm:$0xff]  ;;  %v1396_v16 = vadd.f32 %v2083_v45, %v1299_v43 }
 0x158   :  { %v2879_v1 = vpop.f32.mrf.mxu1  ;;  %v1310_v47 = vadd.f32 %v2028_v10, %v2970_v56  ;;  %v2975_v33 = vld [vmem:[#allocation12_spill] sm:$0xff] }
 0x159   :  { %2968 = vst [vmem:[#allocation16_spill] sm:$0xff] %v2879_v1  ;;  %v2039_v5 = vpop.f32.mrf.mxu0  ;;  %v1383_v19 = vadd.f32 %v2074_v48, %v1286_v37  ;;  %v2086_v37 = vadd.f32 %v2975_v33, %v2974_v28  ;;  %v2980_v48 = vld [vmem:[#allocation6_spill] sm:$0xff] }
 0x15a   :  { %v2881_v20 = vpop.f32.mrf.mxu1  ;;  %v2040_v4 = vadd.f32 %v2039_v5, %v2038_v31  ;;  %v2979_v5 = vld [vmem:[#allocation10_spill] sm:$0xff]  ;;  %v1323_v50 = vadd.f32 %v2037_v2, %v2980_v48 }
 0x15b   :  { %v2041_v9 = vpop.f32.mrf.mxu0 }
 0x15c   :  { %v2884_v3 = vpop.f32.mrf.mxu1  ;;  %v1326_v35 = vadd.f32 %v2040_v4, %v2981_v55  ;;  %v1399_v4 = vadd.f32 %v2086_v37, %v1302_v25  ;;  %v1391_v25 = vadd.f32 %v2899_v41, %v2904_v52 }
 0x15d   :  { %v2042_v1 = vpop.f32.mrf.mxu0 }
 0x15e   :  { %v2106_v53 = vpop.f32.mrf.mxu1  ;;  %v2043_v58 = vadd.f32 %v2042_v1, %v2041_v9  ;;  %v1407_v1 = vadd.f32 %v2092_v14, %v1310_v47  ;;  %v2976_v9 = vld [vmem:[#allocation14_spill] sm:$0xff]  ;;  %v2977_v17 = vld [vmem:[#allocation15_spill] sm:$0xff] }
 0x15f   :  { %v2044_v0 = vpop.f32.mrf.mxu0  ;;  %v2101_v26 = vadd.f32 %v2977_v17, %v2976_v9  ;;  %v2107_v43 = vadd.f32 %v2106_v53, %v2884_v3 }
 0x160   :  { %v2892_v42 = vpop.f32.mrf.mxu1  ;;  %v1331_v31 = vadd.f32 %v2043_v58, %v2978_v30 }
 0x161   :  { %v2045_v21 = vpop.f32.mrf.mxu0  ;;  %v1420_v63 = vadd.f32 %v2101_v26, %v1323_v50 }
 0x162   :  { %v2109_v11 = vpop.f32.mrf.mxu1  ;;  %v2046_v40 = vadd.f32 %v2045_v21, %v2044_v0 }
 0x163   :  { %v2145_v60 = vpop.f32.mrf.mxu0  ;;  %v2110_v12 = vadd.f32 %v2109_v11, %v2892_v42 }
 0x164   :  { %v2153_v61 = vpop.f32.mrf.mxu1  ;;  %v1477_v22 = vadd.f32 %v2145_v60, %v1380_v7  ;;  %v1334_v49 = vadd.f32 %v2046_v40, %v2982_v46  ;;  %v1428_v60 = vadd.f32 %v2107_v43, %v1331_v31 }
 0x165   :  { %v1468_v6 = vpop.f32.mrf.mxu0  ;;  %v1509_v44 = vadd.f32 %v2153_v61, %v1412_v29  ;;  %v2983_v29 = vld [vmem:[#allocation16_spill] sm:$0xff] }
 0x166   :  { %v1500_v34 = vpop.f32.mrf.mxu1  ;;  %v1469_v32 = vadd.f32 %v1468_v6, %v2979_v5  ;;  %v1533_v59 = vmax.f32 %v1477_v22, 0.0  ;;  %v2104_v6 = vadd.f32 %v2881_v20, %v2983_v29  ;;  %v1431_v28 = vadd.f32 %v2110_v12, %v1334_v49 }
 0x167   :  { %v2146_v13 = vpop.f32.mrf.mxu0  ;;  %v1501_v10 = vadd.f32 %v1500_v34, %v1404_v24  ;;  %v1541_v38 = vmax.f32 %v1509_v44, 0.0 }
 0x168   :  { %v1480_v36 = vadd.f32 %v2146_v13, %v1383_v19  ;;  %v2154_v18 = vpop.f32.mrf.mxu1  ;;  %v1531_v54 = vmax.f32 %v1469_v32, 0.0  ;;  %v1423_v34 = vadd.f32 %v2104_v6, %v1326_v35 }
 0x169   :  { %v1512_v62 = vadd.f32 %v2154_v18, %v1415_v15  ;;  %v1471_v0 = vpop.f32.mrf.mxu0  ;;  %v1539_v14 = vmax.f32 %v1501_v10, 0.0 }
 0x16a   :  { %v1534_v21 = vmax.f32 %v1480_v36, 0.0  ;;  %v1472_v7 = vadd.f32 %v1471_v0, %v1375_v51  ;;  %v1503_v45 = vpop.f32.mrf.mxu1 }
 0x16b   :  { %v1542_v56 = vmax.f32 %v1512_v62, 0.0  ;;  %v1504_v47 = vadd.f32 %v1503_v45, %v1407_v1  ;;  %v2149_v19 = vpop.f32.mrf.mxu0 }
 0x16c   :  { %v1816_v27 = vpack.c.bf16 %v1534_v21, %v1533_v59  ;;  %v1532_v57 = vmax.f32 %v1472_v7, 0.0  ;;  %v2157_v8 = vpop.f32.mrf.mxu1  ;;  %v1493_v61 = vadd.f32 %v2149_v19, %v1396_v16 }
 0x16d   :  { %v1836_v58 = vpack.c.bf16 %v1542_v56, %v1541_v38  ;;  %v1540_v3 = vmax.f32 %v1504_v47, 0.0  ;;  %v1484_v53 = vpop.f32.mrf.mxu0  ;;  %v1525_v11 = vadd.f32 %v2157_v8, %v1428_v60 }
 0x16e   :  { %1848 = vst [vmem:[%s2953_s3 + $0x8] sm:$0xff] %v1816_v27   ;;  %v1811_v51 = vpack.c.bf16 %v1532_v57, %v1531_v54  ;;  %v1516_v2 = vpop.f32.mrf.mxu1  ;;  %v1485_v16 = vadd.f32 %v1484_v53, %v2895_v39  ;;  %v1537_v40 = vmax.f32 %v1493_v61, 0.0 }
 0x16f   :  { %1852 = vst [vmem:[%s2953_s3 + $0x28] sm:$0xff] %v1836_v58   ;;  %v1831_v42 = vpack.c.bf16 %v1540_v3, %v1539_v14  ;;  %v2150_v23 = vpop.f32.mrf.mxu0  ;;  %v1517_v20 = vadd.f32 %v1516_v2, %v1420_v63  ;;  %v1545_v1 = vmax.f32 %v1525_v11, 0.0 }
 0x170   :  { %1812 = vst [vmem:[%s2953_s3] sm:$0xff] %v1811_v51   ;;  %v1496_v33 = vadd.f32 %v2150_v23, %v1399_v4  ;;  %v2158_v22 = vpop.f32.mrf.mxu1  ;;  %v1535_v17 = vmax.f32 %v1485_v16, 0.0 }
 0x171   :  { %1851 = vst [vmem:[%s2953_s3 + $0x20] sm:$0xff] %v1831_v42   ;;  %v1528_v37 = vadd.f32 %v2158_v22, %v1431_v28  ;;  %v1487_v24 = vpop.f32.mrf.mxu0  ;;  %v1543_v31 = vmax.f32 %v1517_v20, 0.0 }
 0x172   :  { %v1538_v44 = vmax.f32 %v1496_v33, 0.0  ;;  %v1488_v13 = vadd.f32 %v1487_v24, %v1391_v25  ;;  %v1519_v15 = vpop.f32.mrf.mxu1 }
 0x173   :  { %v1546_v9 = vmax.f32 %v1528_v37, 0.0  ;;  %v1520_v39 = vadd.f32 %v1519_v15, %v1423_v34 }
 0x174   :  { %v1826_v26 = vpack.c.bf16 %v1538_v44, %v1537_v40  ;;  %v1536_v30 = vmax.f32 %v1488_v13, 0.0 }
 0x175   :  { %v1846_v41 = vpack.c.bf16 %v1546_v9, %v1545_v1  ;;  %v1544_v52 = vmax.f32 %v1520_v39, 0.0 }
 0x176   :  { %1850 = vst [vmem:[%s2953_s3 + $0x18] sm:$0xff] %v1826_v26   ;;  %v1821_v5 = vpack.c.bf16 %v1536_v30, %v1535_v17 }
 0x177   :  { %1854 = vst [vmem:[%s2953_s3 + $0x38] sm:$0xff] %v1846_v41   ;;  %v1841_v32 = vpack.c.bf16 %v1544_v52, %v1543_v31 }
 0x178   :  { %1849 = vst [vmem:[%s2953_s3 + $0x10] sm:$0xff] %v1821_v5  }
 0x179   :  { %1853 = vst [vmem:[%s2953_s3 + $0x30] sm:$0xff] %v1841_v32  }

// kernel: decoder_forward.12
= control target key start
LH: loop header
LB: loop body
LE: loop exit
PB: predicated region body
PF: predicated region fallthrough
CT: control target
= control target key end

     0   :  { %v10273_v22 = vmov 1966171168   ;;  %v186_v24 = vlaneseq  ;;  %vm10275_vm0 = vmmov 0   ;;  %vm6887_vm1 = vcmask 41984   ;;  %s14672_s1 = inlined_call_operand.vmem [shape: bf16[1152,128], index: 1, kind: input, shape index: {}]   ;;  %s14673_s0 = inlined_call_operand.vmem [shape: bf16[16,2,1152], index: 0, kind: input, shape index: {}]   ;;  %s14674_s3 = inlined_call_operand.vmem [shape: bf16[16,128,128], index: 3, kind: input, shape index: {}]   ;;  %s14675_s2 = inlined_call_operand.vmem [shape: f32[1,128], index: 2, kind: input, shape index: {}]   ;;  %s14676_s5 = inlined_call_operand.vmem [shape: bf16[128,6], index: 5, kind: input, shape index: {}]   ;;  %s14677_s4 = inlined_call_operand.vmem [shape: f32[1,128], index: 4, kind: input, shape index: {}]   ;;  %s14678_s6 = inlined_call_operand.vmem [shape: f32[1,6], index: 6, kind: input, shape index: {}]   ;;  %s14679_s7 = inlined_call_operand.vmem [shape: f32[2,6], index: 7, kind: output, shape index: {}]  }
   0x1   :  { %v10319_v0 = vld [vmem:[%s14672_s1 + $0x78] sm:$0xff]   ;;  %v10342_v4 = vld [vmem:[%s14672_s1 + $0x70] sm:$0xff]   ;;  %v10366_v8 = vld [vmem:[%s14672_s1 + $0x68] sm:$0xff]   ;;  %v184_v23 = vunpack.c.l.s4 %v10273_v22 }
   0x2   :  { %v10324_v1 = vld [vmem:[%s14672_s1 + $0xf8] sm:$0xff]   ;;  %7390 = vmatprep.subr.bf16.mxu0 %v10319_v0  ;;  %v10348_v5 = vld [vmem:[%s14672_s1 + $0xf0] sm:$0xff]   ;;  %v10372_v9 = vld [vmem:[%s14672_s1 + $0xe8] sm:$0xff]   ;;  %v187_v30 = vshrl.u32 %v186_v24, 7 }
   0x3   :  { %v10330_v2 = vld [vmem:[%s14672_s1 + $0x38] sm:$0xff]   ;;  %7412 = vmatprep.subr.bf16.mxu1 %v10324_v1  ;;  %v10354_v6 = vld [vmem:[%s14672_s1 + $0x30] sm:$0xff]   ;;  %v10378_v10 = vld [vmem:[%s14672_s1 + $0x28] sm:$0xff]   ;;  %v185_v29 = vunpack.c.0.s8 %v184_v23 }
   0x4   :  { %v10336_v3 = vld [vmem:[%s14672_s1 + $0xb8] sm:$0xff]   ;;  %7391 = vmatpush3.bf16.msra.mxu0 %v10330_v2  ;;  %v10360_v7 = vld [vmem:[%s14672_s1 + $0xb0] sm:$0xff]   ;;  %v10384_v11 = vld [vmem:[%s14672_s1 + $0xa8] sm:$0xff]  }
   0x5   :  { %7413 = vmatpush3.bf16.msra.mxu1 %v10336_v3  ;;  %7392 = vmatprep.subr.bf16.mxu0 %v10342_v4  ;;  %v10390_v12 = vld [vmem:[%s14672_s1 + $0x60] sm:$0xff]   ;;  %v10414_v16 = vld [vmem:[%s14672_s1 + $0x58] sm:$0xff]   ;;  %v10438_v20 = vld [vmem:[%s14672_s1 + $0x50] sm:$0xff]   ;;  %v10494_v35 = vsub.s32 %v185_v29, %v187_v30 }
   0x6   :  { %7414 = vmatprep.subr.bf16.mxu1 %v10348_v5  ;;  %v10396_v13 = vld [vmem:[%s14672_s1 + $0xe0] sm:$0xff]   ;;  %v10420_v17 = vld [vmem:[%s14672_s1 + $0xd8] sm:$0xff]   ;;  %v10444_v21 = vld [vmem:[%s14672_s1 + $0xd0] sm:$0xff]  }
   0x7   :  { %v10402_v14 = vld [vmem:[%s14672_s1 + $0x20] sm:$0xff]   ;;  %v10426_v18 = vld [vmem:[%s14672_s1 + $0x18] sm:$0xff]   ;;  %v10450_v25 = vld [vmem:[%s14672_s1 + $0x10] sm:$0xff]  }
   0x8   :  { %7393 = vmatpush3.bf16.msra.mxu0 %v10354_v6  ;;  %v10408_v15 = vld [vmem:[%s14672_s1 + $0xa0] sm:$0xff]   ;;  %v10432_v19 = vld [vmem:[%s14672_s1 + $0x98] sm:$0xff]   ;;  %v10456_v26 = vld [vmem:[%s14672_s1 + $0x90] sm:$0xff]  }
   0x9   :  { %7415 = vmatpush3.bf16.msra.mxu1 %v10360_v7  ;;  %7394 = vmatprep.subr.bf16.mxu0 %v10366_v8  ;;  %v10462_v27 = vld [vmem:[%s14672_s1 + $0x48] sm:$0xff]   ;;  %v10486_v33 = vld [vmem:[%s14672_s1 + $0x40] sm:$0xff]   ;;  %v10517_v41 = vld [vmem:[%s14672_s1 + $0x178] sm:$0xff]  }
   0xa   :  { %7416 = vmatprep.subr.bf16.mxu1 %v10372_v9  ;;  %v10468_v28 = vld [vmem:[%s14672_s1 + $0xc8] sm:$0xff]   ;;  %v10492_v34 = vld [vmem:[%s14672_s1 + $0xc0] sm:$0xff]   ;;  %v10522_v42 = vld [vmem:[%s14672_s1 + $0x1f8] sm:$0xff]  }
   0xb   :  { %v10474_v31 = vld [vmem:[%s14672_s1 + $0x8] sm:$0xff]   ;;  %v10500_v36 = vld [vmem:[%s14672_s1] sm:$0xff]   ;;  %v10534_v47 = vld [vmem:[%s14672_s1 + $0x138] sm:$0xff]  }
   0xc   :  { %7395 = vmatpush3.bf16.msra.mxu0 %v10378_v10  ;;  %v10480_v32 = vld [vmem:[%s14672_s1 + $0x88] sm:$0xff]   ;;  %v10506_v37 = vld [vmem:[%s14672_s1 + $0x80] sm:$0xff]   ;;  %v10541_v50 = vld [vmem:[%s14672_s1 + $0x170] sm:$0xff]  }
   0xd   :  { %7417 = vmatpush3.bf16.msra.mxu1 %v10384_v11  ;;  %7396 = vmatprep.subr.bf16.mxu0 %v10390_v12  ;;  %v27_v38 = vld [vmem:[%s14673_s0] sm:$0xff]  ;;  %v10546_v52 = vld [vmem:[%s14672_s1 + $0x1b8] sm:$0xff]   ;;  %v10552_v54 = vld [vmem:[%s14672_s1 + $0x1f0] sm:$0xff]  }
   0xe   :  { %7418 = vmatprep.subr.bf16.mxu1 %v10396_v13  ;;  %v182_v39 = vcombine.high %v27_v38, %v27_v38  ;;  %v189_v40 = vrot.slane %v27_v38, %v10494_v35  ;;  %v10558_v55 = vld [vmem:[%s14672_s1 + $0x130] sm:$0xff]   ;;  %v10564_v57 = vld [vmem:[%s14672_s1 + $0x168] sm:$0xff]   ;;  %v10588_v61 = vld [vmem:[%s14672_s1 + $0x160] sm:$0xff]  }
   0xf   :  { %v10570_v58 = vld [vmem:[%s14672_s1 + $0x1b0] sm:$0xff]   ;;  %v10576_v59 = vld [vmem:[%s14672_s1 + $0x1e8] sm:$0xff]   ;;  %v10600_v63 = vld [vmem:[%s14672_s1 + $0x1e0] sm:$0xff]  }
  0x10   :  { %7397 = vmatpush3.bf16.msra.mxu0 %v10402_v14  ;;  %v197_v43 = vcombine.high %v189_v40, %v189_v40  ;;  %v205_v44 = vrot.slane %v189_v40, %v10494_v35  ;;  %v10527_v45 = vrot.slane %v182_v39, %v10494_v35  ;;  %v10582_v60 = vld [vmem:[%s14672_s1 + $0x128] sm:$0xff]   ;;  %v10606_v22 = vld [vmem:[%s14672_s1 + $0x120] sm:$0xff]   ;;  %v10612_v23 = vld [vmem:[%s14672_s1 + $0x158] sm:$0xff]  }
  0x11   :  { %7419 = vmatpush3.bf16.msra.mxu1 %v10408_v15  ;;  %7398 = vmatprep.subr.bf16.mxu0 %v10414_v16  ;;  %v10594_v62 = vld [vmem:[%s14672_s1 + $0x1a8] sm:$0xff]   ;;  %v10618_v24 = vld [vmem:[%s14672_s1 + $0x1a0] sm:$0xff]   ;;  %v10624_v29 = vld [vmem:[%s14672_s1 + $0x1d8] sm:$0xff]  }
  0x12   :  { %7420 = vmatprep.subr.bf16.mxu1 %v10420_v17  ;;  %v219_v46 = vrot.slane %v197_v43, %v10494_v35  ;;  %v198_v48 = vcombine.high %v10527_v45, %v10527_v45  ;;  %v227_v49 = vcombine.high %v205_v44, %v205_v44  ;;  %14908 = vst [vmem:[#allocation2_spill] sm:$0xff] %v10618_v24  ;;  %14909 = vst [vmem:[#allocation3_spill] sm:$0xff] %v10624_v29  ;;  %v10630_v30 = vld [vmem:[%s14672_s1 + $0x118] sm:$0xff]   ;;  %v10636_v38 = vld [vmem:[%s14672_s1 + $0x150] sm:$0xff]  }
  0x13   :  { %v10642_v39 = vld [vmem:[%s14672_s1 + $0x198] sm:$0xff]   ;;  %v10648_v40 = vld [vmem:[%s14672_s1 + $0x1d0] sm:$0xff]  }
  0x14   :  { %7399 = vmatpush3.bf16.msra.mxu0 %v10426_v18  ;;  %718 = vmatprep.mubr.bf16.mxu0 %v219_v46  ;;  %v229_v51 = vcombine.high %v219_v46, %v219_v46  ;;  %v226_v53 = vrot.slane %v198_v48, %v10494_v35  ;;  %14910 = vst [vmem:[#allocation4_spill] sm:$0xff] %v10642_v39  ;;  %14911 = vst [vmem:[#allocation5_spill] sm:$0xff] %v10648_v40  ;;  %v10654_v43 = vld [vmem:[%s14672_s1 + $0x110] sm:$0xff]   ;;  %v10672_v48 = vld [vmem:[%s14672_s1 + $0x1c8] sm:$0xff]  }
  0x15   :  { %7421 = vmatpush3.bf16.msra.mxu1 %v10432_v19  ;;  %7400 = vmatprep.subr.bf16.mxu0 %v10438_v20  ;;  %v10666_v46 = vld [vmem:[%s14672_s1 + $0x190] sm:$0xff]   ;;  %14913 = vst [vmem:[#allocation7_spill] sm:$0xff] %v10672_v48 }
  0x16   :  { %7422 = vmatprep.subr.bf16.mxu1 %v10444_v21  ;;  %758 = vmatprep.mubr.bf16.mxu1 %v229_v51  ;;  %v230_v56 = vcombine.high %v226_v53, %v226_v53  ;;  %14912 = vst [vmem:[#allocation6_spill] sm:$0xff] %v10666_v46  ;;  %v10684_v51 = vld [vmem:[%s14672_s1 + $0x140] sm:$0xff]  }
  0x18   :  { %7401 = vmatpush3.bf16.msra.mxu0 %v10450_v25 }
  0x19   :  { %7423 = vmatpush3.bf16.msra.mxu1 %v10456_v26  ;;  %7402 = vmatprep.subr.bf16.mxu0 %v10462_v27 }
  0x1a   :  { %7424 = vmatprep.subr.bf16.mxu1 %v10468_v28 }
  0x1c   :  { %7403 = vmatpush3.bf16.msra.mxu0 %v10474_v31 }
  0x1d   :  { %7425 = vmatpush3.bf16.msra.mxu1 %v10480_v32  ;;  %7404 = vmatprep.subr.bf16.mxu0 %v10486_v33 }
  0x1e   :  { %7426 = vmatprep.subr.bf16.mxu1 %v10492_v34 }
  0x20   :  { %7405 = vmatpush3.bf16.msra.mxu0 %v10500_v36 }
  0x21   :  { %7427 = vmatpush3.bf16.msra.mxu1 %v10506_v37  ;;  %7434 = vmatprep.subr.bf16.mxu0 %v10517_v41 }
  0x22   :  { %7456 = vmatprep.subr.bf16.mxu1 %v10522_v42 }
  0x23   :  { %719 = vmatmul.mubr.bf16.vlgmr.msra.gmra.mxu0 %v205_v44  ;;  %v10660_v44 = vld [vmem:[%s14672_s1 + $0x148] sm:$0xff]  }
  0x24   :  { %7435 = vmatpush3.bf16.msra.mxu0 %v10534_v47  ;;  %759 = vmatmul.mubr.bf16.vlgmr.msra.gmra.mxu1 %v227_v49  ;;  %v10678_v49 = vld [vmem:[%s14672_s1 + $0x108] sm:$0xff]  }
  0x25   :  { %7436 = vmatprep.subr.bf16.mxu0 %v10541_v50  ;;  %7457 = vmatpush3.bf16.msra.mxu1 %v10546_v52 }
  0x26   :  { %798 = vmatprep.mubr.bf16.mxu0 %v226_v53  ;;  %7458 = vmatprep.subr.bf16.mxu1 %v10552_v54  ;;  %v10690_v53 = vld [vmem:[%s14672_s1 + $0x188] sm:$0xff]  }
  0x27   :  { %838 = vmatprep.mubr.bf16.mxu1 %v230_v56  ;;  %14914 = vst [vmem:[#allocation8_spill] sm:$0xff] %v10690_v53  ;;  %v10696_v56 = vld [vmem:[%s14672_s1 + $0x1c0] sm:$0xff]  }
  0x28   :  { %7437 = vmatpush3.bf16.msra.mxu0 %v10558_v55  ;;  %14915 = vst [vmem:[#allocation9_spill] sm:$0xff] %v10696_v56 }
  0x29   :  { %7438 = vmatprep.subr.bf16.mxu0 %v10564_v57  ;;  %7459 = vmatpush3.bf16.msra.mxu1 %v10570_v58 }
  0x2a   :  { %7460 = vmatprep.subr.bf16.mxu1 %v10576_v59 }
  0x2c   :  { %7439 = vmatpush3.bf16.msra.mxu0 %v10582_v60 }
  0x2d   :  { %7440 = vmatprep.subr.bf16.mxu0 %v10588_v61  ;;  %7461 = vmatpush3.bf16.msra.mxu1 %v10594_v62 }
  0x2e   :  { %7462 = vmatprep.subr.bf16.mxu1 %v10600_v63 }
  0x30   :  { %7441 = vmatpush3.bf16.msra.mxu0 %v10606_v22 }
  0x31   :  { %7442 = vmatprep.subr.bf16.mxu0 %v10612_v23  ;;  %7463 = vmatpush3.bf16.msra.mxu1 %v10618_v24 }
  0x32   :  { %7464 = vmatprep.subr.bf16.mxu1 %v10624_v29  ;;  %v14689_v29 = vmov 0.0  }
  0x34   :  { %7443 = vmatpush3.bf16.msra.mxu0 %v10630_v30 }
  0x35   :  { %7444 = vmatprep.subr.bf16.mxu0 %v10636_v38  ;;  %7465 = vmatpush3.bf16.msra.mxu1 %v10642_v39  ;;  %v10718_v39 = vld [vmem:[%s14672_s1 + $0x238] sm:$0xff]  }
  0x36   :  { %7466 = vmatprep.subr.bf16.mxu1 %v10648_v40  ;;  %v10702_v40 = vld [vmem:[%s14672_s1 + $0x100] sm:$0xff]  }
  0x38   :  { %7445 = vmatpush3.bf16.msra.mxu0 %v10654_v43 }
  0x39   :  { %7446 = vmatprep.subr.bf16.mxu0 %v10660_v44  ;;  %7467 = vmatpush3.bf16.msra.mxu1 %v10666_v46  ;;  %v212_v46 = vrot.slane %v10527_v45, %v10494_v35 }
  0x3a   :  { %7468 = vmatprep.subr.bf16.mxu1 %v10672_v48  ;;  %v10711_v48 = vld [vmem:[%s14672_s1 + $0x180] sm:$0xff]  }
  0x3b   :  { %14916 = vst [vmem:[#allocation10_spill] sm:$0xff] %v10711_v48  ;;  %v228_v45 = vcombine.high %v212_v46, %v212_v46 }
  0x3c   :  { %7447 = vmatpush3.bf16.msra.mxu0 %v10678_v49 }
  0x3d   :  { %7448 = vmatprep.subr.bf16.mxu0 %v10684_v51  ;;  %7469 = vmatpush3.bf16.msra.mxu1 %v10690_v53  ;;  %v10730_v53 = vld [vmem:[%s14672_s1 + $0x230] sm:$0xff]  }
  0x3e   :  { %7470 = vmatprep.subr.bf16.mxu1 %v10696_v56  ;;  %v6967_v56 = vld [vmem:[%s14673_s0 + $0x9] sm:$0xff] }
  0x40   :  { %7449 = vmatpush3.bf16.msra.mxu0 %v10702_v40 }
  0x41   :  { %9095 = vmatprep.subr.bf16.mxu0 %v14689_v29  ;;  %7471 = vmatpush3.bf16.msra.mxu1 %v10711_v48  ;;  %v916_v48 = vrot.slane %v6967_v56, %v10494_v35 }
  0x42   :  { %7487 = vmatprep.subr.bf16.mxu1 %v10319_v0 }
  0x43   :  { %799 = vmatmul.mubr.bf16.vlgmr.msra.gmra.mxu0 %v212_v46  ;;  %v924_v0 = vcombine.high %v916_v48, %v916_v48  ;;  %v10742_v46 = vld [vmem:[%s14672_s1 + $0x228] sm:$0xff]  }
  0x44   :  { %9096 = vmatpush3.bf16.msra.mxu0 %v10718_v39  ;;  %9111 = vmatprep.mubr.msk.bf16.mxu0 %vm10275_vm0, %v14689_v29 }
  0x45   :  { %839 = vmatmul.mubr.bf16.vlgmr.msra.gmra.mxu1 %v228_v45  ;;  %9097 = vmatprep.subr.bf16.mxu0 %v14689_v29  ;;  %v946_v24 = vrot.slane %v924_v0, %v10494_v35 }
  0x46   :  { %7488 = vmatpush3.bf16.msra.mxu1 %v10330_v2  ;;  %v10752_v2 = vld [vmem:[%s14672_s1 + $0x220] sm:$0xff]  }
  0x47   :  { %7489 = vmatprep.subr.bf16.mxu1 %v10342_v4  ;;  %1013 = vmatprep.mubr.bf16.mxu1 %v946_v24  ;;  %v10761_v4 = vld [vmem:[%s14672_s1 + $0x218] sm:$0xff]  }
  0x48   :  { %9098 = vmatpush3.bf16.msra.mxu0 %v10730_v53 }
  0x49   :  { %9099 = vmatprep.subr.bf16.mxu0 %v14689_v29 }
  0x4a   :  { %7490 = vmatpush3.bf16.msra.mxu1 %v10354_v6  ;;  %v10770_v6 = vld [vmem:[%s14672_s1 + $0x210] sm:$0xff]  }
  0x4b   :  { %7491 = vmatprep.subr.bf16.mxu1 %v10366_v8  ;;  %v909_v8 = vcombine.high %v6967_v56, %v6967_v56 }
  0x4c   :  { %9100 = vmatpush3.bf16.msra.mxu0 %v10742_v46 }
  0x4d   :  { %9101 = vmatprep.subr.bf16.mxu0 %v14689_v29 }
  0x4e   :  { %7492 = vmatpush3.bf16.msra.mxu1 %v10378_v10  ;;  %v10779_v10 = vld [vmem:[%s14672_s1 + $0x208] sm:$0xff]  }
  0x4f   :  { %7493 = vmatprep.subr.bf16.mxu1 %v10390_v12  ;;  %v923_v12 = vrot.slane %v909_v8, %v10494_v35 }
  0x50   :  { %9102 = vmatpush3.bf16.msra.mxu0 %v10752_v2 }
  0x51   :  { %9103 = vmatprep.subr.bf16.mxu0 %v14689_v29 }
  0x52   :  { %7494 = vmatpush3.bf16.msra.mxu1 %v10402_v14  ;;  %v10789_v14 = vld [vmem:[%s14672_s1 + $0x200] sm:$0xff]  }
  0x53   :  { %7495 = vmatprep.subr.bf16.mxu1 %v10414_v16  ;;  %v6894_v16 = vld.sshfl [vmem:[%s14673_s0 + $0x8] sm:$0x1 pattern:$0x75316420] }
  0x54   :  { %9104 = vmatpush3.bf16.msra.mxu0 %v10761_v4 }
  0x55   :  { %9105 = vmatprep.subr.bf16.mxu0 %v14689_v29 }
  0x56   :  { %7496 = vmatpush3.bf16.msra.mxu1 %v10426_v18  ;;  %v925_v18 = vcombine.high %v923_v12, %v923_v12 }
  0x57   :  { %7497 = vmatprep.subr.bf16.mxu1 %v10438_v20  ;;  %v244_v20 = vrot.slane %v6894_v16, %v10494_v35 }
  0x58   :  { %9106 = vmatpush3.bf16.msra.mxu0 %v10770_v6  ;;  %v953_v56 = vrot.slane %v925_v18, %v10494_v35 }
  0x59   :  { %9107 = vmatprep.subr.bf16.mxu0 %v14689_v29 }
  0x5a   :  { %7498 = vmatpush3.bf16.msra.mxu1 %v10450_v25  ;;  %v956_v25 = vcombine.high %v946_v24, %v946_v24  ;;  %v9846_v24 = vld [vmem:[%s14674_s3 + $0x48] sm:$0xff]  }
  0x5b   :  { %7499 = vmatprep.subr.bf16.mxu1 %v10462_v27  ;;  %v932_v27 = vrot.slane %v916_v48, %v10494_v35 }
  0x5c   :  { %9108 = vmatpush3.bf16.msra.mxu0 %v10779_v10 }
  0x5d   :  { %9109 = vmatprep.subr.bf16.mxu0 %v14689_v29 }
  0x5e   :  { %7500 = vmatpush3.bf16.msra.mxu1 %v10474_v31  ;;  %v14925_v31 = vld [vmem:[#allocation10_spill] sm:$0xff] }
  0x5f   :  { %7501 = vmatprep.subr.bf16.mxu1 %v10486_v33 }
  0x60   :  { %9110 = vmatpush3.bf16.msra.mxu0 %v10789_v14 }
  0x61   :  { %7509 = vmatprep.subr.bf16.mxu0 %v10324_v1  ;;  %v954_v1 = vcombine.high %v932_v27, %v932_v27 }
  0x62   :  { %7502 = vmatpush3.bf16.msra.mxu1 %v10500_v36  ;;  %v9834_v36 = vld [vmem:[%s14674_s3 + $0x28] sm:$0xff]  }
  0x63   :  { %9112 = vmatmul.mubr.bf16.vlgmr.msra.gmra.mxu0 %v244_v20  ;;  %7531 = vmatprep.subr.bf16.mxu1 %v10517_v41  ;;  %v9836_v41 = vld [vmem:[%s14674_s3 + $0x18] sm:$0xff]  }
  0x64   :  { %7510 = vmatpush3.bf16.msra.mxu0 %v10336_v3  ;;  %1053 = vmatprep.mubr.bf16.mxu0 %v956_v25  ;;  %v957_v3 = vcombine.high %v953_v56, %v953_v56 }
  0x65   :  { %1014 = vmatmul.mubr.bf16.vlgmr.msra.gmra.mxu1 %v932_v27  ;;  %7511 = vmatprep.subr.bf16.mxu0 %v10348_v5  ;;  %v939_v5 = vrot.slane %v923_v12, %v10494_v35 }
  0x66   :  { %7532 = vmatpush3.bf16.msra.mxu1 %v10534_v47  ;;  %1093 = vmatprep.mubr.bf16.mxu1 %v953_v56  ;;  %v9838_v47 = vld [vmem:[%s14674_s3 + $0x8] sm:$0xff]  }
  0x67   :  { %7533 = vmatprep.subr.bf16.mxu1 %v10541_v50  ;;  %v9839_v50 = vld [vmem:[%s14674_s3] sm:$0xff]  }
  0x68   :  { %7512 = vmatpush3.bf16.msra.mxu0 %v10360_v7  ;;  %v14917_v7 = vld [vmem:[#allocation2_spill] sm:$0xff] }
  0x69   :  { %7513 = vmatprep.subr.bf16.mxu0 %v10372_v9  ;;  %v14918_v9 = vld [vmem:[#allocation3_spill] sm:$0xff] }
  0x6a   :  { %7534 = vmatpush3.bf16.msra.mxu1 %v10558_v55  ;;  %v9841_v55 = vld [vmem:[%s14674_s3 + $0x70] sm:$0xff]  }
  0x6b   :  { %7535 = vmatprep.subr.bf16.mxu1 %v10564_v57  ;;  %v9842_v57 = vld [vmem:[%s14674_s3 + $0x68] sm:$0xff]  }
  0x6c   :  { %7514 = vmatpush3.bf16.msra.mxu0 %v10384_v11  ;;  %v14919_v11 = vld [vmem:[#allocation4_spill] sm:$0xff] }
  0x6d   :  { %7515 = vmatprep.subr.bf16.mxu0 %v10396_v13  ;;  %v14920_v13 = vld [vmem:[#allocation5_spill] sm:$0xff] }
  0x6e   :  { %7536 = vmatpush3.bf16.msra.mxu1 %v10582_v60 }
  0x6f   :  { %7537 = vmatprep.subr.bf16.mxu1 %v10588_v61  ;;  %v9845_v61 = vld [vmem:[%s14674_s3 + $0x50] sm:$0xff]  }
  0x70   :  { %7516 = vmatpush3.bf16.msra.mxu0 %v10408_v15  ;;  %v14921_v15 = vld [vmem:[#allocation6_spill] sm:$0xff] }
  0x71   :  { %7517 = vmatprep.subr.bf16.mxu0 %v10420_v17  ;;  %v14922_v17 = vld [vmem:[#allocation7_spill] sm:$0xff] }
  0x72   :  { %7538 = vmatpush3.bf16.msra.mxu1 %v10606_v22 }
  0x73   :  { %7539 = vmatprep.subr.bf16.mxu1 %v10612_v23 }
  0x74   :  { %7518 = vmatpush3.bf16.msra.mxu0 %v10432_v19  ;;  %v14923_v19 = vld [vmem:[#allocation8_spill] sm:$0xff] }
  0x75   :  { %7519 = vmatprep.subr.bf16.mxu0 %v10444_v21  ;;  %v6969_v21 = vld.sshfl [vmem:[%s14673_s0 + $0x11] sm:$0x1 pattern:$0x75316420] }
  0x76   :  { %7540 = vmatpush3.bf16.msra.mxu1 %v10630_v30  ;;  %v971_v33 = vrot.slane %v6969_v21, %v10494_v35 }
  0x77   :  { %7541 = vmatprep.subr.bf16.mxu1 %v10636_v38 }
  0x78   :  { %7520 = vmatpush3.bf16.msra.mxu0 %v10456_v26  ;;  %v14924_v26 = vld [vmem:[#allocation9_spill] sm:$0xff] }
  0x79   :  { %7521 = vmatprep.subr.bf16.mxu0 %v10468_v28  ;;  %v955_v28 = vcombine.high %v939_v5, %v939_v5 }
  0x7a   :  { %7542 = vmatpush3.bf16.msra.mxu1 %v10654_v43  ;;  %v10950_v43 = vld [vmem:[%s14672_s1 + $0x78] sm:$0xff]  }
  0x7b   :  { %7543 = vmatprep.subr.bf16.mxu1 %v10660_v44 }
  0x7c   :  { %7522 = vmatpush3.bf16.msra.mxu0 %v10480_v32  ;;  %v9832_v32 = vld [vmem:[%s14674_s3 + $0x38] sm:$0xff]  }
  0x7d   :  { %7523 = vmatprep.subr.bf16.mxu0 %v10492_v34  ;;  %v9833_v34 = vld [vmem:[%s14674_s3 + $0x30] sm:$0xff]  }
  0x7e   :  { %7544 = vmatpush3.bf16.msra.mxu1 %v10678_v49 }
  0x7f   :  { %7545 = vmatprep.subr.bf16.mxu1 %v10684_v51 }
  0x80   :  { %7524 = vmatpush3.bf16.msra.mxu0 %v10506_v37  ;;  %v9835_v37 = vld [vmem:[%s14674_s3 + $0x20] sm:$0xff]  }
  0x81   :  { %7553 = vmatprep.subr.bf16.mxu0 %v10522_v42  ;;  %v9837_v42 = vld [vmem:[%s14674_s3 + $0x10] sm:$0xff]  }
  0x82   :  { %7546 = vmatpush3.bf16.msra.mxu1 %v10702_v40  ;;  %v9847_v40 = vld [vmem:[%s14674_s3 + $0x40] sm:$0xff]  }
  0x83   :  { %1054 = vmatmul.mubr.bf16.vlgmr.msra.gmra.mxu0 %v954_v1  ;;  %9115 = vmatprep.subr.bf16.mxu1 %v14689_v29 }
  0x84   :  { %7554 = vmatpush3.bf16.msra.mxu0 %v10546_v52  ;;  %1133 = vmatprep.mubr.bf16.mxu0 %v957_v3  ;;  %v10913_v52 = vld [vmem:[%s14672_s1 + $0xf8] sm:$0xff]  }
  0x85   :  { %1094 = vmatmul.mubr.bf16.vlgmr.msra.gmra.mxu1 %v939_v5  ;;  %7555 = vmatprep.subr.bf16.mxu0 %v10552_v54  ;;  %v9840_v54 = vld [vmem:[%s14674_s3 + $0x78] sm:$0xff]  }
  0x86   :  { %9116 = vmatpush3.bf16.msra.mxu1 %v10718_v39  ;;  %9131 = vmatprep.mubr.msk.bf16.mxu1 %vm10275_vm0, %v14689_v29 }
  0x87   :  { %9117 = vmatprep.subr.bf16.mxu1 %v14689_v29 }
  0x88   :  { %7556 = vmatpush3.bf16.msra.mxu0 %v10570_v58  ;;  %v9843_v58 = vld [vmem:[%s14674_s3 + $0x60] sm:$0xff]  }
  0x89   :  { %7557 = vmatprep.subr.bf16.mxu0 %v10576_v59  ;;  %v9844_v59 = vld [vmem:[%s14674_s3 + $0x58] sm:$0xff]  }
  0x8a   :  { %9118 = vmatpush3.bf16.msra.mxu1 %v10730_v53 }
  0x8b   :  { %9119 = vmatprep.subr.bf16.mxu1 %v14689_v29 }
  0x8c   :  { %7558 = vmatpush3.bf16.msra.mxu0 %v10594_v62 }
  0x8d   :  { %7559 = vmatprep.subr.bf16.mxu0 %v10600_v63 }
  0x8e   :  { %9120 = vmatpush3.bf16.msra.mxu1 %v10742_v46 }
  0x8f   :  { %9121 = vmatprep.subr.bf16.mxu1 %v14689_v29 }
  0x90   :  { %7560 = vmatpush3.bf16.msra.mxu0 %v14917_v7 }
  0x91   :  { %7561 = vmatprep.subr.bf16.mxu0 %v14918_v9 }
  0x92   :  { %9122 = vmatpush3.bf16.msra.mxu1 %v10752_v2 }
  0x93   :  { %9123 = vmatprep.subr.bf16.mxu1 %v14689_v29 }
  0x94   :  { %7562 = vmatpush3.bf16.msra.mxu0 %v14919_v11 }
  0x95   :  { %7563 = vmatprep.subr.bf16.mxu0 %v14920_v13 }
  0x96   :  { %9124 = vmatpush3.bf16.msra.mxu1 %v10761_v4  ;;  %v10956_v4 = vld [vmem:[%s14675_s2] ss:$0 sm:$0xff] }
  0x97   :  { %9125 = vmatprep.subr.bf16.mxu1 %v14689_v29  ;;  %14926 = vst [vmem:[#allocation2_spill] sm:$0xff] %v10956_v4 }
  0x98   :  { %7564 = vmatpush3.bf16.msra.mxu0 %v14921_v15 }
  0x99   :  { %7565 = vmatprep.subr.bf16.mxu0 %v14922_v17 }
  0x9a   :  { %9126 = vmatpush3.bf16.msra.mxu1 %v10770_v6 }
  0x9b   :  { %9127 = vmatprep.subr.bf16.mxu1 %v14689_v29 }
  0x9c   :  { %7566 = vmatpush3.bf16.msra.mxu0 %v14923_v19 }
  0x9d   :  { %7567 = vmatprep.subr.bf16.mxu0 %v14924_v26 }
  0x9e   :  { %9128 = vmatpush3.bf16.msra.mxu1 %v10779_v10  ;;  %v7002_v10 = vld [vmem:[%s14673_s0 + $0x12] sm:$0xff] }
  0x9f   :  { %9129 = vmatprep.subr.bf16.mxu1 %v14689_v29 }
  0xa0   :  { %7568 = vmatpush3.bf16.msra.mxu0 %v14925_v31  ;;  %v10981_v31 = vld [vmem:[%s14672_s1 + $0xf0] sm:$0xff]  }
  0xa1   :  { %9135 = vmatprep.subr.bf16.mxu0 %v14689_v29 }
  0xa2   :  { %9130 = vmatpush3.bf16.msra.mxu1 %v10789_v14  ;;  %v1388_v14 = vrot.slane %v7002_v10, %v10494_v35 }
  0xa3   :  { %1134 = vmatmul.mubr.bf16.vlgmr.msra.gmra.mxu0 %v955_v28  ;;  %9155 = vmatprep.subr.bf16.mxu1 %v14689_v29  ;;  %v10975_v28 = vld [vmem:[%s14672_s1 + $0xb8] sm:$0xff]  }
  0xa4   :  { %9151 = vmatprep.mubr.msk.bf16.mxu0 %vm10275_vm0, %v14689_v29  ;;  %9136 = vmatpush3.bf16.msra.mxu0 %v9840_v54  ;;  %v1396_v25 = vcombine.high %v1388_v14, %v1388_v14  ;;  %v11030_v54 = vld [vmem:[%s14672_s1 + $0xd0] sm:$0xff]  }
  0xa5   :  { %9132 = vmatmul.mubr.bf16.vlgmr.msra.gmra.mxu1 %v971_v33  ;;  %9137 = vmatprep.subr.bf16.mxu0 %v14689_v29  ;;  %v10993_v33 = vld [vmem:[%s14672_s1 + $0xe8] sm:$0xff]  }
  0xa6   :  { %9156 = vmatpush3.bf16.msra.mxu1 %v9832_v32  ;;  %9171 = vmatprep.mubr.msk.bf16.mxu1 %vm10275_vm0, %v14689_v29  ;;  %v10964_v1 = vrot.slane %v1396_v25, %v10494_v35  ;;  %v10987_v32 = vld [vmem:[%s14672_s1 + $0xb0] sm:$0xff]  }
  0xa7   :  { %9157 = vmatprep.subr.bf16.mxu1 %v14689_v29 }
  0xa8   :  { %9138 = vmatpush3.bf16.msra.mxu0 %v9841_v55  ;;  %v1428_v15 = vcombine.high %v10964_v1, %v10964_v1  ;;  %v11036_v55 = vld [vmem:[%s14672_s1 + $0x90] sm:$0xff]  }
  0xa9   :  { %9139 = vmatprep.subr.bf16.mxu0 %v14689_v29  ;;  %14927 = vst [vmem:[#allocation3_spill] sm:$0xff] %v11036_v55 }
  0xaa   :  { %9158 = vmatpush3.bf16.msra.mxu1 %v9833_v34  ;;  %v10999_v34 = vld [vmem:[%s14672_s1 + $0xa8] sm:$0xff]  }
  0xab   :  { %9159 = vmatprep.subr.bf16.mxu1 %v14689_v29 }
  0xac   :  { %9140 = vmatpush3.bf16.msra.mxu0 %v9842_v57 }
  0xad   :  { %9141 = vmatprep.subr.bf16.mxu0 %v14689_v29 }
  0xae   :  { %9160 = vmatpush3.bf16.msra.mxu1 %v9834_v36  ;;  %v11005_v36 = vld [vmem:[%s14672_s1 + $0xe0] sm:$0xff]  }
  0xaf   :  { %9161 = vmatprep.subr.bf16.mxu1 %v14689_v29 }
  0xb0   :  { %9142 = vmatpush3.bf16.msra.mxu0 %v9843_v58  ;;  %v11042_v58 = vld [vmem:[%s14672_s1 + $0xc8] sm:$0xff]  }
  0xb1   :  { %9143 = vmatprep.subr.bf16.mxu0 %v14689_v29  ;;  %14928 = vst [vmem:[#allocation4_spill] sm:$0xff] %v11042_v58 }
  0xb2   :  { %9162 = vmatpush3.bf16.msra.mxu1 %v9835_v37  ;;  %v11011_v37 = vld [vmem:[%s14672_s1 + $0xa0] sm:$0xff]  }
  0xb3   :  { %9163 = vmatprep.subr.bf16.mxu1 %v14689_v29 }
  0xb4   :  { %9144 = vmatpush3.bf16.msra.mxu0 %v9844_v59  ;;  %v11046_v59 = vrot.slane %v1388_v14, %v10494_v35 }
  0xb5   :  { %9145 = vmatprep.subr.bf16.mxu0 %v14689_v29 }
  0xb6   :  { %9164 = vmatpush3.bf16.msra.mxu1 %v9836_v41  ;;  %v1381_v41 = vcombine.high %v7002_v10, %v7002_v10  ;;  %v11124_v10 = vld [vmem:[%s14672_s1 + $0x1d8] sm:$0xff]  }
  0xb7   :  { %9165 = vmatprep.subr.bf16.mxu1 %v14689_v29  ;;  %14940 = vst [vmem:[#allocation16_spill] sm:$0xff] %v11124_v10 }
  0xb8   :  { %9146 = vmatpush3.bf16.msra.mxu0 %v9845_v61  ;;  %v11051_v61 = vld [vmem:[%s14672_s1 + $0x88] sm:$0xff]  }
  0xb9   :  { %9147 = vmatprep.subr.bf16.mxu0 %v14689_v29  ;;  %14929 = vst [vmem:[#allocation5_spill] sm:$0xff] %v11051_v61 }
  0xba   :  { %9166 = vmatpush3.bf16.msra.mxu1 %v9837_v42  ;;  %v11017_v42 = vld [vmem:[%s14672_s1 + $0xd8] sm:$0xff]  }
  0xbb   :  { %9167 = vmatprep.subr.bf16.mxu1 %v14689_v29 }
  0xbc   :  { %9148 = vmatpush3.bf16.msra.mxu0 %v9846_v24  ;;  %v1426_v24 = vcombine.high %v11046_v59, %v11046_v59 }
  0xbd   :  { %9149 = vmatprep.subr.bf16.mxu0 %v14689_v29 }
  0xbe   :  { %9168 = vmatpush3.bf16.msra.mxu1 %v9838_v47  ;;  %v11023_v47 = vld [vmem:[%s14672_s1 + $0x98] sm:$0xff]  }
  0xbf   :  { %9169 = vmatprep.subr.bf16.mxu1 %v14689_v29 }
  0xc0   :  { %9150 = vmatpush3.bf16.msra.mxu0 %v9847_v40 }
  0xc1   :  { %7602 = vmatprep.subr.bf16.mxu0 %v10950_v43 }
  0xc2   :  { %9170 = vmatpush3.bf16.msra.mxu1 %v9839_v50  ;;  %v1395_v50 = vrot.slane %v1381_v41, %v10494_v35 }
  0xc3   :  { %7624 = vmatprep.subr.bf16.mxu1 %v10913_v52 }
  0xc4   :  { %v1397_v57 = vcombine.high %v1395_v50, %v1395_v50 }
  0xe3   :  { %v7406_v60 = vpop.f32.mrf.mxu0 }
  0xe4   :  { %v7428_v62 = vpop.f32.mrf.mxu1 }
  0xe5   :  { %v7407_v63 = vpop.f32.mrf.mxu0 }
  0xe6   :  { %v7429_v22 = vpop.f32.mrf.mxu1  ;;  %v7408_v2 = vadd.f32 %v7407_v63, %v7406_v60  ;;  %v11060_v63 = vld [vmem:[%s14672_s1 + $0xc0] sm:$0xff]  }
  0xe7   :  { %v7409_v23 = vpop.f32.mrf.mxu0  ;;  %v7430_v8 = vadd.f32 %v7429_v22, %v7428_v62  ;;  %v11055_v62 = vrot.slane %v1397_v57, %v10494_v35  ;;  %14930 = vst [vmem:[#allocation6_spill] sm:$0xff] %v11060_v63 }
  0xe8   :  { %v7431_v30 = vpop.f32.mrf.mxu1  ;;  %v721_v6 = vadd.f32 %v7408_v2, %v10956_v4  ;;  %v11106_v2 = vld [vmem:[%s14672_s1 + $0x1a8] sm:$0xff]  }
  0xe9   :  { %v7410_v38 = vpop.f32.mrf.mxu0  ;;  %v1429_v40 = vcombine.high %v11055_v62, %v11055_v62  ;;  %14937 = vst [vmem:[#allocation13_spill] sm:$0xff] %v11106_v2 }
  0xea   :  { %v7432_v39 = vpop.f32.mrf.mxu1  ;;  %v761_v16 = vadd.f32 %v7430_v8, %v721_v6  ;;  %v11112_v6 = vld [vmem:[%s14672_s1 + $0x1e0] sm:$0xff]  }
  0xeb   :  { %v11068_v39 = vld [vmem:[%s14672_s1 + $0x80] sm:$0xff]   ;;  %14938 = vst [vmem:[#allocation14_spill] sm:$0xff] %v11112_v6 }
  0xec   :  { %14931 = vst [vmem:[#allocation7_spill] sm:$0xff] %v11068_v39  ;;  %v11118_v8 = vld [vmem:[%s14672_s1 + $0x1a0] sm:$0xff]  }
  0xed   :  { %14939 = vst [vmem:[#allocation15_spill] sm:$0xff] %v11118_v8 }
 0x103   :  { %v7450_v44 = vpop.f32.mrf.mxu0 }
 0x105   :  { %v7472_v48 = vpop.f32.mrf.mxu1  ;;  %v7451_v49 = vpop.f32.mrf.mxu0 }
 0x106   :  { %v7452_v12 = vadd.f32 %v7451_v49, %v7450_v44  ;;  %v11076_v44 = vld [vmem:[%s14672_s1 + $0x1f8] sm:$0xff]  }
 0x107   :  { %v7473_v51 = vpop.f32.mrf.mxu1  ;;  %v7453_v53 = vpop.f32.mrf.mxu0  ;;  %14932 = vst [vmem:[#allocation8_spill] sm:$0xff] %v11076_v44 }
 0x108   :  { %v801_v18 = vadd.f32 %v7452_v12, %v761_v16  ;;  %v7474_v20 = vadd.f32 %v7473_v51, %v7472_v48  ;;  %v11082_v53 = vld [vmem:[%s14672_s1 + $0x1b8] sm:$0xff]   ;;  %v11138_v16 = vld [vmem:[%s14672_s1 + $0x1d0] sm:$0xff]  }
 0x109   :  { %v7475_v45 = vpop.f32.mrf.mxu1  ;;  %v7454_v0 = vpop.f32.mrf.mxu0  ;;  %14933 = vst [vmem:[#allocation9_spill] sm:$0xff] %v11082_v53  ;;  %v11130_v12 = vld [vmem:[%s14672_s1 + $0x198] sm:$0xff]   ;;  %14942 = vst [vmem:[#allocation18_spill] sm:$0xff] %v11138_v16 }
 0x10a   :  { %v841_v27 = vadd.f32 %v7474_v20, %v801_v18  ;;  %v11088_v45 = vld [vmem:[%s14672_s1 + $0x1f0] sm:$0xff]   ;;  %14941 = vst [vmem:[#allocation17_spill] sm:$0xff] %v11130_v12 }
 0x10b   :  { %v7476_v46 = vpop.f32.mrf.mxu1  ;;  %14934 = vst [vmem:[#allocation10_spill] sm:$0xff] %v11088_v45  ;;  %v11094_v0 = vld [vmem:[%s14672_s1 + $0x1b0] sm:$0xff]  }
 0x10c   :  { %14935 = vst [vmem:[#allocation11_spill] sm:$0xff] %v11094_v0  ;;  %v11100_v46 = vld [vmem:[%s14672_s1 + $0x1e8] sm:$0xff]   ;;  %v11144_v20 = vld [vmem:[%s14672_s1 + $0x190] sm:$0xff]  }
 0x10d   :  { %14936 = vst [vmem:[#allocation12_spill] sm:$0xff] %v11100_v46  ;;  %14943 = vst [vmem:[#allocation19_spill] sm:$0xff] %v11144_v20 }
 0x123   :  { %v880_v56 = vpop.f32.mrf.mxu0 }
 0x124   :  { %v881_v3 = vadd.f32 %v880_v56, %v841_v27  ;;  %v11151_v27 = vld [vmem:[%s14672_s1 + $0x1c8] sm:$0xff]  }
 0x125   :  { %v10966_v5 = vpop.f32.mrf.mxu1  ;;  %v9113_v7 = vpop.f32.mrf.mxu0  ;;  %14944 = vst [vmem:[#allocation20_spill] sm:$0xff] %v11151_v27 }
 0x126   :  { %v886_v9 = vmax.f32 %v881_v3, 0.0 }
 0x127   :  { %v10968_v11 = vpop.f32.mrf.mxu1  ;;  %v883_v13 = vpop.f32.mrf.mxu0 }
 0x128   :  { %v887_v17 = vpack.c.bf16 %v886_v9, %v886_v9  ;;  %v7505_v14 = vadd.f32 %v10968_v11, %v10966_v5  ;;  %v11155_v5 = vrot.slane %v1395_v50, %v10494_v35  ;;  %v11160_v9 = vld [vmem:[%s14672_s1 + $0x188] sm:$0xff]   ;;  %v11166_v11 = vld [vmem:[%s14672_s1 + $0x1c0] sm:$0xff]  }
 0x129   :  { %v7506_v19 = vpop.f32.mrf.mxu1  ;;  %v9114_v21 = vpop.f32.mrf.mxu0  ;;  %14945 = vst [vmem:[#allocation21_spill] sm:$0xff] %v11160_v9  ;;  %14946 = vst [vmem:[#allocation22_spill] sm:$0xff] %v11166_v11  ;;  %v11174_v50 = vld [vmem:[%s14672_s1 + $0x180] sm:$0xff]  }
 0x12a   :  { %9172 = vmatmul.mubr.bf16.vlgmr.msra.gmra.mxu1 %v887_v17  ;;  %v1016_v25 = vadd.f32 %v7505_v14, %v10956_v4  ;;  %v1427_v21 = vcombine.high %v11155_v5, %v11155_v5  ;;  %14947 = vst [vmem:[#allocation23_spill] sm:$0xff] %v11174_v50  ;;  %v11214_v14 = vld [vmem:[%s14672_s1 + $0x60] sm:$0xff]  }
 0x12b   :  { %v7507_v26 = vpop.f32.mrf.mxu1  ;;  %7625 = vmatpush3.bf16.msra.mxu1 %v10975_v28  ;;  %1525 = vmatprep.mubr.bf16.mxu1 %v1428_v15  ;;  %14952 = vst [vmem:[#allocation28_spill] sm:$0xff] %v11214_v14 }
 0x12c   :  { %7626 = vmatprep.subr.bf16.mxu1 %v10981_v31 }
 0x12f   :  { %7627 = vmatpush3.bf16.msra.mxu1 %v10987_v32 }
 0x130   :  { %7628 = vmatprep.subr.bf16.mxu1 %v10993_v33 }
 0x133   :  { %7629 = vmatpush3.bf16.msra.mxu1 %v10999_v34 }
 0x134   :  { %7630 = vmatprep.subr.bf16.mxu1 %v11005_v36 }
 0x137   :  { %7631 = vmatpush3.bf16.msra.mxu1 %v11011_v37 }
 0x138   :  { %7632 = vmatprep.subr.bf16.mxu1 %v11017_v42 }
 0x13b   :  { %7633 = vmatpush3.bf16.msra.mxu1 %v11023_v47 }
 0x13c   :  { %7634 = vmatprep.subr.bf16.mxu1 %v11030_v54 }
 0x13f   :  { %7635 = vmatpush3.bf16.msra.mxu1 %v11036_v55 }
 0x140   :  { %7636 = vmatprep.subr.bf16.mxu1 %v11042_v58 }
 0x143   :  { %v7525_v60 = vpop.f32.mrf.mxu0  ;;  %7637 = vmatpush3.bf16.msra.mxu1 %v11051_v61 }
 0x144   :  { %7638 = vmatprep.subr.bf16.mxu1 %v11060_v63 }
 0x145   :  { %v7547_v22 = vpop.f32.mrf.mxu1  ;;  %v7526_v23 = vpop.f32.mrf.mxu0 }
 0x146   :  { %v7527_v18 = vadd.f32 %v7526_v23, %v7525_v60 }
 0x147   :  { %v7548_v30 = vpop.f32.mrf.mxu1  ;;  %v7528_v38 = vpop.f32.mrf.mxu0  ;;  %7639 = vmatpush3.bf16.msra.mxu1 %v11068_v39  ;;  %v9850_v39 = vld [vmem:[%s14674_s3 + $0xb0] sm:$0xff]  }
 0x148   :  { %7668 = vmatprep.subr.bf16.mxu1 %v11076_v44  ;;  %v1056_v56 = vadd.f32 %v7527_v18, %v1016_v25  ;;  %v7549_v3 = vadd.f32 %v7548_v30, %v7547_v22  ;;  %v11220_v18 = vld [vmem:[%s14672_s1 + $0x20] sm:$0xff]   ;;  %v11226_v25 = vld [vmem:[%s14672_s1 + $0x58] sm:$0xff]  }
 0x149   :  { %v7550_v48 = vpop.f32.mrf.mxu1  ;;  %v7529_v49 = vpop.f32.mrf.mxu0  ;;  %14953 = vst [vmem:[#allocation29_spill] sm:$0xff] %v11220_v18  ;;  %14954 = vst [vmem:[#allocation30_spill] sm:$0xff] %v11226_v25  ;;  %v9849_v44 = vld [vmem:[%s14674_s3 + $0xb8] sm:$0xff]  }
 0x14a   :  { %1526 = vmatmul.mubr.bf16.vlgmr.msra.gmra.mxu1 %v1426_v24  ;;  %v1096_v17 = vadd.f32 %v7549_v3, %v1056_v56  ;;  %v11190_v48 = vld [vmem:[%s14672_s1 + $0x70] sm:$0xff]   ;;  %v11232_v56 = vld [vmem:[%s14672_s1 + $0x18] sm:$0xff]  }
 0x14b   :  { %v7551_v51 = vpop.f32.mrf.mxu1  ;;  %7669 = vmatpush3.bf16.msra.mxu1 %v11082_v53  ;;  %1605 = vmatprep.mubr.bf16.mxu1 %v1429_v40  ;;  %v11183_v40 = vld [vmem:[%s14672_s1 + $0x38] sm:$0xff]   ;;  %14948 = vst [vmem:[#allocation24_spill] sm:$0xff] %v11190_v48  ;;  %v11196_v49 = vld [vmem:[%s14672_s1 + $0x30] sm:$0xff]   ;;  %14955 = vst [vmem:[#allocation31_spill] sm:$0xff] %v11232_v56 }
 0x14c   :  { %7670 = vmatprep.subr.bf16.mxu1 %v11088_v45  ;;  %14949 = vst [vmem:[#allocation25_spill] sm:$0xff] %v11196_v49  ;;  %v11202_v51 = vld [vmem:[%s14672_s1 + $0x68] sm:$0xff]   ;;  %v11238_v3 = vld [vmem:[%s14672_s1 + $0x50] sm:$0xff]  }
 0x14d   :  { %14950 = vst [vmem:[#allocation26_spill] sm:$0xff] %v11202_v51  ;;  %14956 = vst [vmem:[#allocation32_spill] sm:$0xff] %v11238_v3 }
 0x14f   :  { %7671 = vmatpush3.bf16.msra.mxu1 %v11094_v0  ;;  %v11429_v0 = vld [vmem:[%s14672_s1 + $0x200] sm:$0xff]  }
 0x150   :  { %7672 = vmatprep.subr.bf16.mxu1 %v11100_v46 }
 0x153   :  { %7673 = vmatpush3.bf16.msra.mxu1 %v11106_v2  ;;  %v7004_v2 = vld.sshfl [vmem:[%s14673_s0 + $0x1a] sm:$0x1 pattern:$0x75316420] }
 0x154   :  { %7674 = vmatprep.subr.bf16.mxu1 %v11112_v6  ;;  %v11418_v6 = vld [vmem:[%s14672_s1 + $0x208] sm:$0xff]   ;;  %v1443_v46 = vrot.slane %v7004_v2, %v10494_v35 }
 0x157   :  { %7675 = vmatpush3.bf16.msra.mxu1 %v11118_v8  ;;  %v11411_v8 = vld [vmem:[%s14672_s1 + $0x210] sm:$0xff]  }
 0x158   :  { %7676 = vmatprep.subr.bf16.mxu1 %v11124_v10  ;;  %v11404_v10 = vld [vmem:[%s14672_s1 + $0x218] sm:$0xff]  }
 0x15b   :  { %7677 = vmatpush3.bf16.msra.mxu1 %v11130_v12  ;;  %v11397_v12 = vld [vmem:[%s14672_s1 + $0x220] sm:$0xff]  }
 0x15c   :  { %7678 = vmatprep.subr.bf16.mxu1 %v11138_v16  ;;  %v11383_v16 = vld [vmem:[%s14672_s1 + $0x230] sm:$0xff]  }
 0x15d   :  { %14969 = vst [vmem:[#allocation44_spill] sm:$0xff] %v11383_v16 }
 0x15f   :  { %7679 = vmatpush3.bf16.msra.mxu1 %v11144_v20  ;;  %v11374_v20 = vld [vmem:[%s14672_s1 + $0x238] sm:$0xff]  }
 0x160   :  { %7680 = vmatprep.subr.bf16.mxu1 %v11151_v27  ;;  %v14967_v27 = vmov 0.0   ;;  %14968 = vst [vmem:[#allocation43_spill] sm:$0xff] %v11374_v20 }
 0x163   :  { %v7569_v7 = vpop.f32.mrf.mxu0  ;;  %7681 = vmatpush3.bf16.msra.mxu1 %v11160_v9  ;;  %v11366_v9 = vld [vmem:[%s14672_s1 + $0x100] sm:$0xff]  }
 0x164   :  { %7682 = vmatprep.subr.bf16.mxu1 %v11166_v11  ;;  %v11360_v11 = vld [vmem:[%s14672_s1 + $0x140] sm:$0xff]  }
 0x165   :  { %v1175_v13 = vpop.f32.mrf.mxu1  ;;  %v7570_v15 = vpop.f32.mrf.mxu0 }
 0x166   :  { %v7571_v19 = vadd.f32 %v7570_v15, %v7569_v7  ;;  %v11244_v7 = vld [vmem:[%s14672_s1 + $0x10] sm:$0xff]   ;;  %v11256_v15 = vld [vmem:[%s14672_s1 + $0x8] sm:$0xff]  }
 0x167   :  { %v9133_v26 = vpop.f32.mrf.mxu1  ;;  %v7572_v41 = vpop.f32.mrf.mxu0  ;;  %7683 = vmatpush3.bf16.msra.mxu1 %v11174_v50  ;;  %14957 = vst [vmem:[#allocation33_spill] sm:$0xff] %v11244_v7  ;;  %14959 = vst [vmem:[#allocation35_spill] sm:$0xff] %v11256_v15  ;;  %v11354_v50 = vld [vmem:[%s14672_s1 + $0x108] sm:$0xff]  }
 0x168   :  { %v1136_v57 = vadd.f32 %v7571_v19, %v1096_v17  ;;  %9195 = vmatprep.subr.bf16.mxu1 %v14689_v29  ;;  %v11262_v17 = vld [vmem:[%s14672_s1 + $0x40] sm:$0xff]   ;;  %v11281_v26 = vld [vmem:[%s14672_s1 + $0x138] sm:$0xff]   ;;  %v11288_v41 = vld [vmem:[%s14672_s1 + $0x170] sm:$0xff]  }
 0x169   :  { %v1178_v60 = vpop.f32.mrf.mxu1  ;;  %v7573_v22 = vpop.f32.mrf.mxu0  ;;  %14960 = vst [vmem:[#allocation36_spill] sm:$0xff] %v11262_v17  ;;  %v11268_v19 = vld [vmem:[%s14672_s1] sm:$0xff]  }
 0x16a   :  { %v1176_v23 = vadd.f32 %v1175_v13, %v1136_v57  ;;  %1606 = vmatmul.mubr.bf16.vlgmr.msra.gmra.mxu1 %v1427_v21  ;;  %v11250_v13 = vld [vmem:[%s14672_s1 + $0x48] sm:$0xff]   ;;  %v11274_v21 = vld [vmem:[%s14672_s1 + $0x178] sm:$0xff]   ;;  %v11312_v60 = vld [vmem:[%s14672_s1 + $0x160] sm:$0xff]  }
 0x16b   :  { %v9134_v24 = vpop.f32.mrf.mxu1  ;;  %9211 = vmatprep.mubr.msk.bf16.mxu1 %vm10275_vm0, %v14689_v29  ;;  %14958 = vst [vmem:[#allocation34_spill] sm:$0xff] %v11250_v13  ;;  %v11300_v57 = vld [vmem:[%s14672_s1 + $0x168] sm:$0xff]   ;;  %14962 = vst [vmem:[#allocation38_spill] sm:$0xff] %v11312_v60  ;;  %v11318_v22 = vld [vmem:[%s14672_s1 + $0x120] sm:$0xff]   ;;  %9196 = vmatpush3.bf16.msra.mxu1 %v9849_v44 }
 0x16c   :  { %v1181_v30 = vmax.f32 %v1176_v23, 0.0  ;;  %14963 = vst [vmem:[#allocation39_spill] sm:$0xff] %v11318_v22  ;;  %v11324_v23 = vld [vmem:[%s14672_s1 + $0x158] sm:$0xff]   ;;  %v11348_v29 = vld [vmem:[%s14672_s1 + $0x148] sm:$0xff]   ;;  %9197 = vmatprep.subr.bf16.mxu1 %v14967_v27 }
 0x16d   :  { %14964 = vst [vmem:[#allocation40_spill] sm:$0xff] %v11324_v23  ;;  %v11330_v24 = vld [vmem:[%s14672_s1 + $0x118] sm:$0xff]  }
 0x16e   :  { %v1182_v38 = vpack.c.bf16 %v1181_v30, %v1181_v30  ;;  %14965 = vst [vmem:[#allocation41_spill] sm:$0xff] %v11330_v24  ;;  %v11336_v30 = vld [vmem:[%s14672_s1 + $0x150] sm:$0xff]   ;;  %v9853_v44 = vld [vmem:[%s14674_s3 + $0x98] sm:$0xff]  }
 0x16f   :  { %14966 = vst [vmem:[#allocation42_spill] sm:$0xff] %v11336_v30  ;;  %9198 = vmatpush3.bf16.msra.mxu1 %v9850_v39  ;;  %v9854_v39 = vld [vmem:[%s14674_s3 + $0x90] sm:$0xff]  }
 0x170   :  { %9152 = vmatmul.mubr.bf16.vlgmr.msra.gmra.mxu0 %v1182_v38  ;;  %v11342_v38 = vld [vmem:[%s14672_s1 + $0x110] sm:$0xff]   ;;  %9199 = vmatprep.subr.bf16.mxu1 %v14967_v27 }
 0x171   :  { %7603 = vmatpush3.bf16.msra.mxu0 %v11183_v40  ;;  %1485 = vmatprep.mubr.bf16.mxu0 %v10964_v1  ;;  %v11208_v1 = vld [vmem:[%s14672_s1 + $0x28] sm:$0xff]  }
 0x172   :  { %7604 = vmatprep.subr.bf16.mxu0 %v11190_v48  ;;  %14951 = vst [vmem:[#allocation27_spill] sm:$0xff] %v11208_v1 }
 0x175   :  { %7605 = vmatpush3.bf16.msra.mxu0 %v11196_v49 }
 0x176   :  { %7606 = vmatprep.subr.bf16.mxu0 %v11202_v51 }
 0x179   :  { %7607 = vmatpush3.bf16.msra.mxu0 %v11208_v1 }
 0x17a   :  { %7608 = vmatprep.subr.bf16.mxu0 %v11214_v14 }
 0x17d   :  { %7609 = vmatpush3.bf16.msra.mxu0 %v11220_v18 }
 0x17e   :  { %7610 = vmatprep.subr.bf16.mxu0 %v11226_v25 }
 0x181   :  { %7611 = vmatpush3.bf16.msra.mxu0 %v11232_v56 }
 0x182   :  { %7612 = vmatprep.subr.bf16.mxu0 %v11238_v3 }
 0x185   :  { %7613 = vmatpush3.bf16.msra.mxu0 %v11244_v7 }
 0x186   :  { %7614 = vmatprep.subr.bf16.mxu0 %v11250_v13 }
 0x189   :  { %7615 = vmatpush3.bf16.msra.mxu0 %v11256_v15 }
 0x18a   :  { %7616 = vmatprep.subr.bf16.mxu0 %v11262_v17 }
 0x18d   :  { %7617 = vmatpush3.bf16.msra.mxu0 %v11268_v19 }
 0x18e   :  { %7646 = vmatprep.subr.bf16.mxu0 %v11274_v21 }
 0x190   :  { %1486 = vmatmul.mubr.bf16.vlgmr.msra.gmra.mxu0 %v11046_v59  ;;  %v11294_v59 = vld [vmem:[%s14672_s1 + $0x130] sm:$0xff]  }
 0x191   :  { %7647 = vmatpush3.bf16.msra.mxu0 %v11281_v26  ;;  %1565 = vmatprep.mubr.bf16.mxu0 %v11055_v62  ;;  %v11306_v62 = vld [vmem:[%s14672_s1 + $0x128] sm:$0xff]  }
 0x192   :  { %7648 = vmatprep.subr.bf16.mxu0 %v11288_v41  ;;  %14961 = vst [vmem:[#allocation37_spill] sm:$0xff] %v11306_v62 }
 0x195   :  { %7649 = vmatpush3.bf16.msra.mxu0 %v11294_v59 }
 0x196   :  { %7650 = vmatprep.subr.bf16.mxu0 %v11300_v57 }
 0x199   :  { %7651 = vmatpush3.bf16.msra.mxu0 %v11306_v62 }
 0x19a   :  { %7652 = vmatprep.subr.bf16.mxu0 %v11312_v60 }
 0x19d   :  { %7653 = vmatpush3.bf16.msra.mxu0 %v11318_v22 }
 0x19e   :  { %7654 = vmatprep.subr.bf16.mxu0 %v11324_v23 }
 0x1a1   :  { %7655 = vmatpush3.bf16.msra.mxu0 %v11330_v24 }
 0x1a2   :  { %7656 = vmatprep.subr.bf16.mxu0 %v11336_v30 }
 0x1a5   :  { %7657 = vmatpush3.bf16.msra.mxu0 %v11342_v38 }
 0x1a6   :  { %7658 = vmatprep.subr.bf16.mxu0 %v11348_v29 }
 0x1a9   :  { %7659 = vmatpush3.bf16.msra.mxu0 %v11354_v50 }
 0x1aa   :  { %7660 = vmatprep.subr.bf16.mxu0 %v11360_v11 }
 0x1ad   :  { %7661 = vmatpush3.bf16.msra.mxu0 %v11366_v9 }
 0x1ae   :  { %9175 = vmatprep.subr.bf16.mxu0 %v14967_v27 }
 0x1b0   :  { %1566 = vmatmul.mubr.bf16.vlgmr.msra.gmra.mxu0 %v11155_v5  ;;  %v11390_v5 = vld [vmem:[%s14672_s1 + $0x228] sm:$0xff]  }
 0x1b1   :  { %9176 = vmatpush3.bf16.msra.mxu0 %v11374_v20  ;;  %9191 = vmatprep.mubr.msk.bf16.mxu0 %vm10275_vm0, %v14967_v27  ;;  %14970 = vst [vmem:[#allocation45_spill] sm:$0xff] %v11390_v5 }
 0x1b2   :  { %9177 = vmatprep.subr.bf16.mxu0 %v14967_v27 }
 0x1b5   :  { %9178 = vmatpush3.bf16.msra.mxu0 %v11383_v16 }
 0x1b6   :  { %9179 = vmatprep.subr.bf16.mxu0 %v14967_v27 }
 0x1b9   :  { %9180 = vmatpush3.bf16.msra.mxu0 %v11390_v5 }
 0x1ba   :  { %9181 = vmatprep.subr.bf16.mxu0 %v14967_v27 }
 0x1bd   :  { %9182 = vmatpush3.bf16.msra.mxu0 %v11397_v12 }
 0x1be   :  { %9183 = vmatprep.subr.bf16.mxu0 %v14967_v27 }
 0x1c1   :  { %9184 = vmatpush3.bf16.msra.mxu0 %v11404_v10 }
 0x1c2   :  { %9185 = vmatprep.subr.bf16.mxu0 %v14967_v27 }
 0x1c5   :  { %9186 = vmatpush3.bf16.msra.mxu0 %v11411_v8 }
 0x1c6   :  { %9187 = vmatprep.subr.bf16.mxu0 %v14967_v27 }
 0x1c9   :  { %9188 = vmatpush3.bf16.msra.mxu0 %v11418_v6 }
 0x1ca   :  { %9189 = vmatprep.subr.bf16.mxu0 %v14967_v27 }
 0x1cd   :  { %9190 = vmatpush3.bf16.msra.mxu0 %v11429_v0 }
 0x1ce   :  { %7708 = vmatprep.subr.bf16.mxu0 %v10950_v43 }
 0x1d0   :  { %9192 = vmatmul.mubr.bf16.vlgmr.msra.gmra.mxu0 %v1443_v46 }
 0x1d1   :  { %7709 = vmatpush3.bf16.msra.mxu0 %v11183_v40 }
 0x1d2   :  { %7710 = vmatprep.subr.bf16.mxu0 %v11190_v48 }
 0x1d5   :  { %7711 = vmatpush3.bf16.msra.mxu0 %v11196_v49 }
 0x1d6   :  { %7712 = vmatprep.subr.bf16.mxu0 %v11202_v51 }
 0x1d9   :  { %7713 = vmatpush3.bf16.msra.mxu0 %v11208_v1 }
 0x1da   :  { %7714 = vmatprep.subr.bf16.mxu0 %v11214_v14 }
 0x1dd   :  { %7715 = vmatpush3.bf16.msra.mxu0 %v11220_v18 }
 0x1de   :  { %7716 = vmatprep.subr.bf16.mxu0 %v11226_v25 }
 0x1e1   :  { %7717 = vmatpush3.bf16.msra.mxu0 %v11232_v56 }
 0x1e2   :  { %7718 = vmatprep.subr.bf16.mxu0 %v11238_v3 }
 0x1e5   :  { %7719 = vmatpush3.bf16.msra.mxu0 %v11244_v7 }
 0x1e6   :  { %7720 = vmatprep.subr.bf16.mxu0 %v11250_v13 }
 0x1e9   :  { %7721 = vmatpush3.bf16.msra.mxu0 %v11256_v15 }
 0x1ea   :  { %v11446_v46 = vpop.f32.mrf.mxu1  ;;  %7722 = vmatprep.subr.bf16.mxu0 %v11262_v17 }
 0x1eb   :  { %14971 = vst [vmem:[#allocation46_spill] sm:$0xff] %v11446_v46 }
 0x1ec   :  { %v9173_v2 = vpop.f32.mrf.mxu1 }
 0x1ed   :  { %7723 = vmatpush3.bf16.msra.mxu0 %v11268_v19  ;;  %v9851_v2 = vld [vmem:[%s14674_s3 + $0xa8] sm:$0xff]  }
 0x1ee   :  { %v1373_v45 = vpop.f32.mrf.mxu1  ;;  %7752 = vmatprep.subr.bf16.mxu0 %v11274_v21  ;;  %9200 = vmatpush3.bf16.msra.mxu1 %v9851_v2 }
 0x1ef   :  { %9201 = vmatprep.subr.bf16.mxu1 %v14967_v27 }
 0x1f0   :  { %v9174_v53 = vpop.f32.mrf.mxu1 }
 0x1f1   :  { %v9852_v53 = vld [vmem:[%s14674_s3 + $0xa0] sm:$0xff]  }
 0x1f2   :  { %9202 = vmatpush3.bf16.msra.mxu1 %v9852_v53  ;;  %v9855_v53 = vld [vmem:[%s14674_s3 + $0x88] sm:$0xff]  }
 0x1f3   :  { %9203 = vmatprep.subr.bf16.mxu1 %v14967_v27 }
 0x1f6   :  { %9204 = vmatpush3.bf16.msra.mxu1 %v9853_v44  ;;  %v7029_v44 = vld [vmem:[%s14673_s0 + $0x1b] sm:$0xff] }
 0x1f7   :  { %9205 = vmatprep.subr.bf16.mxu1 %v14967_v27  ;;  %v1773_v58 = vrot.slane %v7029_v44, %v10494_v35 }
 0x1f9   :  { %v1781_v55 = vcombine.high %v1773_v58, %v1773_v58 }
 0x1fa   :  { %9206 = vmatpush3.bf16.msra.mxu1 %v9854_v39  ;;  %v9856_v39 = vld [vmem:[%s14674_s3 + $0x80] sm:$0xff]  }
 0x1fb   :  { %9207 = vmatprep.subr.bf16.mxu1 %v14967_v27 }
 0x1fe   :  { %9208 = vmatpush3.bf16.msra.mxu1 %v9855_v53 }
 0x1ff   :  { %9209 = vmatprep.subr.bf16.mxu1 %v14967_v27 }
 0x202   :  { %9210 = vmatpush3.bf16.msra.mxu1 %v9856_v39 }
 0x203   :  { %7730 = vmatprep.subr.bf16.mxu1 %v10913_v52 }
 0x20a   :  { %v7640_v45 = vpop.f32.mrf.mxu1 }
 0x20c   :  { %v7641_v2 = vpop.f32.mrf.mxu1 }
 0x20d   :  { %v11477_v46 = vadd.f32 %v7641_v2, %v7640_v45  ;;  %v11489_v45 = vrot.slane %v1781_v55, %v10494_v35  ;;  %v1766_v2 = vcombine.high %v7029_v44, %v7029_v44 }
 0x20e   :  { %v7643_v63 = vpop.f32.mrf.mxu1 }
 0x20f   :  { %1870 = vmatprep.mubr.bf16.mxu0 %v11489_v45 }
 0x210   :  { %v7644_v61 = vpop.f32.mrf.mxu1 }
 0x211   :  { %v11493_v61 = vrot.slane %v1773_v58, %v10494_v35 }
 0x213   :  { %1871 = vmatmul.mubr.bf16.vlgmr.msra.gmra.mxu0 %v11493_v61 }
 0x214   :  { %7753 = vmatpush3.bf16.msra.mxu0 %v11281_v26 }
 0x215   :  { %7754 = vmatprep.subr.bf16.mxu0 %v11288_v41 }
 0x218   :  { %7755 = vmatpush3.bf16.msra.mxu0 %v11294_v59 }
 0x219   :  { %7756 = vmatprep.subr.bf16.mxu0 %v11300_v57 }
 0x21c   :  { %7757 = vmatpush3.bf16.msra.mxu0 %v11306_v62 }
 0x21d   :  { %7758 = vmatprep.subr.bf16.mxu0 %v11312_v60 }
 0x220   :  { %7759 = vmatpush3.bf16.msra.mxu0 %v11318_v22 }
 0x221   :  { %7760 = vmatprep.subr.bf16.mxu0 %v11324_v23  ;;  %v1780_v23 = vrot.slane %v1766_v2, %v10494_v35 }
 0x223   :  { %v11522_v44 = vrot.slane %v1780_v23, %v10494_v35 }
 0x224   :  { %7761 = vmatpush3.bf16.msra.mxu0 %v11330_v24 }
 0x225   :  { %7762 = vmatprep.subr.bf16.mxu0 %v11336_v30  ;;  %v1782_v30 = vcombine.high %v1780_v23, %v1780_v23 }
 0x228   :  { %7763 = vmatpush3.bf16.msra.mxu0 %v11342_v38 }
 0x229   :  { %7764 = vmatprep.subr.bf16.mxu0 %v11348_v29 }
 0x22a   :  { %v7684_v52 = vpop.f32.mrf.mxu1 }
 0x22c   :  { %v7685_v55 = vpop.f32.mrf.mxu1  ;;  %7765 = vmatpush3.bf16.msra.mxu0 %v11354_v50 }
 0x22d   :  { %v11507_v58 = vadd.f32 %v7685_v55, %v7684_v52  ;;  %7766 = vmatprep.subr.bf16.mxu0 %v11360_v11  ;;  %v11518_v52 = vrot.slane %v1782_v30, %v10494_v35  ;;  %v7031_v30 = vld.sshfl [vmem:[%s14673_s0 + $0x23] sm:$0x1 pattern:$0x75316420] }
 0x22e   :  { %v7687_v63 = vpop.f32.mrf.mxu1 }
 0x22f   :  { %1950 = vmatprep.mubr.bf16.mxu0 %v11518_v52  ;;  %v1828_v63 = vrot.slane %v7031_v30, %v10494_v35 }
 0x230   :  { %v11511_v53 = vpop.f32.mrf.mxu0  ;;  %v7688_v39 = vpop.f32.mrf.mxu1  ;;  %7767 = vmatpush3.bf16.msra.mxu0 %v11366_v9 }
 0x231   :  { %9215 = vmatprep.subr.bf16.mxu0 %v14967_v27 }
 0x232   :  { %v9153_v24 = vpop.f32.mrf.mxu0 }
 0x233   :  { %1951 = vmatmul.mubr.bf16.vlgmr.msra.gmra.mxu0 %v11522_v44 }
 0x234   :  { %v1285_v22 = vpop.f32.mrf.mxu0  ;;  %9216 = vmatpush3.bf16.msra.mxu0 %v11374_v20  ;;  %9231 = vmatprep.mubr.msk.bf16.mxu0 %vm10275_vm0, %v14967_v27 }
 0x235   :  { %9217 = vmatprep.subr.bf16.mxu0 %v14967_v27 }
 0x236   :  { %v9154_v55 = vpop.f32.mrf.mxu0 }
 0x238   :  { %9218 = vmatpush3.bf16.msra.mxu0 %v11383_v16 }
 0x239   :  { %9219 = vmatprep.subr.bf16.mxu0 %v14967_v27 }
 0x23c   :  { %9220 = vmatpush3.bf16.msra.mxu0 %v11390_v5 }
 0x23d   :  { %9221 = vmatprep.subr.bf16.mxu0 %v14967_v27 }
 0x240   :  { %9222 = vmatpush3.bf16.msra.mxu0 %v11397_v12 }
 0x241   :  { %9223 = vmatprep.subr.bf16.mxu0 %v14967_v27 }
 0x244   :  { %9224 = vmatpush3.bf16.msra.mxu0 %v11404_v10 }
 0x245   :  { %9225 = vmatprep.subr.bf16.mxu0 %v14967_v27 }
 0x248   :  { %9226 = vmatpush3.bf16.msra.mxu0 %v11411_v8 }
 0x249   :  { %9227 = vmatprep.subr.bf16.mxu0 %v14967_v27 }
 0x24c   :  { %9228 = vmatpush3.bf16.msra.mxu0 %v11418_v6 }
 0x24d   :  { %9229 = vmatprep.subr.bf16.mxu0 %v14967_v27 }
 0x250   :  { %v7618_v22 = vpop.f32.mrf.mxu0  ;;  %9230 = vmatpush3.bf16.msra.mxu0 %v11429_v0 }
 0x251   :  { %7814 = vmatprep.subr.bf16.mxu0 %v10950_v43 }
 0x252   :  { %v7619_v23 = vpop.f32.mrf.mxu0 }
 0x253   :  { %9232 = vmatmul.mubr.bf16.vlgmr.msra.gmra.mxu0 %v1828_v63  ;;  %v7620_v39 = vadd.f32 %v7619_v23, %v7618_v22 }
 0x254   :  { %v7621_v24 = vpop.f32.mrf.mxu0  ;;  %7815 = vmatpush3.bf16.msra.mxu0 %v11183_v40 }
 0x255   :  { %7816 = vmatprep.subr.bf16.mxu0 %v11190_v48  ;;  %v1488_v55 = vadd.f32 %v7620_v39, %v10956_v4 }
 0x256   :  { %v7622_v2 = vpop.f32.mrf.mxu0 }
 0x257   :  { %v1528_v63 = vadd.f32 %v11477_v46, %v1488_v55  ;;  %v14980_v55 = vld [vmem:[#allocation11_spill] sm:$0xff] }
 0x258   :  { %7817 = vmatpush3.bf16.msra.mxu0 %v11196_v49 }
 0x259   :  { %7818 = vmatprep.subr.bf16.mxu0 %v11202_v51 }
 0x25c   :  { %7819 = vmatpush3.bf16.msra.mxu0 %v11208_v1 }
 0x25d   :  { %7820 = vmatprep.subr.bf16.mxu0 %v11214_v14 }
 0x260   :  { %7821 = vmatpush3.bf16.msra.mxu0 %v11220_v18 }
 0x261   :  { %7822 = vmatprep.subr.bf16.mxu0 %v11226_v25 }
 0x264   :  { %7823 = vmatpush3.bf16.msra.mxu0 %v11232_v56 }
 0x265   :  { %7824 = vmatprep.subr.bf16.mxu0 %v11238_v3 }
 0x268   :  { %7825 = vmatpush3.bf16.msra.mxu0 %v11244_v7 }
 0x269   :  { %7826 = vmatprep.subr.bf16.mxu0 %v11250_v13 }
 0x26c   :  { %7827 = vmatpush3.bf16.msra.mxu0 %v11256_v15 }
 0x26d   :  { %7828 = vmatprep.subr.bf16.mxu0 %v11262_v17  ;;  %v1813_v17 = vcombine.high %v11489_v45, %v11489_v45  ;;  %v14978_v45 = vld [vmem:[#allocation9_spill] sm:$0xff] }
 0x270   :  { %v7662_v24 = vpop.f32.mrf.mxu0  ;;  %7829 = vmatpush3.bf16.msra.mxu0 %v11268_v19 }
 0x271   :  { %7858 = vmatprep.subr.bf16.mxu0 %v11274_v21 }
 0x272   :  { %v7663_v30 = vpop.f32.mrf.mxu0 }
 0x273   :  { %v7664_v2 = vadd.f32 %v7663_v30, %v7662_v24  ;;  %v14981_v24 = vld [vmem:[#allocation12_spill] sm:$0xff]  ;;  %v14982_v30 = vld [vmem:[#allocation13_spill] sm:$0xff] }
 0x274   :  { %v7665_v25 = vpop.f32.mrf.mxu0 }
 0x275   :  { %v1568_v56 = vadd.f32 %v7664_v2, %v1528_v63  ;;  %v14973_v25 = vld [vmem:[#allocation4_spill] sm:$0xff]  ;;  %v14984_v63 = vld [vmem:[#allocation15_spill] sm:$0xff] }
 0x276   :  { %v7666_v22 = vpop.f32.mrf.mxu0  ;;  %v14985_v2 = vld [vmem:[#allocation16_spill] sm:$0xff] }
 0x277   :  { %v1608_v23 = vadd.f32 %v11507_v58, %v1568_v56  ;;  %v14974_v56 = vld [vmem:[#allocation5_spill] sm:$0xff]  ;;  %v14979_v58 = vld [vmem:[#allocation10_spill] sm:$0xff] }
 0x278   :  { %v14987_v22 = vld [vmem:[#allocation18_spill] sm:$0xff] }
 0x290   :  { %v1647_v13 = vpop.f32.mrf.mxu0 }
 0x291   :  { %v1648_v39 = vadd.f32 %v1647_v13, %v1608_v23  ;;  %v14976_v13 = vld [vmem:[#allocation7_spill] sm:$0xff] }
 0x292   :  { %v9193_v7 = vpop.f32.mrf.mxu0  ;;  %v14988_v23 = vld [vmem:[#allocation19_spill] sm:$0xff] }
 0x293   :  { %v1653_v4 = vmax.f32 %v1648_v39, 0.0  ;;  %v1811_v7 = vcombine.high %v11493_v61, %v11493_v61  ;;  %v14983_v61 = vld [vmem:[#allocation14_spill] sm:$0xff]  ;;  %v14989_v39 = vld [vmem:[#allocation20_spill] sm:$0xff] }
 0x294   :  { %v1650_v15 = vpop.f32.mrf.mxu0 }
 0x295   :  { %v1654_v3 = vpack.c.bf16 %v1653_v4, %v1653_v4  ;;  %v14972_v4 = vld [vmem:[#allocation3_spill] sm:$0xff]  ;;  %v1814_v15 = vcombine.high %v11518_v52, %v11518_v52  ;;  %v14986_v52 = vld [vmem:[#allocation17_spill] sm:$0xff] }
 0x296   :  { %v9194_v46 = vpop.f32.mrf.mxu0 }
 0x297   :  { %9212 = vmatmul.mubr.bf16.vlgmr.msra.gmra.mxu1 %v1654_v3  ;;  %v14975_v3 = vld [vmem:[#allocation6_spill] sm:$0xff]  ;;  %v14990_v46 = vld [vmem:[#allocation21_spill] sm:$0xff] }
 0x298   :  { %7731 = vmatpush3.bf16.msra.mxu1 %v10975_v28  ;;  %1910 = vmatprep.mubr.bf16.mxu1 %v1813_v17  ;;  %v14977_v17 = vld [vmem:[#allocation8_spill] sm:$0xff] }
 0x299   :  { %7732 = vmatprep.subr.bf16.mxu1 %v10981_v31 }
 0x29c   :  { %7733 = vmatpush3.bf16.msra.mxu1 %v10987_v32 }
 0x29d   :  { %7734 = vmatprep.subr.bf16.mxu1 %v10993_v33 }
 0x2a0   :  { %7735 = vmatpush3.bf16.msra.mxu1 %v10999_v34 }
 0x2a1   :  { %7736 = vmatprep.subr.bf16.mxu1 %v11005_v36 }
 0x2a4   :  { %7737 = vmatpush3.bf16.msra.mxu1 %v11011_v37 }
 0x2a5   :  { %7738 = vmatprep.subr.bf16.mxu1 %v11017_v42 }
 0x2a8   :  { %7739 = vmatpush3.bf16.msra.mxu1 %v11023_v47 }
 0x2a9   :  { %7740 = vmatprep.subr.bf16.mxu1 %v11030_v54 }
 0x2ac   :  { %7741 = vmatpush3.bf16.msra.mxu1 %v14972_v4 }
 0x2ad   :  { %7742 = vmatprep.subr.bf16.mxu1 %v14973_v25 }
 0x2b0   :  { %7743 = vmatpush3.bf16.msra.mxu1 %v14974_v56 }
 0x2b1   :  { %7744 = vmatprep.subr.bf16.mxu1 %v14975_v3 }
 0x2b4   :  { %7745 = vmatpush3.bf16.msra.mxu1 %v14976_v13 }
 0x2b5   :  { %7774 = vmatprep.subr.bf16.mxu1 %v14977_v17 }
 0x2b7   :  { %1911 = vmatmul.mubr.bf16.vlgmr.msra.gmra.mxu1 %v1811_v7  ;;  %v14991_v7 = vld [vmem:[#allocation22_spill] sm:$0xff] }
 0x2b8   :  { %7775 = vmatpush3.bf16.msra.mxu1 %v14978_v45  ;;  %1990 = vmatprep.mubr.bf16.mxu1 %v1814_v15  ;;  %v1812_v15 = vcombine.high %v11522_v44, %v11522_v44 }
 0x2b9   :  { %7776 = vmatprep.subr.bf16.mxu1 %v14979_v58 }
 0x2bc   :  { %7777 = vmatpush3.bf16.msra.mxu1 %v14980_v55 }
 0x2bd   :  { %7778 = vmatprep.subr.bf16.mxu1 %v14981_v24 }
 0x2c0   :  { %7779 = vmatpush3.bf16.msra.mxu1 %v14982_v30 }
 0x2c1   :  { %7780 = vmatprep.subr.bf16.mxu1 %v14983_v61  ;;  %v14992_v61 = vld [vmem:[#allocation23_spill] sm:$0xff] }
 0x2c4   :  { %7781 = vmatpush3.bf16.msra.mxu1 %v14984_v63 }
 0x2c5   :  { %7782 = vmatprep.subr.bf16.mxu1 %v14985_v2 }
 0x2c8   :  { %7783 = vmatpush3.bf16.msra.mxu1 %v14986_v52 }
 0x2c9   :  { %7784 = vmatprep.subr.bf16.mxu1 %v14987_v22 }
 0x2cc   :  { %7785 = vmatpush3.bf16.msra.mxu1 %v14988_v23 }
 0x2cd   :  { %7786 = vmatprep.subr.bf16.mxu1 %v14989_v39 }
 0x2d0   :  { %7787 = vmatpush3.bf16.msra.mxu1 %v14990_v46 }
 0x2d1   :  { %7788 = vmatprep.subr.bf16.mxu1 %v14991_v7 }
 0x2d3   :  { %v7724_v2 = vpop.f32.mrf.mxu0 }
 0x2d4   :  { %7789 = vmatpush3.bf16.msra.mxu1 %v14992_v61  ;;  %v9858_v61 = vld [vmem:[%s14674_s3 + $0xf8] sm:$0xff]  }
 0x2d5   :  { %9235 = vmatprep.subr.bf16.mxu1 %v14967_v27  ;;  %v7725_v22 = vpop.f32.mrf.mxu0 }
 0x2d6   :  { %v11609_v23 = vadd.f32 %v7725_v22, %v7724_v2  ;;  %v9860_v2 = vld [vmem:[%s14674_s3 + $0xe8] sm:$0xff]  }
 0x2d7   :  { %1991 = vmatmul.mubr.bf16.vlgmr.msra.gmra.mxu1 %v1812_v15  ;;  %v7727_v39 = vpop.f32.mrf.mxu0  ;;  %v9859_v15 = vld [vmem:[%s14674_s3 + $0xf0] sm:$0xff]  }
 0x2d8   :  { %9251 = vmatprep.mubr.msk.bf16.mxu1 %vm10275_vm0, %v14967_v27  ;;  %9236 = vmatpush3.bf16.msra.mxu1 %v9858_v61  ;;  %v9862_v61 = vld [vmem:[%s14674_s3 + $0xd8] sm:$0xff]   ;;  %v9864_v39 = vld [vmem:[%s14674_s3 + $0xc8] sm:$0xff]  }
 0x2d9   :  { %v7728_v52 = vpop.f32.mrf.mxu0  ;;  %9237 = vmatprep.subr.bf16.mxu1 %v14967_v27 }
 0x2dc   :  { %9238 = vmatpush3.bf16.msra.mxu1 %v9859_v15 }
 0x2dd   :  { %9239 = vmatprep.subr.bf16.mxu1 %v14967_v27 }
 0x2e0   :  { %9240 = vmatpush3.bf16.msra.mxu1 %v9860_v2 }
 0x2e1   :  { %9241 = vmatprep.subr.bf16.mxu1 %v14967_v27 }
 0x2f3   :  { %v7768_v46 = vpop.f32.mrf.mxu0 }
 0x2f5   :  { %v7769_v63 = vpop.f32.mrf.mxu0 }
 0x2f6   :  { %v11611_v7 = vadd.f32 %v7769_v63, %v7768_v46  ;;  %v9863_v63 = vld [vmem:[%s14674_s3 + $0xd0] sm:$0xff]  }
 0x2f7   :  { %v7771_v30 = vpop.f32.mrf.mxu0 }
 0x2f8   :  { %v9861_v30 = vld [vmem:[%s14674_s3 + $0xe0] sm:$0xff]  }
 0x2f9   :  { %v7772_v44 = vpop.f32.mrf.mxu0  ;;  %9242 = vmatpush3.bf16.msra.mxu1 %v9861_v30  ;;  %v9865_v30 = vld [vmem:[%s14674_s3 + $0xc0] sm:$0xff]  }
 0x2fa   :  { %9243 = vmatprep.subr.bf16.mxu1 %v14967_v27  ;;  %v7056_v44 = vld [vmem:[%s14673_s0 + $0x24] sm:$0xff] }
 0x2fb   :  { %v2158_v15 = vrot.slane %v7056_v44, %v10494_v35 }
 0x2fd   :  { %9244 = vmatpush3.bf16.msra.mxu1 %v9862_v61  ;;  %v2166_v61 = vcombine.high %v2158_v15, %v2158_v15 }
 0x2fe   :  { %9245 = vmatprep.subr.bf16.mxu1 %v14967_v27 }
 0x301   :  { %9246 = vmatpush3.bf16.msra.mxu1 %v9863_v63  ;;  %v11651_v63 = vrot.slane %v2166_v61, %v10494_v35  ;;  %v2151_v61 = vcombine.high %v7056_v44, %v7056_v44 }
 0x302   :  { %9247 = vmatprep.subr.bf16.mxu1 %v14967_v27 }
 0x303   :  { %2255 = vmatprep.mubr.bf16.mxu0 %v11651_v63 }
 0x305   :  { %9248 = vmatpush3.bf16.msra.mxu1 %v9864_v39  ;;  %v11660_v39 = vrot.slane %v2158_v15, %v10494_v35  ;;  %v14994_v15 = vld [vmem:[#allocation40_spill] sm:$0xff] }
 0x306   :  { %9249 = vmatprep.subr.bf16.mxu1 %v14967_v27 }
 0x307   :  { %2256 = vmatmul.mubr.bf16.vlgmr.msra.gmra.mxu0 %v11660_v39 }
 0x308   :  { %7859 = vmatpush3.bf16.msra.mxu0 %v11281_v26 }
 0x309   :  { %9250 = vmatpush3.bf16.msra.mxu1 %v9865_v30  ;;  %7860 = vmatprep.subr.bf16.mxu0 %v11288_v41  ;;  %v14996_v30 = vld [vmem:[#allocation42_spill] sm:$0xff] }
 0x30c   :  { %7861 = vmatpush3.bf16.msra.mxu0 %v11294_v59 }
 0x30d   :  { %7862 = vmatprep.subr.bf16.mxu0 %v11300_v57 }
 0x310   :  { %7863 = vmatpush3.bf16.msra.mxu0 %v11306_v62  ;;  %v2165_v62 = vrot.slane %v2151_v61, %v10494_v35 }
 0x311   :  { %7864 = vmatprep.subr.bf16.mxu0 %v11312_v60 }
 0x312   :  { %v2167_v60 = vcombine.high %v2165_v62, %v2165_v62 }
 0x313   :  { %v11636_v52 = vpop.f32.mrf.mxu0 }
 0x315   :  { %v9233_v22 = vpop.f32.mrf.mxu0 }
 0x316   :  { %v11656_v22 = vld [vmem:[%s14672_s1 + $0xf8] sm:$0xff]  }
 0x317   :  { %v2035_v46 = vpop.f32.mrf.mxu0  ;;  %7836 = vmatprep.subr.bf16.mxu1 %v11656_v22 }
 0x318   :  { %v14993_v46 = vld [vmem:[#allocation39_spill] sm:$0xff] }
 0x319   :  { %v9234_v2 = vpop.f32.mrf.mxu0  ;;  %7865 = vmatpush3.bf16.msra.mxu0 %v14993_v46 }
 0x31a   :  { %7866 = vmatprep.subr.bf16.mxu0 %v14994_v15  ;;  %v14995_v2 = vld [vmem:[#allocation41_spill] sm:$0xff]  ;;  %v11681_v15 = vrot.slane %v2167_v60, %v10494_v35 }
 0x31c   :  { %2335 = vmatprep.mubr.bf16.mxu0 %v11681_v15 }
 0x31d   :  { %7867 = vmatpush3.bf16.msra.mxu0 %v14995_v2 }
 0x31e   :  { %7868 = vmatprep.subr.bf16.mxu0 %v14996_v30  ;;  %v11685_v30 = vrot.slane %v2165_v62, %v10494_v35  ;;  %v14997_v62 = vld [vmem:[#allocation46_spill] sm:$0xff] }
 0x31f   :  { %v1371_v60 = vadd.f32 %v14997_v62, %v11511_v53  ;;  %v7058_v53 = vld.sshfl [vmem:[%s14673_s0 + $0x2c] sm:$0x1 pattern:$0x75316420] }
 0x320   :  { %v2213_v62 = vrot.slane %v7058_v53, %v10494_v35 }
 0x321   :  { %7869 = vmatpush3.bf16.msra.mxu0 %v11342_v38 }
 0x322   :  { %7870 = vmatprep.subr.bf16.mxu0 %v11348_v29 }
 0x325   :  { %7871 = vmatpush3.bf16.msra.mxu0 %v11354_v50 }
 0x326   :  { %7872 = vmatprep.subr.bf16.mxu0 %v11360_v11 }
 0x329   :  { %7873 = vmatpush3.bf16.msra.mxu0 %v11366_v9 }
 0x32a   :  { %9255 = vmatprep.subr.bf16.mxu0 %v14967_v27 }
 0x32c   :  { %2336 = vmatmul.mubr.bf16.vlgmr.msra.gmra.mxu0 %v11685_v30 }
 0x32d   :  { %9256 = vmatpush3.bf16.msra.mxu0 %v11374_v20  ;;  %9271 = vmatprep.mubr.msk.bf16.mxu0 %vm10275_vm0, %v14967_v27 }
 0x32e   :  { %9257 = vmatprep.subr.bf16.mxu0 %v14967_v27 }
 0x331   :  { %9258 = vmatpush3.bf16.msra.mxu0 %v11383_v16 }
 0x332   :  { %9259 = vmatprep.subr.bf16.mxu0 %v14967_v27 }
 0x335   :  { %9260 = vmatpush3.bf16.msra.mxu0 %v11390_v5 }
 0x336   :  { %9261 = vmatprep.subr.bf16.mxu0 %v14967_v27 }
 0x339   :  { %9262 = vmatpush3.bf16.msra.mxu0 %v11397_v12 }
 0x33a   :  { %9263 = vmatprep.subr.bf16.mxu0 %v14967_v27 }
 0x33d   :  { %9264 = vmatpush3.bf16.msra.mxu0 %v11404_v10 }
 0x33e   :  { %9265 = vmatprep.subr.bf16.mxu0 %v14967_v27 }
 0x341   :  { %9266 = vmatpush3.bf16.msra.mxu0 %v11411_v8 }
 0x342   :  { %9267 = vmatprep.subr.bf16.mxu0 %v14967_v27 }
 0x345   :  { %9268 = vmatpush3.bf16.msra.mxu0 %v11418_v6 }
 0x346   :  { %9269 = vmatprep.subr.bf16.mxu0 %v14967_v27 }
 0x349   :  { %9270 = vmatpush3.bf16.msra.mxu0 %v11429_v0 }
 0x34a   :  { %7920 = vmatprep.subr.bf16.mxu0 %v10950_v43 }
 0x34c   :  { %9272 = vmatmul.mubr.bf16.vlgmr.msra.gmra.mxu0 %v2213_v62 }
 0x34d   :  { %7921 = vmatpush3.bf16.msra.mxu0 %v11183_v40 }
 0x34e   :  { %7922 = vmatprep.subr.bf16.mxu0 %v11190_v48 }
 0x351   :  { %7923 = vmatpush3.bf16.msra.mxu0 %v11196_v49  ;;  %v15002_v49 = vld [vmem:[#allocation33_spill] sm:$0xff] }
 0x352   :  { %7924 = vmatprep.subr.bf16.mxu0 %v11202_v51 }
 0x355   :  { %7925 = vmatpush3.bf16.msra.mxu0 %v11208_v1  ;;  %v15003_v1 = vld [vmem:[#allocation34_spill] sm:$0xff] }
 0x356   :  { %7926 = vmatprep.subr.bf16.mxu0 %v11214_v14 }
 0x357   :  { %v1754_v44 = vpop.f32.mrf.mxu1 }
 0x358   :  { %v11703_v61 = vadd.f32 %v1754_v44, %v1371_v60  ;;  %v15001_v44 = vld [vmem:[#allocation2_spill] sm:$0xff] }
 0x359   :  { %v9213_v16 = vpop.f32.mrf.mxu1  ;;  %7927 = vmatpush3.bf16.msra.mxu0 %v11220_v18  ;;  %v1873_v53 = vadd.f32 %v11609_v23, %v15001_v44 }
 0x35a   :  { %v14998_v16 = vld [vmem:[#allocation30_spill] sm:$0xff] }
 0x35b   :  { %v1757_v5 = vpop.f32.mrf.mxu1  ;;  %7928 = vmatprep.subr.bf16.mxu0 %v14998_v16  ;;  %v15004_v16 = vld [vmem:[#allocation35_spill] sm:$0xff] }
 0x35c   :  { %v15000_v5 = vld [vmem:[#allocation32_spill] sm:$0xff] }
 0x35d   :  { %v9214_v20 = vpop.f32.mrf.mxu1 }
 0x35e   :  { %v14999_v20 = vld [vmem:[#allocation31_spill] sm:$0xff] }
 0x35f   :  { %7929 = vmatpush3.bf16.msra.mxu0 %v14999_v20  ;;  %v15005_v20 = vld [vmem:[#allocation36_spill] sm:$0xff] }
 0x360   :  { %7930 = vmatprep.subr.bf16.mxu0 %v15000_v5 }
 0x363   :  { %7931 = vmatpush3.bf16.msra.mxu0 %v15002_v49 }
 0x364   :  { %7932 = vmatprep.subr.bf16.mxu0 %v15003_v1 }
 0x367   :  { %7933 = vmatpush3.bf16.msra.mxu0 %v15004_v16 }
 0x368   :  { %7934 = vmatprep.subr.bf16.mxu0 %v15005_v20 }
 0x36b   :  { %7935 = vmatpush3.bf16.msra.mxu0 %v11268_v19  ;;  %v2197_v19 = vcombine.high %v11685_v30, %v11685_v30  ;;  %v9872_v30 = vld [vmem:[%s14674_s3 + $0x110] sm:$0xff]  }
 0x36c   :  { %7964 = vmatprep.subr.bf16.mxu0 %v11274_v21  ;;  %v15016_v21 = vld [vmem:[#allocation23_spill] sm:$0xff] }
 0x377   :  { %v7746_v43 = vpop.f32.mrf.mxu1 }
 0x379   :  { %v7747_v60 = vpop.f32.mrf.mxu1 }
 0x37a   :  { %v7748_v62 = vadd.f32 %v7747_v60, %v7746_v43 }
 0x37b   :  { %v7749_v51 = vpop.f32.mrf.mxu1 }
 0x37c   :  { %v1913_v14 = vadd.f32 %v7748_v62, %v1873_v53 }
 0x37d   :  { %v7750_v48 = vpop.f32.mrf.mxu1 }
 0x37e   :  { %v1953_v18 = vadd.f32 %v11611_v7, %v1913_v14  ;;  %v2198_v48 = vcombine.high %v11651_v63, %v11651_v63  ;;  %v9867_v7 = vld [vmem:[%s14674_s3 + $0x138] sm:$0xff]   ;;  %v9869_v63 = vld [vmem:[%s14674_s3 + $0x128] sm:$0xff]  }
 0x397   :  { %v7790_v5 = vpop.f32.mrf.mxu1 }
 0x399   :  { %v7791_v23 = vpop.f32.mrf.mxu1 }
 0x39a   :  { %v7792_v43 = vadd.f32 %v7791_v23, %v7790_v5  ;;  %v9873_v5 = vld [vmem:[%s14674_s3 + $0x108] sm:$0xff]  }
 0x39b   :  { %v7793_v60 = vpop.f32.mrf.mxu1  ;;  %v7083_v23 = vld [vmem:[%s14673_s0 + $0x2d] sm:$0xff] }
 0x39c   :  { %v1993_v44 = vadd.f32 %v7792_v43, %v1953_v18  ;;  %v15015_v18 = vld [vmem:[#allocation22_spill] sm:$0xff]  ;;  %v2543_v43 = vrot.slane %v7083_v23, %v10494_v35 }
 0x39d   :  { %v7794_v51 = vpop.f32.mrf.mxu1 }
 0x39e   :  { %v2033_v1 = vadd.f32 %v11636_v52, %v1993_v44  ;;  %v9868_v52 = vld [vmem:[%s14674_s3 + $0x130] sm:$0xff]   ;;  %v9874_v44 = vld [vmem:[%s14674_s3 + $0x100] sm:$0xff]   ;;  %v2551_v51 = vcombine.high %v2543_v43, %v2543_v43 }
 0x3a0   :  { %v2038_v53 = vmax.f32 %v2033_v1, 0.0  ;;  %v15014_v1 = vld [vmem:[#allocation21_spill] sm:$0xff] }
 0x3a2   :  { %v2039_v14 = vpack.c.bf16 %v2038_v53, %v2038_v53  ;;  %v11819_v53 = vrot.slane %v2551_v51, %v10494_v35  ;;  %v11962_v51 = vld [vmem:[%s14672_s1 + $0xe0] sm:$0xff]  }
 0x3a4   :  { %9252 = vmatmul.mubr.bf16.vlgmr.msra.gmra.mxu1 %v2039_v14  ;;  %2640 = vmatprep.mubr.bf16.mxu0 %v11819_v53  ;;  %v15017_v14 = vld [vmem:[#allocation37_spill] sm:$0xff] }
 0x3a5   :  { %7837 = vmatpush3.bf16.msra.mxu1 %v10975_v28  ;;  %2295 = vmatprep.mubr.bf16.mxu1 %v2198_v48  ;;  %v2196_v28 = vcombine.high %v11660_v39, %v11660_v39  ;;  %v9870_v39 = vld [vmem:[%s14674_s3 + $0x120] sm:$0xff]   ;;  %v11823_v48 = vrot.slane %v2543_v43, %v10494_v35  ;;  %v11938_v43 = vld [vmem:[%s14672_s1 + $0xf0] sm:$0xff]  }
 0x3a6   :  { %7838 = vmatprep.subr.bf16.mxu1 %v10981_v31  ;;  %v2199_v31 = vcombine.high %v11681_v15, %v11681_v15  ;;  %v9871_v15 = vld [vmem:[%s14674_s3 + $0x118] sm:$0xff]  }
 0x3a7   :  { %2641 = vmatmul.mubr.bf16.vlgmr.msra.gmra.mxu0 %v11823_v48 }
 0x3a8   :  { %7965 = vmatpush3.bf16.msra.mxu0 %v11281_v26  ;;  %v2536_v26 = vcombine.high %v7083_v23, %v7083_v23  ;;  %v11932_v23 = vld [vmem:[%s14672_s1 + $0xb8] sm:$0xff]  }
 0x3a9   :  { %7839 = vmatpush3.bf16.msra.mxu1 %v10987_v32  ;;  %v15006_v32 = vld [vmem:[#allocation13_spill] sm:$0xff]  ;;  %7966 = vmatprep.subr.bf16.mxu0 %v11288_v41 }
 0x3aa   :  { %7840 = vmatprep.subr.bf16.mxu1 %v10993_v33  ;;  %v15007_v33 = vld [vmem:[#allocation14_spill] sm:$0xff]  ;;  %v2550_v41 = vrot.slane %v2536_v26, %v10494_v35  ;;  %v11998_v26 = vld [vmem:[%s14672_s1 + $0xc8] sm:$0xff]  }
 0x3ac   :  { %7967 = vmatpush3.bf16.msra.mxu0 %v11294_v59  ;;  %v2552_v59 = vcombine.high %v2550_v41, %v2550_v41 }
 0x3ad   :  { %7841 = vmatpush3.bf16.msra.mxu1 %v10999_v34  ;;  %v15008_v34 = vld [vmem:[#allocation15_spill] sm:$0xff]  ;;  %7968 = vmatprep.subr.bf16.mxu0 %v11300_v57 }
 0x3ae   :  { %7842 = vmatprep.subr.bf16.mxu1 %v11005_v36  ;;  %v15009_v36 = vld [vmem:[#allocation16_spill] sm:$0xff]  ;;  %v11844_v57 = vrot.slane %v2552_v59, %v10494_v35  ;;  %v12010_v59 = vld [vmem:[%s14672_s1 + $0xc0] sm:$0xff]  }
 0x3b0   :  { %7969 = vmatpush3.bf16.msra.mxu0 %v15017_v14  ;;  %2720 = vmatprep.mubr.bf16.mxu0 %v11844_v57  ;;  %v11974_v14 = vld [vmem:[%s14672_s1 + $0xd8] sm:$0xff]  }
 0x3b1   :  { %7843 = vmatpush3.bf16.msra.mxu1 %v11011_v37  ;;  %v15010_v37 = vld [vmem:[#allocation17_spill] sm:$0xff] }
 0x3b2   :  { %7844 = vmatprep.subr.bf16.mxu1 %v11017_v42  ;;  %v15011_v42 = vld [vmem:[#allocation18_spill] sm:$0xff] }
 0x3b5   :  { %7845 = vmatpush3.bf16.msra.mxu1 %v11023_v47  ;;  %v15012_v47 = vld [vmem:[#allocation19_spill] sm:$0xff] }
 0x3b6   :  { %7846 = vmatprep.subr.bf16.mxu1 %v11030_v54  ;;  %v15013_v54 = vld [vmem:[#allocation20_spill] sm:$0xff] }
 0x3b9   :  { %7847 = vmatpush3.bf16.msra.mxu1 %v14972_v4 }
 0x3ba   :  { %7848 = vmatprep.subr.bf16.mxu1 %v14973_v25 }
 0x3bd   :  { %7849 = vmatpush3.bf16.msra.mxu1 %v14974_v56 }
 0x3be   :  { %7850 = vmatprep.subr.bf16.mxu1 %v14975_v3 }
 0x3c1   :  { %7851 = vmatpush3.bf16.msra.mxu1 %v14976_v13 }
 0x3c2   :  { %7880 = vmatprep.subr.bf16.mxu1 %v14977_v17 }
 0x3c4   :  { %2296 = vmatmul.mubr.bf16.vlgmr.msra.gmra.mxu1 %v2196_v28  ;;  %v15018_v28 = vld [vmem:[#allocation38_spill] sm:$0xff] }
 0x3c5   :  { %7881 = vmatpush3.bf16.msra.mxu1 %v14978_v45  ;;  %2375 = vmatprep.mubr.bf16.mxu1 %v2199_v31  ;;  %v15019_v31 = vld [vmem:[#allocation40_spill] sm:$0xff] }
 0x3c6   :  { %7882 = vmatprep.subr.bf16.mxu1 %v14979_v58  ;;  %7970 = vmatprep.subr.bf16.mxu0 %v15018_v28  ;;  %v11980_v28 = vld [vmem:[%s14672_s1 + $0x98] sm:$0xff]  }
 0x3c7   :  { %v7830_v4 = vpop.f32.mrf.mxu0  ;;  %7971 = vmatpush3.bf16.msra.mxu0 %v14993_v46  ;;  %v11848_v46 = vrot.slane %v2550_v41, %v10494_v35  ;;  %v12004_v41 = vld [vmem:[%s14672_s1 + $0x88] sm:$0xff]  }
 0x3c8   :  { %7972 = vmatprep.subr.bf16.mxu0 %v15019_v31  ;;  %v11986_v31 = vld [vmem:[%s14672_s1 + $0xd0] sm:$0xff]  }
 0x3c9   :  { %7883 = vmatpush3.bf16.msra.mxu1 %v14980_v55  ;;  %v7831_v25 = vpop.f32.mrf.mxu0 }
 0x3ca   :  { %7884 = vmatprep.subr.bf16.mxu1 %v14981_v24  ;;  %v11777_v56 = vadd.f32 %v7831_v25, %v7830_v4 }
 0x3cb   :  { %v7833_v3 = vpop.f32.mrf.mxu0  ;;  %7973 = vmatpush3.bf16.msra.mxu0 %v14995_v2 }
 0x3cc   :  { %v15035_v3 = vld [vmem:[#allocation34_spill] sm:$0xff] }
 0x3cd   :  { %7885 = vmatpush3.bf16.msra.mxu1 %v15006_v32  ;;  %v7834_v13 = vpop.f32.mrf.mxu0  ;;  %v15020_v32 = vld [vmem:[#allocation42_spill] sm:$0xff] }
 0x3ce   :  { %7886 = vmatprep.subr.bf16.mxu1 %v15007_v33  ;;  %7974 = vmatprep.subr.bf16.mxu0 %v15020_v32  ;;  %v11992_v32 = vld [vmem:[%s14672_s1 + $0x90] sm:$0xff]  }
 0x3cf   :  { %7975 = vmatpush3.bf16.msra.mxu0 %v11342_v38 }
 0x3d0   :  { %7976 = vmatprep.subr.bf16.mxu0 %v11348_v29  ;;  %v15021_v29 = vld [vmem:[#allocation43_spill] sm:$0xff] }
 0x3d1   :  { %7887 = vmatpush3.bf16.msra.mxu1 %v15008_v34 }
 0x3d2   :  { %7888 = vmatprep.subr.bf16.mxu1 %v15009_v36  ;;  %v15027_v36 = vld [vmem:[#allocation26_spill] sm:$0xff] }
 0x3d3   :  { %7977 = vmatpush3.bf16.msra.mxu0 %v11354_v50 }
 0x3d4   :  { %7978 = vmatprep.subr.bf16.mxu0 %v11360_v11  ;;  %v15023_v11 = vld [vmem:[#allocation45_spill] sm:$0xff] }
 0x3d5   :  { %7889 = vmatpush3.bf16.msra.mxu1 %v15010_v37  ;;  %v15028_v37 = vld [vmem:[#allocation27_spill] sm:$0xff] }
 0x3d6   :  { %7890 = vmatprep.subr.bf16.mxu1 %v15011_v42  ;;  %v15030_v42 = vld [vmem:[#allocation29_spill] sm:$0xff] }
 0x3d7   :  { %7979 = vmatpush3.bf16.msra.mxu0 %v11366_v9  ;;  %v15022_v9 = vld [vmem:[#allocation44_spill] sm:$0xff] }
 0x3d8   :  { %9295 = vmatprep.subr.bf16.mxu0 %v14967_v27 }
 0x3d9   :  { %7891 = vmatpush3.bf16.msra.mxu1 %v15012_v47  ;;  %v15031_v47 = vld [vmem:[#allocation30_spill] sm:$0xff] }
 0x3da   :  { %7892 = vmatprep.subr.bf16.mxu1 %v15013_v54  ;;  %2721 = vmatmul.mubr.bf16.vlgmr.msra.gmra.mxu0 %v11848_v46  ;;  %v15032_v54 = vld [vmem:[#allocation31_spill] sm:$0xff] }
 0x3db   :  { %9296 = vmatpush3.bf16.msra.mxu0 %v15021_v29  ;;  %9311 = vmatprep.mubr.msk.bf16.mxu0 %vm10275_vm0, %v14967_v27  ;;  %v2581_v29 = vcombine.high %v11823_v48, %v11823_v48  ;;  %v12032_v48 = vld [vmem:[%s14672_s1 + $0x1b8] sm:$0xff]  }
 0x3dc   :  { %9297 = vmatprep.subr.bf16.mxu0 %v14967_v27 }
 0x3dd   :  { %7893 = vmatpush3.bf16.msra.mxu1 %v15014_v1 }
 0x3de   :  { %7894 = vmatprep.subr.bf16.mxu1 %v15015_v18  ;;  %v15033_v18 = vld [vmem:[#allocation32_spill] sm:$0xff] }
 0x3df   :  { %9298 = vmatpush3.bf16.msra.mxu0 %v15022_v9  ;;  %v12018_v9 = vld [vmem:[%s14672_s1 + $0x80] sm:$0xff]  }
 0x3e0   :  { %9299 = vmatprep.subr.bf16.mxu0 %v14967_v27 }
 0x3e1   :  { %7895 = vmatpush3.bf16.msra.mxu1 %v15016_v21 }
 0x3e2   :  { %9275 = vmatprep.subr.bf16.mxu1 %v14967_v27 }
 0x3e3   :  { %9300 = vmatpush3.bf16.msra.mxu0 %v15023_v11  ;;  %v2584_v11 = vcombine.high %v11844_v57, %v11844_v57  ;;  %v12038_v57 = vld [vmem:[%s14672_s1 + $0x1f0] sm:$0xff]  }
 0x3e4   :  { %2376 = vmatmul.mubr.bf16.vlgmr.msra.gmra.mxu1 %v2197_v19  ;;  %9301 = vmatprep.subr.bf16.mxu0 %v14967_v27  ;;  %v11895_v19 = vld [vmem:[%s14675_s2] ss:$0 sm:$0xff] }
 0x3e5   :  { %9291 = vmatprep.mubr.msk.bf16.mxu1 %vm10275_vm0, %v14967_v27  ;;  %9276 = vmatpush3.bf16.msra.mxu1 %v9867_v7  ;;  %15034 = vst [vmem:[#allocation4_spill] sm:$0xff] %v11895_v19  ;;  %v2258_v21 = vadd.f32 %v11895_v19, %v11777_v56  ;;  %v11911_v56 = vld [vmem:[%s14672_s1 + $0x40] sm:$0xff]  }
 0x3e6   :  { %9277 = vmatprep.subr.bf16.mxu1 %v14967_v27 }
 0x3e7   :  { %9302 = vmatpush3.bf16.msra.mxu0 %v11397_v12 }
 0x3e8   :  { %9303 = vmatprep.subr.bf16.mxu0 %v14967_v27 }
 0x3e9   :  { %9278 = vmatpush3.bf16.msra.mxu1 %v9868_v52 }
 0x3ea   :  { %9279 = vmatprep.subr.bf16.mxu1 %v14967_v27 }
 0x3eb   :  { %9304 = vmatpush3.bf16.msra.mxu0 %v11404_v10  ;;  %v7085_v10 = vld.sshfl [vmem:[%s14673_s0 + $0x35] sm:$0x1 pattern:$0x75316420] }
 0x3ec   :  { %v7874_v17 = vpop.f32.mrf.mxu0  ;;  %9305 = vmatprep.subr.bf16.mxu0 %v14967_v27  ;;  %v2598_v12 = vrot.slane %v7085_v10, %v10494_v35  ;;  %v12062_v10 = vld [vmem:[%s14672_s1 + $0x1e0] sm:$0xff]  }
 0x3ed   :  { %9280 = vmatpush3.bf16.msra.mxu1 %v9869_v63 }
 0x3ee   :  { %v7875_v45 = vpop.f32.mrf.mxu0  ;;  %9281 = vmatprep.subr.bf16.mxu1 %v14967_v27 }
 0x3ef   :  { %v11779_v58 = vadd.f32 %v7875_v45, %v7874_v17  ;;  %9306 = vmatpush3.bf16.msra.mxu0 %v11411_v8  ;;  %v11879_v8 = vld [vmem:[%s14672_s1 + $0x78] sm:$0xff]  }
 0x3f0   :  { %v7877_v55 = vpop.f32.mrf.mxu0  ;;  %9307 = vmatprep.subr.bf16.mxu0 %v14967_v27  ;;  %15024 = vst [vmem:[#allocation3_spill] sm:$0xff] %v11879_v8 }
 0x3f1   :  { %9282 = vmatpush3.bf16.msra.mxu1 %v9870_v39  ;;  %v11905_v55 = vld [vmem:[%s14672_s1 + $0x8] sm:$0xff]  }
 0x3f2   :  { %v7878_v24 = vpop.f32.mrf.mxu0  ;;  %9283 = vmatprep.subr.bf16.mxu1 %v14967_v27 }
 0x3f3   :  { %9308 = vmatpush3.bf16.msra.mxu0 %v11418_v6  ;;  %v15025_v6 = vld [vmem:[#allocation24_spill] sm:$0xff] }
 0x3f4   :  { %9309 = vmatprep.subr.bf16.mxu0 %v14967_v27 }
 0x3f5   :  { %9284 = vmatpush3.bf16.msra.mxu1 %v9871_v15 }
 0x3f6   :  { %9285 = vmatprep.subr.bf16.mxu1 %v14967_v27 }
 0x3f7   :  { %9310 = vmatpush3.bf16.msra.mxu0 %v11429_v0  ;;  %v15029_v0 = vld [vmem:[#allocation28_spill] sm:$0xff] }
 0x3f8   :  { %8026 = vmatprep.subr.bf16.mxu0 %v11879_v8 }
 0x3f9   :  { %9286 = vmatpush3.bf16.msra.mxu1 %v9872_v30 }
 0x3fa   :  { %9287 = vmatprep.subr.bf16.mxu1 %v14967_v27  ;;  %9312 = vmatmul.mubr.bf16.vlgmr.msra.gmra.mxu0 %v2598_v12  ;;  %v12068_v12 = vld [vmem:[%s14672_s1 + $0x1a0] sm:$0xff]  }
 0x3fb   :  { %8027 = vmatpush3.bf16.msra.mxu0 %v11183_v40 }
 0x3fc   :  { %8028 = vmatprep.subr.bf16.mxu0 %v15025_v6  ;;  %v12074_v6 = vld [vmem:[%s14672_s1 + $0x1d8] sm:$0xff]  }
 0x3fd   :  { %9288 = vmatpush3.bf16.msra.mxu1 %v9873_v5  ;;  %v2583_v5 = vcombine.high %v11819_v53, %v11819_v53  ;;  %v11968_v53 = vld [vmem:[%s14672_s1 + $0xa0] sm:$0xff]  }
 0x3fe   :  { %9289 = vmatprep.subr.bf16.mxu1 %v14967_v27 }
 0x401   :  { %9290 = vmatpush3.bf16.msra.mxu1 %v9874_v44  ;;  %v11956_v44 = vld [vmem:[%s14672_s1 + $0xa8] sm:$0xff]  }
 0x402   :  { %7942 = vmatprep.subr.bf16.mxu1 %v11656_v22 }
 0x40c   :  { %v11804_v16 = vpop.f32.mrf.mxu0 }
 0x40e   :  { %v9273_v20 = vpop.f32.mrf.mxu0 }
 0x410   :  { %v2420_v62 = vpop.f32.mrf.mxu0 }
 0x412   :  { %v9274_v60 = vpop.f32.mrf.mxu0 }
 0x413   :  { %v11950_v60 = vld [vmem:[%s14672_s1 + $0xe8] sm:$0xff]  }
 0x464   :  { %v2139_v50 = vpop.f32.mrf.mxu1 }
 0x465   :  { %v11865_v38 = vadd.f32 %v2139_v50, %v11703_v61  ;;  %v15026_v61 = vld [vmem:[#allocation25_spill] sm:$0xff] }
 0x466   :  { %v9253_v2 = vpop.f32.mrf.mxu1  ;;  %8029 = vmatpush3.bf16.msra.mxu0 %v15026_v61  ;;  %v12026_v50 = vld [vmem:[%s14672_s1 + $0x1f8] sm:$0xff]  }
 0x467   :  { %8030 = vmatprep.subr.bf16.mxu0 %v15027_v36  ;;  %v12044_v2 = vld [vmem:[%s14672_s1 + $0x1b0] sm:$0xff]   ;;  %v12080_v61 = vld [vmem:[%s14672_s1 + $0x198] sm:$0xff]  }
 0x468   :  { %v2142_v33 = vpop.f32.mrf.mxu1  ;;  %v12086_v36 = vld [vmem:[%s14672_s1 + $0x1d0] sm:$0xff]  }
 0x469   :  { %v12050_v33 = vld [vmem:[%s14672_s1 + $0x1e8] sm:$0xff]  }
 0x46a   :  { %v9254_v34 = vpop.f32.mrf.mxu1  ;;  %8031 = vmatpush3.bf16.msra.mxu0 %v15028_v37  ;;  %v12092_v37 = vld [vmem:[%s14672_s1 + $0x190] sm:$0xff]  }
 0x46b   :  { %8032 = vmatprep.subr.bf16.mxu0 %v15029_v0  ;;  %v12056_v34 = vld [vmem:[%s14672_s1 + $0x1a8] sm:$0xff]  }
 0x46c   :  { %v12098_v0 = vld [vmem:[%s14672_s1 + $0x1c8] sm:$0xff]  }
 0x46e   :  { %8033 = vmatpush3.bf16.msra.mxu0 %v15030_v42  ;;  %v12104_v42 = vld [vmem:[%s14672_s1 + $0x188] sm:$0xff]  }
 0x46f   :  { %8034 = vmatprep.subr.bf16.mxu0 %v15031_v47  ;;  %v12110_v47 = vld [vmem:[%s14672_s1 + $0x1c0] sm:$0xff]  }
 0x472   :  { %8035 = vmatpush3.bf16.msra.mxu0 %v15032_v54  ;;  %v2582_v54 = vcombine.high %v11848_v46, %v11848_v46 }
 0x473   :  { %8036 = vmatprep.subr.bf16.mxu0 %v15033_v18  ;;  %v7936_v18 = vpop.f32.mrf.mxu0 }
 0x476   :  { %8037 = vmatpush3.bf16.msra.mxu0 %v15002_v49  ;;  %v11917_v49 = vld [vmem:[%s14672_s1] sm:$0xff]  }
 0x477   :  { %8038 = vmatprep.subr.bf16.mxu0 %v15035_v3 }
 0x47a   :  { %8039 = vmatpush3.bf16.msra.mxu0 %v11905_v55 }
 0x47b   :  { %8040 = vmatprep.subr.bf16.mxu0 %v11911_v56 }
 0x47e   :  { %8041 = vmatpush3.bf16.msra.mxu0 %v11917_v49 }
 0x484   :  { %v7852_v1 = vpop.f32.mrf.mxu1 }
 0x486   :  { %v7853_v40 = vpop.f32.mrf.mxu1 }
 0x487   :  { %v7854_v4 = vadd.f32 %v7853_v40, %v7852_v1  ;;  %v12118_v1 = vld [vmem:[%s14672_s1 + $0x180] sm:$0xff]   ;;  %v7937_v40 = vpop.f32.mrf.mxu0 }
 0x488   :  { %v7855_v25 = vpop.f32.mrf.mxu1 }
 0x489   :  { %v2298_v13 = vadd.f32 %v7854_v4, %v2258_v21  ;;  %v12124_v21 = vadd.f32 %v7937_v40, %v7936_v18  ;;  %v7939_v4 = vpop.f32.mrf.mxu0  ;;  %v9883_v18 = vld [vmem:[%s14674_s3 + $0x140] sm:$0xff]  }
 0x48a   :  { %v7856_v17 = vpop.f32.mrf.mxu1 }
 0x48b   :  { %v2338_v45 = vadd.f32 %v11779_v58, %v2298_v13  ;;  %v11923_v58 = vld [vmem:[%s14672_s1 + $0x178] sm:$0xff]   ;;  %v7940_v25 = vpop.f32.mrf.mxu0 }
 0x48c   :  { %8070 = vmatprep.subr.bf16.mxu0 %v11923_v58 }
 0x49a   :  { %v7980_v46 = vpop.f32.mrf.mxu0 }
 0x49c   :  { %v7981_v3 = vpop.f32.mrf.mxu0 }
 0x49d   :  { %v12126_v13 = vadd.f32 %v7981_v3, %v7980_v46  ;;  %v12177_v46 = vld [vmem:[%s14672_s1 + $0x138] sm:$0xff]   ;;  %v12183_v3 = vld [vmem:[%s14672_s1 + $0x170] sm:$0xff]  }
 0x49e   :  { %v7983_v17 = vpop.f32.mrf.mxu0 }
 0x49f   :  { %v12189_v17 = vld [vmem:[%s14672_s1 + $0x130] sm:$0xff]  }
 0x4a4   :  { %v7896_v24 = vpop.f32.mrf.mxu1 }
 0x4a6   :  { %v7897_v7 = vpop.f32.mrf.mxu1 }
 0x4a7   :  { %v7898_v52 = vadd.f32 %v7897_v7, %v7896_v24  ;;  %v9876_v24 = vld [vmem:[%s14674_s3 + $0x178] sm:$0xff]   ;;  %v9877_v7 = vld [vmem:[%s14674_s3 + $0x170] sm:$0xff]  }
 0x4a8   :  { %v7899_v63 = vpop.f32.mrf.mxu1 }
 0x4a9   :  { %v2378_v39 = vadd.f32 %v7898_v52, %v2338_v45  ;;  %v7984_v45 = vpop.f32.mrf.mxu0  ;;  %v9878_v52 = vld [vmem:[%s14674_s3 + $0x168] sm:$0xff]   ;;  %v9879_v63 = vld [vmem:[%s14674_s3 + $0x160] sm:$0xff]  }
 0x4aa   :  { %v7900_v15 = vpop.f32.mrf.mxu1  ;;  %v12195_v45 = vld [vmem:[%s14672_s1 + $0x168] sm:$0xff]  }
 0x4ab   :  { %v2418_v30 = vadd.f32 %v11804_v16, %v2378_v39  ;;  %v11944_v16 = vld [vmem:[%s14672_s1 + $0xb0] sm:$0xff]   ;;  %v9880_v39 = vld [vmem:[%s14674_s3 + $0x158] sm:$0xff]  }
 0x4ac   :  { %v9881_v15 = vld [vmem:[%s14674_s3 + $0x150] sm:$0xff]  }
 0x4ad   :  { %v2423_v20 = vmax.f32 %v2418_v30, 0.0 }
 0x4af   :  { %v2424_v62 = vpack.c.bf16 %v2423_v20, %v2423_v20 }
 0x4b1   :  { %9292 = vmatmul.mubr.bf16.vlgmr.msra.gmra.mxu1 %v2424_v62 }
 0x4b2   :  { %7943 = vmatpush3.bf16.msra.mxu1 %v11932_v23  ;;  %2680 = vmatprep.mubr.bf16.mxu1 %v2583_v5  ;;  %v9882_v5 = vld [vmem:[%s14674_s3 + $0x148] sm:$0xff]  }
 0x4b3   :  { %7944 = vmatprep.subr.bf16.mxu1 %v11938_v43 }
 0x4b6   :  { %7945 = vmatpush3.bf16.msra.mxu1 %v11944_v16 }
 0x4b7   :  { %7946 = vmatprep.subr.bf16.mxu1 %v11950_v60 }
 0x4ba   :  { %7947 = vmatpush3.bf16.msra.mxu1 %v11956_v44  ;;  %v12151_v30 = vpop.f32.mrf.mxu0 }
 0x4bb   :  { %7948 = vmatprep.subr.bf16.mxu1 %v11962_v51 }
 0x4bc   :  { %v9313_v20 = vpop.f32.mrf.mxu0 }
 0x4bd   :  { %v12237_v20 = vld [vmem:[%s14672_s1 + $0x110] sm:$0xff]  }
 0x4be   :  { %7949 = vmatpush3.bf16.msra.mxu1 %v11968_v53  ;;  %v2805_v62 = vpop.f32.mrf.mxu0  ;;  %15041 = vst [vmem:[#allocation10_spill] sm:$0xff] %v12237_v20 }
 0x4bf   :  { %7950 = vmatprep.subr.bf16.mxu1 %v11974_v14 }
 0x4c2   :  { %7951 = vmatpush3.bf16.msra.mxu1 %v11980_v28 }
 0x4c3   :  { %7952 = vmatprep.subr.bf16.mxu1 %v11986_v31 }
 0x4c6   :  { %7953 = vmatpush3.bf16.msra.mxu1 %v11992_v32 }
 0x4c7   :  { %7954 = vmatprep.subr.bf16.mxu1 %v11998_v26 }
 0x4ca   :  { %7955 = vmatpush3.bf16.msra.mxu1 %v12004_v41 }
 0x4cb   :  { %7956 = vmatprep.subr.bf16.mxu1 %v12010_v59 }
 0x4ce   :  { %7957 = vmatpush3.bf16.msra.mxu1 %v12018_v9 }
 0x4cf   :  { %7986 = vmatprep.subr.bf16.mxu1 %v12026_v50 }
 0x4d1   :  { %2681 = vmatmul.mubr.bf16.vlgmr.msra.gmra.mxu1 %v2581_v29  ;;  %v7110_v29 = vld [vmem:[%s14673_s0 + $0x36] sm:$0xff] }
 0x4d2   :  { %7987 = vmatpush3.bf16.msra.mxu1 %v12032_v48  ;;  %2760 = vmatprep.mubr.bf16.mxu1 %v2584_v11  ;;  %v2928_v11 = vrot.slane %v7110_v29, %v10494_v35  ;;  %v2921_v62 = vcombine.high %v7110_v29, %v7110_v29  ;;  %v12262_v29 = vld [vmem:[%s14672_s1 + $0x100] sm:$0xff]  }
 0x4d3   :  { %7988 = vmatprep.subr.bf16.mxu1 %v12038_v57  ;;  %15045 = vst [vmem:[#allocation41_spill] sm:$0xff] %v12262_v29 }
 0x4d4   :  { %v2936_v40 = vcombine.high %v2928_v11, %v2928_v11  ;;  %v12170_v25 = vrot.slane %v2928_v11, %v10494_v35  ;;  %v12249_v11 = vld [vmem:[%s14672_s1 + $0x108] sm:$0xff]  }
 0x4d5   :  { %15043 = vst [vmem:[#allocation12_spill] sm:$0xff] %v12249_v11 }
 0x4d6   :  { %7989 = vmatpush3.bf16.msra.mxu1 %v12044_v2  ;;  %v12166_v4 = vrot.slane %v2936_v40, %v10494_v35 }
 0x4d7   :  { %7990 = vmatprep.subr.bf16.mxu1 %v12050_v33 }
 0x4d8   :  { %3025 = vmatprep.mubr.bf16.mxu0 %v12166_v4 }
 0x4d9   :  { %3026 = vmatmul.mubr.bf16.vlgmr.msra.gmra.mxu0 %v12170_v25 }
 0x4da   :  { %7991 = vmatpush3.bf16.msra.mxu1 %v12056_v34  ;;  %8071 = vmatpush3.bf16.msra.mxu0 %v12177_v46 }
 0x4db   :  { %7992 = vmatprep.subr.bf16.mxu1 %v12062_v10  ;;  %8072 = vmatprep.subr.bf16.mxu0 %v12183_v3 }
 0x4de   :  { %7993 = vmatpush3.bf16.msra.mxu1 %v12068_v12  ;;  %8073 = vmatpush3.bf16.msra.mxu0 %v12189_v17 }
 0x4df   :  { %7994 = vmatprep.subr.bf16.mxu1 %v12074_v6  ;;  %8074 = vmatprep.subr.bf16.mxu0 %v12195_v45 }
 0x4e2   :  { %7995 = vmatpush3.bf16.msra.mxu1 %v12080_v61 }
 0x4e3   :  { %7996 = vmatprep.subr.bf16.mxu1 %v12086_v36 }
 0x4e6   :  { %7997 = vmatpush3.bf16.msra.mxu1 %v12092_v37 }
 0x4e7   :  { %7998 = vmatprep.subr.bf16.mxu1 %v12098_v0 }
 0x4ea   :  { %7999 = vmatpush3.bf16.msra.mxu1 %v12104_v42 }
 0x4eb   :  { %8000 = vmatprep.subr.bf16.mxu1 %v12110_v47 }
 0x4ee   :  { %8001 = vmatpush3.bf16.msra.mxu1 %v12118_v1 }
 0x4ef   :  { %9315 = vmatprep.subr.bf16.mxu1 %v14967_v27 }
 0x4f1   :  { %2761 = vmatmul.mubr.bf16.vlgmr.msra.gmra.mxu1 %v2582_v54  ;;  %v9314_v54 = vpop.f32.mrf.mxu0 }
 0x4f2   :  { %9331 = vmatprep.mubr.msk.bf16.mxu1 %vm10275_vm0, %v14967_v27  ;;  %9316 = vmatpush3.bf16.msra.mxu1 %v9876_v24  ;;  %v12201_v24 = vld [vmem:[%s14672_s1 + $0x128] sm:$0xff]   ;;  %v12255_v54 = vld [vmem:[%s14672_s1 + $0x140] sm:$0xff]  }
 0x4f3   :  { %9317 = vmatprep.subr.bf16.mxu1 %v14967_v27  ;;  %8075 = vmatpush3.bf16.msra.mxu0 %v12201_v24  ;;  %15044 = vst [vmem:[#allocation39_spill] sm:$0xff] %v12255_v54 }
 0x4f6   :  { %9318 = vmatpush3.bf16.msra.mxu1 %v9877_v7  ;;  %v12207_v7 = vld [vmem:[%s14672_s1 + $0x160] sm:$0xff]  }
 0x4f7   :  { %9319 = vmatprep.subr.bf16.mxu1 %v14967_v27  ;;  %15036 = vst [vmem:[#allocation5_spill] sm:$0xff] %v12207_v7  ;;  %8076 = vmatprep.subr.bf16.mxu0 %v12207_v7 }
 0x4fa   :  { %9320 = vmatpush3.bf16.msra.mxu1 %v9878_v52  ;;  %v12213_v52 = vld [vmem:[%s14672_s1 + $0x120] sm:$0xff]  }
 0x4fb   :  { %9321 = vmatprep.subr.bf16.mxu1 %v14967_v27  ;;  %15037 = vst [vmem:[#allocation6_spill] sm:$0xff] %v12213_v52  ;;  %8077 = vmatpush3.bf16.msra.mxu0 %v12213_v52 }
 0x4fe   :  { %9322 = vmatpush3.bf16.msra.mxu1 %v9879_v63  ;;  %v12219_v63 = vld [vmem:[%s14672_s1 + $0x158] sm:$0xff]  }
 0x4ff   :  { %9323 = vmatprep.subr.bf16.mxu1 %v14967_v27  ;;  %15038 = vst [vmem:[#allocation7_spill] sm:$0xff] %v12219_v63  ;;  %8078 = vmatprep.subr.bf16.mxu0 %v12219_v63 }
 0x502   :  { %9324 = vmatpush3.bf16.msra.mxu1 %v9880_v39  ;;  %v12225_v39 = vld [vmem:[%s14672_s1 + $0x118] sm:$0xff]  }
 0x503   :  { %9325 = vmatprep.subr.bf16.mxu1 %v14967_v27  ;;  %15039 = vst [vmem:[#allocation8_spill] sm:$0xff] %v12225_v39  ;;  %8079 = vmatpush3.bf16.msra.mxu0 %v12225_v39 }
 0x506   :  { %9326 = vmatpush3.bf16.msra.mxu1 %v9881_v15  ;;  %v12231_v15 = vld [vmem:[%s14672_s1 + $0x150] sm:$0xff]  }
 0x507   :  { %9327 = vmatprep.subr.bf16.mxu1 %v14967_v27  ;;  %15040 = vst [vmem:[#allocation9_spill] sm:$0xff] %v12231_v15  ;;  %8080 = vmatprep.subr.bf16.mxu0 %v12231_v15 }
 0x508   :  { %8081 = vmatpush3.bf16.msra.mxu0 %v12237_v20 }
 0x50a   :  { %9328 = vmatpush3.bf16.msra.mxu1 %v9882_v5  ;;  %v12243_v5 = vld [vmem:[%s14672_s1 + $0x148] sm:$0xff]  }
 0x50b   :  { %9329 = vmatprep.subr.bf16.mxu1 %v14967_v27  ;;  %15042 = vst [vmem:[#allocation11_spill] sm:$0xff] %v12243_v5  ;;  %8082 = vmatprep.subr.bf16.mxu0 %v12243_v5 }
 0x50c   :  { %8083 = vmatpush3.bf16.msra.mxu0 %v12249_v11 }
 0x50d   :  { %8084 = vmatprep.subr.bf16.mxu0 %v12255_v54 }
 0x50e   :  { %9330 = vmatpush3.bf16.msra.mxu1 %v9883_v18  ;;  %v2935_v18 = vrot.slane %v2921_v62, %v10494_v35  ;;  %v12277_v62 = vld [vmem:[%s14672_s1 + $0x238] sm:$0xff]  }
 0x50f   :  { %8048 = vmatprep.subr.bf16.mxu1 %v11656_v22  ;;  %15046 = vst [vmem:[#allocation46_spill] sm:$0xff] %v12277_v62 }
 0x510   :  { %v2937_v40 = vcombine.high %v2935_v18, %v2935_v18  ;;  %8085 = vmatpush3.bf16.msra.mxu0 %v12262_v29  ;;  %v12270_v11 = vrot.slane %v2935_v18, %v10494_v35  ;;  %v12286_v18 = vld [vmem:[%s14672_s1 + $0x230] sm:$0xff]  }
 0x511   :  { %9335 = vmatprep.subr.bf16.mxu0 %v14967_v27  ;;  %15047 = vst [vmem:[#allocation2_spill] sm:$0xff] %v12286_v18 }
 0x512   :  { %v12266_v5 = vrot.slane %v2937_v40, %v10494_v35  ;;  %v12293_v40 = vld [vmem:[%s14672_s1 + $0x228] sm:$0xff]  }
 0x513   :  { %15048 = vst [vmem:[#allocation33_spill] sm:$0xff] %v12293_v40 }
 0x514   :  { %3105 = vmatprep.mubr.bf16.mxu0 %v12266_v5 }
 0x515   :  { %3106 = vmatmul.mubr.bf16.vlgmr.msra.gmra.mxu0 %v12270_v11 }
 0x516   :  { %9336 = vmatpush3.bf16.msra.mxu0 %v12277_v62  ;;  %9351 = vmatprep.mubr.msk.bf16.mxu0 %vm10275_vm0, %v14967_v27  ;;  %v12300_v62 = vld [vmem:[%s14672_s1 + $0x220] sm:$0xff]  }
 0x517   :  { %9337 = vmatprep.subr.bf16.mxu0 %v14967_v27  ;;  %15049 = vst [vmem:[#allocation35_spill] sm:$0xff] %v12300_v62 }
 0x51a   :  { %9338 = vmatpush3.bf16.msra.mxu0 %v12286_v18  ;;  %v12307_v18 = vld [vmem:[%s14672_s1 + $0x218] sm:$0xff]  }
 0x51b   :  { %9339 = vmatprep.subr.bf16.mxu0 %v14967_v27  ;;  %15050 = vst [vmem:[#allocation36_spill] sm:$0xff] %v12307_v18 }
 0x51e   :  { %9340 = vmatpush3.bf16.msra.mxu0 %v12293_v40 }
 0x51f   :  { %9341 = vmatprep.subr.bf16.mxu0 %v14967_v27 }
 0x522   :  { %9342 = vmatpush3.bf16.msra.mxu0 %v12300_v62  ;;  %v12317_v62 = vld [vmem:[%s14672_s1 + $0x210] sm:$0xff]  }
 0x523   :  { %9343 = vmatprep.subr.bf16.mxu0 %v14967_v27  ;;  %15052 = vst [vmem:[#allocation14_spill] sm:$0xff] %v12317_v62 }
 0x526   :  { %9344 = vmatpush3.bf16.msra.mxu0 %v12307_v18  ;;  %v12324_v18 = vld [vmem:[%s14672_s1 + $0x208] sm:$0xff]  }
 0x527   :  { %9345 = vmatprep.subr.bf16.mxu0 %v14967_v27  ;;  %15053 = vst [vmem:[#allocation15_spill] sm:$0xff] %v12324_v18 }
 0x52a   :  { %9346 = vmatpush3.bf16.msra.mxu0 %v12317_v62  ;;  %v12410_v62 = vld [vmem:[%s14672_s1 + $0x48] sm:$0xff]  }
 0x52b   :  { %9347 = vmatprep.subr.bf16.mxu0 %v14967_v27  ;;  %15066 = vst [vmem:[#allocation43_spill] sm:$0xff] %v12410_v62 }
 0x52e   :  { %9348 = vmatpush3.bf16.msra.mxu0 %v12324_v18  ;;  %v12404_v18 = vld [vmem:[%s14672_s1 + $0x10] sm:$0xff]  }
 0x52f   :  { %9349 = vmatprep.subr.bf16.mxu0 %v14967_v27  ;;  %15065 = vst [vmem:[#allocation42_spill] sm:$0xff] %v12404_v18 }
 0x571   :  { %v2524_v29 = vpop.f32.mrf.mxu1 }
 0x572   :  { %v12312_v40 = vadd.f32 %v2524_v29, %v11865_v38  ;;  %v7112_v38 = vld.sshfl [vmem:[%s14673_s0 + $0x3e] sm:$0x1 pattern:$0x75316420]  ;;  %v12348_v29 = vld [vmem:[%s14672_s1 + $0x70] sm:$0xff]  }
 0x573   :  { %v9293_v54 = vpop.f32.mrf.mxu1  ;;  %15056 = vst [vmem:[#allocation18_spill] sm:$0xff] %v12348_v29 }
 0x574   :  { %15051 = vst [vmem:[#allocation13_spill] sm:$0xff] %v12312_v40  ;;  %v12342_v54 = vld [vmem:[%s14672_s1 + $0x38] sm:$0xff]  }
 0x575   :  { %v2527_v20 = vpop.f32.mrf.mxu1  ;;  %15055 = vst [vmem:[#allocation17_spill] sm:$0xff] %v12342_v54 }
 0x576   :  { %v12334_v20 = vld [vmem:[%s14672_s1 + $0x200] sm:$0xff]  }
 0x577   :  { %v9294_v15 = vpop.f32.mrf.mxu1  ;;  %15054 = vst [vmem:[#allocation16_spill] sm:$0xff] %v12334_v20  ;;  %9350 = vmatpush3.bf16.msra.mxu0 %v12334_v20  ;;  %v2643_v20 = vadd.f32 %v11895_v19, %v12124_v21 }
 0x578   :  { %v2983_v15 = vrot.slane %v7112_v38, %v10494_v35  ;;  %8132 = vmatprep.subr.bf16.mxu0 %v11879_v8  ;;  %v12354_v38 = vld [vmem:[%s14672_s1 + $0x30] sm:$0xff]  }
 0x579   :  { %15057 = vst [vmem:[#allocation19_spill] sm:$0xff] %v12354_v38  ;;  %v12396_v8 = vld [vmem:[%s14672_s1 + $0x50] sm:$0xff]  }
 0x57a   :  { %9352 = vmatmul.mubr.bf16.vlgmr.msra.gmra.mxu0 %v2983_v15  ;;  %v12360_v15 = vld [vmem:[%s14672_s1 + $0x68] sm:$0xff]   ;;  %15064 = vst [vmem:[#allocation40_spill] sm:$0xff] %v12396_v8 }
 0x57b   :  { %8133 = vmatpush3.bf16.msra.mxu0 %v12342_v54  ;;  %15058 = vst [vmem:[#allocation20_spill] sm:$0xff] %v12360_v15  ;;  %v12366_v54 = vld [vmem:[%s14672_s1 + $0x28] sm:$0xff]  }
 0x57c   :  { %8134 = vmatprep.subr.bf16.mxu0 %v12348_v29  ;;  %15059 = vst [vmem:[#allocation21_spill] sm:$0xff] %v12366_v54  ;;  %v12372_v29 = vld [vmem:[%s14672_s1 + $0x60] sm:$0xff]  }
 0x57d   :  { %15060 = vst [vmem:[#allocation22_spill] sm:$0xff] %v12372_v29 }
 0x57f   :  { %8135 = vmatpush3.bf16.msra.mxu0 %v12354_v38  ;;  %v12378_v38 = vld [vmem:[%s14672_s1 + $0x20] sm:$0xff]  }
 0x580   :  { %8136 = vmatprep.subr.bf16.mxu0 %v12360_v15  ;;  %15061 = vst [vmem:[#allocation23_spill] sm:$0xff] %v12378_v38  ;;  %v12384_v15 = vld [vmem:[%s14672_s1 + $0x58] sm:$0xff]  }
 0x581   :  { %15062 = vst [vmem:[#allocation37_spill] sm:$0xff] %v12384_v15 }
 0x583   :  { %8137 = vmatpush3.bf16.msra.mxu0 %v12366_v54  ;;  %v12390_v54 = vld [vmem:[%s14672_s1 + $0x18] sm:$0xff]  }
 0x584   :  { %8138 = vmatprep.subr.bf16.mxu0 %v12372_v29  ;;  %15063 = vst [vmem:[#allocation38_spill] sm:$0xff] %v12390_v54 }
 0x587   :  { %8139 = vmatpush3.bf16.msra.mxu0 %v12378_v38 }
 0x588   :  { %8140 = vmatprep.subr.bf16.mxu0 %v12384_v15 }
 0x58b   :  { %8141 = vmatpush3.bf16.msra.mxu0 %v12390_v54 }
 0x58c   :  { %8142 = vmatprep.subr.bf16.mxu0 %v12396_v8 }
 0x58f   :  { %8143 = vmatpush3.bf16.msra.mxu0 %v12404_v18 }
 0x590   :  { %8144 = vmatprep.subr.bf16.mxu0 %v12410_v62 }
 0x591   :  { %v7958_v29 = vpop.f32.mrf.mxu1 }
 0x593   :  { %v7959_v38 = vpop.f32.mrf.mxu1  ;;  %8145 = vmatpush3.bf16.msra.mxu0 %v11905_v55 }
 0x594   :  { %v7960_v15 = vadd.f32 %v7959_v38, %v7958_v29  ;;  %8146 = vmatprep.subr.bf16.mxu0 %v11911_v56 }
 0x595   :  { %v7961_v54 = vpop.f32.mrf.mxu1 }
 0x596   :  { %v2683_v8 = vadd.f32 %v7960_v15, %v2643_v20 }
 0x597   :  { %v7962_v40 = vpop.f32.mrf.mxu1  ;;  %8147 = vmatpush3.bf16.msra.mxu0 %v11917_v49 }
 0x598   :  { %v2723_v21 = vadd.f32 %v12126_v13, %v2683_v8  ;;  %8176 = vmatprep.subr.bf16.mxu0 %v11923_v58  ;;  %v2968_v8 = vcombine.high %v12166_v4, %v12166_v4  ;;  %v2967_v4 = vcombine.high %v12270_v11, %v12270_v11 }
 0x5b1   :  { %v8002_v54 = vpop.f32.mrf.mxu1 }
 0x5b3   :  { %v8003_v29 = vpop.f32.mrf.mxu1 }
 0x5b4   :  { %v8004_v38 = vadd.f32 %v8003_v29, %v8002_v54  ;;  %v9885_v29 = vld [vmem:[%s14674_s3 + $0x1b8] sm:$0xff]  }
 0x5b5   :  { %v8005_v18 = vpop.f32.mrf.mxu1 }
 0x5b6   :  { %v2763_v19 = vadd.f32 %v8004_v38, %v2723_v21  ;;  %v9886_v38 = vld [vmem:[%s14674_s3 + $0x1b0] sm:$0xff]  }
 0x5b7   :  { %v8006_v39 = vpop.f32.mrf.mxu1 }
 0x5b8   :  { %v2803_v62 = vadd.f32 %v12151_v30, %v2763_v19  ;;  %v2966_v19 = vcombine.high %v12170_v25, %v12170_v25  ;;  %v2969_v30 = vcombine.high %v12266_v5, %v12266_v5  ;;  %v8042_v25 = vpop.f32.mrf.mxu0 }
 0x5ba   :  { %v2808_v20 = vmax.f32 %v2803_v62, 0.0  ;;  %v8043_v39 = vpop.f32.mrf.mxu0 }
 0x5bb   :  { %v12461_v5 = vadd.f32 %v8043_v39, %v8042_v25  ;;  %v9891_v25 = vld [vmem:[%s14674_s3 + $0x188] sm:$0xff]  }
 0x5bc   :  { %v2809_v13 = vpack.c.bf16 %v2808_v20, %v2808_v20  ;;  %v8045_v62 = vpop.f32.mrf.mxu0  ;;  %v9887_v20 = vld [vmem:[%s14674_s3 + $0x1a8] sm:$0xff]  }
 0x5bd   :  { %v7137_v62 = vld [vmem:[%s14673_s0 + $0x3f] sm:$0xff] }
 0x5be   :  { %9332 = vmatmul.mubr.bf16.vlgmr.msra.gmra.mxu1 %v2809_v13  ;;  %v8046_v18 = vpop.f32.mrf.mxu0  ;;  %v9889_v13 = vld [vmem:[%s14674_s3 + $0x198] sm:$0xff]  }
 0x5bf   :  { %8049 = vmatpush3.bf16.msra.mxu1 %v11932_v23  ;;  %3065 = vmatprep.mubr.bf16.mxu1 %v2968_v8  ;;  %v9888_v8 = vld [vmem:[%s14674_s3 + $0x1a0] sm:$0xff]   ;;  %v3313_v18 = vrot.slane %v7137_v62, %v10494_v35 }
 0x5c0   :  { %8050 = vmatprep.subr.bf16.mxu1 %v11938_v43 }
 0x5c3   :  { %8051 = vmatpush3.bf16.msra.mxu1 %v11944_v16 }
 0x5c4   :  { %8052 = vmatprep.subr.bf16.mxu1 %v11950_v60 }
 0x5c7   :  { %8053 = vmatpush3.bf16.msra.mxu1 %v11956_v44 }
 0x5c8   :  { %8054 = vmatprep.subr.bf16.mxu1 %v11962_v51 }
 0x5cb   :  { %8055 = vmatpush3.bf16.msra.mxu1 %v11968_v53 }
 0x5cc   :  { %8056 = vmatprep.subr.bf16.mxu1 %v11974_v14 }
 0x5cf   :  { %8057 = vmatpush3.bf16.msra.mxu1 %v11980_v28 }
 0x5d0   :  { %8058 = vmatprep.subr.bf16.mxu1 %v11986_v31 }
 0x5d3   :  { %8059 = vmatpush3.bf16.msra.mxu1 %v11992_v32 }
 0x5d4   :  { %8060 = vmatprep.subr.bf16.mxu1 %v11998_v26 }
 0x5d5   :  { %v8086_v40 = vpop.f32.mrf.mxu0 }
 0x5d7   :  { %8061 = vmatpush3.bf16.msra.mxu1 %v12004_v41  ;;  %v8087_v15 = vpop.f32.mrf.mxu0 }
 0x5d8   :  { %8062 = vmatprep.subr.bf16.mxu1 %v12010_v59  ;;  %v12463_v21 = vadd.f32 %v8087_v15, %v8086_v40  ;;  %v9892_v15 = vld [vmem:[%s14674_s3 + $0x180] sm:$0xff]  }
 0x5d9   :  { %v8089_v54 = vpop.f32.mrf.mxu0 }
 0x5da   :  { %v3321_v54 = vcombine.high %v3313_v18, %v3313_v18 }
 0x5db   :  { %8063 = vmatpush3.bf16.msra.mxu1 %v12018_v9  ;;  %v8090_v11 = vpop.f32.mrf.mxu0 }
 0x5dc   :  { %8092 = vmatprep.subr.bf16.mxu1 %v12026_v50  ;;  %v12503_v11 = vrot.slane %v3321_v54, %v10494_v35  ;;  %v15075_v54 = vld [vmem:[#allocation2_spill] sm:$0xff] }
 0x5de   :  { %3066 = vmatmul.mubr.bf16.vlgmr.msra.gmra.mxu1 %v2966_v19  ;;  %v9890_v19 = vld [vmem:[%s14674_s3 + $0x190] sm:$0xff]   ;;  %3410 = vmatprep.mubr.bf16.mxu0 %v12503_v11 }
 0x5df   :  { %8093 = vmatpush3.bf16.msra.mxu1 %v12032_v48  ;;  %3145 = vmatprep.mubr.bf16.mxu1 %v2969_v30 }
 0x5e0   :  { %8094 = vmatprep.subr.bf16.mxu1 %v12038_v57 }
 0x5e3   :  { %8095 = vmatpush3.bf16.msra.mxu1 %v12044_v2 }
 0x5e4   :  { %8096 = vmatprep.subr.bf16.mxu1 %v12050_v33 }
 0x5e7   :  { %8097 = vmatpush3.bf16.msra.mxu1 %v12056_v34 }
 0x5e8   :  { %8098 = vmatprep.subr.bf16.mxu1 %v12062_v10 }
 0x5eb   :  { %8099 = vmatpush3.bf16.msra.mxu1 %v12068_v12 }
 0x5ec   :  { %8100 = vmatprep.subr.bf16.mxu1 %v12074_v6 }
 0x5ef   :  { %8101 = vmatpush3.bf16.msra.mxu1 %v12080_v61 }
 0x5f0   :  { %8102 = vmatprep.subr.bf16.mxu1 %v12086_v36 }
 0x5f3   :  { %8103 = vmatpush3.bf16.msra.mxu1 %v12092_v37 }
 0x5f4   :  { %8104 = vmatprep.subr.bf16.mxu1 %v12098_v0 }
 0x5f7   :  { %8105 = vmatpush3.bf16.msra.mxu1 %v12104_v42 }
 0x5f8   :  { %8106 = vmatprep.subr.bf16.mxu1 %v12110_v47 }
 0x5fb   :  { %8107 = vmatpush3.bf16.msra.mxu1 %v12118_v1 }
 0x5fc   :  { %9355 = vmatprep.subr.bf16.mxu1 %v14967_v27 }
 0x5fe   :  { %3146 = vmatmul.mubr.bf16.vlgmr.msra.gmra.mxu1 %v2967_v4 }
 0x5ff   :  { %9371 = vmatprep.mubr.msk.bf16.mxu1 %vm10275_vm0, %v14967_v27  ;;  %9356 = vmatpush3.bf16.msra.mxu1 %v9885_v29  ;;  %v12507_v29 = vrot.slane %v3313_v18, %v10494_v35  ;;  %v15073_v18 = vld [vmem:[#allocation41_spill] sm:$0xff] }
 0x600   :  { %9357 = vmatprep.subr.bf16.mxu1 %v14967_v27 }
 0x601   :  { %3411 = vmatmul.mubr.bf16.vlgmr.msra.gmra.mxu0 %v12507_v29 }
 0x602   :  { %8177 = vmatpush3.bf16.msra.mxu0 %v12177_v46 }
 0x603   :  { %9358 = vmatpush3.bf16.msra.mxu1 %v9886_v38  ;;  %8178 = vmatprep.subr.bf16.mxu0 %v12183_v3  ;;  %v15068_v38 = vld [vmem:[#allocation9_spill] sm:$0xff] }
 0x604   :  { %9359 = vmatprep.subr.bf16.mxu1 %v14967_v27 }
 0x606   :  { %8179 = vmatpush3.bf16.msra.mxu0 %v12189_v17 }
 0x607   :  { %9360 = vmatpush3.bf16.msra.mxu1 %v9887_v20  ;;  %8180 = vmatprep.subr.bf16.mxu0 %v12195_v45  ;;  %v15069_v20 = vld [vmem:[#allocation10_spill] sm:$0xff] }
 0x608   :  { %9361 = vmatprep.subr.bf16.mxu1 %v14967_v27 }
 0x60a   :  { %8181 = vmatpush3.bf16.msra.mxu0 %v12201_v24 }
 0x60b   :  { %9362 = vmatpush3.bf16.msra.mxu1 %v9888_v8  ;;  %8182 = vmatprep.subr.bf16.mxu0 %v12207_v7  ;;  %v15070_v8 = vld [vmem:[#allocation11_spill] sm:$0xff] }
 0x60c   :  { %9363 = vmatprep.subr.bf16.mxu1 %v14967_v27 }
 0x60e   :  { %8183 = vmatpush3.bf16.msra.mxu0 %v12213_v52 }
 0x60f   :  { %9364 = vmatpush3.bf16.msra.mxu1 %v9889_v13  ;;  %8184 = vmatprep.subr.bf16.mxu0 %v12219_v63  ;;  %v3306_v13 = vcombine.high %v7137_v62, %v7137_v62  ;;  %v15074_v62 = vld [vmem:[#allocation46_spill] sm:$0xff] }
 0x610   :  { %9365 = vmatprep.subr.bf16.mxu1 %v14967_v27  ;;  %v15096_v63 = vld [vmem:[#allocation42_spill] sm:$0xff] }
 0x613   :  { %9366 = vmatpush3.bf16.msra.mxu1 %v9890_v19  ;;  %v15071_v19 = vld [vmem:[#allocation12_spill] sm:$0xff] }
 0x614   :  { %9367 = vmatprep.subr.bf16.mxu1 %v14967_v27 }
 0x617   :  { %9368 = vmatpush3.bf16.msra.mxu1 %v9891_v25  ;;  %v3320_v25 = vrot.slane %v3306_v13, %v10494_v35  ;;  %v15076_v13 = vld [vmem:[#allocation33_spill] sm:$0xff] }
 0x618   :  { %9369 = vmatprep.subr.bf16.mxu1 %v14967_v27 }
 0x61b   :  { %9370 = vmatpush3.bf16.msra.mxu1 %v9892_v15  ;;  %v12532_v15 = vrot.slane %v3320_v25, %v10494_v35 }
 0x61c   :  { %8154 = vmatprep.subr.bf16.mxu1 %v11656_v22  ;;  %v15067_v22 = vld [vmem:[#allocation8_spill] sm:$0xff] }
 0x61d   :  { %8185 = vmatpush3.bf16.msra.mxu0 %v15067_v22 }
 0x61e   :  { %8186 = vmatprep.subr.bf16.mxu0 %v15068_v38  ;;  %v15091_v38 = vld [vmem:[#allocation23_spill] sm:$0xff] }
 0x621   :  { %8187 = vmatpush3.bf16.msra.mxu0 %v15069_v20  ;;  %v15082_v20 = vld [vmem:[#allocation15_spill] sm:$0xff] }
 0x622   :  { %8188 = vmatprep.subr.bf16.mxu0 %v15070_v8 }
 0x625   :  { %8189 = vmatpush3.bf16.msra.mxu0 %v15071_v19 }
 0x63a   :  { %v12488_v30 = vpop.f32.mrf.mxu0 }
 0x63c   :  { %v9353_v4 = vpop.f32.mrf.mxu0 }
 0x63d   :  { %v15072_v4 = vld [vmem:[#allocation39_spill] sm:$0xff] }
 0x63e   :  { %v3190_v39 = vpop.f32.mrf.mxu0  ;;  %8190 = vmatprep.subr.bf16.mxu0 %v15072_v4 }
 0x63f   :  { %v3322_v39 = vcombine.high %v3320_v25, %v3320_v25  ;;  %8191 = vmatpush3.bf16.msra.mxu0 %v15073_v18  ;;  %v15077_v25 = vld [vmem:[#allocation35_spill] sm:$0xff]  ;;  %v15079_v18 = vld [vmem:[#allocation13_spill] sm:$0xff] }
 0x640   :  { %v9354_v40 = vpop.f32.mrf.mxu0  ;;  %9375 = vmatprep.subr.bf16.mxu0 %v14967_v27 }
 0x641   :  { %v12528_v40 = vrot.slane %v3322_v39, %v10494_v35  ;;  %v15078_v39 = vld [vmem:[#allocation36_spill] sm:$0xff] }
 0x643   :  { %3490 = vmatprep.mubr.bf16.mxu0 %v12528_v40 }
 0x644   :  { %3491 = vmatmul.mubr.bf16.vlgmr.msra.gmra.mxu0 %v12532_v15 }
 0x645   :  { %9376 = vmatpush3.bf16.msra.mxu0 %v15074_v62  ;;  %9391 = vmatprep.mubr.msk.bf16.mxu0 %vm10275_vm0, %v14967_v27 }
 0x646   :  { %9377 = vmatprep.subr.bf16.mxu0 %v14967_v27 }
 0x649   :  { %9378 = vmatpush3.bf16.msra.mxu0 %v15075_v54  ;;  %v15081_v54 = vld [vmem:[#allocation14_spill] sm:$0xff] }
 0x64a   :  { %9379 = vmatprep.subr.bf16.mxu0 %v14967_v27 }
 0x64d   :  { %9380 = vmatpush3.bf16.msra.mxu0 %v15076_v13 }
 0x64e   :  { %9381 = vmatprep.subr.bf16.mxu0 %v14967_v27 }
 0x651   :  { %9382 = vmatpush3.bf16.msra.mxu0 %v15077_v25  ;;  %v15083_v25 = vld [vmem:[#allocation16_spill] sm:$0xff] }
 0x652   :  { %9383 = vmatprep.subr.bf16.mxu0 %v14967_v27 }
 0x655   :  { %9384 = vmatpush3.bf16.msra.mxu0 %v15078_v39  ;;  %v7139_v39 = vld.sshfl [vmem:[%s14673_s0 + $0x47] sm:$0x1 pattern:$0x75316420] }
 0x656   :  { %9385 = vmatprep.subr.bf16.mxu0 %v14967_v27 }
 0x659   :  { %9386 = vmatpush3.bf16.msra.mxu0 %v15081_v54  ;;  %v15089_v54 = vld [vmem:[#allocation21_spill] sm:$0xff] }
 0x65a   :  { %9387 = vmatprep.subr.bf16.mxu0 %v14967_v27 }
 0x65d   :  { %9388 = vmatpush3.bf16.msra.mxu0 %v15082_v20  ;;  %v15088_v20 = vld [vmem:[#allocation20_spill] sm:$0xff] }
 0x65e   :  { %9389 = vmatprep.subr.bf16.mxu0 %v14967_v27 }
 0x661   :  { %9390 = vmatpush3.bf16.msra.mxu0 %v15083_v25  ;;  %v15092_v25 = vld [vmem:[#allocation37_spill] sm:$0xff] }
 0x67e   :  { %v2909_v62 = vpop.f32.mrf.mxu1 }
 0x67f   :  { %v12549_v4 = vadd.f32 %v2909_v62, %v15079_v18  ;;  %v3368_v18 = vrot.slane %v7139_v39, %v10494_v35  ;;  %v15084_v62 = vld [vmem:[#allocation3_spill] sm:$0xff]  ;;  %v15093_v39 = vld [vmem:[#allocation38_spill] sm:$0xff] }
 0x680   :  { %v9333_v19 = vpop.f32.mrf.mxu1  ;;  %8238 = vmatprep.subr.bf16.mxu0 %v15084_v62 }
 0x681   :  { %15080 = vst [vmem:[#allocation44_spill] sm:$0xff] %v12549_v4  ;;  %9392 = vmatmul.mubr.bf16.vlgmr.msra.gmra.mxu0 %v3368_v18  ;;  %v15085_v19 = vld [vmem:[#allocation17_spill] sm:$0xff]  ;;  %v15090_v4 = vld [vmem:[#allocation22_spill] sm:$0xff]  ;;  %v15094_v18 = vld [vmem:[#allocation40_spill] sm:$0xff] }
 0x682   :  { %v2912_v8 = vpop.f32.mrf.mxu1  ;;  %8239 = vmatpush3.bf16.msra.mxu0 %v15085_v19 }
 0x683   :  { %v15086_v8 = vld [vmem:[#allocation18_spill] sm:$0xff] }
 0x684   :  { %v9334_v13 = vpop.f32.mrf.mxu1  ;;  %8240 = vmatprep.subr.bf16.mxu0 %v15086_v8  ;;  %v15095_v8 = vld [vmem:[#allocation4_spill] sm:$0xff] }
 0x685   :  { %v15087_v13 = vld [vmem:[#allocation19_spill] sm:$0xff]  ;;  %v3028_v22 = vadd.f32 %v15095_v8, %v12461_v5 }
 0x686   :  { %8241 = vmatpush3.bf16.msra.mxu0 %v15087_v13 }
 0x687   :  { %8242 = vmatprep.subr.bf16.mxu0 %v15088_v20 }
 0x68a   :  { %8243 = vmatpush3.bf16.msra.mxu0 %v15089_v54  ;;  %v15097_v54 = vld [vmem:[#allocation43_spill] sm:$0xff] }
 0x68b   :  { %8244 = vmatprep.subr.bf16.mxu0 %v15090_v4 }
 0x68e   :  { %8245 = vmatpush3.bf16.msra.mxu0 %v15091_v38 }
 0x68f   :  { %8246 = vmatprep.subr.bf16.mxu0 %v15092_v25 }
 0x692   :  { %8247 = vmatpush3.bf16.msra.mxu0 %v15093_v39 }
 0x693   :  { %8248 = vmatprep.subr.bf16.mxu0 %v15094_v18 }
 0x696   :  { %8249 = vmatpush3.bf16.msra.mxu0 %v15096_v63 }
 0x697   :  { %8250 = vmatprep.subr.bf16.mxu0 %v15097_v54 }
 0x69a   :  { %8251 = vmatpush3.bf16.msra.mxu0 %v11905_v55 }
 0x69b   :  { %8252 = vmatprep.subr.bf16.mxu0 %v11911_v56 }
 0x69e   :  { %v8064_v62 = vpop.f32.mrf.mxu1  ;;  %8253 = vmatpush3.bf16.msra.mxu0 %v11917_v49 }
 0x69f   :  { %8282 = vmatprep.subr.bf16.mxu0 %v11923_v58 }
 0x6a0   :  { %v8065_v19 = vpop.f32.mrf.mxu1 }
 0x6a1   :  { %v8066_v13 = vadd.f32 %v8065_v19, %v8064_v62 }
 0x6a2   :  { %v8067_v20 = vpop.f32.mrf.mxu1 }
 0x6a3   :  { %v3068_v4 = vadd.f32 %v8066_v13, %v3028_v22 }
 0x6a4   :  { %v8068_v52 = vpop.f32.mrf.mxu1 }
 0x6a5   :  { %v3108_v38 = vadd.f32 %v12463_v21, %v3068_v4  ;;  %v3353_v52 = vcombine.high %v12503_v11, %v12503_v11  ;;  %v3352_v11 = vcombine.high %v12532_v15, %v12532_v15 }
 0x6be   :  { %v8108_v18 = vpop.f32.mrf.mxu1 }
 0x6c0   :  { %v8109_v5 = vpop.f32.mrf.mxu1 }
 0x6c1   :  { %v8110_v62 = vadd.f32 %v8109_v5, %v8108_v18 }
 0x6c2   :  { %v8111_v19 = vpop.f32.mrf.mxu1 }
 0x6c3   :  { %v3148_v63 = vadd.f32 %v8110_v62, %v3108_v38  ;;  %v9894_v19 = vld [vmem:[%s14674_s3 + $0x1f8] sm:$0xff]  }
 0x6c4   :  { %v8112_v20 = vpop.f32.mrf.mxu1 }
 0x6c5   :  { %v3188_v54 = vadd.f32 %v12488_v30, %v3148_v63  ;;  %v3351_v63 = vcombine.high %v12507_v29, %v12507_v29  ;;  %v3354_v30 = vcombine.high %v12528_v40, %v12528_v40  ;;  %v8148_v29 = vpop.f32.mrf.mxu0  ;;  %v9895_v20 = vld [vmem:[%s14674_s3 + $0x1f0] sm:$0xff]  }
 0x6c7   :  { %v3193_v22 = vmax.f32 %v3188_v54, 0.0  ;;  %v8149_v38 = vpop.f32.mrf.mxu0 }
 0x6c8   :  { %v12623_v4 = vadd.f32 %v8149_v38, %v8148_v29  ;;  %v9900_v29 = vld [vmem:[%s14674_s3 + $0x1c8] sm:$0xff]  }
 0x6c9   :  { %v3194_v21 = vpack.c.bf16 %v3193_v22, %v3193_v22  ;;  %v8151_v40 = vpop.f32.mrf.mxu0  ;;  %v9896_v22 = vld [vmem:[%s14674_s3 + $0x1e8] sm:$0xff]  }
 0x6ca   :  { %v7164_v40 = vld [vmem:[%s14673_s0 + $0x48] sm:$0xff] }
 0x6cb   :  { %9372 = vmatmul.mubr.bf16.vlgmr.msra.gmra.mxu1 %v3194_v21  ;;  %v8152_v54 = vpop.f32.mrf.mxu0  ;;  %v9898_v21 = vld [vmem:[%s14674_s3 + $0x1d8] sm:$0xff]  }
 0x6cc   :  { %8155 = vmatpush3.bf16.msra.mxu1 %v11932_v23  ;;  %3450 = vmatprep.mubr.bf16.mxu1 %v3353_v52  ;;  %v9897_v52 = vld [vmem:[%s14674_s3 + $0x1e0] sm:$0xff]   ;;  %v3698_v54 = vrot.slane %v7164_v40, %v10494_v35 }
 0x6cd   :  { %8156 = vmatprep.subr.bf16.mxu1 %v11938_v43 }
 0x6d0   :  { %8157 = vmatpush3.bf16.msra.mxu1 %v11944_v16 }
 0x6d1   :  { %8158 = vmatprep.subr.bf16.mxu1 %v11950_v60 }
 0x6d4   :  { %8159 = vmatpush3.bf16.msra.mxu1 %v11956_v44 }
 0x6d5   :  { %8160 = vmatprep.subr.bf16.mxu1 %v11962_v51 }
 0x6d8   :  { %8161 = vmatpush3.bf16.msra.mxu1 %v11968_v53 }
 0x6d9   :  { %8162 = vmatprep.subr.bf16.mxu1 %v11974_v14 }
 0x6dc   :  { %8163 = vmatpush3.bf16.msra.mxu1 %v11980_v28 }
 0x6dd   :  { %8164 = vmatprep.subr.bf16.mxu1 %v11986_v31 }
 0x6e0   :  { %8165 = vmatpush3.bf16.msra.mxu1 %v11992_v32 }
 0x6e1   :  { %8166 = vmatprep.subr.bf16.mxu1 %v11998_v26 }
 0x6e4   :  { %8167 = vmatpush3.bf16.msra.mxu1 %v12004_v41 }
 0x6e5   :  { %8168 = vmatprep.subr.bf16.mxu1 %v12010_v59 }
 0x6e8   :  { %8169 = vmatpush3.bf16.msra.mxu1 %v12018_v9 }
 0x6e9   :  { %8198 = vmatprep.subr.bf16.mxu1 %v12026_v50 }
 0x6eb   :  { %3451 = vmatmul.mubr.bf16.vlgmr.msra.gmra.mxu1 %v3351_v63  ;;  %v9899_v63 = vld [vmem:[%s14674_s3 + $0x1d0] sm:$0xff]  }
 0x6ec   :  { %8199 = vmatpush3.bf16.msra.mxu1 %v12032_v48  ;;  %3530 = vmatprep.mubr.bf16.mxu1 %v3354_v30 }
 0x6ed   :  { %8200 = vmatprep.subr.bf16.mxu1 %v12038_v57 }
 0x6f0   :  { %8201 = vmatpush3.bf16.msra.mxu1 %v12044_v2 }
 0x6f1   :  { %8202 = vmatprep.subr.bf16.mxu1 %v12050_v33 }
 0x6f4   :  { %8203 = vmatpush3.bf16.msra.mxu1 %v12056_v34 }
 0x6f5   :  { %8204 = vmatprep.subr.bf16.mxu1 %v12062_v10 }
 0x6f8   :  { %8205 = vmatpush3.bf16.msra.mxu1 %v12068_v12 }
 0x6f9   :  { %8206 = vmatprep.subr.bf16.mxu1 %v12074_v6 }
 0x6fc   :  { %8207 = vmatpush3.bf16.msra.mxu1 %v12080_v61 }
 0x6fd   :  { %8208 = vmatprep.subr.bf16.mxu1 %v12086_v36 }
 0x700   :  { %8209 = vmatpush3.bf16.msra.mxu1 %v12092_v37 }
 0x701   :  { %8210 = vmatprep.subr.bf16.mxu1 %v12098_v0 }
 0x704   :  { %8211 = vmatpush3.bf16.msra.mxu1 %v12104_v42  ;;  %v8192_v13 = vpop.f32.mrf.mxu0 }
 0x705   :  { %8212 = vmatprep.subr.bf16.mxu1 %v12110_v47 }
 0x706   :  { %v8193_v18 = vpop.f32.mrf.mxu0 }
 0x707   :  { %v12625_v5 = vadd.f32 %v8193_v18, %v8192_v13  ;;  %v9901_v18 = vld [vmem:[%s14674_s3 + $0x1c0] sm:$0xff]  }
 0x708   :  { %8213 = vmatpush3.bf16.msra.mxu1 %v12118_v1  ;;  %v8195_v62 = vpop.f32.mrf.mxu0 }
 0x709   :  { %9395 = vmatprep.subr.bf16.mxu1 %v14967_v27  ;;  %v3706_v62 = vcombine.high %v3698_v54, %v3698_v54 }
 0x70a   :  { %v8196_v15 = vpop.f32.mrf.mxu0 }
 0x70b   :  { %3531 = vmatmul.mubr.bf16.vlgmr.msra.gmra.mxu1 %v3352_v11  ;;  %v12665_v15 = vrot.slane %v3706_v62, %v10494_v35 }
 0x70c   :  { %9411 = vmatprep.mubr.msk.bf16.mxu1 %vm10275_vm0, %v14967_v27  ;;  %9396 = vmatpush3.bf16.msra.mxu1 %v9894_v19  ;;  %v12670_v19 = vld [vmem:[%s14672_s1 + $0xf8] sm:$0xff]  }
 0x70d   :  { %9397 = vmatprep.subr.bf16.mxu1 %v14967_v27  ;;  %3795 = vmatprep.mubr.bf16.mxu0 %v12665_v15 }
 0x710   :  { %9398 = vmatpush3.bf16.msra.mxu1 %v9895_v20  ;;  %v12674_v20 = vrot.slane %v3698_v54, %v10494_v35  ;;  %v15104_v54 = vld [vmem:[#allocation12_spill] sm:$0xff] }
 0x711   :  { %9399 = vmatprep.subr.bf16.mxu1 %v14967_v27 }
 0x712   :  { %3796 = vmatmul.mubr.bf16.vlgmr.msra.gmra.mxu0 %v12674_v20 }
 0x713   :  { %8283 = vmatpush3.bf16.msra.mxu0 %v12177_v46 }
 0x714   :  { %9400 = vmatpush3.bf16.msra.mxu1 %v9896_v22  ;;  %8284 = vmatprep.subr.bf16.mxu0 %v12183_v3  ;;  %v15098_v22 = vld [vmem:[#allocation6_spill] sm:$0xff] }
 0x715   :  { %9401 = vmatprep.subr.bf16.mxu1 %v14967_v27 }
 0x717   :  { %8285 = vmatpush3.bf16.msra.mxu0 %v12189_v17 }
 0x718   :  { %9402 = vmatpush3.bf16.msra.mxu1 %v9897_v52  ;;  %8286 = vmatprep.subr.bf16.mxu0 %v12195_v45  ;;  %v15099_v52 = vld [vmem:[#allocation7_spill] sm:$0xff] }
 0x719   :  { %9403 = vmatprep.subr.bf16.mxu1 %v14967_v27 }
 0x71b   :  { %8287 = vmatpush3.bf16.msra.mxu0 %v12201_v24 }
 0x71c   :  { %9404 = vmatpush3.bf16.msra.mxu1 %v9898_v21  ;;  %8288 = vmatprep.subr.bf16.mxu0 %v12207_v7  ;;  %v15100_v21 = vld [vmem:[#allocation8_spill] sm:$0xff]  ;;  %v15106_v7 = vld [vmem:[#allocation41_spill] sm:$0xff] }
 0x71d   :  { %9405 = vmatprep.subr.bf16.mxu1 %v14967_v27 }
 0x71f   :  { %8289 = vmatpush3.bf16.msra.mxu0 %v15098_v22  ;;  %v15124_v22 = vld [vmem:[#allocation23_spill] sm:$0xff] }
 0x720   :  { %9406 = vmatpush3.bf16.msra.mxu1 %v9899_v63  ;;  %8290 = vmatprep.subr.bf16.mxu0 %v15099_v52  ;;  %v15101_v63 = vld [vmem:[#allocation9_spill] sm:$0xff] }
 0x721   :  { %9407 = vmatprep.subr.bf16.mxu1 %v14967_v27 }
 0x723   :  { %8291 = vmatpush3.bf16.msra.mxu0 %v15100_v21  ;;  %v15115_v21 = vld [vmem:[#allocation15_spill] sm:$0xff] }
 0x724   :  { %9408 = vmatpush3.bf16.msra.mxu1 %v9900_v29  ;;  %8292 = vmatprep.subr.bf16.mxu0 %v15101_v63  ;;  %v15103_v29 = vld [vmem:[#allocation11_spill] sm:$0xff] }
 0x725   :  { %9409 = vmatprep.subr.bf16.mxu1 %v14967_v27 }
 0x728   :  { %9410 = vmatpush3.bf16.msra.mxu1 %v9901_v18 }
 0x729   :  { %8260 = vmatprep.subr.bf16.mxu1 %v12670_v19 }
 0x741   :  { %v12650_v30 = vpop.f32.mrf.mxu0 }
 0x743   :  { %v9393_v11 = vpop.f32.mrf.mxu0 }
 0x744   :  { %v15102_v11 = vld [vmem:[#allocation10_spill] sm:$0xff] }
 0x745   :  { %v3575_v38 = vpop.f32.mrf.mxu0  ;;  %8293 = vmatpush3.bf16.msra.mxu0 %v15102_v11 }
 0x746   :  { %8294 = vmatprep.subr.bf16.mxu0 %v15103_v29  ;;  %v3691_v38 = vcombine.high %v7164_v40, %v7164_v40  ;;  %v15107_v40 = vld [vmem:[#allocation46_spill] sm:$0xff] }
 0x747   :  { %v9394_v13 = vpop.f32.mrf.mxu0 }
 0x748   :  { %v15105_v13 = vld [vmem:[#allocation39_spill] sm:$0xff]  ;;  %v3705_v18 = vrot.slane %v3691_v38, %v10494_v35  ;;  %v15108_v38 = vld [vmem:[#allocation2_spill] sm:$0xff] }
 0x749   :  { %8295 = vmatpush3.bf16.msra.mxu0 %v15104_v54 }
 0x74a   :  { %8296 = vmatprep.subr.bf16.mxu0 %v15105_v13  ;;  %v3707_v62 = vcombine.high %v3705_v18, %v3705_v18  ;;  %v12699_v63 = vrot.slane %v3705_v18, %v10494_v35  ;;  %v15110_v18 = vld [vmem:[#allocation35_spill] sm:$0xff]  ;;  %v15112_v13 = vld [vmem:[#allocation44_spill] sm:$0xff] }
 0x74c   :  { %v12695_v52 = vrot.slane %v3707_v62, %v10494_v35  ;;  %v15109_v62 = vld [vmem:[#allocation33_spill] sm:$0xff] }
 0x74d   :  { %8297 = vmatpush3.bf16.msra.mxu0 %v15106_v7  ;;  %v15111_v7 = vld [vmem:[#allocation36_spill] sm:$0xff] }
 0x74e   :  { %9415 = vmatprep.subr.bf16.mxu0 %v14967_v27  ;;  %3875 = vmatprep.mubr.bf16.mxu0 %v12695_v52 }
 0x750   :  { %3876 = vmatmul.mubr.bf16.vlgmr.msra.gmra.mxu0 %v12699_v63 }
 0x751   :  { %9416 = vmatpush3.bf16.msra.mxu0 %v15107_v40  ;;  %9431 = vmatprep.mubr.msk.bf16.mxu0 %vm10275_vm0, %v14967_v27 }
 0x752   :  { %9417 = vmatprep.subr.bf16.mxu0 %v14967_v27 }
 0x755   :  { %9418 = vmatpush3.bf16.msra.mxu0 %v15108_v38  ;;  %v15114_v38 = vld [vmem:[#allocation14_spill] sm:$0xff] }
 0x756   :  { %9419 = vmatprep.subr.bf16.mxu0 %v14967_v27 }
 0x759   :  { %9420 = vmatpush3.bf16.msra.mxu0 %v15109_v62 }
 0x75a   :  { %9421 = vmatprep.subr.bf16.mxu0 %v14967_v27 }
 0x75d   :  { %9422 = vmatpush3.bf16.msra.mxu0 %v15110_v18  ;;  %v15116_v18 = vld [vmem:[#allocation16_spill] sm:$0xff] }
 0x75e   :  { %9423 = vmatprep.subr.bf16.mxu0 %v14967_v27 }
 0x761   :  { %9424 = vmatpush3.bf16.msra.mxu0 %v15111_v7  ;;  %v7166_v7 = vld.sshfl [vmem:[%s14673_s0 + $0x50] sm:$0x1 pattern:$0x75316420] }
 0x762   :  { %9425 = vmatprep.subr.bf16.mxu0 %v14967_v27 }
 0x765   :  { %9426 = vmatpush3.bf16.msra.mxu0 %v15114_v38  ;;  %v15122_v38 = vld [vmem:[#allocation21_spill] sm:$0xff] }
 0x766   :  { %9427 = vmatprep.subr.bf16.mxu0 %v14967_v27 }
 0x769   :  { %9428 = vmatpush3.bf16.msra.mxu0 %v15115_v21  ;;  %v15121_v21 = vld [vmem:[#allocation20_spill] sm:$0xff] }
 0x76a   :  { %9429 = vmatprep.subr.bf16.mxu0 %v14967_v27 }
 0x76d   :  { %9430 = vmatpush3.bf16.msra.mxu0 %v15116_v18 }
 0x78b   :  { %v3294_v40 = vpop.f32.mrf.mxu1 }
 0x78c   :  { %v12716_v54 = vadd.f32 %v3294_v40, %v15112_v13  ;;  %v3753_v13 = vrot.slane %v7166_v7, %v10494_v35  ;;  %v15117_v40 = vld [vmem:[#allocation3_spill] sm:$0xff] }
 0x78d   :  { %v9373_v29 = vpop.f32.mrf.mxu1  ;;  %8344 = vmatprep.subr.bf16.mxu0 %v15117_v40 }
 0x78e   :  { %15113 = vst [vmem:[#allocation45_spill] sm:$0xff] %v12716_v54  ;;  %9432 = vmatmul.mubr.bf16.vlgmr.msra.gmra.mxu0 %v3753_v13  ;;  %v15118_v29 = vld [vmem:[#allocation17_spill] sm:$0xff]  ;;  %v15123_v54 = vld [vmem:[#allocation22_spill] sm:$0xff]  ;;  %v15125_v13 = vld [vmem:[#allocation40_spill] sm:$0xff] }
 0x78f   :  { %v3297_v11 = vpop.f32.mrf.mxu1  ;;  %8345 = vmatpush3.bf16.msra.mxu0 %v15118_v29  ;;  %v15126_v29 = vld [vmem:[#allocation42_spill] sm:$0xff] }
 0x790   :  { %v15119_v11 = vld [vmem:[#allocation18_spill] sm:$0xff] }
 0x791   :  { %v9374_v62 = vpop.f32.mrf.mxu1  ;;  %8346 = vmatprep.subr.bf16.mxu0 %v15119_v11  ;;  %v3413_v11 = vadd.f32 %v15095_v8, %v12623_v4 }
 0x792   :  { %v15120_v62 = vld [vmem:[#allocation19_spill] sm:$0xff] }
 0x793   :  { %8347 = vmatpush3.bf16.msra.mxu0 %v15120_v62 }
 0x794   :  { %8348 = vmatprep.subr.bf16.mxu0 %v15121_v21 }
 0x797   :  { %8349 = vmatpush3.bf16.msra.mxu0 %v15122_v38  ;;  %v15127_v38 = vld [vmem:[#allocation43_spill] sm:$0xff] }
 0x798   :  { %8350 = vmatprep.subr.bf16.mxu0 %v15123_v54 }
 0x79b   :  { %8351 = vmatpush3.bf16.msra.mxu0 %v15124_v22 }
 0x79c   :  { %8352 = vmatprep.subr.bf16.mxu0 %v15092_v25 }
 0x79f   :  { %8353 = vmatpush3.bf16.msra.mxu0 %v15093_v39 }
 0x7a0   :  { %8354 = vmatprep.subr.bf16.mxu0 %v15125_v13 }
 0x7a3   :  { %8355 = vmatpush3.bf16.msra.mxu0 %v15126_v29 }
 0x7a4   :  { %8356 = vmatprep.subr.bf16.mxu0 %v15127_v38 }
 0x7a7   :  { %8357 = vmatpush3.bf16.msra.mxu0 %v11905_v55  ;;  %v3736_v55 = vcombine.high %v12674_v20, %v12674_v20  ;;  %v15137_v20 = vld [vmem:[#allocation41_spill] sm:$0xff] }
 0x7a8   :  { %8358 = vmatprep.subr.bf16.mxu0 %v11911_v56  ;;  %v3739_v56 = vcombine.high %v12695_v52, %v12695_v52 }
 0x7ab   :  { %v8170_v7 = vpop.f32.mrf.mxu1  ;;  %8359 = vmatpush3.bf16.msra.mxu0 %v11917_v49  ;;  %v3737_v49 = vcombine.high %v12699_v63, %v12699_v63  ;;  %v15138_v63 = vld [vmem:[#allocation46_spill] sm:$0xff] }
 0x7ac   :  { %8388 = vmatprep.subr.bf16.mxu0 %v11923_v58 }
 0x7ad   :  { %v8171_v40 = vpop.f32.mrf.mxu1 }
 0x7ae   :  { %v8172_v62 = vadd.f32 %v8171_v40, %v8170_v7 }
 0x7af   :  { %v8173_v21 = vpop.f32.mrf.mxu1 }
 0x7b0   :  { %v3453_v54 = vadd.f32 %v8172_v62, %v3413_v11  ;;  %v15141_v62 = vld [vmem:[#allocation35_spill] sm:$0xff] }
 0x7b1   :  { %v8174_v18 = vpop.f32.mrf.mxu1 }
 0x7b2   :  { %v3493_v22 = vadd.f32 %v12625_v5, %v3453_v54  ;;  %v3738_v5 = vcombine.high %v12665_v15, %v12665_v15  ;;  %v15140_v18 = vld [vmem:[#allocation33_spill] sm:$0xff] }
 0x7cb   :  { %v8214_v13 = vpop.f32.mrf.mxu1 }
 0x7cd   :  { %v8215_v8 = vpop.f32.mrf.mxu1 }
 0x7ce   :  { %v8216_v4 = vadd.f32 %v8215_v8, %v8214_v13  ;;  %v15142_v13 = vld [vmem:[#allocation36_spill] sm:$0xff] }
 0x7cf   :  { %v8217_v7 = vpop.f32.mrf.mxu1 }
 0x7d0   :  { %v3533_v40 = vadd.f32 %v8216_v4, %v3493_v22  ;;  %v15143_v4 = vld [vmem:[#allocation45_spill] sm:$0xff] }
 0x7d1   :  { %v8218_v21 = vpop.f32.mrf.mxu1 }
 0x7d2   :  { %v3573_v38 = vadd.f32 %v12650_v30, %v3533_v40  ;;  %v8254_v58 = vpop.f32.mrf.mxu0  ;;  %v15133_v30 = vld [vmem:[#allocation10_spill] sm:$0xff] }
 0x7d3   :  { %v15144_v21 = vld [vmem:[#allocation14_spill] sm:$0xff] }
 0x7d4   :  { %v3578_v11 = vmax.f32 %v3573_v38, 0.0  ;;  %v15139_v38 = vld [vmem:[#allocation2_spill] sm:$0xff] }
 0x7d6   :  { %v3579_v54 = vpack.c.bf16 %v3578_v11, %v3578_v11 }
 0x7d8   :  { %9412 = vmatmul.mubr.bf16.vlgmr.msra.gmra.mxu1 %v3579_v54  ;;  %v15145_v54 = vld [vmem:[#allocation15_spill] sm:$0xff] }
 0x7d9   :  { %8261 = vmatpush3.bf16.msra.mxu1 %v11932_v23  ;;  %3835 = vmatprep.mubr.bf16.mxu1 %v3738_v5  ;;  %v8255_v23 = vpop.f32.mrf.mxu0 }
 0x7da   :  { %8262 = vmatprep.subr.bf16.mxu1 %v11938_v43  ;;  %v12790_v43 = vadd.f32 %v8255_v23, %v8254_v58  ;;  %v12892_v58 = vld [vmem:[%s14672_s1 + $0x78] sm:$0xff]  }
 0x7db   :  { %15147 = vst [vmem:[#allocation24_spill] sm:$0xff] %v12892_v58  ;;  %v15148_v23 = vld [vmem:[#allocation17_spill] sm:$0xff] }
 0x7dd   :  { %8263 = vmatpush3.bf16.msra.mxu1 %v11944_v16  ;;  %v8257_v16 = vpop.f32.mrf.mxu0 }
 0x7de   :  { %8264 = vmatprep.subr.bf16.mxu1 %v11950_v60  ;;  %v15149_v16 = vld [vmem:[#allocation18_spill] sm:$0xff] }
 0x7df   :  { %v8258_v60 = vpop.f32.mrf.mxu0 }
 0x7e0   :  { %v15150_v60 = vld [vmem:[#allocation19_spill] sm:$0xff] }
 0x7e1   :  { %8265 = vmatpush3.bf16.msra.mxu1 %v11956_v44 }
 0x7e2   :  { %8266 = vmatprep.subr.bf16.mxu1 %v11962_v51 }
 0x7e5   :  { %8267 = vmatpush3.bf16.msra.mxu1 %v11968_v53 }
 0x7e6   :  { %8268 = vmatprep.subr.bf16.mxu1 %v11974_v14 }
 0x7e9   :  { %8269 = vmatpush3.bf16.msra.mxu1 %v11980_v28 }
 0x7ea   :  { %8270 = vmatprep.subr.bf16.mxu1 %v11986_v31  ;;  %v9903_v31 = vld [vmem:[%s14674_s3 + $0x238] sm:$0xff]  }
 0x7ed   :  { %8271 = vmatpush3.bf16.msra.mxu1 %v11992_v32  ;;  %v9904_v32 = vld [vmem:[%s14674_s3 + $0x230] sm:$0xff]  }
 0x7ee   :  { %8272 = vmatprep.subr.bf16.mxu1 %v11998_v26  ;;  %v9905_v26 = vld [vmem:[%s14674_s3 + $0x228] sm:$0xff]  }
 0x7f1   :  { %8273 = vmatpush3.bf16.msra.mxu1 %v12004_v41  ;;  %v9906_v41 = vld [vmem:[%s14674_s3 + $0x220] sm:$0xff]  }
 0x7f2   :  { %8274 = vmatprep.subr.bf16.mxu1 %v12010_v59  ;;  %v9907_v59 = vld [vmem:[%s14674_s3 + $0x218] sm:$0xff]  }
 0x7f5   :  { %8275 = vmatpush3.bf16.msra.mxu1 %v12018_v9  ;;  %v9908_v9 = vld [vmem:[%s14674_s3 + $0x210] sm:$0xff]  }
 0x7f6   :  { %8304 = vmatprep.subr.bf16.mxu1 %v12026_v50 }
 0x7f8   :  { %3836 = vmatmul.mubr.bf16.vlgmr.msra.gmra.mxu1 %v3736_v55  ;;  %v7193_v55 = vld.sshfl [vmem:[%s14673_s0 + $0x59] sm:$0x1 pattern:$0x75316420] }
 0x7f9   :  { %8305 = vmatpush3.bf16.msra.mxu1 %v12032_v48  ;;  %3915 = vmatprep.mubr.bf16.mxu1 %v3739_v56  ;;  %v15146_v56 = vld [vmem:[#allocation16_spill] sm:$0xff] }
 0x7fa   :  { %8306 = vmatprep.subr.bf16.mxu1 %v12038_v57  ;;  %v9909_v57 = vld [vmem:[%s14674_s3 + $0x208] sm:$0xff]  }
 0x7fd   :  { %8307 = vmatpush3.bf16.msra.mxu1 %v12044_v2 }
 0x7fe   :  { %8308 = vmatprep.subr.bf16.mxu1 %v12050_v33  ;;  %v7191_v33 = vld [vmem:[%s14673_s0 + $0x51] sm:$0xff] }
 0x801   :  { %8309 = vmatpush3.bf16.msra.mxu1 %v12056_v34  ;;  %v4083_v34 = vrot.slane %v7191_v33, %v10494_v35 }
 0x802   :  { %8310 = vmatprep.subr.bf16.mxu1 %v12062_v10 }
 0x805   :  { %8311 = vmatpush3.bf16.msra.mxu1 %v12068_v12  ;;  %v9910_v12 = vld [vmem:[%s14674_s3 + $0x200] sm:$0xff]  }
 0x806   :  { %8312 = vmatprep.subr.bf16.mxu1 %v12074_v6  ;;  %v4091_v6 = vcombine.high %v4083_v34, %v4083_v34 }
 0x809   :  { %8313 = vmatpush3.bf16.msra.mxu1 %v12080_v61  ;;  %v12832_v61 = vrot.slane %v4091_v6, %v10494_v35 }
 0x80a   :  { %8314 = vmatprep.subr.bf16.mxu1 %v12086_v36  ;;  %v12836_v36 = vrot.slane %v4083_v34, %v10494_v35 }
 0x80b   :  { %4180 = vmatprep.mubr.bf16.mxu0 %v12832_v61 }
 0x80c   :  { %4181 = vmatmul.mubr.bf16.vlgmr.msra.gmra.mxu0 %v12836_v36 }
 0x80d   :  { %8315 = vmatpush3.bf16.msra.mxu1 %v12092_v37  ;;  %8389 = vmatpush3.bf16.msra.mxu0 %v12177_v46  ;;  %v15128_v37 = vld [vmem:[#allocation5_spill] sm:$0xff]  ;;  %v15134_v46 = vld [vmem:[#allocation11_spill] sm:$0xff] }
 0x80e   :  { %8316 = vmatprep.subr.bf16.mxu1 %v12098_v0  ;;  %8390 = vmatprep.subr.bf16.mxu0 %v12183_v3  ;;  %v15129_v0 = vld [vmem:[#allocation6_spill] sm:$0xff]  ;;  %v4076_v3 = vcombine.high %v7191_v33, %v7191_v33  ;;  %v12918_v33 = vld [vmem:[%s14672_s1 + $0x8] sm:$0xff]  }
 0x810   :  { %v8298_v44 = vpop.f32.mrf.mxu0 }
 0x811   :  { %8317 = vmatpush3.bf16.msra.mxu1 %v12104_v42  ;;  %8391 = vmatpush3.bf16.msra.mxu0 %v12189_v17  ;;  %v15130_v42 = vld [vmem:[#allocation7_spill] sm:$0xff]  ;;  %v15135_v17 = vld [vmem:[#allocation12_spill] sm:$0xff] }
 0x812   :  { %8318 = vmatprep.subr.bf16.mxu1 %v12110_v47  ;;  %v8299_v51 = vpop.f32.mrf.mxu0  ;;  %8392 = vmatprep.subr.bf16.mxu0 %v12195_v45  ;;  %v15131_v47 = vld [vmem:[#allocation8_spill] sm:$0xff]  ;;  %v15136_v45 = vld [vmem:[#allocation39_spill] sm:$0xff] }
 0x813   :  { %v12792_v53 = vadd.f32 %v8299_v51, %v8298_v44  ;;  %v15151_v44 = vld [vmem:[#allocation20_spill] sm:$0xff]  ;;  %v15152_v51 = vld [vmem:[#allocation21_spill] sm:$0xff] }
 0x814   :  { %v8301_v14 = vpop.f32.mrf.mxu0 }
 0x815   :  { %8319 = vmatpush3.bf16.msra.mxu1 %v12118_v1  ;;  %8393 = vmatpush3.bf16.msra.mxu0 %v12201_v24  ;;  %v15132_v1 = vld [vmem:[#allocation9_spill] sm:$0xff]  ;;  %v4090_v24 = vrot.slane %v4076_v3, %v10494_v35  ;;  %v15153_v14 = vld [vmem:[#allocation22_spill] sm:$0xff]  ;;  %v12951_v3 = vld [vmem:[%s14672_s1 + $0xf0] sm:$0xff]  }
 0x816   :  { %9435 = vmatprep.subr.bf16.mxu1 %v14967_v27  ;;  %v8302_v28 = vpop.f32.mrf.mxu0  ;;  %8394 = vmatprep.subr.bf16.mxu0 %v15128_v37 }
 0x817   :  { %v4092_v15 = vcombine.high %v4090_v24, %v4090_v24  ;;  %v12861_v52 = vrot.slane %v4090_v24, %v10494_v35  ;;  %v15154_v28 = vld [vmem:[#allocation23_spill] sm:$0xff]  ;;  %v12981_v24 = vld [vmem:[%s14672_s1 + $0xa0] sm:$0xff]  }
 0x818   :  { %3916 = vmatmul.mubr.bf16.vlgmr.msra.gmra.mxu1 %v3737_v49  ;;  %v4138_v49 = vrot.slane %v7193_v55, %v10494_v35  ;;  %v13075_v55 = vld [vmem:[%s14672_s1 + $0x1e0] sm:$0xff]  }
 0x819   :  { %9451 = vmatprep.mubr.msk.bf16.mxu1 %vm10275_vm0, %v14967_v27  ;;  %9436 = vmatpush3.bf16.msra.mxu1 %v9903_v31  ;;  %v12857_v22 = vrot.slane %v4092_v15, %v10494_v35  ;;  %v12987_v15 = vld [vmem:[%s14672_s1 + $0xd8] sm:$0xff]  }
 0x81a   :  { %9437 = vmatprep.subr.bf16.mxu1 %v14967_v27  ;;  %8395 = vmatpush3.bf16.msra.mxu0 %v15129_v0 }
 0x81b   :  { %8396 = vmatprep.subr.bf16.mxu0 %v15130_v42  ;;  %4260 = vmatprep.mubr.bf16.mxu0 %v12857_v22 }
 0x81d   :  { %9438 = vmatpush3.bf16.msra.mxu1 %v9904_v32  ;;  %v15155_v32 = vld [vmem:[#allocation40_spill] sm:$0xff] }
 0x81e   :  { %9439 = vmatprep.subr.bf16.mxu1 %v14967_v27  ;;  %8397 = vmatpush3.bf16.msra.mxu0 %v15131_v47 }
 0x81f   :  { %8398 = vmatprep.subr.bf16.mxu0 %v15132_v1  ;;  %v4123_v1 = vcombine.high %v12832_v61, %v12832_v61  ;;  %v12963_v61 = vld [vmem:[%s14672_s1 + $0xe8] sm:$0xff]  }
 0x821   :  { %9440 = vmatpush3.bf16.msra.mxu1 %v9905_v26 }
 0x822   :  { %9441 = vmatprep.subr.bf16.mxu1 %v14967_v27  ;;  %8399 = vmatpush3.bf16.msra.mxu0 %v15133_v30 }
 0x823   :  { %8400 = vmatprep.subr.bf16.mxu0 %v15134_v46  ;;  %v12945_v46 = vld [vmem:[%s14672_s1 + $0xb8] sm:$0xff]  }
 0x825   :  { %9442 = vmatpush3.bf16.msra.mxu1 %v9906_v41  ;;  %v12908_v41 = vld [vmem:[%s14675_s2] ss:$0 sm:$0xff] }
 0x826   :  { %9443 = vmatprep.subr.bf16.mxu1 %v14967_v27  ;;  %8401 = vmatpush3.bf16.msra.mxu0 %v15135_v17  ;;  %15156 = vst [vmem:[#allocation25_spill] sm:$0xff] %v12908_v41  ;;  %v12969_v17 = vld [vmem:[%s14672_s1 + $0xa8] sm:$0xff]  }
 0x827   :  { %8402 = vmatprep.subr.bf16.mxu0 %v15136_v45  ;;  %v12975_v45 = vld [vmem:[%s14672_s1 + $0xe0] sm:$0xff]  }
 0x829   :  { %9444 = vmatpush3.bf16.msra.mxu1 %v9907_v59  ;;  %v3798_v59 = vadd.f32 %v12908_v41, %v12790_v43  ;;  %v12924_v43 = vld [vmem:[%s14672_s1 + $0x40] sm:$0xff]  }
 0x82a   :  { %9445 = vmatprep.subr.bf16.mxu1 %v14967_v27  ;;  %8403 = vmatpush3.bf16.msra.mxu0 %v15137_v20  ;;  %v12993_v20 = vld [vmem:[%s14672_s1 + $0x98] sm:$0xff]  }
 0x82b   :  { %9455 = vmatprep.subr.bf16.mxu0 %v14967_v27 }
 0x82d   :  { %9446 = vmatpush3.bf16.msra.mxu1 %v9908_v9  ;;  %4261 = vmatmul.mubr.bf16.vlgmr.msra.gmra.mxu0 %v12861_v52 }
 0x82e   :  { %9447 = vmatprep.subr.bf16.mxu1 %v14967_v27  ;;  %9456 = vmatpush3.bf16.msra.mxu0 %v15138_v63  ;;  %v12999_v63 = vld [vmem:[%s14672_s1 + $0xd0] sm:$0xff]  }
 0x82f   :  { %9471 = vmatprep.mubr.msk.bf16.mxu0 %vm10275_vm0, %v14967_v27  ;;  %9457 = vmatprep.subr.bf16.mxu0 %v14967_v27 }
 0x831   :  { %9448 = vmatpush3.bf16.msra.mxu1 %v9909_v57  ;;  %v15157_v57 = vld [vmem:[#allocation43_spill] sm:$0xff] }
 0x832   :  { %9449 = vmatprep.subr.bf16.mxu1 %v14967_v27  ;;  %9458 = vmatpush3.bf16.msra.mxu0 %v15139_v38  ;;  %v13005_v38 = vld [vmem:[%s14672_s1 + $0x90] sm:$0xff]  }
 0x833   :  { %9459 = vmatprep.subr.bf16.mxu0 %v14967_v27 }
 0x835   :  { %9450 = vmatpush3.bf16.msra.mxu1 %v9910_v12 }
 0x836   :  { %8366 = vmatprep.subr.bf16.mxu1 %v12670_v19  ;;  %9460 = vmatpush3.bf16.msra.mxu0 %v15140_v18  ;;  %v13011_v18 = vld [vmem:[%s14672_s1 + $0xc8] sm:$0xff]  }
 0x837   :  { %9461 = vmatprep.subr.bf16.mxu0 %v14967_v27 }
 0x83a   :  { %9462 = vmatpush3.bf16.msra.mxu0 %v15141_v62  ;;  %v13017_v62 = vld [vmem:[%s14672_s1 + $0x88] sm:$0xff]  }
 0x83b   :  { %9463 = vmatprep.subr.bf16.mxu0 %v14967_v27 }
 0x83e   :  { %9464 = vmatpush3.bf16.msra.mxu0 %v15142_v13  ;;  %v13023_v13 = vld [vmem:[%s14672_s1 + $0xc0] sm:$0xff]  }
 0x83f   :  { %9465 = vmatprep.subr.bf16.mxu0 %v14967_v27 }
 0x842   :  { %9466 = vmatpush3.bf16.msra.mxu0 %v15144_v21  ;;  %v13039_v21 = vld [vmem:[%s14672_s1 + $0x1f8] sm:$0xff]  }
 0x843   :  { %9467 = vmatprep.subr.bf16.mxu0 %v14967_v27 }
 0x846   :  { %9468 = vmatpush3.bf16.msra.mxu0 %v15145_v54  ;;  %v13069_v54 = vld [vmem:[%s14672_s1 + $0x1a8] sm:$0xff]  }
 0x847   :  { %9469 = vmatprep.subr.bf16.mxu0 %v14967_v27 }
 0x84a   :  { %9470 = vmatpush3.bf16.msra.mxu0 %v15146_v56  ;;  %v13081_v56 = vld [vmem:[%s14672_s1 + $0x1a0] sm:$0xff]  }
 0x84b   :  { %8450 = vmatprep.subr.bf16.mxu0 %v12892_v58 }
 0x84d   :  { %9472 = vmatmul.mubr.bf16.vlgmr.msra.gmra.mxu0 %v4138_v49  ;;  %v13087_v49 = vld [vmem:[%s14672_s1 + $0x1d8] sm:$0xff]  }
 0x84e   :  { %v12817_v50 = vpop.f32.mrf.mxu0  ;;  %8451 = vmatpush3.bf16.msra.mxu0 %v15148_v23  ;;  %v13093_v23 = vld [vmem:[%s14672_s1 + $0x198] sm:$0xff]  }
 0x84f   :  { %8452 = vmatprep.subr.bf16.mxu0 %v15149_v16  ;;  %v13099_v16 = vld [vmem:[%s14672_s1 + $0x1d0] sm:$0xff]  }
 0x850   :  { %v9433_v48 = vpop.f32.mrf.mxu0 }
 0x852   :  { %v3960_v2 = vpop.f32.mrf.mxu0  ;;  %8453 = vmatpush3.bf16.msra.mxu0 %v15150_v60  ;;  %v13105_v60 = vld [vmem:[%s14672_s1 + $0x190] sm:$0xff]  }
 0x853   :  { %8454 = vmatprep.subr.bf16.mxu0 %v15151_v44  ;;  %v13111_v44 = vld [vmem:[%s14672_s1 + $0x1c8] sm:$0xff]  }
 0x854   :  { %v9434_v10 = vpop.f32.mrf.mxu0 }
 0x856   :  { %8455 = vmatpush3.bf16.msra.mxu0 %v15152_v51  ;;  %v13117_v51 = vld [vmem:[%s14672_s1 + $0x188] sm:$0xff]  }
 0x857   :  { %8456 = vmatprep.subr.bf16.mxu0 %v15153_v14  ;;  %v13123_v14 = vld [vmem:[%s14672_s1 + $0x1c0] sm:$0xff]  }
 0x85a   :  { %8457 = vmatpush3.bf16.msra.mxu0 %v15154_v28  ;;  %v4122_v28 = vcombine.high %v12861_v52, %v12861_v52 }
 0x85b   :  { %8458 = vmatprep.subr.bf16.mxu0 %v15092_v25 }
 0x85e   :  { %8459 = vmatpush3.bf16.msra.mxu0 %v15093_v39 }
 0x85f   :  { %8460 = vmatprep.subr.bf16.mxu0 %v15155_v32 }
 0x862   :  { %8461 = vmatpush3.bf16.msra.mxu0 %v15126_v29  ;;  %v12930_v29 = vld [vmem:[%s14672_s1] sm:$0xff]  }
 0x863   :  { %8462 = vmatprep.subr.bf16.mxu0 %v15157_v57 }
 0x866   :  { %8463 = vmatpush3.bf16.msra.mxu0 %v12918_v33 }
 0x867   :  { %8464 = vmatprep.subr.bf16.mxu0 %v12924_v43 }
 0x86a   :  { %8465 = vmatpush3.bf16.msra.mxu0 %v12930_v29 }
 0x898   :  { %v3679_v8 = vpop.f32.mrf.mxu1 }
 0x899   :  { %v12878_v7 = vadd.f32 %v3679_v8, %v15143_v4  ;;  %v4121_v8 = vcombine.high %v12836_v36, %v12836_v36  ;;  %v13031_v4 = vld [vmem:[%s14672_s1 + $0x80] sm:$0xff]   ;;  %v13045_v36 = vld [vmem:[%s14672_s1 + $0x1b8] sm:$0xff]  }
 0x89a   :  { %v9413_v40 = vpop.f32.mrf.mxu1 }
 0x89b   :  { %v4124_v40 = vcombine.high %v12857_v22, %v12857_v22  ;;  %v13051_v22 = vld [vmem:[%s14672_s1 + $0x1f0] sm:$0xff]  }
 0x89c   :  { %v3682_v11 = vpop.f32.mrf.mxu1 }
 0x89d   :  { %v13057_v11 = vld [vmem:[%s14672_s1 + $0x1b0] sm:$0xff]  }
 0x89e   :  { %v9414_v5 = vpop.f32.mrf.mxu1 }
 0x89f   :  { %v13063_v5 = vld [vmem:[%s14672_s1 + $0x1e8] sm:$0xff]  }
 0x8b8   :  { %v8276_v31 = vpop.f32.mrf.mxu1 }
 0x8ba   :  { %v8277_v26 = vpop.f32.mrf.mxu1 }
 0x8bb   :  { %v8278_v9 = vadd.f32 %v8277_v26, %v8276_v31  ;;  %v13131_v31 = vld [vmem:[%s14672_s1 + $0x180] sm:$0xff]  }
 0x8bc   :  { %v8279_v48 = vpop.f32.mrf.mxu1 }
 0x8bd   :  { %v3838_v25 = vadd.f32 %v8278_v9, %v3798_v59 }
 0x8be   :  { %v8280_v39 = vpop.f32.mrf.mxu1 }
 0x8bf   :  { %v3878_v2 = vadd.f32 %v12792_v53, %v3838_v25  ;;  %v12936_v53 = vld [vmem:[%s14672_s1 + $0x178] sm:$0xff]  }
 0x8c0   :  { %8494 = vmatprep.subr.bf16.mxu0 %v12936_v53 }
 0x8cc   :  { %v8360_v32 = vpop.f32.mrf.mxu0 }
 0x8ce   :  { %v8361_v26 = vpop.f32.mrf.mxu0 }
 0x8cf   :  { %v13137_v59 = vadd.f32 %v8361_v26, %v8360_v32  ;;  %v9919_v32 = vld [vmem:[%s14674_s3 + $0x240] sm:$0xff]  }
 0x8d0   :  { %v8363_v9 = vpop.f32.mrf.mxu0 }
 0x8d2   :  { %v8364_v48 = vpop.f32.mrf.mxu0 }
 0x8d8   :  { %v8320_v34 = vpop.f32.mrf.mxu1 }
 0x8da   :  { %v8321_v10 = vpop.f32.mrf.mxu1 }
 0x8db   :  { %v8322_v12 = vadd.f32 %v8321_v10, %v8320_v34  ;;  %v9912_v34 = vld [vmem:[%s14674_s3 + $0x278] sm:$0xff]   ;;  %v9913_v10 = vld [vmem:[%s14674_s3 + $0x270] sm:$0xff]  }
 0x8dc   :  { %v8323_v6 = vpop.f32.mrf.mxu1 }
 0x8dd   :  { %v3918_v37 = vadd.f32 %v8322_v12, %v3878_v2  ;;  %v9914_v12 = vld [vmem:[%s14674_s3 + $0x268] sm:$0xff]   ;;  %v9915_v6 = vld [vmem:[%s14674_s3 + $0x260] sm:$0xff]  }
 0x8de   :  { %v8324_v0 = vpop.f32.mrf.mxu1 }
 0x8df   :  { %v3958_v42 = vadd.f32 %v12817_v50, %v3918_v37  ;;  %v12957_v50 = vld [vmem:[%s14672_s1 + $0xb0] sm:$0xff]   ;;  %v9916_v37 = vld [vmem:[%s14674_s3 + $0x258] sm:$0xff]  }
 0x8e0   :  { %v9917_v0 = vld [vmem:[%s14674_s3 + $0x250] sm:$0xff]  }
 0x8e1   :  { %v3963_v47 = vmax.f32 %v3958_v42, 0.0 }
 0x8e3   :  { %v3964_v30 = vpack.c.bf16 %v3963_v47, %v3963_v47 }
 0x8e5   :  { %9452 = vmatmul.mubr.bf16.vlgmr.msra.gmra.mxu1 %v3964_v30 }
 0x8e6   :  { %8367 = vmatpush3.bf16.msra.mxu1 %v12945_v46  ;;  %4220 = vmatprep.mubr.bf16.mxu1 %v4123_v1  ;;  %v9918_v1 = vld [vmem:[%s14674_s3 + $0x248] sm:$0xff]  }
 0x8e7   :  { %8368 = vmatprep.subr.bf16.mxu1 %v12951_v3 }
 0x8ea   :  { %8369 = vmatpush3.bf16.msra.mxu1 %v12957_v50 }
 0x8eb   :  { %8370 = vmatprep.subr.bf16.mxu1 %v12963_v61 }
 0x8ed   :  { %v8404_v52 = vpop.f32.mrf.mxu0 }
 0x8ee   :  { %8371 = vmatpush3.bf16.msra.mxu1 %v12969_v17 }
 0x8ef   :  { %8372 = vmatprep.subr.bf16.mxu1 %v12975_v45  ;;  %v8405_v57 = vpop.f32.mrf.mxu0 }
 0x8f0   :  { %v13139_v25 = vadd.f32 %v8405_v57, %v8404_v52  ;;  %v13190_v52 = vld [vmem:[%s14672_s1 + $0x138] sm:$0xff]   ;;  %v13196_v57 = vld [vmem:[%s14672_s1 + $0x170] sm:$0xff]  }
 0x8f1   :  { %v8407_v39 = vpop.f32.mrf.mxu0 }
 0x8f2   :  { %8373 = vmatpush3.bf16.msra.mxu1 %v12981_v24  ;;  %v13202_v39 = vld [vmem:[%s14672_s1 + $0x130] sm:$0xff]  }
 0x8f3   :  { %8374 = vmatprep.subr.bf16.mxu1 %v12987_v15  ;;  %v8408_v2 = vpop.f32.mrf.mxu0 }
 0x8f4   :  { %v13208_v2 = vld [vmem:[%s14672_s1 + $0x168] sm:$0xff]  }
 0x8f6   :  { %8375 = vmatpush3.bf16.msra.mxu1 %v12993_v20 }
 0x8f7   :  { %8376 = vmatprep.subr.bf16.mxu1 %v12999_v63 }
 0x8fa   :  { %8377 = vmatpush3.bf16.msra.mxu1 %v13005_v38 }
 0x8fb   :  { %8378 = vmatprep.subr.bf16.mxu1 %v13011_v18 }
 0x8fe   :  { %8379 = vmatpush3.bf16.msra.mxu1 %v13017_v62 }
 0x8ff   :  { %8380 = vmatprep.subr.bf16.mxu1 %v13023_v13 }
 0x902   :  { %8381 = vmatpush3.bf16.msra.mxu1 %v13031_v4 }
 0x903   :  { %8410 = vmatprep.subr.bf16.mxu1 %v13039_v21 }
 0x905   :  { %4221 = vmatmul.mubr.bf16.vlgmr.msra.gmra.mxu1 %v4121_v8  ;;  %v7218_v8 = vld [vmem:[%s14673_s0 + $0x5a] sm:$0xff] }
 0x906   :  { %8411 = vmatpush3.bf16.msra.mxu1 %v13045_v36  ;;  %4300 = vmatprep.mubr.bf16.mxu1 %v4124_v40  ;;  %v4468_v40 = vrot.slane %v7218_v8, %v10494_v35 }
 0x907   :  { %8412 = vmatprep.subr.bf16.mxu1 %v13051_v22 }
 0x908   :  { %v4476_v26 = vcombine.high %v4468_v40, %v4468_v40  ;;  %v13183_v48 = vrot.slane %v4468_v40, %v10494_v35  ;;  %v13262_v40 = vld [vmem:[%s14672_s1 + $0x108] sm:$0xff]  }
 0x909   :  { %15165 = vst [vmem:[#allocation34_spill] sm:$0xff] %v13262_v40 }
 0x90a   :  { %8413 = vmatpush3.bf16.msra.mxu1 %v13057_v11  ;;  %v13179_v9 = vrot.slane %v4476_v26, %v10494_v35 }
 0x90b   :  { %8414 = vmatprep.subr.bf16.mxu1 %v13063_v5 }
 0x90c   :  { %4565 = vmatprep.mubr.bf16.mxu0 %v13179_v9 }
 0x90d   :  { %v13164_v42 = vpop.f32.mrf.mxu0  ;;  %4566 = vmatmul.mubr.bf16.vlgmr.msra.gmra.mxu0 %v13183_v48 }
 0x90e   :  { %8415 = vmatpush3.bf16.msra.mxu1 %v13069_v54  ;;  %8495 = vmatpush3.bf16.msra.mxu0 %v13190_v52 }
 0x90f   :  { %8416 = vmatprep.subr.bf16.mxu1 %v13075_v55  ;;  %v9473_v47 = vpop.f32.mrf.mxu0  ;;  %8496 = vmatprep.subr.bf16.mxu0 %v13196_v57 }
 0x910   :  { %v13250_v47 = vld [vmem:[%s14672_s1 + $0x110] sm:$0xff]  }
 0x911   :  { %v4345_v30 = vpop.f32.mrf.mxu0  ;;  %15163 = vst [vmem:[#allocation31_spill] sm:$0xff] %v13250_v47 }
 0x912   :  { %8417 = vmatpush3.bf16.msra.mxu1 %v13081_v56  ;;  %8497 = vmatpush3.bf16.msra.mxu0 %v13202_v39  ;;  %v4461_v30 = vcombine.high %v7218_v8, %v7218_v8  ;;  %v13275_v8 = vld [vmem:[%s14672_s1 + $0x100] sm:$0xff]  }
 0x913   :  { %8418 = vmatprep.subr.bf16.mxu1 %v13087_v49  ;;  %8498 = vmatprep.subr.bf16.mxu0 %v13208_v2  ;;  %15167 = vst [vmem:[#allocation37_spill] sm:$0xff] %v13275_v8 }
 0x916   :  { %8419 = vmatpush3.bf16.msra.mxu1 %v13093_v23 }
 0x917   :  { %8420 = vmatprep.subr.bf16.mxu1 %v13099_v16 }
 0x91a   :  { %8421 = vmatpush3.bf16.msra.mxu1 %v13105_v60 }
 0x91b   :  { %8422 = vmatprep.subr.bf16.mxu1 %v13111_v44 }
 0x91e   :  { %8423 = vmatpush3.bf16.msra.mxu1 %v13117_v51 }
 0x91f   :  { %8424 = vmatprep.subr.bf16.mxu1 %v13123_v14 }
 0x922   :  { %8425 = vmatpush3.bf16.msra.mxu1 %v13131_v31 }
 0x923   :  { %9475 = vmatprep.subr.bf16.mxu1 %v14967_v27 }
 0x925   :  { %4301 = vmatmul.mubr.bf16.vlgmr.msra.gmra.mxu1 %v4122_v28  ;;  %v9474_v28 = vpop.f32.mrf.mxu0 }
 0x926   :  { %9491 = vmatprep.mubr.msk.bf16.mxu1 %vm10275_vm0, %v14967_v27  ;;  %9476 = vmatpush3.bf16.msra.mxu1 %v9912_v34  ;;  %v13214_v34 = vld [vmem:[%s14672_s1 + $0x128] sm:$0xff]   ;;  %v13268_v28 = vld [vmem:[%s14672_s1 + $0x140] sm:$0xff]  }
 0x927   :  { %9477 = vmatprep.subr.bf16.mxu1 %v14967_v27  ;;  %8499 = vmatpush3.bf16.msra.mxu0 %v13214_v34  ;;  %15166 = vst [vmem:[#allocation13_spill] sm:$0xff] %v13268_v28 }
 0x92a   :  { %9478 = vmatpush3.bf16.msra.mxu1 %v9913_v10  ;;  %v13220_v10 = vld [vmem:[%s14672_s1 + $0x160] sm:$0xff]  }
 0x92b   :  { %9479 = vmatprep.subr.bf16.mxu1 %v14967_v27  ;;  %15158 = vst [vmem:[#allocation26_spill] sm:$0xff] %v13220_v10  ;;  %8500 = vmatprep.subr.bf16.mxu0 %v13220_v10 }
 0x92e   :  { %9480 = vmatpush3.bf16.msra.mxu1 %v9914_v12  ;;  %v13226_v12 = vld [vmem:[%s14672_s1 + $0x120] sm:$0xff]  }
 0x92f   :  { %9481 = vmatprep.subr.bf16.mxu1 %v14967_v27  ;;  %15159 = vst [vmem:[#allocation27_spill] sm:$0xff] %v13226_v12  ;;  %8501 = vmatpush3.bf16.msra.mxu0 %v13226_v12 }
 0x932   :  { %9482 = vmatpush3.bf16.msra.mxu1 %v9915_v6  ;;  %v13232_v6 = vld [vmem:[%s14672_s1 + $0x158] sm:$0xff]  }
 0x933   :  { %9483 = vmatprep.subr.bf16.mxu1 %v14967_v27  ;;  %15160 = vst [vmem:[#allocation28_spill] sm:$0xff] %v13232_v6  ;;  %8502 = vmatprep.subr.bf16.mxu0 %v13232_v6 }
 0x936   :  { %9484 = vmatpush3.bf16.msra.mxu1 %v9916_v37  ;;  %v13238_v37 = vld [vmem:[%s14672_s1 + $0x118] sm:$0xff]  }
 0x937   :  { %9485 = vmatprep.subr.bf16.mxu1 %v14967_v27  ;;  %15161 = vst [vmem:[#allocation29_spill] sm:$0xff] %v13238_v37  ;;  %8503 = vmatpush3.bf16.msra.mxu0 %v13238_v37 }
 0x93a   :  { %9486 = vmatpush3.bf16.msra.mxu1 %v9917_v0  ;;  %v13244_v0 = vld [vmem:[%s14672_s1 + $0x150] sm:$0xff]  }
 0x93b   :  { %9487 = vmatprep.subr.bf16.mxu1 %v14967_v27  ;;  %15162 = vst [vmem:[#allocation30_spill] sm:$0xff] %v13244_v0  ;;  %8504 = vmatprep.subr.bf16.mxu0 %v13244_v0 }
 0x93c   :  { %8505 = vmatpush3.bf16.msra.mxu0 %v13250_v47 }
 0x93e   :  { %9488 = vmatpush3.bf16.msra.mxu1 %v9918_v1  ;;  %v13256_v1 = vld [vmem:[%s14672_s1 + $0x148] sm:$0xff]  }
 0x93f   :  { %9489 = vmatprep.subr.bf16.mxu1 %v14967_v27  ;;  %15164 = vst [vmem:[#allocation32_spill] sm:$0xff] %v13256_v1  ;;  %8506 = vmatprep.subr.bf16.mxu0 %v13256_v1 }
 0x940   :  { %8507 = vmatpush3.bf16.msra.mxu0 %v13262_v40 }
 0x941   :  { %8508 = vmatprep.subr.bf16.mxu0 %v13268_v28 }
 0x942   :  { %9490 = vmatpush3.bf16.msra.mxu1 %v9919_v32  ;;  %v4475_v32 = vrot.slane %v4461_v30, %v10494_v35  ;;  %v13290_v30 = vld [vmem:[%s14672_s1 + $0x238] sm:$0xff]  }
 0x943   :  { %8472 = vmatprep.subr.bf16.mxu1 %v12670_v19  ;;  %15168 = vst [vmem:[#allocation38_spill] sm:$0xff] %v13290_v30 }
 0x944   :  { %v4477_v26 = vcombine.high %v4475_v32, %v4475_v32  ;;  %8509 = vmatpush3.bf16.msra.mxu0 %v13275_v8  ;;  %v13283_v40 = vrot.slane %v4475_v32, %v10494_v35  ;;  %v13299_v32 = vld [vmem:[%s14672_s1 + $0x230] sm:$0xff]  }
 0x945   :  { %9495 = vmatprep.subr.bf16.mxu0 %v14967_v27  ;;  %15169 = vst [vmem:[#allocation4_spill] sm:$0xff] %v13299_v32 }
 0x946   :  { %v13279_v1 = vrot.slane %v4477_v26, %v10494_v35  ;;  %v13306_v26 = vld [vmem:[%s14672_s1 + $0x228] sm:$0xff]  }
 0x947   :  { %15170 = vst [vmem:[#allocation44_spill] sm:$0xff] %v13306_v26 }
 0x948   :  { %4645 = vmatprep.mubr.bf16.mxu0 %v13279_v1 }
 0x949   :  { %4646 = vmatmul.mubr.bf16.vlgmr.msra.gmra.mxu0 %v13283_v40 }
 0x94a   :  { %9496 = vmatpush3.bf16.msra.mxu0 %v13290_v30  ;;  %9511 = vmatprep.mubr.msk.bf16.mxu0 %vm10275_vm0, %v14967_v27  ;;  %v13313_v30 = vld [vmem:[%s14672_s1 + $0x220] sm:$0xff]  }
 0x94b   :  { %9497 = vmatprep.subr.bf16.mxu0 %v14967_v27  ;;  %15171 = vst [vmem:[#allocation3_spill] sm:$0xff] %v13313_v30 }
 0x94e   :  { %9498 = vmatpush3.bf16.msra.mxu0 %v13299_v32  ;;  %v13320_v32 = vld [vmem:[%s14672_s1 + $0x218] sm:$0xff]  }
 0x94f   :  { %9499 = vmatprep.subr.bf16.mxu0 %v14967_v27  ;;  %15172 = vst [vmem:[#allocation42_spill] sm:$0xff] %v13320_v32 }
 0x952   :  { %9500 = vmatpush3.bf16.msra.mxu0 %v13306_v26 }
 0x953   :  { %9501 = vmatprep.subr.bf16.mxu0 %v14967_v27 }
 0x956   :  { %9502 = vmatpush3.bf16.msra.mxu0 %v13313_v30  ;;  %v13330_v30 = vld [vmem:[%s14672_s1 + $0x210] sm:$0xff]  }
 0x957   :  { %9503 = vmatprep.subr.bf16.mxu0 %v14967_v27  ;;  %15174 = vst [vmem:[#allocation6_spill] sm:$0xff] %v13330_v30 }
 0x95a   :  { %9504 = vmatpush3.bf16.msra.mxu0 %v13320_v32  ;;  %v13337_v32 = vld [vmem:[%s14672_s1 + $0x208] sm:$0xff]  }
 0x95b   :  { %9505 = vmatprep.subr.bf16.mxu0 %v14967_v27  ;;  %15175 = vst [vmem:[#allocation7_spill] sm:$0xff] %v13337_v32 }
 0x95e   :  { %9506 = vmatpush3.bf16.msra.mxu0 %v13330_v30  ;;  %v13423_v30 = vld [vmem:[%s14672_s1 + $0x48] sm:$0xff]  }
 0x95f   :  { %9507 = vmatprep.subr.bf16.mxu0 %v14967_v27  ;;  %15188 = vst [vmem:[#allocation45_spill] sm:$0xff] %v13423_v30 }
 0x962   :  { %9508 = vmatpush3.bf16.msra.mxu0 %v13337_v32  ;;  %v13417_v32 = vld [vmem:[%s14672_s1 + $0x10] sm:$0xff]  }
 0x963   :  { %9509 = vmatprep.subr.bf16.mxu0 %v14967_v27  ;;  %15187 = vst [vmem:[#allocation36_spill] sm:$0xff] %v13417_v32 }
 0x9a5   :  { %v4064_v8 = vpop.f32.mrf.mxu1 }
 0x9a6   :  { %v13325_v26 = vadd.f32 %v4064_v8, %v12878_v7  ;;  %v7220_v7 = vld.sshfl [vmem:[%s14673_s0 + $0x62] sm:$0x1 pattern:$0x75316420]  ;;  %v13361_v8 = vld [vmem:[%s14672_s1 + $0x70] sm:$0xff]  }
 0x9a7   :  { %v9453_v28 = vpop.f32.mrf.mxu1  ;;  %15178 = vst [vmem:[#allocation10_spill] sm:$0xff] %v13361_v8 }
 0x9a8   :  { %15173 = vst [vmem:[#allocation5_spill] sm:$0xff] %v13325_v26  ;;  %v13355_v28 = vld [vmem:[%s14672_s1 + $0x38] sm:$0xff]  }
 0x9a9   :  { %v4067_v47 = vpop.f32.mrf.mxu1  ;;  %15177 = vst [vmem:[#allocation9_spill] sm:$0xff] %v13355_v28 }
 0x9aa   :  { %v13347_v47 = vld [vmem:[%s14672_s1 + $0x200] sm:$0xff]  }
 0x9ab   :  { %v9454_v0 = vpop.f32.mrf.mxu1  ;;  %15176 = vst [vmem:[#allocation8_spill] sm:$0xff] %v13347_v47  ;;  %9510 = vmatpush3.bf16.msra.mxu0 %v13347_v47  ;;  %v4183_v47 = vadd.f32 %v12908_v41, %v13137_v59 }
 0x9ac   :  { %v4523_v0 = vrot.slane %v7220_v7, %v10494_v35  ;;  %8556 = vmatprep.subr.bf16.mxu0 %v12892_v58  ;;  %v13367_v7 = vld [vmem:[%s14672_s1 + $0x30] sm:$0xff]  }
 0x9ad   :  { %15179 = vst [vmem:[#allocation11_spill] sm:$0xff] %v13367_v7  ;;  %v13409_v58 = vld [vmem:[%s14672_s1 + $0x50] sm:$0xff]  }
 0x9ae   :  { %9512 = vmatmul.mubr.bf16.vlgmr.msra.gmra.mxu0 %v4523_v0  ;;  %v13373_v0 = vld [vmem:[%s14672_s1 + $0x68] sm:$0xff]   ;;  %15186 = vst [vmem:[#allocation35_spill] sm:$0xff] %v13409_v58 }
 0x9af   :  { %8557 = vmatpush3.bf16.msra.mxu0 %v13355_v28  ;;  %15180 = vst [vmem:[#allocation12_spill] sm:$0xff] %v13373_v0  ;;  %v13379_v28 = vld [vmem:[%s14672_s1 + $0x28] sm:$0xff]  }
 0x9b0   :  { %8558 = vmatprep.subr.bf16.mxu0 %v13361_v8  ;;  %15181 = vst [vmem:[#allocation39_spill] sm:$0xff] %v13379_v28  ;;  %v13385_v8 = vld [vmem:[%s14672_s1 + $0x60] sm:$0xff]  }
 0x9b1   :  { %15182 = vst [vmem:[#allocation41_spill] sm:$0xff] %v13385_v8 }
 0x9b3   :  { %8559 = vmatpush3.bf16.msra.mxu0 %v13367_v7  ;;  %v13391_v7 = vld [vmem:[%s14672_s1 + $0x20] sm:$0xff]  }
 0x9b4   :  { %8560 = vmatprep.subr.bf16.mxu0 %v13373_v0  ;;  %15183 = vst [vmem:[#allocation46_spill] sm:$0xff] %v13391_v7  ;;  %v13397_v0 = vld [vmem:[%s14672_s1 + $0x58] sm:$0xff]  }
 0x9b5   :  { %15184 = vst [vmem:[#allocation2_spill] sm:$0xff] %v13397_v0 }
 0x9b7   :  { %8561 = vmatpush3.bf16.msra.mxu0 %v13379_v28  ;;  %v13403_v28 = vld [vmem:[%s14672_s1 + $0x18] sm:$0xff]  }
 0x9b8   :  { %8562 = vmatprep.subr.bf16.mxu0 %v13385_v8  ;;  %15185 = vst [vmem:[#allocation33_spill] sm:$0xff] %v13403_v28 }
 0x9bb   :  { %8563 = vmatpush3.bf16.msra.mxu0 %v13391_v7 }
 0x9bc   :  { %8564 = vmatprep.subr.bf16.mxu0 %v13397_v0 }
 0x9bf   :  { %8565 = vmatpush3.bf16.msra.mxu0 %v13403_v28 }
 0x9c0   :  { %8566 = vmatprep.subr.bf16.mxu0 %v13409_v58 }
 0x9c3   :  { %8567 = vmatpush3.bf16.msra.mxu0 %v13417_v32 }
 0x9c4   :  { %8568 = vmatprep.subr.bf16.mxu0 %v13423_v30 }
 0x9c5   :  { %v8382_v8 = vpop.f32.mrf.mxu1 }
 0x9c7   :  { %v8383_v7 = vpop.f32.mrf.mxu1  ;;  %8569 = vmatpush3.bf16.msra.mxu0 %v12918_v33 }
 0x9c8   :  { %v8384_v0 = vadd.f32 %v8383_v7, %v8382_v8  ;;  %8570 = vmatprep.subr.bf16.mxu0 %v12924_v43 }
 0x9c9   :  { %v8385_v28 = vpop.f32.mrf.mxu1 }
 0x9ca   :  { %v4223_v58 = vadd.f32 %v8384_v0, %v4183_v47 }
 0x9cb   :  { %v8386_v26 = vpop.f32.mrf.mxu1  ;;  %8571 = vmatpush3.bf16.msra.mxu0 %v12930_v29 }
 0x9cc   :  { %v4263_v59 = vadd.f32 %v13139_v25, %v4223_v58  ;;  %8600 = vmatprep.subr.bf16.mxu0 %v12936_v53  ;;  %v4508_v58 = vcombine.high %v13179_v9, %v13179_v9  ;;  %v4507_v9 = vcombine.high %v13283_v40, %v13283_v40 }
 0x9e5   :  { %v8426_v28 = vpop.f32.mrf.mxu1 }
 0x9e7   :  { %v8427_v8 = vpop.f32.mrf.mxu1 }
 0x9e8   :  { %v8428_v7 = vadd.f32 %v8427_v8, %v8426_v28  ;;  %v9921_v8 = vld [vmem:[%s14674_s3 + $0x2b8] sm:$0xff]  }
 0x9e9   :  { %v8429_v32 = vpop.f32.mrf.mxu1 }
 0x9ea   :  { %v4303_v41 = vadd.f32 %v8428_v7, %v4263_v59  ;;  %v9922_v7 = vld [vmem:[%s14674_s3 + $0x2b0] sm:$0xff]  }
 0x9eb   :  { %v8430_v37 = vpop.f32.mrf.mxu1 }
 0x9ec   :  { %v4343_v30 = vadd.f32 %v13164_v42, %v4303_v41  ;;  %v4506_v41 = vcombine.high %v13183_v48, %v13183_v48  ;;  %v4509_v42 = vcombine.high %v13279_v1, %v13279_v1  ;;  %v8466_v48 = vpop.f32.mrf.mxu0 }
 0x9ee   :  { %v4348_v47 = vmax.f32 %v4343_v30, 0.0  ;;  %v8467_v37 = vpop.f32.mrf.mxu0 }
 0x9ef   :  { %v13474_v1 = vadd.f32 %v8467_v37, %v8466_v48  ;;  %v9927_v48 = vld [vmem:[%s14674_s3 + $0x288] sm:$0xff]  }
 0x9f0   :  { %v4349_v25 = vpack.c.bf16 %v4348_v47, %v4348_v47  ;;  %v8469_v30 = vpop.f32.mrf.mxu0  ;;  %v9923_v47 = vld [vmem:[%s14674_s3 + $0x2a8] sm:$0xff]  }
 0x9f1   :  { %v7245_v30 = vld [vmem:[%s14673_s0 + $0x63] sm:$0xff] }
 0x9f2   :  { %9492 = vmatmul.mubr.bf16.vlgmr.msra.gmra.mxu1 %v4349_v25  ;;  %v8470_v32 = vpop.f32.mrf.mxu0  ;;  %v9925_v25 = vld [vmem:[%s14674_s3 + $0x298] sm:$0xff]  }
 0x9f3   :  { %8473 = vmatpush3.bf16.msra.mxu1 %v12945_v46  ;;  %4605 = vmatprep.mubr.bf16.mxu1 %v4508_v58  ;;  %v9924_v58 = vld [vmem:[%s14674_s3 + $0x2a0] sm:$0xff]   ;;  %v4853_v32 = vrot.slane %v7245_v30, %v10494_v35 }
 0x9f4   :  { %8474 = vmatprep.subr.bf16.mxu1 %v12951_v3 }
 0x9f7   :  { %8475 = vmatpush3.bf16.msra.mxu1 %v12957_v50 }
 0x9f8   :  { %8476 = vmatprep.subr.bf16.mxu1 %v12963_v61 }
 0x9fb   :  { %8477 = vmatpush3.bf16.msra.mxu1 %v12969_v17 }
 0x9fc   :  { %8478 = vmatprep.subr.bf16.mxu1 %v12975_v45 }
 0x9ff   :  { %8479 = vmatpush3.bf16.msra.mxu1 %v12981_v24 }
 0xa00   :  { %8480 = vmatprep.subr.bf16.mxu1 %v12987_v15 }
 0xa03   :  { %8481 = vmatpush3.bf16.msra.mxu1 %v12993_v20 }
 0xa04   :  { %8482 = vmatprep.subr.bf16.mxu1 %v12999_v63 }
 0xa07   :  { %8483 = vmatpush3.bf16.msra.mxu1 %v13005_v38 }
 0xa08   :  { %8484 = vmatprep.subr.bf16.mxu1 %v13011_v18 }
 0xa09   :  { %v8510_v26 = vpop.f32.mrf.mxu0 }
 0xa0b   :  { %8485 = vmatpush3.bf16.msra.mxu1 %v13017_v62  ;;  %v8511_v0 = vpop.f32.mrf.mxu0 }
 0xa0c   :  { %8486 = vmatprep.subr.bf16.mxu1 %v13023_v13  ;;  %v13476_v59 = vadd.f32 %v8511_v0, %v8510_v26  ;;  %v9928_v0 = vld [vmem:[%s14674_s3 + $0x280] sm:$0xff]  }
 0xa0d   :  { %v8513_v28 = vpop.f32.mrf.mxu0 }
 0xa0e   :  { %v4861_v28 = vcombine.high %v4853_v32, %v4853_v32 }
 0xa0f   :  { %8487 = vmatpush3.bf16.msra.mxu1 %v13031_v4  ;;  %v8514_v40 = vpop.f32.mrf.mxu0 }
 0xa10   :  { %8516 = vmatprep.subr.bf16.mxu1 %v13039_v21  ;;  %v13516_v40 = vrot.slane %v4861_v28, %v10494_v35  ;;  %v15197_v28 = vld [vmem:[#allocation4_spill] sm:$0xff] }
 0xa12   :  { %4606 = vmatmul.mubr.bf16.vlgmr.msra.gmra.mxu1 %v4506_v41  ;;  %v9926_v41 = vld [vmem:[%s14674_s3 + $0x290] sm:$0xff]   ;;  %4950 = vmatprep.mubr.bf16.mxu0 %v13516_v40 }
 0xa13   :  { %8517 = vmatpush3.bf16.msra.mxu1 %v13045_v36  ;;  %4685 = vmatprep.mubr.bf16.mxu1 %v4509_v42 }
 0xa14   :  { %8518 = vmatprep.subr.bf16.mxu1 %v13051_v22 }
 0xa17   :  { %8519 = vmatpush3.bf16.msra.mxu1 %v13057_v11 }
 0xa18   :  { %8520 = vmatprep.subr.bf16.mxu1 %v13063_v5 }
 0xa1b   :  { %8521 = vmatpush3.bf16.msra.mxu1 %v13069_v54 }
 0xa1c   :  { %8522 = vmatprep.subr.bf16.mxu1 %v13075_v55 }
 0xa1f   :  { %8523 = vmatpush3.bf16.msra.mxu1 %v13081_v56 }
 0xa20   :  { %8524 = vmatprep.subr.bf16.mxu1 %v13087_v49 }
 0xa23   :  { %8525 = vmatpush3.bf16.msra.mxu1 %v13093_v23 }
 0xa24   :  { %8526 = vmatprep.subr.bf16.mxu1 %v13099_v16 }
 0xa27   :  { %8527 = vmatpush3.bf16.msra.mxu1 %v13105_v60 }
 0xa28   :  { %8528 = vmatprep.subr.bf16.mxu1 %v13111_v44 }
 0xa2b   :  { %8529 = vmatpush3.bf16.msra.mxu1 %v13117_v51 }
 0xa2c   :  { %8530 = vmatprep.subr.bf16.mxu1 %v13123_v14 }
 0xa2f   :  { %8531 = vmatpush3.bf16.msra.mxu1 %v13131_v31 }
 0xa30   :  { %9515 = vmatprep.subr.bf16.mxu1 %v14967_v27 }
 0xa32   :  { %4686 = vmatmul.mubr.bf16.vlgmr.msra.gmra.mxu1 %v4507_v9 }
 0xa33   :  { %9531 = vmatprep.mubr.msk.bf16.mxu1 %vm10275_vm0, %v14967_v27  ;;  %9516 = vmatpush3.bf16.msra.mxu1 %v9921_v8  ;;  %v13520_v8 = vrot.slane %v4853_v32, %v10494_v35  ;;  %v15195_v32 = vld [vmem:[#allocation37_spill] sm:$0xff] }
 0xa34   :  { %9517 = vmatprep.subr.bf16.mxu1 %v14967_v27 }
 0xa35   :  { %4951 = vmatmul.mubr.bf16.vlgmr.msra.gmra.mxu0 %v13520_v8 }
 0xa36   :  { %8601 = vmatpush3.bf16.msra.mxu0 %v13190_v52 }
 0xa37   :  { %9518 = vmatpush3.bf16.msra.mxu1 %v9922_v7  ;;  %8602 = vmatprep.subr.bf16.mxu0 %v13196_v57  ;;  %v15190_v7 = vld [vmem:[#allocation30_spill] sm:$0xff] }
 0xa38   :  { %9519 = vmatprep.subr.bf16.mxu1 %v14967_v27 }
 0xa3a   :  { %8603 = vmatpush3.bf16.msra.mxu0 %v13202_v39 }
 0xa3b   :  { %9520 = vmatpush3.bf16.msra.mxu1 %v9923_v47  ;;  %8604 = vmatprep.subr.bf16.mxu0 %v13208_v2  ;;  %v15191_v47 = vld [vmem:[#allocation31_spill] sm:$0xff] }
 0xa3c   :  { %9521 = vmatprep.subr.bf16.mxu1 %v14967_v27 }
 0xa3e   :  { %8605 = vmatpush3.bf16.msra.mxu0 %v13214_v34 }
 0xa3f   :  { %9522 = vmatpush3.bf16.msra.mxu1 %v9924_v58  ;;  %8606 = vmatprep.subr.bf16.mxu0 %v13220_v10  ;;  %v15192_v58 = vld [vmem:[#allocation32_spill] sm:$0xff] }
 0xa40   :  { %9523 = vmatprep.subr.bf16.mxu1 %v14967_v27 }
 0xa42   :  { %8607 = vmatpush3.bf16.msra.mxu0 %v13226_v12 }
 0xa43   :  { %9524 = vmatpush3.bf16.msra.mxu1 %v9925_v25  ;;  %8608 = vmatprep.subr.bf16.mxu0 %v13232_v6  ;;  %v4846_v25 = vcombine.high %v7245_v30, %v7245_v30  ;;  %v15196_v30 = vld [vmem:[#allocation38_spill] sm:$0xff]  ;;  %v15218_v6 = vld [vmem:[#allocation36_spill] sm:$0xff] }
 0xa44   :  { %9525 = vmatprep.subr.bf16.mxu1 %v14967_v27 }
 0xa47   :  { %9526 = vmatpush3.bf16.msra.mxu1 %v9926_v41  ;;  %v15193_v41 = vld [vmem:[#allocation34_spill] sm:$0xff] }
 0xa48   :  { %9527 = vmatprep.subr.bf16.mxu1 %v14967_v27 }
 0xa4b   :  { %9528 = vmatpush3.bf16.msra.mxu1 %v9927_v48  ;;  %v4860_v48 = vrot.slane %v4846_v25, %v10494_v35  ;;  %v15198_v25 = vld [vmem:[#allocation44_spill] sm:$0xff] }
 0xa4c   :  { %9529 = vmatprep.subr.bf16.mxu1 %v14967_v27 }
 0xa4f   :  { %9530 = vmatpush3.bf16.msra.mxu1 %v9928_v0  ;;  %v13545_v0 = vrot.slane %v4860_v48, %v10494_v35 }
 0xa50   :  { %8578 = vmatprep.subr.bf16.mxu1 %v12670_v19  ;;  %v15189_v19 = vld [vmem:[#allocation29_spill] sm:$0xff] }
 0xa51   :  { %8609 = vmatpush3.bf16.msra.mxu0 %v15189_v19 }
 0xa52   :  { %8610 = vmatprep.subr.bf16.mxu0 %v15190_v7  ;;  %v15213_v7 = vld [vmem:[#allocation46_spill] sm:$0xff] }
 0xa55   :  { %8611 = vmatpush3.bf16.msra.mxu0 %v15191_v47  ;;  %v15204_v47 = vld [vmem:[#allocation7_spill] sm:$0xff] }
 0xa56   :  { %8612 = vmatprep.subr.bf16.mxu0 %v15192_v58 }
 0xa59   :  { %8613 = vmatpush3.bf16.msra.mxu0 %v15193_v41 }
 0xa6e   :  { %v13501_v42 = vpop.f32.mrf.mxu0 }
 0xa70   :  { %v9513_v9 = vpop.f32.mrf.mxu0 }
 0xa71   :  { %v15194_v9 = vld [vmem:[#allocation13_spill] sm:$0xff] }
 0xa72   :  { %v4730_v37 = vpop.f32.mrf.mxu0  ;;  %8614 = vmatprep.subr.bf16.mxu0 %v15194_v9 }
 0xa73   :  { %v4862_v37 = vcombine.high %v4860_v48, %v4860_v48  ;;  %8615 = vmatpush3.bf16.msra.mxu0 %v15195_v32  ;;  %v15199_v48 = vld [vmem:[#allocation3_spill] sm:$0xff]  ;;  %v15201_v32 = vld [vmem:[#allocation5_spill] sm:$0xff] }
 0xa74   :  { %v9514_v26 = vpop.f32.mrf.mxu0  ;;  %9535 = vmatprep.subr.bf16.mxu0 %v14967_v27 }
 0xa75   :  { %v13541_v26 = vrot.slane %v4862_v37, %v10494_v35  ;;  %v15200_v37 = vld [vmem:[#allocation42_spill] sm:$0xff] }
 0xa77   :  { %5030 = vmatprep.mubr.bf16.mxu0 %v13541_v26 }
 0xa78   :  { %5031 = vmatmul.mubr.bf16.vlgmr.msra.gmra.mxu0 %v13545_v0 }
 0xa79   :  { %9536 = vmatpush3.bf16.msra.mxu0 %v15196_v30  ;;  %9551 = vmatprep.mubr.msk.bf16.mxu0 %vm10275_vm0, %v14967_v27 }
 0xa7a   :  { %9537 = vmatprep.subr.bf16.mxu0 %v14967_v27 }
 0xa7d   :  { %9538 = vmatpush3.bf16.msra.mxu0 %v15197_v28  ;;  %v15203_v28 = vld [vmem:[#allocation6_spill] sm:$0xff] }
 0xa7e   :  { %9539 = vmatprep.subr.bf16.mxu0 %v14967_v27 }
 0xa81   :  { %9540 = vmatpush3.bf16.msra.mxu0 %v15198_v25 }
 0xa82   :  { %9541 = vmatprep.subr.bf16.mxu0 %v14967_v27 }
 0xa85   :  { %9542 = vmatpush3.bf16.msra.mxu0 %v15199_v48  ;;  %v15205_v48 = vld [vmem:[#allocation8_spill] sm:$0xff] }
 0xa86   :  { %9543 = vmatprep.subr.bf16.mxu0 %v14967_v27 }
 0xa89   :  { %9544 = vmatpush3.bf16.msra.mxu0 %v15200_v37  ;;  %v7247_v37 = vld.sshfl [vmem:[%s14673_s0 + $0x6b] sm:$0x1 pattern:$0x75316420] }
 0xa8a   :  { %9545 = vmatprep.subr.bf16.mxu0 %v14967_v27 }
 0xa8d   :  { %9546 = vmatpush3.bf16.msra.mxu0 %v15203_v28  ;;  %v15211_v28 = vld [vmem:[#allocation39_spill] sm:$0xff] }
 0xa8e   :  { %9547 = vmatprep.subr.bf16.mxu0 %v14967_v27 }
 0xa91   :  { %9548 = vmatpush3.bf16.msra.mxu0 %v15204_v47  ;;  %v15210_v47 = vld [vmem:[#allocation12_spill] sm:$0xff] }
 0xa92   :  { %9549 = vmatprep.subr.bf16.mxu0 %v14967_v27 }
 0xa95   :  { %9550 = vmatpush3.bf16.msra.mxu0 %v15205_v48  ;;  %v15214_v48 = vld [vmem:[#allocation2_spill] sm:$0xff] }
 0xab2   :  { %v4449_v30 = vpop.f32.mrf.mxu1 }
 0xab3   :  { %v13562_v9 = vadd.f32 %v4449_v30, %v15201_v32  ;;  %v4908_v32 = vrot.slane %v7247_v37, %v10494_v35  ;;  %v15206_v30 = vld [vmem:[#allocation24_spill] sm:$0xff]  ;;  %v15215_v37 = vld [vmem:[#allocation33_spill] sm:$0xff] }
 0xab4   :  { %v9493_v41 = vpop.f32.mrf.mxu1  ;;  %8662 = vmatprep.subr.bf16.mxu0 %v15206_v30 }
 0xab5   :  { %15202 = vst [vmem:[#allocation14_spill] sm:$0xff] %v13562_v9  ;;  %9552 = vmatmul.mubr.bf16.vlgmr.msra.gmra.mxu0 %v4908_v32  ;;  %v15207_v41 = vld [vmem:[#allocation9_spill] sm:$0xff]  ;;  %v15216_v32 = vld [vmem:[#allocation35_spill] sm:$0xff] }
 0xab6   :  { %v4452_v58 = vpop.f32.mrf.mxu1  ;;  %8663 = vmatpush3.bf16.msra.mxu0 %v15207_v41  ;;  %v15212_v9 = vld [vmem:[#allocation41_spill] sm:$0xff] }
 0xab7   :  { %v15208_v58 = vld [vmem:[#allocation10_spill] sm:$0xff] }
 0xab8   :  { %v9494_v25 = vpop.f32.mrf.mxu1  ;;  %8664 = vmatprep.subr.bf16.mxu0 %v15208_v58  ;;  %v15217_v58 = vld [vmem:[#allocation25_spill] sm:$0xff] }
 0xab9   :  { %v15209_v25 = vld [vmem:[#allocation11_spill] sm:$0xff]  ;;  %v4568_v19 = vadd.f32 %v15217_v58, %v13474_v1 }
 0xaba   :  { %8665 = vmatpush3.bf16.msra.mxu0 %v15209_v25 }
 0xabb   :  { %8666 = vmatprep.subr.bf16.mxu0 %v15210_v47 }
 0xabe   :  { %8667 = vmatpush3.bf16.msra.mxu0 %v15211_v28  ;;  %v15219_v28 = vld [vmem:[#allocation45_spill] sm:$0xff] }
 0xabf   :  { %8668 = vmatprep.subr.bf16.mxu0 %v15212_v9 }
 0xac2   :  { %8669 = vmatpush3.bf16.msra.mxu0 %v15213_v7 }
 0xac3   :  { %8670 = vmatprep.subr.bf16.mxu0 %v15214_v48 }
 0xac6   :  { %8671 = vmatpush3.bf16.msra.mxu0 %v15215_v37 }
 0xac7   :  { %8672 = vmatprep.subr.bf16.mxu0 %v15216_v32 }
 0xaca   :  { %8673 = vmatpush3.bf16.msra.mxu0 %v15218_v6 }
 0xacb   :  { %8674 = vmatprep.subr.bf16.mxu0 %v15219_v28 }
 0xace   :  { %8675 = vmatpush3.bf16.msra.mxu0 %v12918_v33 }
 0xacf   :  { %8676 = vmatprep.subr.bf16.mxu0 %v12924_v43 }
 0xad2   :  { %v8488_v30 = vpop.f32.mrf.mxu1  ;;  %8677 = vmatpush3.bf16.msra.mxu0 %v12930_v29 }
 0xad3   :  { %8706 = vmatprep.subr.bf16.mxu0 %v12936_v53 }
 0xad4   :  { %v8489_v41 = vpop.f32.mrf.mxu1 }
 0xad5   :  { %v8490_v25 = vadd.f32 %v8489_v41, %v8488_v30 }
 0xad6   :  { %v8491_v47 = vpop.f32.mrf.mxu1 }
 0xad7   :  { %v4608_v9 = vadd.f32 %v8490_v25, %v4568_v19 }
 0xad8   :  { %v8492_v12 = vpop.f32.mrf.mxu1 }
 0xad9   :  { %v4648_v7 = vadd.f32 %v13476_v59, %v4608_v9  ;;  %v4893_v12 = vcombine.high %v13516_v40, %v13516_v40  ;;  %v4892_v40 = vcombine.high %v13545_v0, %v13545_v0 }
 0xaf2   :  { %v8532_v32 = vpop.f32.mrf.mxu1 }
 0xaf4   :  { %v8533_v1 = vpop.f32.mrf.mxu1 }
 0xaf5   :  { %v8534_v30 = vadd.f32 %v8533_v1, %v8532_v32 }
 0xaf6   :  { %v8535_v41 = vpop.f32.mrf.mxu1 }
 0xaf7   :  { %v4688_v6 = vadd.f32 %v8534_v30, %v4648_v7  ;;  %v9930_v41 = vld [vmem:[%s14674_s3 + $0x2f8] sm:$0xff]  }
 0xaf8   :  { %v8536_v47 = vpop.f32.mrf.mxu1 }
 0xaf9   :  { %v4728_v28 = vadd.f32 %v13501_v42, %v4688_v6  ;;  %v4891_v6 = vcombine.high %v13520_v8, %v13520_v8  ;;  %v4894_v42 = vcombine.high %v13541_v26, %v13541_v26  ;;  %v8572_v8 = vpop.f32.mrf.mxu0  ;;  %v9931_v47 = vld [vmem:[%s14674_s3 + $0x2f0] sm:$0xff]  }
 0xafb   :  { %v4733_v19 = vmax.f32 %v4728_v28, 0.0  ;;  %v8573_v7 = vpop.f32.mrf.mxu0 }
 0xafc   :  { %v13636_v9 = vadd.f32 %v8573_v7, %v8572_v8  ;;  %v9936_v8 = vld [vmem:[%s14674_s3 + $0x2c8] sm:$0xff]  }
 0xafd   :  { %v4734_v59 = vpack.c.bf16 %v4733_v19, %v4733_v19  ;;  %v8575_v26 = vpop.f32.mrf.mxu0  ;;  %v9932_v19 = vld [vmem:[%s14674_s3 + $0x2e8] sm:$0xff]  }
 0xafe   :  { %v7272_v26 = vld [vmem:[%s14673_s0 + $0x6c] sm:$0xff] }
 0xaff   :  { %9532 = vmatmul.mubr.bf16.vlgmr.msra.gmra.mxu1 %v4734_v59  ;;  %v8576_v28 = vpop.f32.mrf.mxu0  ;;  %v9934_v59 = vld [vmem:[%s14674_s3 + $0x2d8] sm:$0xff]  }
 0xb00   :  { %8579 = vmatpush3.bf16.msra.mxu1 %v12945_v46  ;;  %4990 = vmatprep.mubr.bf16.mxu1 %v4893_v12  ;;  %v9933_v12 = vld [vmem:[%s14674_s3 + $0x2e0] sm:$0xff]   ;;  %v5238_v28 = vrot.slane %v7272_v26, %v10494_v35 }
 0xb01   :  { %8580 = vmatprep.subr.bf16.mxu1 %v12951_v3 }
 0xb04   :  { %8581 = vmatpush3.bf16.msra.mxu1 %v12957_v50 }
 0xb05   :  { %8582 = vmatprep.subr.bf16.mxu1 %v12963_v61 }
 0xb08   :  { %8583 = vmatpush3.bf16.msra.mxu1 %v12969_v17 }
 0xb09   :  { %8584 = vmatprep.subr.bf16.mxu1 %v12975_v45 }
 0xb0c   :  { %8585 = vmatpush3.bf16.msra.mxu1 %v12981_v24 }
 0xb0d   :  { %8586 = vmatprep.subr.bf16.mxu1 %v12987_v15 }
 0xb10   :  { %8587 = vmatpush3.bf16.msra.mxu1 %v12993_v20 }
 0xb11   :  { %8588 = vmatprep.subr.bf16.mxu1 %v12999_v63 }
 0xb14   :  { %8589 = vmatpush3.bf16.msra.mxu1 %v13005_v38 }
 0xb15   :  { %8590 = vmatprep.subr.bf16.mxu1 %v13011_v18 }
 0xb18   :  { %8591 = vmatpush3.bf16.msra.mxu1 %v13017_v62 }
 0xb19   :  { %8592 = vmatprep.subr.bf16.mxu1 %v13023_v13 }
 0xb1c   :  { %8593 = vmatpush3.bf16.msra.mxu1 %v13031_v4 }
 0xb1d   :  { %8622 = vmatprep.subr.bf16.mxu1 %v13039_v21 }
 0xb1f   :  { %4991 = vmatmul.mubr.bf16.vlgmr.msra.gmra.mxu1 %v4891_v6  ;;  %v9935_v6 = vld [vmem:[%s14674_s3 + $0x2d0] sm:$0xff]  }
 0xb20   :  { %8623 = vmatpush3.bf16.msra.mxu1 %v13045_v36  ;;  %5070 = vmatprep.mubr.bf16.mxu1 %v4894_v42 }
 0xb21   :  { %8624 = vmatprep.subr.bf16.mxu1 %v13051_v22 }
 0xb24   :  { %8625 = vmatpush3.bf16.msra.mxu1 %v13057_v11 }
 0xb25   :  { %8626 = vmatprep.subr.bf16.mxu1 %v13063_v5 }
 0xb28   :  { %8627 = vmatpush3.bf16.msra.mxu1 %v13069_v54 }
 0xb29   :  { %8628 = vmatprep.subr.bf16.mxu1 %v13075_v55 }
 0xb2c   :  { %8629 = vmatpush3.bf16.msra.mxu1 %v13081_v56 }
 0xb2d   :  { %8630 = vmatprep.subr.bf16.mxu1 %v13087_v49 }
 0xb30   :  { %8631 = vmatpush3.bf16.msra.mxu1 %v13093_v23 }
 0xb31   :  { %8632 = vmatprep.subr.bf16.mxu1 %v13099_v16 }
 0xb34   :  { %8633 = vmatpush3.bf16.msra.mxu1 %v13105_v60 }
 0xb35   :  { %8634 = vmatprep.subr.bf16.mxu1 %v13111_v44 }
 0xb38   :  { %8635 = vmatpush3.bf16.msra.mxu1 %v13117_v51  ;;  %v8616_v25 = vpop.f32.mrf.mxu0 }
 0xb39   :  { %8636 = vmatprep.subr.bf16.mxu1 %v13123_v14 }
 0xb3a   :  { %v8617_v32 = vpop.f32.mrf.mxu0 }
 0xb3b   :  { %v13638_v1 = vadd.f32 %v8617_v32, %v8616_v25  ;;  %v9937_v32 = vld [vmem:[%s14674_s3 + $0x2c0] sm:$0xff]  }
 0xb3c   :  { %8637 = vmatpush3.bf16.msra.mxu1 %v13131_v31  ;;  %v8619_v30 = vpop.f32.mrf.mxu0 }
 0xb3d   :  { %9555 = vmatprep.subr.bf16.mxu1 %v14967_v27  ;;  %v5246_v30 = vcombine.high %v5238_v28, %v5238_v28 }
 0xb3e   :  { %v8620_v0 = vpop.f32.mrf.mxu0 }
 0xb3f   :  { %5071 = vmatmul.mubr.bf16.vlgmr.msra.gmra.mxu1 %v4892_v40  ;;  %v13678_v0 = vrot.slane %v5246_v30, %v10494_v35 }
 0xb40   :  { %9571 = vmatprep.mubr.msk.bf16.mxu1 %vm10275_vm0, %v14967_v27  ;;  %9556 = vmatpush3.bf16.msra.mxu1 %v9930_v41  ;;  %v13683_v41 = vld [vmem:[%s14672_s1 + $0xf8] sm:$0xff]  }
 0xb41   :  { %9557 = vmatprep.subr.bf16.mxu1 %v14967_v27  ;;  %5335 = vmatprep.mubr.bf16.mxu0 %v13678_v0 }
 0xb44   :  { %9558 = vmatpush3.bf16.msra.mxu1 %v9931_v47  ;;  %v13687_v47 = vrot.slane %v5238_v28, %v10494_v35  ;;  %v15226_v28 = vld [vmem:[#allocation34_spill] sm:$0xff] }
 0xb45   :  { %9559 = vmatprep.subr.bf16.mxu1 %v14967_v27 }
 0xb46   :  { %5336 = vmatmul.mubr.bf16.vlgmr.msra.gmra.mxu0 %v13687_v47 }
 0xb47   :  { %8707 = vmatpush3.bf16.msra.mxu0 %v13190_v52 }
 0xb48   :  { %9560 = vmatpush3.bf16.msra.mxu1 %v9932_v19  ;;  %8708 = vmatprep.subr.bf16.mxu0 %v13196_v57  ;;  %v15220_v19 = vld [vmem:[#allocation27_spill] sm:$0xff] }
 0xb49   :  { %9561 = vmatprep.subr.bf16.mxu1 %v14967_v27 }
 0xb4b   :  { %8709 = vmatpush3.bf16.msra.mxu0 %v13202_v39 }
 0xb4c   :  { %9562 = vmatpush3.bf16.msra.mxu1 %v9933_v12  ;;  %8710 = vmatprep.subr.bf16.mxu0 %v13208_v2  ;;  %v15221_v12 = vld [vmem:[#allocation28_spill] sm:$0xff] }
 0xb4d   :  { %9563 = vmatprep.subr.bf16.mxu1 %v14967_v27 }
 0xb4f   :  { %8711 = vmatpush3.bf16.msra.mxu0 %v13214_v34 }
 0xb50   :  { %9564 = vmatpush3.bf16.msra.mxu1 %v9934_v59  ;;  %8712 = vmatprep.subr.bf16.mxu0 %v13220_v10  ;;  %v15222_v59 = vld [vmem:[#allocation29_spill] sm:$0xff] }
 0xb51   :  { %9565 = vmatprep.subr.bf16.mxu1 %v14967_v27  ;;  %v15228_v10 = vld [vmem:[#allocation37_spill] sm:$0xff] }
 0xb53   :  { %8713 = vmatpush3.bf16.msra.mxu0 %v15220_v19  ;;  %v15246_v19 = vld [vmem:[#allocation46_spill] sm:$0xff] }
 0xb54   :  { %9566 = vmatpush3.bf16.msra.mxu1 %v9935_v6  ;;  %8714 = vmatprep.subr.bf16.mxu0 %v15221_v12  ;;  %v15223_v6 = vld [vmem:[#allocation30_spill] sm:$0xff] }
 0xb55   :  { %9567 = vmatprep.subr.bf16.mxu1 %v14967_v27 }
 0xb57   :  { %8715 = vmatpush3.bf16.msra.mxu0 %v15222_v59  ;;  %v15237_v59 = vld [vmem:[#allocation7_spill] sm:$0xff] }
 0xb58   :  { %9568 = vmatpush3.bf16.msra.mxu1 %v9936_v8  ;;  %8716 = vmatprep.subr.bf16.mxu0 %v15223_v6  ;;  %v15225_v8 = vld [vmem:[#allocation32_spill] sm:$0xff] }
 0xb59   :  { %9569 = vmatprep.subr.bf16.mxu1 %v14967_v27 }
 0xb5c   :  { %9570 = vmatpush3.bf16.msra.mxu1 %v9937_v32 }
 0xb5d   :  { %8684 = vmatprep.subr.bf16.mxu1 %v13683_v41 }
 0xb75   :  { %v13663_v42 = vpop.f32.mrf.mxu0 }
 0xb77   :  { %v9553_v40 = vpop.f32.mrf.mxu0 }
 0xb78   :  { %v15224_v40 = vld [vmem:[#allocation31_spill] sm:$0xff] }
 0xb79   :  { %v5115_v7 = vpop.f32.mrf.mxu0  ;;  %8717 = vmatpush3.bf16.msra.mxu0 %v15224_v40 }
 0xb7a   :  { %8718 = vmatprep.subr.bf16.mxu0 %v15225_v8  ;;  %v5231_v7 = vcombine.high %v7272_v26, %v7272_v26  ;;  %v15229_v26 = vld [vmem:[#allocation38_spill] sm:$0xff] }
 0xb7b   :  { %v9554_v25 = vpop.f32.mrf.mxu0 }
 0xb7c   :  { %v15227_v25 = vld [vmem:[#allocation13_spill] sm:$0xff]  ;;  %v5245_v32 = vrot.slane %v5231_v7, %v10494_v35  ;;  %v15230_v7 = vld [vmem:[#allocation4_spill] sm:$0xff] }
 0xb7d   :  { %8719 = vmatpush3.bf16.msra.mxu0 %v15226_v28 }
 0xb7e   :  { %8720 = vmatprep.subr.bf16.mxu0 %v15227_v25  ;;  %v5247_v30 = vcombine.high %v5245_v32, %v5245_v32  ;;  %v13712_v6 = vrot.slane %v5245_v32, %v10494_v35  ;;  %v15232_v32 = vld [vmem:[#allocation3_spill] sm:$0xff]  ;;  %v15234_v25 = vld [vmem:[#allocation14_spill] sm:$0xff] }
 0xb80   :  { %v13708_v12 = vrot.slane %v5247_v30, %v10494_v35  ;;  %v15231_v30 = vld [vmem:[#allocation44_spill] sm:$0xff] }
 0xb81   :  { %8721 = vmatpush3.bf16.msra.mxu0 %v15228_v10  ;;  %v15233_v10 = vld [vmem:[#allocation42_spill] sm:$0xff] }
 0xb82   :  { %9575 = vmatprep.subr.bf16.mxu0 %v14967_v27  ;;  %5415 = vmatprep.mubr.bf16.mxu0 %v13708_v12 }
 0xb84   :  { %5416 = vmatmul.mubr.bf16.vlgmr.msra.gmra.mxu0 %v13712_v6 }
 0xb85   :  { %9576 = vmatpush3.bf16.msra.mxu0 %v15229_v26  ;;  %9591 = vmatprep.mubr.msk.bf16.mxu0 %vm10275_vm0, %v14967_v27 }
 0xb86   :  { %9577 = vmatprep.subr.bf16.mxu0 %v14967_v27 }
 0xb89   :  { %9578 = vmatpush3.bf16.msra.mxu0 %v15230_v7  ;;  %v15236_v7 = vld [vmem:[#allocation6_spill] sm:$0xff] }
 0xb8a   :  { %9579 = vmatprep.subr.bf16.mxu0 %v14967_v27 }
 0xb8d   :  { %9580 = vmatpush3.bf16.msra.mxu0 %v15231_v30 }
 0xb8e   :  { %9581 = vmatprep.subr.bf16.mxu0 %v14967_v27 }
 0xb91   :  { %9582 = vmatpush3.bf16.msra.mxu0 %v15232_v32  ;;  %v15238_v32 = vld [vmem:[#allocation8_spill] sm:$0xff] }
 0xb92   :  { %9583 = vmatprep.subr.bf16.mxu0 %v14967_v27 }
 0xb95   :  { %9584 = vmatpush3.bf16.msra.mxu0 %v15233_v10  ;;  %v7274_v10 = vld.sshfl [vmem:[%s14673_s0 + $0x74] sm:$0x1 pattern:$0x75316420] }
 0xb96   :  { %9585 = vmatprep.subr.bf16.mxu0 %v14967_v27 }
 0xb99   :  { %9586 = vmatpush3.bf16.msra.mxu0 %v15236_v7  ;;  %v15244_v7 = vld [vmem:[#allocation39_spill] sm:$0xff] }
 0xb9a   :  { %9587 = vmatprep.subr.bf16.mxu0 %v14967_v27 }
 0xb9d   :  { %9588 = vmatpush3.bf16.msra.mxu0 %v15237_v59  ;;  %v15243_v59 = vld [vmem:[#allocation12_spill] sm:$0xff] }
 0xb9e   :  { %9589 = vmatprep.subr.bf16.mxu0 %v14967_v27 }
 0xba1   :  { %9590 = vmatpush3.bf16.msra.mxu0 %v15238_v32 }
 0xbbf   :  { %v4834_v26 = vpop.f32.mrf.mxu1 }
 0xbc0   :  { %v13729_v28 = vadd.f32 %v4834_v26, %v15234_v25  ;;  %v5293_v25 = vrot.slane %v7274_v10, %v10494_v35  ;;  %v15239_v26 = vld [vmem:[#allocation24_spill] sm:$0xff] }
 0xbc1   :  { %v9533_v8 = vpop.f32.mrf.mxu1  ;;  %8768 = vmatprep.subr.bf16.mxu0 %v15239_v26 }
 0xbc2   :  { %15235 = vst [vmem:[#allocation15_spill] sm:$0xff] %v13729_v28  ;;  %9592 = vmatmul.mubr.bf16.vlgmr.msra.gmra.mxu0 %v5293_v25  ;;  %v15240_v8 = vld [vmem:[#allocation9_spill] sm:$0xff]  ;;  %v15247_v25 = vld [vmem:[#allocation35_spill] sm:$0xff] }
 0xbc3   :  { %v4837_v40 = vpop.f32.mrf.mxu1  ;;  %8769 = vmatpush3.bf16.msra.mxu0 %v15240_v8  ;;  %v15245_v28 = vld [vmem:[#allocation41_spill] sm:$0xff]  ;;  %v15248_v8 = vld [vmem:[#allocation36_spill] sm:$0xff] }
 0xbc4   :  { %v15241_v40 = vld [vmem:[#allocation10_spill] sm:$0xff] }
 0xbc5   :  { %v9534_v30 = vpop.f32.mrf.mxu1  ;;  %8770 = vmatprep.subr.bf16.mxu0 %v15241_v40  ;;  %v4953_v40 = vadd.f32 %v15217_v58, %v13636_v9 }
 0xbc6   :  { %v15242_v30 = vld [vmem:[#allocation11_spill] sm:$0xff] }
 0xbc7   :  { %8771 = vmatpush3.bf16.msra.mxu0 %v15242_v30 }
 0xbc8   :  { %8772 = vmatprep.subr.bf16.mxu0 %v15243_v59 }
 0xbcb   :  { %8773 = vmatpush3.bf16.msra.mxu0 %v15244_v7  ;;  %v15249_v7 = vld [vmem:[#allocation45_spill] sm:$0xff] }
 0xbcc   :  { %8774 = vmatprep.subr.bf16.mxu0 %v15245_v28 }
 0xbcf   :  { %8775 = vmatpush3.bf16.msra.mxu0 %v15246_v19 }
 0xbd0   :  { %8776 = vmatprep.subr.bf16.mxu0 %v15214_v48 }
 0xbd3   :  { %8777 = vmatpush3.bf16.msra.mxu0 %v15215_v37 }
 0xbd4   :  { %8778 = vmatprep.subr.bf16.mxu0 %v15247_v25 }
 0xbd7   :  { %8779 = vmatpush3.bf16.msra.mxu0 %v15248_v8 }
 0xbd8   :  { %8780 = vmatprep.subr.bf16.mxu0 %v15249_v7 }
 0xbdb   :  { %8781 = vmatpush3.bf16.msra.mxu0 %v12918_v33  ;;  %v5276_v33 = vcombine.high %v13687_v47, %v13687_v47  ;;  %v15259_v47 = vld [vmem:[#allocation37_spill] sm:$0xff] }
 0xbdc   :  { %8782 = vmatprep.subr.bf16.mxu0 %v12924_v43  ;;  %v5279_v43 = vcombine.high %v13708_v12, %v13708_v12 }
 0xbdf   :  { %v8594_v10 = vpop.f32.mrf.mxu1  ;;  %8783 = vmatpush3.bf16.msra.mxu0 %v12930_v29  ;;  %v5277_v29 = vcombine.high %v13712_v6, %v13712_v6  ;;  %v15260_v6 = vld [vmem:[#allocation38_spill] sm:$0xff] }
 0xbe0   :  { %8812 = vmatprep.subr.bf16.mxu0 %v12936_v53 }
 0xbe1   :  { %v8595_v26 = vpop.f32.mrf.mxu1 }
 0xbe2   :  { %v8596_v30 = vadd.f32 %v8595_v26, %v8594_v10 }
 0xbe3   :  { %v8597_v59 = vpop.f32.mrf.mxu1 }
 0xbe4   :  { %v4993_v28 = vadd.f32 %v8596_v30, %v4953_v40  ;;  %v15263_v30 = vld [vmem:[#allocation3_spill] sm:$0xff] }
 0xbe5   :  { %v8598_v32 = vpop.f32.mrf.mxu1 }
 0xbe6   :  { %v5033_v19 = vadd.f32 %v13638_v1, %v4993_v28  ;;  %v5278_v1 = vcombine.high %v13678_v0, %v13678_v0  ;;  %v15262_v32 = vld [vmem:[#allocation44_spill] sm:$0xff] }
 0xbff   :  { %v8638_v25 = vpop.f32.mrf.mxu1 }
 0xc01   :  { %v8639_v58 = vpop.f32.mrf.mxu1 }
 0xc02   :  { %v8640_v9 = vadd.f32 %v8639_v58, %v8638_v25  ;;  %v15264_v25 = vld [vmem:[#allocation42_spill] sm:$0xff] }
 0xc03   :  { %v8641_v10 = vpop.f32.mrf.mxu1 }
 0xc04   :  { %v5073_v26 = vadd.f32 %v8640_v9, %v5033_v19  ;;  %v15265_v9 = vld [vmem:[#allocation15_spill] sm:$0xff] }
 0xc05   :  { %v8642_v59 = vpop.f32.mrf.mxu1 }
 0xc06   :  { %v5113_v7 = vadd.f32 %v13663_v42, %v5073_v26  ;;  %v8678_v53 = vpop.f32.mrf.mxu0  ;;  %v15255_v42 = vld [vmem:[#allocation31_spill] sm:$0xff]  ;;  %v15266_v59 = vld [vmem:[#allocation6_spill] sm:$0xff] }
 0xc08   :  { %v5118_v40 = vmax.f32 %v5113_v7, 0.0  ;;  %v15261_v7 = vld [vmem:[#allocation4_spill] sm:$0xff] }
 0xc0a   :  { %v5119_v28 = vpack.c.bf16 %v5118_v40, %v5118_v40 }
 0xc0c   :  { %9572 = vmatmul.mubr.bf16.vlgmr.msra.gmra.mxu1 %v5119_v28  ;;  %v15267_v28 = vld [vmem:[#allocation7_spill] sm:$0xff] }
 0xc0d   :  { %8685 = vmatpush3.bf16.msra.mxu1 %v12945_v46  ;;  %5375 = vmatprep.mubr.bf16.mxu1 %v5278_v1  ;;  %v8679_v46 = vpop.f32.mrf.mxu0 }
 0xc0e   :  { %8686 = vmatprep.subr.bf16.mxu1 %v12951_v3  ;;  %v13803_v3 = vadd.f32 %v8679_v46, %v8678_v53  ;;  %v13905_v53 = vld [vmem:[%s14672_s1 + $0x78] sm:$0xff]  }
 0xc0f   :  { %v15269_v46 = vld [vmem:[#allocation9_spill] sm:$0xff] }
 0xc11   :  { %8687 = vmatpush3.bf16.msra.mxu1 %v12957_v50  ;;  %v8681_v50 = vpop.f32.mrf.mxu0 }
 0xc12   :  { %8688 = vmatprep.subr.bf16.mxu1 %v12963_v61  ;;  %v15270_v50 = vld [vmem:[#allocation10_spill] sm:$0xff] }
 0xc13   :  { %v8682_v61 = vpop.f32.mrf.mxu0 }
 0xc14   :  { %v15271_v61 = vld [vmem:[#allocation11_spill] sm:$0xff] }
 0xc15   :  { %8689 = vmatpush3.bf16.msra.mxu1 %v12969_v17 }
 0xc16   :  { %8690 = vmatprep.subr.bf16.mxu1 %v12975_v45 }
 0xc19   :  { %8691 = vmatpush3.bf16.msra.mxu1 %v12981_v24 }
 0xc1a   :  { %8692 = vmatprep.subr.bf16.mxu1 %v12987_v15 }
 0xc1d   :  { %8693 = vmatpush3.bf16.msra.mxu1 %v12993_v20 }
 0xc1e   :  { %8694 = vmatprep.subr.bf16.mxu1 %v12999_v63  ;;  %v9939_v63 = vld [vmem:[%s14674_s3 + $0x338] sm:$0xff]  }
 0xc21   :  { %8695 = vmatpush3.bf16.msra.mxu1 %v13005_v38  ;;  %v9940_v38 = vld [vmem:[%s14674_s3 + $0x330] sm:$0xff]  }
 0xc22   :  { %8696 = vmatprep.subr.bf16.mxu1 %v13011_v18  ;;  %v9941_v18 = vld [vmem:[%s14674_s3 + $0x328] sm:$0xff]  }
 0xc25   :  { %8697 = vmatpush3.bf16.msra.mxu1 %v13017_v62  ;;  %v9942_v62 = vld [vmem:[%s14674_s3 + $0x320] sm:$0xff]  }
 0xc26   :  { %8698 = vmatprep.subr.bf16.mxu1 %v13023_v13  ;;  %v9943_v13 = vld [vmem:[%s14674_s3 + $0x318] sm:$0xff]  }
 0xc29   :  { %8699 = vmatpush3.bf16.msra.mxu1 %v13031_v4  ;;  %v9944_v4 = vld [vmem:[%s14674_s3 + $0x310] sm:$0xff]  }
 0xc2a   :  { %8728 = vmatprep.subr.bf16.mxu1 %v13039_v21 }
 0xc2c   :  { %5376 = vmatmul.mubr.bf16.vlgmr.msra.gmra.mxu1 %v5276_v33  ;;  %v7301_v33 = vld.sshfl [vmem:[%s14673_s0 + $0x7d] sm:$0x1 pattern:$0x75316420] }
 0xc2d   :  { %8729 = vmatpush3.bf16.msra.mxu1 %v13045_v36  ;;  %5455 = vmatprep.mubr.bf16.mxu1 %v5279_v43  ;;  %v15268_v43 = vld [vmem:[#allocation8_spill] sm:$0xff] }
 0xc2e   :  { %8730 = vmatprep.subr.bf16.mxu1 %v13051_v22  ;;  %v9945_v22 = vld [vmem:[%s14674_s3 + $0x308] sm:$0xff]  }
 0xc31   :  { %8731 = vmatpush3.bf16.msra.mxu1 %v13057_v11 }
 0xc32   :  { %8732 = vmatprep.subr.bf16.mxu1 %v13063_v5  ;;  %v7299_v5 = vld [vmem:[%s14673_s0 + $0x75] sm:$0xff] }
 0xc35   :  { %8733 = vmatpush3.bf16.msra.mxu1 %v13069_v54  ;;  %v5623_v54 = vrot.slane %v7299_v5, %v10494_v35 }
 0xc36   :  { %8734 = vmatprep.subr.bf16.mxu1 %v13075_v55 }
 0xc39   :  { %8735 = vmatpush3.bf16.msra.mxu1 %v13081_v56  ;;  %v9946_v56 = vld [vmem:[%s14674_s3 + $0x300] sm:$0xff]  }
 0xc3a   :  { %8736 = vmatprep.subr.bf16.mxu1 %v13087_v49  ;;  %v5631_v49 = vcombine.high %v5623_v54, %v5623_v54 }
 0xc3d   :  { %8737 = vmatpush3.bf16.msra.mxu1 %v13093_v23  ;;  %v13845_v23 = vrot.slane %v5631_v49, %v10494_v35 }
 0xc3e   :  { %8738 = vmatprep.subr.bf16.mxu1 %v13099_v16  ;;  %v13849_v16 = vrot.slane %v5623_v54, %v10494_v35 }
 0xc3f   :  { %5720 = vmatprep.mubr.bf16.mxu0 %v13845_v23 }
 0xc40   :  { %5721 = vmatmul.mubr.bf16.vlgmr.msra.gmra.mxu0 %v13849_v16 }
 0xc41   :  { %8739 = vmatpush3.bf16.msra.mxu1 %v13105_v60  ;;  %8813 = vmatpush3.bf16.msra.mxu0 %v13190_v52  ;;  %v15250_v60 = vld [vmem:[#allocation26_spill] sm:$0xff]  ;;  %v15256_v52 = vld [vmem:[#allocation32_spill] sm:$0xff] }
 0xc42   :  { %8740 = vmatprep.subr.bf16.mxu1 %v13111_v44  ;;  %8814 = vmatprep.subr.bf16.mxu0 %v13196_v57  ;;  %v15251_v44 = vld [vmem:[#allocation27_spill] sm:$0xff]  ;;  %v5616_v57 = vcombine.high %v7299_v5, %v7299_v5 }
 0xc43   :  { %v13931_v5 = vld [vmem:[%s14672_s1 + $0x8] sm:$0xff]  }
 0xc44   :  { %v8722_v17 = vpop.f32.mrf.mxu0 }
 0xc45   :  { %8741 = vmatpush3.bf16.msra.mxu1 %v13117_v51  ;;  %8815 = vmatpush3.bf16.msra.mxu0 %v13202_v39  ;;  %v15252_v51 = vld [vmem:[#allocation28_spill] sm:$0xff]  ;;  %v15257_v39 = vld [vmem:[#allocation34_spill] sm:$0xff] }
 0xc46   :  { %8742 = vmatprep.subr.bf16.mxu1 %v13123_v14  ;;  %v8723_v45 = vpop.f32.mrf.mxu0  ;;  %8816 = vmatprep.subr.bf16.mxu0 %v13208_v2  ;;  %v15253_v14 = vld [vmem:[#allocation29_spill] sm:$0xff] }
 0xc47   :  { %v13805_v24 = vadd.f32 %v8723_v45, %v8722_v17  ;;  %v15258_v2 = vld [vmem:[#allocation13_spill] sm:$0xff]  ;;  %v15272_v17 = vld [vmem:[#allocation12_spill] sm:$0xff]  ;;  %v15273_v45 = vld [vmem:[#allocation39_spill] sm:$0xff] }
 0xc48   :  { %v8725_v15 = vpop.f32.mrf.mxu0 }
 0xc49   :  { %8743 = vmatpush3.bf16.msra.mxu1 %v13131_v31  ;;  %8817 = vmatpush3.bf16.msra.mxu0 %v13214_v34  ;;  %v15254_v31 = vld [vmem:[#allocation30_spill] sm:$0xff]  ;;  %v5630_v34 = vrot.slane %v5616_v57, %v10494_v35  ;;  %v15274_v15 = vld [vmem:[#allocation41_spill] sm:$0xff]  ;;  %v13964_v57 = vld [vmem:[%s14672_s1 + $0xf0] sm:$0xff]  }
 0xc4a   :  { %9595 = vmatprep.subr.bf16.mxu1 %v14967_v27  ;;  %v8726_v20 = vpop.f32.mrf.mxu0  ;;  %8818 = vmatprep.subr.bf16.mxu0 %v15250_v60 }
 0xc4b   :  { %v5632_v0 = vcombine.high %v5630_v34, %v5630_v34  ;;  %v13874_v12 = vrot.slane %v5630_v34, %v10494_v35  ;;  %v15275_v20 = vld [vmem:[#allocation46_spill] sm:$0xff] }
 0xc4c   :  { %5456 = vmatmul.mubr.bf16.vlgmr.msra.gmra.mxu1 %v5277_v29  ;;  %v5678_v29 = vrot.slane %v7301_v33, %v10494_v35  ;;  %v13994_v34 = vld [vmem:[%s14672_s1 + $0xa0] sm:$0xff]  }
 0xc4d   :  { %9611 = vmatprep.mubr.msk.bf16.mxu1 %vm10275_vm0, %v14967_v27  ;;  %9596 = vmatpush3.bf16.msra.mxu1 %v9939_v63  ;;  %v13870_v19 = vrot.slane %v5632_v0, %v10494_v35  ;;  %v14000_v0 = vld [vmem:[%s14672_s1 + $0xd8] sm:$0xff]   ;;  %v14088_v33 = vld [vmem:[%s14672_s1 + $0x1e0] sm:$0xff]  }
 0xc4e   :  { %9597 = vmatprep.subr.bf16.mxu1 %v14967_v27  ;;  %8819 = vmatpush3.bf16.msra.mxu0 %v15251_v44 }
 0xc4f   :  { %8820 = vmatprep.subr.bf16.mxu0 %v15252_v51  ;;  %5800 = vmatprep.mubr.bf16.mxu0 %v13870_v19 }
 0xc51   :  { %9598 = vmatpush3.bf16.msra.mxu1 %v9940_v38  ;;  %v15276_v38 = vld [vmem:[#allocation35_spill] sm:$0xff] }
 0xc52   :  { %9599 = vmatprep.subr.bf16.mxu1 %v14967_v27  ;;  %8821 = vmatpush3.bf16.msra.mxu0 %v15253_v14 }
 0xc53   :  { %8822 = vmatprep.subr.bf16.mxu0 %v15254_v31  ;;  %v5663_v31 = vcombine.high %v13845_v23, %v13845_v23  ;;  %v13976_v23 = vld [vmem:[%s14672_s1 + $0xe8] sm:$0xff]  }
 0xc55   :  { %9600 = vmatpush3.bf16.msra.mxu1 %v9941_v18 }
 0xc56   :  { %9601 = vmatprep.subr.bf16.mxu1 %v14967_v27  ;;  %8823 = vmatpush3.bf16.msra.mxu0 %v15255_v42 }
 0xc57   :  { %8824 = vmatprep.subr.bf16.mxu0 %v15256_v52  ;;  %v13958_v52 = vld [vmem:[%s14672_s1 + $0xb8] sm:$0xff]  }
 0xc59   :  { %9602 = vmatpush3.bf16.msra.mxu1 %v9942_v62  ;;  %v13921_v62 = vld [vmem:[%s14675_s2] ss:$0 sm:$0xff] }
 0xc5a   :  { %9603 = vmatprep.subr.bf16.mxu1 %v14967_v27  ;;  %8825 = vmatpush3.bf16.msra.mxu0 %v15257_v39  ;;  %15277 = vst [vmem:[#allocation16_spill] sm:$0xff] %v13921_v62  ;;  %v13982_v39 = vld [vmem:[%s14672_s1 + $0xa8] sm:$0xff]  }
 0xc5b   :  { %8826 = vmatprep.subr.bf16.mxu0 %v15258_v2  ;;  %v13988_v2 = vld [vmem:[%s14672_s1 + $0xe0] sm:$0xff]  }
 0xc5d   :  { %9604 = vmatpush3.bf16.msra.mxu1 %v9943_v13  ;;  %v5338_v13 = vadd.f32 %v13921_v62, %v13803_v3  ;;  %v13937_v3 = vld [vmem:[%s14672_s1 + $0x40] sm:$0xff]  }
 0xc5e   :  { %9605 = vmatprep.subr.bf16.mxu1 %v14967_v27  ;;  %8827 = vmatpush3.bf16.msra.mxu0 %v15259_v47  ;;  %v14006_v47 = vld [vmem:[%s14672_s1 + $0x98] sm:$0xff]  }
 0xc5f   :  { %9615 = vmatprep.subr.bf16.mxu0 %v14967_v27 }
 0xc61   :  { %9606 = vmatpush3.bf16.msra.mxu1 %v9944_v4  ;;  %5801 = vmatmul.mubr.bf16.vlgmr.msra.gmra.mxu0 %v13874_v12 }
 0xc62   :  { %9607 = vmatprep.subr.bf16.mxu1 %v14967_v27  ;;  %9616 = vmatpush3.bf16.msra.mxu0 %v15260_v6  ;;  %v14012_v6 = vld [vmem:[%s14672_s1 + $0xd0] sm:$0xff]  }
 0xc63   :  { %9631 = vmatprep.mubr.msk.bf16.mxu0 %vm10275_vm0, %v14967_v27  ;;  %9617 = vmatprep.subr.bf16.mxu0 %v14967_v27 }
 0xc65   :  { %9608 = vmatpush3.bf16.msra.mxu1 %v9945_v22  ;;  %v15278_v22 = vld [vmem:[#allocation45_spill] sm:$0xff] }
 0xc66   :  { %9609 = vmatprep.subr.bf16.mxu1 %v14967_v27  ;;  %9618 = vmatpush3.bf16.msra.mxu0 %v15261_v7  ;;  %v14018_v7 = vld [vmem:[%s14672_s1 + $0x90] sm:$0xff]  }
 0xc67   :  { %9619 = vmatprep.subr.bf16.mxu0 %v14967_v27 }
 0xc69   :  { %9610 = vmatpush3.bf16.msra.mxu1 %v9946_v56 }
 0xc6a   :  { %8790 = vmatprep.subr.bf16.mxu1 %v13683_v41  ;;  %9620 = vmatpush3.bf16.msra.mxu0 %v15262_v32  ;;  %v14024_v32 = vld [vmem:[%s14672_s1 + $0xc8] sm:$0xff]  }
 0xc6b   :  { %9621 = vmatprep.subr.bf16.mxu0 %v14967_v27 }
 0xc6e   :  { %9622 = vmatpush3.bf16.msra.mxu0 %v15263_v30  ;;  %v14030_v30 = vld [vmem:[%s14672_s1 + $0x88] sm:$0xff]  }
 0xc6f   :  { %9623 = vmatprep.subr.bf16.mxu0 %v14967_v27 }
 0xc72   :  { %9624 = vmatpush3.bf16.msra.mxu0 %v15264_v25  ;;  %v14036_v25 = vld [vmem:[%s14672_s1 + $0xc0] sm:$0xff]  }
 0xc73   :  { %9625 = vmatprep.subr.bf16.mxu0 %v14967_v27 }
 0xc76   :  { %9626 = vmatpush3.bf16.msra.mxu0 %v15266_v59  ;;  %v14052_v59 = vld [vmem:[%s14672_s1 + $0x1f8] sm:$0xff]  }
 0xc77   :  { %9627 = vmatprep.subr.bf16.mxu0 %v14967_v27 }
 0xc7a   :  { %9628 = vmatpush3.bf16.msra.mxu0 %v15267_v28  ;;  %v14082_v28 = vld [vmem:[%s14672_s1 + $0x1a8] sm:$0xff]  }
 0xc7b   :  { %9629 = vmatprep.subr.bf16.mxu0 %v14967_v27 }
 0xc7e   :  { %9630 = vmatpush3.bf16.msra.mxu0 %v15268_v43  ;;  %v14094_v43 = vld [vmem:[%s14672_s1 + $0x1a0] sm:$0xff]  }
 0xc7f   :  { %8874 = vmatprep.subr.bf16.mxu0 %v13905_v53 }
 0xc81   :  { %9632 = vmatmul.mubr.bf16.vlgmr.msra.gmra.mxu0 %v5678_v29  ;;  %v14100_v29 = vld [vmem:[%s14672_s1 + $0x1d8] sm:$0xff]  }
 0xc82   :  { %v13830_v21 = vpop.f32.mrf.mxu0  ;;  %8875 = vmatpush3.bf16.msra.mxu0 %v15269_v46  ;;  %v14106_v46 = vld [vmem:[%s14672_s1 + $0x198] sm:$0xff]  }
 0xc83   :  { %8876 = vmatprep.subr.bf16.mxu0 %v15270_v50  ;;  %v14112_v50 = vld [vmem:[%s14672_s1 + $0x1d0] sm:$0xff]  }
 0xc84   :  { %v9593_v36 = vpop.f32.mrf.mxu0 }
 0xc86   :  { %v5500_v11 = vpop.f32.mrf.mxu0  ;;  %8877 = vmatpush3.bf16.msra.mxu0 %v15271_v61  ;;  %v14118_v61 = vld [vmem:[%s14672_s1 + $0x190] sm:$0xff]  }
 0xc87   :  { %8878 = vmatprep.subr.bf16.mxu0 %v15272_v17  ;;  %v14124_v17 = vld [vmem:[%s14672_s1 + $0x1c8] sm:$0xff]  }
 0xc88   :  { %v9594_v55 = vpop.f32.mrf.mxu0 }
 0xc8a   :  { %8879 = vmatpush3.bf16.msra.mxu0 %v15273_v45  ;;  %v14130_v45 = vld [vmem:[%s14672_s1 + $0x188] sm:$0xff]  }
 0xc8b   :  { %8880 = vmatprep.subr.bf16.mxu0 %v15274_v15  ;;  %v14136_v15 = vld [vmem:[%s14672_s1 + $0x1c0] sm:$0xff]  }
 0xc8e   :  { %8881 = vmatpush3.bf16.msra.mxu0 %v15275_v20  ;;  %v5662_v20 = vcombine.high %v13874_v12, %v13874_v12 }
 0xc8f   :  { %8882 = vmatprep.subr.bf16.mxu0 %v15214_v48 }
 0xc92   :  { %8883 = vmatpush3.bf16.msra.mxu0 %v15215_v37 }
 0xc93   :  { %8884 = vmatprep.subr.bf16.mxu0 %v15276_v38 }
 0xc96   :  { %8885 = vmatpush3.bf16.msra.mxu0 %v15248_v8  ;;  %v13943_v8 = vld [vmem:[%s14672_s1] sm:$0xff]  }
 0xc97   :  { %8886 = vmatprep.subr.bf16.mxu0 %v15278_v22 }
 0xc9a   :  { %8887 = vmatpush3.bf16.msra.mxu0 %v13931_v5 }
 0xc9b   :  { %8888 = vmatprep.subr.bf16.mxu0 %v13937_v3 }
 0xc9e   :  { %8889 = vmatpush3.bf16.msra.mxu0 %v13943_v8 }
 0xccc   :  { %v5219_v58 = vpop.f32.mrf.mxu1 }
 0xccd   :  { %v13891_v10 = vadd.f32 %v5219_v58, %v15265_v9  ;;  %v5661_v58 = vcombine.high %v13849_v16, %v13849_v16  ;;  %v14044_v9 = vld [vmem:[%s14672_s1 + $0x80] sm:$0xff]   ;;  %v14058_v16 = vld [vmem:[%s14672_s1 + $0x1b8] sm:$0xff]  }
 0xcce   :  { %v9573_v26 = vpop.f32.mrf.mxu1 }
 0xccf   :  { %v5664_v26 = vcombine.high %v13870_v19, %v13870_v19  ;;  %v14064_v19 = vld [vmem:[%s14672_s1 + $0x1f0] sm:$0xff]  }
 0xcd0   :  { %v5222_v40 = vpop.f32.mrf.mxu1 }
 0xcd1   :  { %v14070_v40 = vld [vmem:[%s14672_s1 + $0x1b0] sm:$0xff]  }
 0xcd2   :  { %v9574_v1 = vpop.f32.mrf.mxu1 }
 0xcd3   :  { %v14076_v1 = vld [vmem:[%s14672_s1 + $0x1e8] sm:$0xff]  }
 0xcec   :  { %v8700_v63 = vpop.f32.mrf.mxu1 }
 0xcee   :  { %v8701_v18 = vpop.f32.mrf.mxu1 }
 0xcef   :  { %v8702_v4 = vadd.f32 %v8701_v18, %v8700_v63  ;;  %v14144_v63 = vld [vmem:[%s14672_s1 + $0x180] sm:$0xff]  }
 0xcf0   :  { %v8703_v36 = vpop.f32.mrf.mxu1 }
 0xcf1   :  { %v5378_v48 = vadd.f32 %v8702_v4, %v5338_v13 }
 0xcf2   :  { %v8704_v37 = vpop.f32.mrf.mxu1 }
 0xcf3   :  { %v5418_v11 = vadd.f32 %v13805_v24, %v5378_v48  ;;  %v13949_v24 = vld [vmem:[%s14672_s1 + $0x178] sm:$0xff]  }
 0xcf4   :  { %8918 = vmatprep.subr.bf16.mxu0 %v13949_v24 }
 0xd00   :  { %v8784_v38 = vpop.f32.mrf.mxu0 }
 0xd02   :  { %v8785_v18 = vpop.f32.mrf.mxu0 }
 0xd03   :  { %v14150_v13 = vadd.f32 %v8785_v18, %v8784_v38  ;;  %v9955_v38 = vld [vmem:[%s14674_s3 + $0x340] sm:$0xff]  }
 0xd04   :  { %v8787_v4 = vpop.f32.mrf.mxu0 }
 0xd06   :  { %v8788_v36 = vpop.f32.mrf.mxu0 }
 0xd0c   :  { %v8744_v54 = vpop.f32.mrf.mxu1 }
 0xd0e   :  { %v8745_v55 = vpop.f32.mrf.mxu1 }
 0xd0f   :  { %v8746_v56 = vadd.f32 %v8745_v55, %v8744_v54  ;;  %v9948_v54 = vld [vmem:[%s14674_s3 + $0x378] sm:$0xff]   ;;  %v9949_v55 = vld [vmem:[%s14674_s3 + $0x370] sm:$0xff]  }
 0xd10   :  { %v8747_v49 = vpop.f32.mrf.mxu1 }
 0xd11   :  { %v5458_v60 = vadd.f32 %v8746_v56, %v5418_v11  ;;  %v9950_v56 = vld [vmem:[%s14674_s3 + $0x368] sm:$0xff]   ;;  %v9951_v49 = vld [vmem:[%s14674_s3 + $0x360] sm:$0xff]  }
 0xd12   :  { %v8748_v44 = vpop.f32.mrf.mxu1 }
 0xd13   :  { %v5498_v51 = vadd.f32 %v13830_v21, %v5458_v60  ;;  %v13970_v21 = vld [vmem:[%s14672_s1 + $0xb0] sm:$0xff]   ;;  %v9952_v60 = vld [vmem:[%s14674_s3 + $0x358] sm:$0xff]  }
 0xd14   :  { %v9953_v44 = vld [vmem:[%s14674_s3 + $0x350] sm:$0xff]  }
 0xd15   :  { %v5503_v14 = vmax.f32 %v5498_v51, 0.0 }
 0xd17   :  { %v5504_v42 = vpack.c.bf16 %v5503_v14, %v5503_v14 }
 0xd19   :  { %9612 = vmatmul.mubr.bf16.vlgmr.msra.gmra.mxu1 %v5504_v42 }
 0xd1a   :  { %8791 = vmatpush3.bf16.msra.mxu1 %v13958_v52  ;;  %5760 = vmatprep.mubr.bf16.mxu1 %v5663_v31  ;;  %v9954_v31 = vld [vmem:[%s14674_s3 + $0x348] sm:$0xff]  }
 0xd1b   :  { %8792 = vmatprep.subr.bf16.mxu1 %v13964_v57 }
 0xd1e   :  { %8793 = vmatpush3.bf16.msra.mxu1 %v13970_v21 }
 0xd1f   :  { %8794 = vmatprep.subr.bf16.mxu1 %v13976_v23 }
 0xd21   :  { %v8828_v12 = vpop.f32.mrf.mxu0 }
 0xd22   :  { %8795 = vmatpush3.bf16.msra.mxu1 %v13982_v39 }
 0xd23   :  { %8796 = vmatprep.subr.bf16.mxu1 %v13988_v2  ;;  %v8829_v22 = vpop.f32.mrf.mxu0 }
 0xd24   :  { %v14152_v48 = vadd.f32 %v8829_v22, %v8828_v12  ;;  %v14203_v12 = vld [vmem:[%s14672_s1 + $0x138] sm:$0xff]   ;;  %v14209_v22 = vld [vmem:[%s14672_s1 + $0x170] sm:$0xff]  }
 0xd25   :  { %v8831_v37 = vpop.f32.mrf.mxu0 }
 0xd26   :  { %8797 = vmatpush3.bf16.msra.mxu1 %v13994_v34  ;;  %v14215_v37 = vld [vmem:[%s14672_s1 + $0x130] sm:$0xff]  }
 0xd27   :  { %8798 = vmatprep.subr.bf16.mxu1 %v14000_v0  ;;  %v8832_v11 = vpop.f32.mrf.mxu0 }
 0xd28   :  { %v14221_v11 = vld [vmem:[%s14672_s1 + $0x168] sm:$0xff]  }
 0xd2a   :  { %8799 = vmatpush3.bf16.msra.mxu1 %v14006_v47 }
 0xd2b   :  { %8800 = vmatprep.subr.bf16.mxu1 %v14012_v6 }
 0xd2e   :  { %8801 = vmatpush3.bf16.msra.mxu1 %v14018_v7 }
 0xd2f   :  { %8802 = vmatprep.subr.bf16.mxu1 %v14024_v32 }
 0xd32   :  { %8803 = vmatpush3.bf16.msra.mxu1 %v14030_v30 }
 0xd33   :  { %8804 = vmatprep.subr.bf16.mxu1 %v14036_v25 }
 0xd36   :  { %8805 = vmatpush3.bf16.msra.mxu1 %v14044_v9 }
 0xd37   :  { %8834 = vmatprep.subr.bf16.mxu1 %v14052_v59 }
 0xd39   :  { %5761 = vmatmul.mubr.bf16.vlgmr.msra.gmra.mxu1 %v5661_v58  ;;  %v7326_v58 = vld [vmem:[%s14673_s0 + $0x7e] sm:$0xff] }
 0xd3a   :  { %8835 = vmatpush3.bf16.msra.mxu1 %v14058_v16  ;;  %5840 = vmatprep.mubr.bf16.mxu1 %v5664_v26  ;;  %v6008_v26 = vrot.slane %v7326_v58, %v10494_v35 }
 0xd3b   :  { %8836 = vmatprep.subr.bf16.mxu1 %v14064_v19 }
 0xd3c   :  { %v6016_v18 = vcombine.high %v6008_v26, %v6008_v26  ;;  %v14196_v36 = vrot.slane %v6008_v26, %v10494_v35  ;;  %v14275_v26 = vld [vmem:[%s14672_s1 + $0x108] sm:$0xff]  }
 0xd3d   :  { %15283 = vst [vmem:[#allocation21_spill] sm:$0xff] %v14275_v26 }
 0xd3e   :  { %8837 = vmatpush3.bf16.msra.mxu1 %v14070_v40  ;;  %v14192_v4 = vrot.slane %v6016_v18, %v10494_v35 }
 0xd3f   :  { %8838 = vmatprep.subr.bf16.mxu1 %v14076_v1 }
 0xd40   :  { %6105 = vmatprep.mubr.bf16.mxu0 %v14192_v4 }
 0xd41   :  { %v14177_v51 = vpop.f32.mrf.mxu0  ;;  %6106 = vmatmul.mubr.bf16.vlgmr.msra.gmra.mxu0 %v14196_v36 }
 0xd42   :  { %8839 = vmatpush3.bf16.msra.mxu1 %v14082_v28  ;;  %8919 = vmatpush3.bf16.msra.mxu0 %v14203_v12 }
 0xd43   :  { %8840 = vmatprep.subr.bf16.mxu1 %v14088_v33  ;;  %v9633_v14 = vpop.f32.mrf.mxu0  ;;  %8920 = vmatprep.subr.bf16.mxu0 %v14209_v22 }
 0xd44   :  { %v14263_v14 = vld [vmem:[%s14672_s1 + $0x110] sm:$0xff]  }
 0xd45   :  { %v5885_v42 = vpop.f32.mrf.mxu0  ;;  %15281 = vst [vmem:[#allocation19_spill] sm:$0xff] %v14263_v14 }
 0xd46   :  { %8841 = vmatpush3.bf16.msra.mxu1 %v14094_v43  ;;  %8921 = vmatpush3.bf16.msra.mxu0 %v14215_v37  ;;  %v6001_v42 = vcombine.high %v7326_v58, %v7326_v58  ;;  %v14288_v58 = vld [vmem:[%s14672_s1 + $0x100] sm:$0xff]  }
 0xd47   :  { %8842 = vmatprep.subr.bf16.mxu1 %v14100_v29  ;;  %8922 = vmatprep.subr.bf16.mxu0 %v14221_v11  ;;  %15285 = vst [vmem:[#allocation23_spill] sm:$0xff] %v14288_v58 }
 0xd4a   :  { %8843 = vmatpush3.bf16.msra.mxu1 %v14106_v46 }
 0xd4b   :  { %8844 = vmatprep.subr.bf16.mxu1 %v14112_v50 }
 0xd4e   :  { %8845 = vmatpush3.bf16.msra.mxu1 %v14118_v61 }
 0xd4f   :  { %8846 = vmatprep.subr.bf16.mxu1 %v14124_v17 }
 0xd52   :  { %8847 = vmatpush3.bf16.msra.mxu1 %v14130_v45 }
 0xd53   :  { %8848 = vmatprep.subr.bf16.mxu1 %v14136_v15 }
 0xd56   :  { %8849 = vmatpush3.bf16.msra.mxu1 %v14144_v63 }
 0xd57   :  { %9635 = vmatprep.subr.bf16.mxu1 %v14967_v27 }
 0xd59   :  { %5841 = vmatmul.mubr.bf16.vlgmr.msra.gmra.mxu1 %v5662_v20  ;;  %v9634_v20 = vpop.f32.mrf.mxu0 }
 0xd5a   :  { %9651 = vmatprep.mubr.msk.bf16.mxu1 %vm10275_vm0, %v14967_v27  ;;  %9636 = vmatpush3.bf16.msra.mxu1 %v9948_v54  ;;  %v14227_v54 = vld [vmem:[%s14672_s1 + $0x128] sm:$0xff]   ;;  %v14281_v20 = vld [vmem:[%s14672_s1 + $0x140] sm:$0xff]  }
 0xd5b   :  { %9637 = vmatprep.subr.bf16.mxu1 %v14967_v27  ;;  %8923 = vmatpush3.bf16.msra.mxu0 %v14227_v54  ;;  %15284 = vst [vmem:[#allocation22_spill] sm:$0xff] %v14281_v20 }
 0xd5e   :  { %9638 = vmatpush3.bf16.msra.mxu1 %v9949_v55  ;;  %v14233_v55 = vld [vmem:[%s14672_s1 + $0x160] sm:$0xff]  }
 0xd5f   :  { %9639 = vmatprep.subr.bf16.mxu1 %v14967_v27  ;;  %8924 = vmatprep.subr.bf16.mxu0 %v14233_v55 }
 0xd62   :  { %9640 = vmatpush3.bf16.msra.mxu1 %v9950_v56  ;;  %v14239_v56 = vld [vmem:[%s14672_s1 + $0x120] sm:$0xff]  }
 0xd63   :  { %9641 = vmatprep.subr.bf16.mxu1 %v14967_v27  ;;  %8925 = vmatpush3.bf16.msra.mxu0 %v14239_v56 }
 0xd66   :  { %9642 = vmatpush3.bf16.msra.mxu1 %v9951_v49  ;;  %v14245_v49 = vld [vmem:[%s14672_s1 + $0x158] sm:$0xff]  }
 0xd67   :  { %9643 = vmatprep.subr.bf16.mxu1 %v14967_v27  ;;  %8926 = vmatprep.subr.bf16.mxu0 %v14245_v49 }
 0xd6a   :  { %9644 = vmatpush3.bf16.msra.mxu1 %v9952_v60  ;;  %v14251_v60 = vld [vmem:[%s14672_s1 + $0x118] sm:$0xff]  }
 0xd6b   :  { %9645 = vmatprep.subr.bf16.mxu1 %v14967_v27  ;;  %15279 = vst [vmem:[#allocation17_spill] sm:$0xff] %v14251_v60  ;;  %8927 = vmatpush3.bf16.msra.mxu0 %v14251_v60 }
 0xd6e   :  { %9646 = vmatpush3.bf16.msra.mxu1 %v9953_v44  ;;  %v14257_v44 = vld [vmem:[%s14672_s1 + $0x150] sm:$0xff]  }
 0xd6f   :  { %9647 = vmatprep.subr.bf16.mxu1 %v14967_v27  ;;  %15280 = vst [vmem:[#allocation18_spill] sm:$0xff] %v14257_v44  ;;  %8928 = vmatprep.subr.bf16.mxu0 %v14257_v44 }
 0xd70   :  { %8929 = vmatpush3.bf16.msra.mxu0 %v14263_v14 }
 0xd72   :  { %9648 = vmatpush3.bf16.msra.mxu1 %v9954_v31  ;;  %v14269_v31 = vld [vmem:[%s14672_s1 + $0x148] sm:$0xff]  }
 0xd73   :  { %9649 = vmatprep.subr.bf16.mxu1 %v14967_v27  ;;  %15282 = vst [vmem:[#allocation20_spill] sm:$0xff] %v14269_v31  ;;  %8930 = vmatprep.subr.bf16.mxu0 %v14269_v31 }
 0xd74   :  { %8931 = vmatpush3.bf16.msra.mxu0 %v14275_v26 }
 0xd75   :  { %8932 = vmatprep.subr.bf16.mxu0 %v14281_v20 }
 0xd76   :  { %9650 = vmatpush3.bf16.msra.mxu1 %v9955_v38  ;;  %v6015_v38 = vrot.slane %v6001_v42, %v10494_v35  ;;  %v14303_v42 = vld [vmem:[%s14672_s1 + $0x238] sm:$0xff]  }
 0xd77   :  { %8896 = vmatprep.subr.bf16.mxu1 %v13683_v41  ;;  %15286 = vst [vmem:[#allocation40_spill] sm:$0xff] %v14303_v42 }
 0xd78   :  { %v6017_v18 = vcombine.high %v6015_v38, %v6015_v38  ;;  %8933 = vmatpush3.bf16.msra.mxu0 %v14288_v58  ;;  %v14296_v26 = vrot.slane %v6015_v38, %v10494_v35  ;;  %v14312_v38 = vld [vmem:[%s14672_s1 + $0x230] sm:$0xff]  }
 0xd79   :  { %9655 = vmatprep.subr.bf16.mxu0 %v14967_v27  ;;  %15287 = vst [vmem:[#allocation43_spill] sm:$0xff] %v14312_v38 }
 0xd7a   :  { %v14292_v31 = vrot.slane %v6017_v18, %v10494_v35  ;;  %v14319_v18 = vld [vmem:[%s14672_s1 + $0x228] sm:$0xff]  }
 0xd7b   :  { %15288 = vst [vmem:[#allocation5_spill] sm:$0xff] %v14319_v18 }
 0xd7c   :  { %6185 = vmatprep.mubr.bf16.mxu0 %v14292_v31 }
 0xd7d   :  { %6186 = vmatmul.mubr.bf16.vlgmr.msra.gmra.mxu0 %v14296_v26 }
 0xd7e   :  { %9656 = vmatpush3.bf16.msra.mxu0 %v14303_v42  ;;  %9671 = vmatprep.mubr.msk.bf16.mxu0 %vm10275_vm0, %v14967_v27  ;;  %v14326_v42 = vld [vmem:[%s14672_s1 + $0x220] sm:$0xff]  }
 0xd7f   :  { %9657 = vmatprep.subr.bf16.mxu0 %v14967_v27  ;;  %15289 = vst [vmem:[#allocation2_spill] sm:$0xff] %v14326_v42 }
 0xd82   :  { %9658 = vmatpush3.bf16.msra.mxu0 %v14312_v38  ;;  %v14333_v38 = vld [vmem:[%s14672_s1 + $0x218] sm:$0xff]  }
 0xd83   :  { %9659 = vmatprep.subr.bf16.mxu0 %v14967_v27  ;;  %15290 = vst [vmem:[#allocation33_spill] sm:$0xff] %v14333_v38 }
 0xd86   :  { %9660 = vmatpush3.bf16.msra.mxu0 %v14319_v18 }
 0xd87   :  { %9661 = vmatprep.subr.bf16.mxu0 %v14967_v27 }
 0xd8a   :  { %9662 = vmatpush3.bf16.msra.mxu0 %v14326_v42  ;;  %v14343_v42 = vld [vmem:[%s14672_s1 + $0x210] sm:$0xff]  }
 0xd8b   :  { %9663 = vmatprep.subr.bf16.mxu0 %v14967_v27  ;;  %15292 = vst [vmem:[#allocation14_spill] sm:$0xff] %v14343_v42 }
 0xd8e   :  { %9664 = vmatpush3.bf16.msra.mxu0 %v14333_v38  ;;  %v14350_v38 = vld [vmem:[%s14672_s1 + $0x208] sm:$0xff]  }
 0xd8f   :  { %9665 = vmatprep.subr.bf16.mxu0 %v14967_v27  ;;  %15293 = vst [vmem:[#allocation24_spill] sm:$0xff] %v14350_v38 }
 0xd92   :  { %9666 = vmatpush3.bf16.msra.mxu0 %v14343_v42 }
 0xd93   :  { %9667 = vmatprep.subr.bf16.mxu0 %v14967_v27 }
 0xd96   :  { %9668 = vmatpush3.bf16.msra.mxu0 %v14350_v38  ;;  %v10263_v38 = vld [vmem:[%s14672_s1 + $0x30] sm:$0xff]  }
 0xd97   :  { %9669 = vmatprep.subr.bf16.mxu0 %v14967_v27 }
 0xdd9   :  { %v5604_v58 = vpop.f32.mrf.mxu1 }
 0xdda   :  { %v14338_v18 = vadd.f32 %v5604_v58, %v13891_v10  ;;  %v7328_v10 = vld.sshfl [vmem:[%s14673_s0 + $0x86] sm:$0x1 pattern:$0x75316420]  ;;  %v10262_v58 = vld [vmem:[%s14672_s1 + $0x70] sm:$0xff]  }
 0xddb   :  { %v9613_v20 = vpop.f32.mrf.mxu1 }
 0xddc   :  { %15291 = vst [vmem:[#allocation25_spill] sm:$0xff] %v14338_v18  ;;  %v10261_v20 = vld [vmem:[%s14672_s1 + $0x38] sm:$0xff]  }
 0xddd   :  { %v5607_v14 = vpop.f32.mrf.mxu1 }
 0xdde   :  { %v14360_v14 = vld [vmem:[%s14672_s1 + $0x200] sm:$0xff]  }
 0xddf   :  { %v9614_v44 = vpop.f32.mrf.mxu1  ;;  %15294 = vst [vmem:[#allocation36_spill] sm:$0xff] %v14360_v14  ;;  %9670 = vmatpush3.bf16.msra.mxu0 %v14360_v14 }
 0xde0   :  { %v6063_v44 = vrot.slane %v7328_v10, %v10494_v35  ;;  %8980 = vmatprep.subr.bf16.mxu0 %v13905_v53  ;;  %v10264_v53 = vld [vmem:[%s14672_s1 + $0x68] sm:$0xff]  }
 0xde1   :  { %v10265_v10 = vld [vmem:[%s14672_s1 + $0x28] sm:$0xff]  }
 0xde2   :  { %9672 = vmatmul.mubr.bf16.vlgmr.msra.gmra.mxu0 %v6063_v44  ;;  %v10266_v44 = vld [vmem:[%s14672_s1 + $0x60] sm:$0xff]  }
 0xde3   :  { %8981 = vmatpush3.bf16.msra.mxu0 %v10261_v20  ;;  %v10267_v20 = vld [vmem:[%s14672_s1 + $0x20] sm:$0xff]  }
 0xde4   :  { %8982 = vmatprep.subr.bf16.mxu0 %v10262_v58  ;;  %v10269_v58 = vld [vmem:[%s14672_s1 + $0x18] sm:$0xff]  }
 0xde7   :  { %8983 = vmatpush3.bf16.msra.mxu0 %v10263_v38  ;;  %v10268_v38 = vld [vmem:[%s14672_s1 + $0x58] sm:$0xff]  }
 0xde8   :  { %8984 = vmatprep.subr.bf16.mxu0 %v10264_v53 }
 0xdeb   :  { %8985 = vmatpush3.bf16.msra.mxu0 %v10265_v10  ;;  %v10270_v10 = vld [vmem:[%s14672_s1 + $0x50] sm:$0xff]  }
 0xdec   :  { %8986 = vmatprep.subr.bf16.mxu0 %v10266_v44 }
 0xdef   :  { %8987 = vmatpush3.bf16.msra.mxu0 %v10267_v20  ;;  %v5723_v20 = vadd.f32 %v13921_v62, %v14150_v13 }
 0xdf0   :  { %8988 = vmatprep.subr.bf16.mxu0 %v10268_v38  ;;  %v10271_v38 = vld [vmem:[%s14672_s1 + $0x10] sm:$0xff]  }
 0xdf3   :  { %8989 = vmatpush3.bf16.msra.mxu0 %v10269_v58  ;;  %v10272_v58 = vld [vmem:[%s14672_s1 + $0x48] sm:$0xff]  }
 0xdf4   :  { %8990 = vmatprep.subr.bf16.mxu0 %v10270_v10 }
 0xdf7   :  { %8991 = vmatpush3.bf16.msra.mxu0 %v10271_v38 }
 0xdf8   :  { %8992 = vmatprep.subr.bf16.mxu0 %v10272_v58 }
 0xdf9   :  { %v8806_v53 = vpop.f32.mrf.mxu1 }
 0xdfb   :  { %v8807_v44 = vpop.f32.mrf.mxu1  ;;  %8993 = vmatpush3.bf16.msra.mxu0 %v13931_v5  ;;  %v6049_v5 = vcombine.high %v14292_v31, %v14292_v31 }
 0xdfc   :  { %v8808_v14 = vadd.f32 %v8807_v44, %v8806_v53  ;;  %8994 = vmatprep.subr.bf16.mxu0 %v13937_v3  ;;  %v6047_v3 = vcombine.high %v14296_v26, %v14296_v26 }
 0xdfd   :  { %v8809_v42 = vpop.f32.mrf.mxu1 }
 0xdfe   :  { %v5763_v18 = vadd.f32 %v8808_v14, %v5723_v20 }
 0xdff   :  { %v8810_v60 = vpop.f32.mrf.mxu1  ;;  %8995 = vmatpush3.bf16.msra.mxu0 %v13943_v8 }
 0xe00   :  { %v5803_v10 = vadd.f32 %v14152_v48, %v5763_v18  ;;  %9024 = vmatprep.subr.bf16.mxu0 %v13949_v24  ;;  %v6048_v48 = vcombine.high %v14192_v4, %v14192_v4 }
 0xe01   :  { %v8890_v8 = vpop.f32.mrf.mxu0 }
 0xe03   :  { %v8891_v24 = vpop.f32.mrf.mxu0 }
 0xe05   :  { %v8893_v4 = vpop.f32.mrf.mxu0 }
 0xe19   :  { %v8850_v13 = vpop.f32.mrf.mxu1 }
 0xe1b   :  { %v8851_v53 = vpop.f32.mrf.mxu1 }
 0xe1c   :  { %v8852_v42 = vadd.f32 %v8851_v53, %v8850_v13  ;;  %v9957_v13 = vld [vmem:[%s14674_s3 + $0x3b8] sm:$0xff]   ;;  %v9958_v53 = vld [vmem:[%s14674_s3 + $0x3b0] sm:$0xff]  }
 0xe1d   :  { %v8853_v44 = vpop.f32.mrf.mxu1 }
 0xe1e   :  { %v5843_v38 = vadd.f32 %v8852_v42, %v5803_v10  ;;  %v9959_v42 = vld [vmem:[%s14674_s3 + $0x3a8] sm:$0xff]   ;;  %v9960_v44 = vld [vmem:[%s14674_s3 + $0x3a0] sm:$0xff]  }
 0xe1f   :  { %v8854_v62 = vpop.f32.mrf.mxu1 }
 0xe20   :  { %v5883_v58 = vadd.f32 %v14177_v51, %v5843_v38  ;;  %v6046_v62 = vcombine.high %v14196_v36, %v14196_v36  ;;  %v14451_v51 = vadd.f32 %v8891_v24, %v8890_v8  ;;  %v8894_v36 = vpop.f32.mrf.mxu0  ;;  %v9961_v38 = vld [vmem:[%s14674_s3 + $0x398] sm:$0xff]   ;;  %v9964_v24 = vld [vmem:[%s14674_s3 + $0x380] sm:$0xff]  }
 0xe22   :  { %v5888_v14 = vmax.f32 %v5883_v58, 0.0  ;;  %v9962_v58 = vld [vmem:[%s14674_s3 + $0x390] sm:$0xff]  }
 0xe24   :  { %v5889_v60 = vpack.c.bf16 %v5888_v14, %v5888_v14 }
 0xe26   :  { %9652 = vmatmul.mubr.bf16.vlgmr.msra.gmra.mxu1 %v5889_v60  ;;  %v9963_v60 = vld [vmem:[%s14674_s3 + $0x388] sm:$0xff]  }
 0xe27   :  { %8897 = vmatpush3.bf16.msra.mxu1 %v13958_v52  ;;  %6145 = vmatprep.mubr.bf16.mxu1 %v6048_v48 }
 0xe28   :  { %8898 = vmatprep.subr.bf16.mxu1 %v13964_v57 }
 0xe2b   :  { %8899 = vmatpush3.bf16.msra.mxu1 %v13970_v21 }
 0xe2c   :  { %8900 = vmatprep.subr.bf16.mxu1 %v13976_v23 }
 0xe2f   :  { %8901 = vmatpush3.bf16.msra.mxu1 %v13982_v39 }
 0xe30   :  { %8902 = vmatprep.subr.bf16.mxu1 %v13988_v2 }
 0xe33   :  { %8903 = vmatpush3.bf16.msra.mxu1 %v13994_v34 }
 0xe34   :  { %8904 = vmatprep.subr.bf16.mxu1 %v14000_v0 }
 0xe37   :  { %8905 = vmatpush3.bf16.msra.mxu1 %v14006_v47 }
 0xe38   :  { %8906 = vmatprep.subr.bf16.mxu1 %v14012_v6 }
 0xe3b   :  { %8907 = vmatpush3.bf16.msra.mxu1 %v14018_v7 }
 0xe3c   :  { %8908 = vmatprep.subr.bf16.mxu1 %v14024_v32 }
 0xe3d   :  { %v8934_v31 = vpop.f32.mrf.mxu0 }
 0xe3f   :  { %8909 = vmatpush3.bf16.msra.mxu1 %v14030_v30  ;;  %v8935_v18 = vpop.f32.mrf.mxu0 }
 0xe40   :  { %8910 = vmatprep.subr.bf16.mxu1 %v14036_v25  ;;  %v14453_v20 = vadd.f32 %v8935_v18, %v8934_v31  ;;  %v15296_v18 = vld [vmem:[#allocation18_spill] sm:$0xff] }
 0xe41   :  { %v8937_v10 = vpop.f32.mrf.mxu0 }
 0xe42   :  { %v15297_v10 = vld [vmem:[#allocation19_spill] sm:$0xff] }
 0xe43   :  { %8911 = vmatpush3.bf16.msra.mxu1 %v14044_v9  ;;  %v8938_v26 = vpop.f32.mrf.mxu0 }
 0xe44   :  { %8940 = vmatprep.subr.bf16.mxu1 %v14052_v59  ;;  %v15301_v26 = vld [vmem:[#allocation23_spill] sm:$0xff] }
 0xe46   :  { %6146 = vmatmul.mubr.bf16.vlgmr.msra.gmra.mxu1 %v6046_v62 }
 0xe47   :  { %8941 = vmatpush3.bf16.msra.mxu1 %v14058_v16  ;;  %6225 = vmatprep.mubr.bf16.mxu1 %v6049_v5  ;;  %v7353_v5 = vld [vmem:[%s14673_s0 + $0x87] sm:$0xff] }
 0xe48   :  { %8942 = vmatprep.subr.bf16.mxu1 %v14064_v19 }
 0xe4b   :  { %8943 = vmatpush3.bf16.msra.mxu1 %v14070_v40 }
 0xe4c   :  { %8944 = vmatprep.subr.bf16.mxu1 %v14076_v1 }
 0xe4f   :  { %8945 = vmatpush3.bf16.msra.mxu1 %v14082_v28 }
 0xe50   :  { %8946 = vmatprep.subr.bf16.mxu1 %v14088_v33 }
 0xe53   :  { %8947 = vmatpush3.bf16.msra.mxu1 %v14094_v43 }
 0xe54   :  { %8948 = vmatprep.subr.bf16.mxu1 %v14100_v29 }
 0xe57   :  { %8949 = vmatpush3.bf16.msra.mxu1 %v14106_v46 }
 0xe58   :  { %8950 = vmatprep.subr.bf16.mxu1 %v14112_v50 }
 0xe5b   :  { %8951 = vmatpush3.bf16.msra.mxu1 %v14118_v61 }
 0xe5c   :  { %8952 = vmatprep.subr.bf16.mxu1 %v14124_v17 }
 0xe5f   :  { %8953 = vmatpush3.bf16.msra.mxu1 %v14130_v45 }
 0xe60   :  { %8954 = vmatprep.subr.bf16.mxu1 %v14136_v15 }
 0xe63   :  { %8955 = vmatpush3.bf16.msra.mxu1 %v14144_v63 }
 0xe64   :  { %9675 = vmatprep.subr.bf16.mxu1 %v14967_v27 }
 0xe66   :  { %6226 = vmatmul.mubr.bf16.vlgmr.msra.gmra.mxu1 %v6047_v3  ;;  %v6393_v3 = vrot.slane %v7353_v5, %v10494_v35 }
 0xe67   :  { %9691 = vmatprep.mubr.msk.bf16.mxu1 %vm10275_vm0, %v14967_v27  ;;  %9676 = vmatpush3.bf16.msra.mxu1 %v9957_v13  ;;  %v15302_v13 = vld [vmem:[#allocation40_spill] sm:$0xff] }
 0xe68   :  { %9677 = vmatprep.subr.bf16.mxu1 %v14967_v27  ;;  %v6401_v4 = vcombine.high %v6393_v3, %v6393_v3  ;;  %v14497_v31 = vrot.slane %v6393_v3, %v10494_v35 }
 0xe6a   :  { %v14493_v36 = vrot.slane %v6401_v4, %v10494_v35  ;;  %v7355_v4 = vld.sshfl [vmem:[%s14673_s0 + $0x8f] sm:$0x1 pattern:$0x75316420] }
 0xe6b   :  { %9678 = vmatpush3.bf16.msra.mxu1 %v9958_v53  ;;  %v15303_v53 = vld [vmem:[#allocation43_spill] sm:$0xff] }
 0xe6c   :  { %9679 = vmatprep.subr.bf16.mxu1 %v14967_v27  ;;  %6490 = vmatprep.mubr.bf16.mxu0 %v14493_v36 }
 0xe6d   :  { %6491 = vmatmul.mubr.bf16.vlgmr.msra.gmra.mxu0 %v14497_v31 }
 0xe6e   :  { %9025 = vmatpush3.bf16.msra.mxu0 %v14203_v12  ;;  %v15298_v12 = vld [vmem:[#allocation20_spill] sm:$0xff] }
 0xe6f   :  { %9680 = vmatpush3.bf16.msra.mxu1 %v9959_v42  ;;  %9026 = vmatprep.subr.bf16.mxu0 %v14209_v22  ;;  %v6386_v22 = vcombine.high %v7353_v5, %v7353_v5  ;;  %v15304_v42 = vld [vmem:[#allocation5_spill] sm:$0xff]  ;;  %v15308_v5 = vld [vmem:[#allocation14_spill] sm:$0xff] }
 0xe70   :  { %9681 = vmatprep.subr.bf16.mxu1 %v14967_v27 }
 0xe72   :  { %9027 = vmatpush3.bf16.msra.mxu0 %v14215_v37  ;;  %v15299_v37 = vld [vmem:[#allocation21_spill] sm:$0xff] }
 0xe73   :  { %9682 = vmatpush3.bf16.msra.mxu1 %v9960_v44  ;;  %9028 = vmatprep.subr.bf16.mxu0 %v14221_v11  ;;  %v15300_v11 = vld [vmem:[#allocation22_spill] sm:$0xff] }
 0xe74   :  { %9683 = vmatprep.subr.bf16.mxu1 %v14967_v27  ;;  %v15305_v44 = vld [vmem:[#allocation2_spill] sm:$0xff] }
 0xe76   :  { %9029 = vmatpush3.bf16.msra.mxu0 %v14227_v54  ;;  %v6400_v54 = vrot.slane %v6386_v22, %v10494_v35  ;;  %v15311_v22 = vld [vmem:[#allocation16_spill] sm:$0xff] }
 0xe77   :  { %9684 = vmatpush3.bf16.msra.mxu1 %v9961_v38  ;;  %9030 = vmatprep.subr.bf16.mxu0 %v14233_v55  ;;  %v15306_v38 = vld [vmem:[#allocation33_spill] sm:$0xff] }
 0xe78   :  { %9685 = vmatprep.subr.bf16.mxu1 %v14967_v27  ;;  %v6402_v55 = vcombine.high %v6400_v54, %v6400_v54 }
 0xe7a   :  { %9031 = vmatpush3.bf16.msra.mxu0 %v14239_v56  ;;  %v14518_v56 = vrot.slane %v6402_v55, %v10494_v35 }
 0xe7b   :  { %9686 = vmatpush3.bf16.msra.mxu1 %v9962_v58  ;;  %9032 = vmatprep.subr.bf16.mxu0 %v14245_v49  ;;  %v14522_v49 = vrot.slane %v6400_v54, %v10494_v35 }
 0xe7c   :  { %9687 = vmatprep.subr.bf16.mxu1 %v14967_v27  ;;  %6570 = vmatprep.mubr.bf16.mxu0 %v14518_v56 }
 0xe7f   :  { %9688 = vmatpush3.bf16.msra.mxu1 %v9963_v60 }
 0xe80   :  { %9689 = vmatprep.subr.bf16.mxu1 %v14967_v27 }
 0xe83   :  { %9690 = vmatpush3.bf16.msra.mxu1 %v9964_v24  ;;  %v15309_v24 = vld [vmem:[#allocation24_spill] sm:$0xff] }
 0xe84   :  { %9002 = vmatprep.subr.bf16.mxu1 %v13683_v41  ;;  %v15295_v41 = vld [vmem:[#allocation17_spill] sm:$0xff] }
 0xe85   :  { %9033 = vmatpush3.bf16.msra.mxu0 %v15295_v41  ;;  %v15310_v41 = vld [vmem:[#allocation36_spill] sm:$0xff] }
 0xe86   :  { %9034 = vmatprep.subr.bf16.mxu0 %v15296_v18  ;;  %v6448_v18 = vrot.slane %v7355_v4, %v10494_v35 }
 0xe89   :  { %9035 = vmatpush3.bf16.msra.mxu0 %v15297_v10 }
 0xe8a   :  { %9036 = vmatprep.subr.bf16.mxu0 %v15298_v12 }
 0xe8d   :  { %9037 = vmatpush3.bf16.msra.mxu0 %v15299_v37  ;;  %v6108_v37 = vadd.f32 %v15311_v22, %v14451_v51 }
 0xe8e   :  { %9038 = vmatprep.subr.bf16.mxu0 %v15300_v11 }
 0xe91   :  { %9039 = vmatpush3.bf16.msra.mxu0 %v15301_v26 }
 0xe92   :  { %9695 = vmatprep.subr.bf16.mxu0 %v14967_v27 }
 0xe94   :  { %6571 = vmatmul.mubr.bf16.vlgmr.msra.gmra.mxu0 %v14522_v49 }
 0xe95   :  { %9696 = vmatpush3.bf16.msra.mxu0 %v15302_v13  ;;  %9711 = vmatprep.mubr.msk.bf16.mxu0 %vm10275_vm0, %v14967_v27 }
 0xe96   :  { %9697 = vmatprep.subr.bf16.mxu0 %v14967_v27 }
 0xe99   :  { %9698 = vmatpush3.bf16.msra.mxu0 %v15303_v53 }
 0xe9a   :  { %9699 = vmatprep.subr.bf16.mxu0 %v14967_v27 }
 0xe9d   :  { %9700 = vmatpush3.bf16.msra.mxu0 %v15304_v42 }
 0xe9e   :  { %9701 = vmatprep.subr.bf16.mxu0 %v14967_v27 }
 0xea1   :  { %9702 = vmatpush3.bf16.msra.mxu0 %v15305_v44 }
 0xea2   :  { %v14478_v14 = vpop.f32.mrf.mxu0  ;;  %9703 = vmatprep.subr.bf16.mxu0 %v14967_v27 }
 0xea4   :  { %v9673_v48 = vpop.f32.mrf.mxu0 }
 0xea5   :  { %9704 = vmatpush3.bf16.msra.mxu0 %v15306_v38  ;;  %v15307_v48 = vld [vmem:[#allocation25_spill] sm:$0xff] }
 0xea6   :  { %v6270_v62 = vpop.f32.mrf.mxu0  ;;  %9705 = vmatprep.subr.bf16.mxu0 %v14967_v27 }
 0xea8   :  { %v9674_v8 = vpop.f32.mrf.mxu0 }
 0xea9   :  { %9706 = vmatpush3.bf16.msra.mxu0 %v15308_v5  ;;  %v6433_v5 = vcombine.high %v14493_v36, %v14493_v36 }
 0xeaa   :  { %9707 = vmatprep.subr.bf16.mxu0 %v14967_v27 }
 0xead   :  { %9708 = vmatpush3.bf16.msra.mxu0 %v15309_v24 }
 0xeae   :  { %9709 = vmatprep.subr.bf16.mxu0 %v14967_v27 }
 0xeb1   :  { %9710 = vmatpush3.bf16.msra.mxu0 %v15310_v41 }
 0xeb2   :  { %9735 = vmatprep.subr.bf16.mxu0 %v14967_v27 }
 0xeb4   :  { %9712 = vmatmul.mubr.bf16.vlgmr.msra.gmra.mxu0 %v6448_v18 }
 0xeb5   :  { %9751 = vmatprep.mubr.msk.bf16.mxu0 %vm10275_vm0, %v14967_v27 }
 0xee6   :  { %v5989_v58 = vpop.f32.mrf.mxu1 }
 0xee7   :  { %v14539_v60 = vadd.f32 %v5989_v58, %v15307_v48 }
 0xee8   :  { %v9653_v62 = vpop.f32.mrf.mxu1 }
 0xeea   :  { %v5992_v3 = vpop.f32.mrf.mxu1 }
 0xeec   :  { %v9654_v8 = vpop.f32.mrf.mxu1 }
 0xf06   :  { %v8912_v10 = vpop.f32.mrf.mxu1 }
 0xf08   :  { %v8913_v12 = vpop.f32.mrf.mxu1 }
 0xf09   :  { %v8914_v11 = vadd.f32 %v8913_v12, %v8912_v10 }
 0xf0a   :  { %v8915_v54 = vpop.f32.mrf.mxu1 }
 0xf0b   :  { %v6148_v55 = vadd.f32 %v8914_v11, %v6108_v37 }
 0xf0c   :  { %v8916_v26 = vpop.f32.mrf.mxu1 }
 0xf0d   :  { %v6188_v13 = vadd.f32 %v14453_v20, %v6148_v55 }
 0xf26   :  { %v8956_v53 = vpop.f32.mrf.mxu1 }
 0xf28   :  { %v8957_v42 = vpop.f32.mrf.mxu1 }
 0xf29   :  { %v8958_v35 = vadd.f32 %v8957_v42, %v8956_v53  ;;  %v9980_v42 = vld [vmem:[%s14676_s5 + $0x8] sm:$0xff]  }
 0xf2a   :  { %v8959_v44 = vpop.f32.mrf.mxu1 }
 0xf2b   :  { %v6228_v38 = vadd.f32 %v8958_v35, %v6188_v13  ;;  %v7380_v44 = vld [vmem:[%s14677_s4] ss:$0 sm:$0xff] }
 0xf2c   :  { %v8960_v58 = vpop.f32.mrf.mxu1 }
 0xf2d   :  { %v6268_v48 = vadd.f32 %v14478_v14, %v6228_v38 }
 0xf2f   :  { %v6273_v62 = vmax.f32 %v6268_v48, 0.0 }
 0xf31   :  { %v6274_v3 = vpack.c.bf16 %v6273_v62, %v6273_v62 }
 0xf33   :  { %9692 = vmatmul.mubr.bf16.vlgmr.msra.gmra.mxu1 %v6274_v3 }
 0xf34   :  { %9003 = vmatpush3.bf16.msra.mxu1 %v13958_v52  ;;  %6530 = vmatprep.mubr.bf16.mxu1 %v6433_v5  ;;  %v6431_v52 = vcombine.high %v14497_v31, %v14497_v31 }
 0xf35   :  { %9004 = vmatprep.subr.bf16.mxu1 %v13964_v57  ;;  %v6434_v57 = vcombine.high %v14518_v56, %v14518_v56 }
 0xf38   :  { %9005 = vmatpush3.bf16.msra.mxu1 %v13970_v21  ;;  %v6432_v21 = vcombine.high %v14522_v49, %v14522_v49 }
 0xf39   :  { %9006 = vmatprep.subr.bf16.mxu1 %v13976_v23  ;;  %v8996_v23 = vpop.f32.mrf.mxu0 }
 0xf3c   :  { %9007 = vmatpush3.bf16.msra.mxu1 %v13982_v39  ;;  %v8997_v39 = vpop.f32.mrf.mxu0 }
 0xf3d   :  { %9008 = vmatprep.subr.bf16.mxu1 %v13988_v2  ;;  %v8998_v2 = vadd.f32 %v8997_v39, %v8996_v23 }
 0xf3f   :  { %v6493_v8 = vadd.f32 %v15311_v22, %v8998_v2  ;;  %v9981_v22 = vld [vmem:[%s14676_s5] sm:$0xff]  }
 0xf40   :  { %9009 = vmatpush3.bf16.msra.mxu1 %v13994_v34  ;;  %v8999_v34 = vpop.f32.mrf.mxu0 }
 0xf41   :  { %9010 = vmatprep.subr.bf16.mxu1 %v14000_v0 }
 0xf42   :  { %v9000_v0 = vpop.f32.mrf.mxu0 }
 0xf44   :  { %9011 = vmatpush3.bf16.msra.mxu1 %v14006_v47 }
 0xf45   :  { %9012 = vmatprep.subr.bf16.mxu1 %v14012_v6 }
 0xf48   :  { %9013 = vmatpush3.bf16.msra.mxu1 %v14018_v7 }
 0xf49   :  { %9014 = vmatprep.subr.bf16.mxu1 %v14024_v32 }
 0xf4c   :  { %9015 = vmatpush3.bf16.msra.mxu1 %v14030_v30 }
 0xf4d   :  { %9016 = vmatprep.subr.bf16.mxu1 %v14036_v25  ;;  %v9966_v25 = vld [vmem:[%s14674_s3 + $0x3f8] sm:$0xff]  }
 0xf50   :  { %9017 = vmatpush3.bf16.msra.mxu1 %v14044_v9  ;;  %v9967_v9 = vld [vmem:[%s14674_s3 + $0x3f0] sm:$0xff]  }
 0xf51   :  { %9046 = vmatprep.subr.bf16.mxu1 %v14052_v59  ;;  %v9968_v59 = vld [vmem:[%s14674_s3 + $0x3e8] sm:$0xff]  }
 0xf53   :  { %6531 = vmatmul.mubr.bf16.vlgmr.msra.gmra.mxu1 %v6431_v52 }
 0xf54   :  { %9047 = vmatpush3.bf16.msra.mxu1 %v14058_v16  ;;  %6610 = vmatprep.mubr.bf16.mxu1 %v6434_v57  ;;  %v9040_v47 = vpop.f32.mrf.mxu0  ;;  %v9969_v16 = vld [vmem:[%s14674_s3 + $0x3e0] sm:$0xff]  }
 0xf55   :  { %9048 = vmatprep.subr.bf16.mxu1 %v14064_v19  ;;  %v9970_v19 = vld [vmem:[%s14674_s3 + $0x3d8] sm:$0xff]  }
 0xf56   :  { %v9041_v6 = vpop.f32.mrf.mxu0 }
 0xf57   :  { %v9042_v7 = vadd.f32 %v9041_v6, %v9040_v47 }
 0xf58   :  { %9049 = vmatpush3.bf16.msra.mxu1 %v14070_v40  ;;  %v9043_v32 = vpop.f32.mrf.mxu0  ;;  %v9971_v40 = vld [vmem:[%s14674_s3 + $0x3d0] sm:$0xff]  }
 0xf59   :  { %9050 = vmatprep.subr.bf16.mxu1 %v14076_v1 }
 0xf5a   :  { %v9044_v30 = vpop.f32.mrf.mxu0 }
 0xf5c   :  { %9051 = vmatpush3.bf16.msra.mxu1 %v14082_v28 }
 0xf5d   :  { %9052 = vmatprep.subr.bf16.mxu1 %v14088_v33  ;;  %v9972_v33 = vld [vmem:[%s14674_s3 + $0x3c8] sm:$0xff]  }
 0xf60   :  { %9053 = vmatpush3.bf16.msra.mxu1 %v14094_v43 }
 0xf61   :  { %9054 = vmatprep.subr.bf16.mxu1 %v14100_v29 }
 0xf64   :  { %9055 = vmatpush3.bf16.msra.mxu1 %v14106_v46  ;;  %v9973_v46 = vld [vmem:[%s14674_s3 + $0x3c0] sm:$0xff]  }
 0xf65   :  { %9056 = vmatprep.subr.bf16.mxu1 %v14112_v50  ;;  %v9974_v50 = vld [vmem:[%s14676_s5 + $0x38] sm:$0xff]  }
 0xf66   :  { %9736 = vmatpush3.bf16.msra.mxu0 %v9974_v50 }
 0xf67   :  { %9737 = vmatprep.subr.bf16.mxu0 %v14967_v27 }
 0xf68   :  { %9057 = vmatpush3.bf16.msra.mxu1 %v14118_v61  ;;  %v9975_v61 = vld [vmem:[%s14676_s5 + $0x30] sm:$0xff]  }
 0xf69   :  { %9058 = vmatprep.subr.bf16.mxu1 %v14124_v17  ;;  %v9976_v17 = vld [vmem:[%s14676_s5 + $0x28] sm:$0xff]  }
 0xf6a   :  { %9738 = vmatpush3.bf16.msra.mxu0 %v9975_v61 }
 0xf6b   :  { %9739 = vmatprep.subr.bf16.mxu0 %v14967_v27 }
 0xf6c   :  { %9059 = vmatpush3.bf16.msra.mxu1 %v14130_v45  ;;  %v9977_v45 = vld [vmem:[%s14676_s5 + $0x20] sm:$0xff]  }
 0xf6d   :  { %9060 = vmatprep.subr.bf16.mxu1 %v14136_v15  ;;  %v9978_v15 = vld [vmem:[%s14676_s5 + $0x18] sm:$0xff]  }
 0xf6e   :  { %9740 = vmatpush3.bf16.msra.mxu0 %v9976_v17 }
 0xf6f   :  { %9741 = vmatprep.subr.bf16.mxu0 %v14967_v27 }
 0xf70   :  { %9061 = vmatpush3.bf16.msra.mxu1 %v14144_v63  ;;  %v9979_v63 = vld [vmem:[%s14676_s5 + $0x10] sm:$0xff]  }
 0xf71   :  { %9715 = vmatprep.subr.bf16.mxu1 %v14967_v27 }
 0xf72   :  { %9742 = vmatpush3.bf16.msra.mxu0 %v9977_v45 }
 0xf73   :  { %6611 = vmatmul.mubr.bf16.vlgmr.msra.gmra.mxu1 %v6432_v21  ;;  %9743 = vmatprep.subr.bf16.mxu0 %v14967_v27 }
 0xf74   :  { %9731 = vmatprep.mubr.msk.bf16.mxu1 %vm10275_vm0, %v14967_v27  ;;  %9716 = vmatpush3.bf16.msra.mxu1 %v9966_v25  ;;  %v6652_v1 = vpop.f32.mrf.mxu0 }
 0xf75   :  { %9717 = vmatprep.subr.bf16.mxu1 %v14967_v27 }
 0xf76   :  { %v9713_v28 = vpop.f32.mrf.mxu0  ;;  %9744 = vmatpush3.bf16.msra.mxu0 %v9978_v15 }
 0xf77   :  { %9745 = vmatprep.subr.bf16.mxu0 %v14967_v27 }
 0xf78   :  { %9718 = vmatpush3.bf16.msra.mxu1 %v9967_v9  ;;  %v6655_v43 = vpop.f32.mrf.mxu0 }
 0xf79   :  { %9719 = vmatprep.subr.bf16.mxu1 %v14967_v27 }
 0xf7a   :  { %v9714_v29 = vpop.f32.mrf.mxu0  ;;  %9746 = vmatpush3.bf16.msra.mxu0 %v9979_v63 }
 0xf7b   :  { %9747 = vmatprep.subr.bf16.mxu0 %v14967_v27 }
 0xf7c   :  { %9720 = vmatpush3.bf16.msra.mxu1 %v9968_v59 }
 0xf7d   :  { %9721 = vmatprep.subr.bf16.mxu1 %v14967_v27 }
 0xf7e   :  { %9748 = vmatpush3.bf16.msra.mxu0 %v9980_v42 }
 0xf7f   :  { %9749 = vmatprep.subr.bf16.mxu0 %v14967_v27 }
 0xf80   :  { %9722 = vmatpush3.bf16.msra.mxu1 %v9969_v16 }
 0xf81   :  { %9723 = vmatprep.subr.bf16.mxu1 %v14967_v27 }
 0xf82   :  { %9750 = vmatpush3.bf16.msra.mxu0 %v9981_v22 }
 0xf84   :  { %9724 = vmatpush3.bf16.msra.mxu1 %v9970_v19 }
 0xf85   :  { %9725 = vmatprep.subr.bf16.mxu1 %v14967_v27 }
 0xf88   :  { %9726 = vmatpush3.bf16.msra.mxu1 %v9971_v40 }
 0xf89   :  { %9727 = vmatprep.subr.bf16.mxu1 %v14967_v27 }
 0xf8c   :  { %9728 = vmatpush3.bf16.msra.mxu1 %v9972_v33 }
 0xf8d   :  { %9729 = vmatprep.subr.bf16.mxu1 %v14967_v27  ;;  %v7381_v27 = vld [vmem:[%s14678_s6] ss:$0 sm:$0xff] }
 0xf90   :  { %9730 = vmatpush3.bf16.msra.mxu1 %v9973_v46 }
 0xff3   :  { %v6374_v51 = vpop.f32.mrf.mxu1 }
 0xff4   :  { %v6380_v20 = vadd.f32 %v6374_v51, %v14539_v60 }
 0xff5   :  { %v9693_v14 = vpop.f32.mrf.mxu1 }
 0xff7   :  { %v6377_v36 = vpop.f32.mrf.mxu1 }
 0xff9   :  { %v9694_v31 = vpop.f32.mrf.mxu1 }
0x1013   :  { %v9018_v56 = vpop.f32.mrf.mxu1 }
0x1015   :  { %v9019_v49 = vpop.f32.mrf.mxu1 }
0x1016   :  { %v9020_v24 = vadd.f32 %v9019_v49, %v9018_v56 }
0x1017   :  { %v9021_v4 = vpop.f32.mrf.mxu1 }
0x1018   :  { %v6533_v41 = vadd.f32 %v9020_v24, %v6493_v8 }
0x1019   :  { %v9022_v18 = vpop.f32.mrf.mxu1 }
0x101a   :  { %v6573_v10 = vadd.f32 %v9042_v7, %v6533_v41 }
0x1033   :  { %v9062_v12 = vpop.f32.mrf.mxu1 }
0x1035   :  { %v9063_v37 = vpop.f32.mrf.mxu1 }
0x1036   :  { %v9064_v11 = vadd.f32 %v9063_v37, %v9062_v12 }
0x1037   :  { %v9065_v54 = vpop.f32.mrf.mxu1 }
0x1038   :  { %v6613_v55 = vadd.f32 %v9064_v11, %v6573_v10 }
0x1039   :  { %v9066_v26 = vpop.f32.mrf.mxu1 }
0x103a   :  { %v6653_v13 = vadd.f32 %v6652_v1, %v6613_v55 }
0x103c   :  { %v6658_v60 = vmax.f32 %v6653_v13, 0.0 }
0x103e   :  { %v6659_v53 = vpack.c.bf16 %v6658_v60, %v6658_v60 }
0x1040   :  { %9732 = vmatmul.mubr.bf16.vlgmr.msra.gmra.mxu1 %v6659_v53 }
0x1100   :  { %v6759_v35 = vpop.f32.mrf.mxu1 }
0x1101   :  { %v6765_v38 = vadd.f32 %v6759_v35, %v6380_v20 }
0x1102   :  { %v9733_v58 = vpop.f32.mrf.mxu1 }
0x1103   :  { %v6773_v48 = vadd.f32 %v7380_v44, %v6765_v38 }
0x1104   :  { %v6762_v62 = vpop.f32.mrf.mxu1 }
0x1105   :  { %v6774_v5 = vmax.f32 %v6773_v48, 0.0 }
0x1106   :  { %v9734_v3 = vpop.f32.mrf.mxu1 }
0x1107   :  { %v6775_v52 = vpack.c.bf16 %v6774_v5, %v6774_v5 }
0x1109   :  { %9752 = vmatmul.mubr.bf16.vlgmr.msra.gmra.mxu0 %v6775_v52 }
0x11c9   :  { %v6881_v57 = vpop.f32.mrf.mxu0 }
0x11ca   :  { %v6882_v21 = vadd.f32 %v7381_v27, %v6881_v57 }
0x11cb   :  { %v9753_v23 = vpop.f32.mrf.mxu0 }
0x11cc   :  { %6888 = vst.msk [vmem:[%s14679_s7] sm:$0x3] %vm6887_vm1, %v6882_v21 }
0x11cd   :  { %v6884_v39 = vpop.f32.mrf.mxu0 }
0x11cf   :  { %v9754_v2 = vpop.f32.mrf.mxu0 }

// kernel: decoder_forward.14
= control target key start
LH: loop header
LB: loop body
LE: loop exit
PB: predicated region body
PF: predicated region fallthrough
CT: control target
= control target key end

     0   :  { %s3950_s12 = smov 0   ;;  %s4799_s0 = inlined_call_operand.vmem [shape: bf16[512,1152], index: 0, kind: input, shape index: {}]   ;;  %s4800_s1 = inlined_call_operand.vmem [shape: bf16[1152,128], index: 1, kind: input, shape index: {}]   ;;  %s4801_s2 = inlined_call_operand.vmem [shape: f32[1,128], index: 2, kind: input, shape index: {}]   ;;  %s4802_s3 = inlined_call_operand.vmem [shape: bf16[512,128], index: 3, kind: output, shape index: {}]  }
   0x1 LB: > { %s2710_s13 = sadd.s32 4294967295, %s3928_s12   ;;  %p2714_p0 = scmp.ge.s32.totalorder %s3928_s12, 1  ;;  %s3928_s12 = sphi %s3950_s12, %s13_s12  }
   0x2   : > { %p139_p1 = scmp.lt.s32.totalorder %s3928_s12, 3 }
   0x4   : > { %p140_p2 = pnand %p2714_p0, %p139_p1 }
   0x6   : > { %143 = sbr.rel (%p140_p2) target bundleno = 534 (0x216), region = 32 }
   0xb   : > { %v3642_v0 = vld [vmem:[%s4800_s1 + $0x78] sm:$0xff]   ;;  %s2715_s16 = sshll.u32 %s2710_s13, 5  ;;  %v3644_v2 = vld [vmem:[%s4800_s1 + $0x70] sm:$0xff]   ;;  %v3646_v4 = vld [vmem:[%s4800_s1 + $0x68] sm:$0xff]  }
   0xc   : > { %v3643_v1 = vld [vmem:[%s4800_s1 + $0x38] sm:$0xff]   ;;  %3097 = vmatprep.subr.bf16.mxu0 %v3642_v0  ;;  %3617 = vmatprep.subr.bf16.mxu1 %v3642_v0  ;;  %p165_p3 = scmp.lt.s32.totalorder %s2715_s16, 63  ;;  %v3645_v3 = vld [vmem:[%s4800_s1 + $0x30] sm:$0xff]   ;;  %v3647_v5 = vld [vmem:[%s4800_s1 + $0x28] sm:$0xff]  }
   0xd   : > { %3098 = vmatpush3.bf16.msra.mxu0 %v3643_v1  ;;  %3625 = vmatpush3.bf16.msra.mxu1 %v3643_v1  ;;  %v3648_v6 = vld [vmem:[%s4800_s1 + $0x60] sm:$0xff]   ;;  %v3650_v8 = vld [vmem:[%s4800_s1 + $0x58] sm:$0xff]   ;;  %v3652_v10 = vld [vmem:[%s4800_s1 + $0x50] sm:$0xff]  }
   0xe   : > { %3099 = vmatprep.subr.bf16.mxu0 %v3644_v2  ;;  %3618 = vmatprep.subr.bf16.mxu1 %v3644_v2  ;;  %s4826_s16 = smov (!%p165_p3, %s2715_s16), 63  ;;  %v3649_v7 = vld [vmem:[%s4800_s1 + $0x20] sm:$0xff]   ;;  %v3651_v9 = vld [vmem:[%s4800_s1 + $0x18] sm:$0xff]   ;;  %v3653_v13 = vld [vmem:[%s4800_s1 + $0x10] sm:$0xff]  }
   0xf   : > { %s3633_s29 = smul.u32 36, %s4826_s16  ;;  %v3654_v14 = vld [vmem:[%s4800_s1 + $0x48] sm:$0xff]   ;;  %v3656_v16 = vld [vmem:[%s4800_s1 + $0x40] sm:$0xff]   ;;  %v3664_v18 = vld [vmem:[%s4800_s1 + $0xf8] sm:$0xff]  }
  0x10   : > { %v3655_v15 = vld [vmem:[%s4800_s1 + $0x8] sm:$0xff]   ;;  %v3657_v17 = vld [vmem:[%s4800_s1] sm:$0xff]   ;;  %v3667_v21 = vld [vmem:[%s4800_s1 + $0x178] sm:$0xff]  }
  0x11   : > { %3100 = vmatpush3.bf16.msra.mxu0 %v3645_v3  ;;  %3626 = vmatpush3.bf16.msra.mxu1 %v3645_v3  ;;  %s3991_s9 = scalar_lea.vmem %s4799_s0, %s3633_s29  ;;  %v3665_v22 = vld [vmem:[%s4800_s1 + $0xb8] sm:$0xff]   ;;  %v3666_v23 = vld [vmem:[%s4800_s1 + $0xf0] sm:$0xff]   ;;  %v3676_v31 = vld [vmem:[%s4800_s1 + $0xe8] sm:$0xff]  }
  0x12   : > { %3101 = vmatprep.subr.bf16.mxu0 %v3646_v4  ;;  %3619 = vmatprep.subr.bf16.mxu1 %v3646_v4  ;;  %v3660_v11 = vld [vmem:[%s3991_s9 + $0x4] ss:$36 sps:$4 sm:$0xff]   ;;  %v3669_v24 = vld [vmem:[%s4800_s1 + $0x138] sm:$0xff]   ;;  %v3670_v25 = vld [vmem:[%s3991_s9 + $0x4c] ss:$36 sps:$4 sm:$0xff]  }
  0x13   : > { %v3663_v12 = vld [vmem:[%s3991_s9 + $0x364] ss:$36 sps:$4 sm:$0xff]   ;;  %1689 = vmatprep.mubr.bf16.mxu0 %v3660_v11  ;;  %v3672_v26 = vld [vmem:[%s3991_s9 + $0x3ac] ss:$36 sps:$4 sm:$0xff]   ;;  %v3680_v35 = vld [vmem:[%s3991_s9 + $0x94] ss:$36 sps:$4 sm:$0xff]  }
  0x14   : > { %1785 = vmatprep.mubr.bf16.mxu1 %v3663_v12  ;;  %v3658_v19 = vld [vmem:[%s3991_s9] ss:$36 sps:$4 sm:$0xff]   ;;  %v3668_v27 = vld [vmem:[%s4800_s1 + $0xb0] sm:$0xff]   ;;  %v3674_v29 = vld [vmem:[%s3991_s9 + $0x48] ss:$36 sps:$4 sm:$0xff]  }
  0x15   : > { %3102 = vmatpush3.bf16.msra.mxu0 %v3647_v5  ;;  %3627 = vmatpush3.bf16.msra.mxu1 %v3647_v5  ;;  %v3661_v20 = vld [vmem:[%s3991_s9 + $0x360] ss:$36 sps:$4 sm:$0xff]   ;;  %v3687_v28 = vld [vmem:[%s4800_s1 + $0x170] sm:$0xff]   ;;  %v3675_v30 = vld [vmem:[%s3991_s9 + $0x3a8] ss:$36 sps:$4 sm:$0xff]  }
  0x16   : > { %3103 = vmatprep.subr.bf16.mxu0 %v3648_v6  ;;  %3620 = vmatprep.subr.bf16.mxu1 %v3648_v6  ;;  %v3677_v32 = vld [vmem:[%s4800_s1 + $0xa8] sm:$0xff]   ;;  %v3689_v33 = vld [vmem:[%s4800_s1 + $0x130] sm:$0xff]   ;;  %v3678_v34 = vld [vmem:[%s4800_s1 + $0xe0] sm:$0xff]  }
  0x17   : > { %v3682_v36 = vld [vmem:[%s3991_s9 + $0x3f4] ss:$36 sps:$4 sm:$0xff]   ;;  %v3679_v37 = vld [vmem:[%s4800_s1 + $0xa0] sm:$0xff]   ;;  %v3701_v43 = vld [vmem:[%s4800_s1 + $0x168] sm:$0xff]  }
  0x18   : > { %v3684_v38 = vld [vmem:[%s3991_s9 + $0x90] ss:$36 sps:$4 sm:$0xff]   ;;  %v3686_v40 = vld [vmem:[%s4800_s1 + $0xd8] sm:$0xff]   ;;  %v3703_v46 = vld [vmem:[%s4800_s1 + $0x128] sm:$0xff]  }
  0x19   : > { %3104 = vmatpush3.bf16.msra.mxu0 %v3649_v7  ;;  %3628 = vmatpush3.bf16.msra.mxu1 %v3649_v7  ;;  %v3685_v39 = vld [vmem:[%s3991_s9 + $0x3f0] ss:$36 sps:$4 sm:$0xff]   ;;  %v3688_v41 = vld [vmem:[%s4800_s1 + $0x98] sm:$0xff]   ;;  %v3698_v48 = vld [vmem:[%s4800_s1 + $0xc8] sm:$0xff]  }
  0x1a   : > { %3105 = vmatprep.subr.bf16.mxu0 %v3650_v8  ;;  %3621 = vmatprep.subr.bf16.mxu1 %v3650_v8  ;;  %v3690_v42 = vld [vmem:[%s4800_s1 + $0xd0] sm:$0xff]   ;;  %v3692_v44 = vld [vmem:[%s3991_s9 + $0xdc] ss:$36 sps:$4 sm:$0xff]   ;;  %v3699_v51 = vld [vmem:[%s4800_s1 + $0x88] sm:$0xff]  }
  0x1b   : > { %v3694_v45 = vld [vmem:[%s3991_s9 + $0x43c] ss:$36 sps:$4 sm:$0xff]   ;;  %v3691_v47 = vld [vmem:[%s4800_s1 + $0x90] sm:$0xff]   ;;  %v3704_v53 = vld [vmem:[%s3991_s9 + $0x124] ss:$36 sps:$4 sm:$0xff]  }
  0x1c   : > { %v3696_v49 = vld [vmem:[%s3991_s9 + $0xd8] ss:$36 sps:$4 sm:$0xff]   ;;  %v3700_v52 = vld [vmem:[%s4800_s1 + $0xc0] sm:$0xff]   ;;  %v3708_v54 = vld [vmem:[%s3991_s9 + $0xc] ss:$36 sps:$4 sm:$0xff]  }
  0x1d   : > { %3106 = vmatpush3.bf16.msra.mxu0 %v3651_v9  ;;  %3629 = vmatpush3.bf16.msra.mxu1 %v3651_v9  ;;  %v3697_v50 = vld [vmem:[%s3991_s9 + $0x438] ss:$36 sps:$4 sm:$0xff]   ;;  %v3718_v55 = vld [vmem:[%s4800_s1 + $0x160] sm:$0xff]   ;;  %v3706_v58 = vld [vmem:[%s3991_s9 + $0x8] ss:$36 sps:$4 sm:$0xff]  }
  0x1e   : > { %3107 = vmatprep.subr.bf16.mxu0 %v3652_v10  ;;  %3622 = vmatprep.subr.bf16.mxu1 %v3652_v10  ;;  %v3719_v56 = vld [vmem:[%s4800_s1 + $0x120] sm:$0xff]   ;;  %v3710_v60 = vld [vmem:[%s4800_s1 + $0x1f8] sm:$0xff]   ;;  %v3712_v62 = vld [vmem:[%s3991_s9 + $0x16c] ss:$36 sps:$4 sm:$0xff]  }
  0x1f   : > { %v3702_v57 = vld [vmem:[%s4800_s1 + $0x80] sm:$0xff]   ;;  %v3711_v61 = vld [vmem:[%s4800_s1 + $0x1b8] sm:$0xff]   ;;  %v3726_v1 = vld [vmem:[%s4800_s1 + $0x1f0] sm:$0xff]  }
  0x20   : > { %v3709_v59 = vld [vmem:[%s3991_s9 + $0x120] ss:$36 sps:$4 sm:$0xff]   ;;  %v3714_v63 = vld [vmem:[%s3991_s9 + $0x54] ss:$36 sps:$4 sm:$0xff]   ;;  %v3716_v4 = vld [vmem:[%s3991_s9 + $0x168] ss:$36 sps:$4 sm:$0xff]  }
  0x21   : > { %3108 = vmatpush3.bf16.msra.mxu0 %v3653_v13  ;;  %3630 = vmatpush3.bf16.msra.mxu1 %v3653_v13  ;;  %v3728_v0 = vld [vmem:[%s4800_s1 + $0x158] sm:$0xff]   ;;  %v3727_v3 = vld [vmem:[%s4800_s1 + $0x1b0] sm:$0xff]   ;;  %v3743_v9 = vld [vmem:[%s4800_s1 + $0x1e8] sm:$0xff]  }
  0x22   : > { %3109 = vmatprep.subr.bf16.mxu0 %v3654_v14  ;;  %3623 = vmatprep.subr.bf16.mxu1 %v3654_v14  ;;  %v3729_v2 = vld [vmem:[%s4800_s1 + $0x118] sm:$0xff]   ;;  %v3717_v5 = vld [vmem:[%s3991_s9 + $0x50] ss:$36 sps:$4 sm:$0xff]   ;;  %v3745_v11 = vld [vmem:[%s4800_s1 + $0x1a8] sm:$0xff]  }
  0x23   : > { %v3720_v6 = vld [vmem:[%s3991_s9 + $0x1b4] ss:$36 sps:$4 sm:$0xff]   ;;  %v3722_v7 = vld [vmem:[%s3991_s9 + $0x9c] ss:$36 sps:$4 sm:$0xff]  }
  0x24   : > { %v3742_v8 = vld [vmem:[%s4800_s1 + $0x150] sm:$0xff]   ;;  %v3725_v13 = vld [vmem:[%s3991_s9 + $0x98] ss:$36 sps:$4 sm:$0xff]  }
  0x25   : > { %3110 = vmatpush3.bf16.msra.mxu0 %v3655_v15  ;;  %3631 = vmatpush3.bf16.msra.mxu1 %v3655_v15  ;;  %v3744_v10 = vld [vmem:[%s4800_s1 + $0x110] sm:$0xff]   ;;  %v3730_v14 = vld [vmem:[%s3991_s9 + $0x1fc] ss:$36 sps:$4 sm:$0xff]   ;;  %v3752_v15 = vld [vmem:[%s4800_s1 + $0x148] sm:$0xff]  }
  0x26   : > { %3111 = vmatprep.subr.bf16.mxu0 %v3656_v16  ;;  %3624 = vmatprep.subr.bf16.mxu1 %v3656_v16  ;;  %v3724_v12 = vld [vmem:[%s3991_s9 + $0x1b0] ss:$36 sps:$4 sm:$0xff]   ;;  %v3753_v16 = vld [vmem:[%s4800_s1 + $0x108] sm:$0xff]  }
  0x29   : > { %3112 = vmatpush3.bf16.msra.mxu0 %v3657_v17  ;;  %3632 = vmatpush3.bf16.msra.mxu1 %v3657_v17  ;;  %v3732_v17 = vld [vmem:[%s3991_s9 + $0xe4] ss:$36 sps:$4 sm:$0xff]  }
  0x2a   : > { %3209 = vmatprep.subr.bf16.mxu1 %v3664_v18  ;;  %3321 = vmatprep.subr.bf16.mxu0 %v3667_v21  ;;  %v3760_v18 = vld [vmem:[%s4800_s1 + $0x1e0] sm:$0xff]  }
  0x2b   : > { %v3735_v21 = vld [vmem:[%s3991_s9 + $0xe0] ss:$36 sps:$4 sm:$0xff]  }
  0x2c   : > { %1690 = vmatmul.mubr.bf16.vlgmr.msra.gmra.mxu0 %v3658_v19  ;;  %1786 = vmatmul.mubr.bf16.vlgmr.msra.gmra.mxu1 %v3661_v20  ;;  %v3761_v19 = vld [vmem:[%s4800_s1 + $0x1a0] sm:$0xff]   ;;  %v3734_v20 = vld [vmem:[%s3991_s9 + $0x1f8] ss:$36 sps:$4 sm:$0xff]  }
  0x2d   : > { %3210 = vmatpush3.bf16.msra.mxu1 %v3665_v22  ;;  %3322 = vmatpush3.bf16.msra.mxu0 %v3669_v24  ;;  %v3736_v22 = vld [vmem:[%s3991_s9 + $0x244] ss:$36 sps:$4 sm:$0xff]  }
  0x2e   : > { %3211 = vmatprep.subr.bf16.mxu1 %v3666_v23  ;;  %1697 = vmatprep.mubr.bf16.mxu0 %v3670_v25  ;;  %v3738_v23 = vld [vmem:[%s3991_s9 + $0x12c] ss:$36 sps:$4 sm:$0xff]   ;;  %v3768_v24 = vld [vmem:[%s4800_s1 + $0x140] sm:$0xff]  }
  0x2f   : > { %1793 = vmatprep.mubr.bf16.mxu1 %v3672_v26  ;;  %3323 = vmatprep.subr.bf16.mxu0 %v3687_v28  ;;  %v3769_v25 = vld [vmem:[%s4800_s1 + $0x100] sm:$0xff]   ;;  %v3776_v26 = vld [vmem:[%s4800_s1 + $0x1d8] sm:$0xff]  }
  0x30   : > { %v3777_v28 = vld [vmem:[%s4800_s1 + $0x198] sm:$0xff]  }
  0x31   : > { %3212 = vmatpush3.bf16.msra.mxu1 %v3668_v27  ;;  %3324 = vmatpush3.bf16.msra.mxu0 %v3689_v33  ;;  %v3740_v27 = vld [vmem:[%s3991_s9 + $0x240] ss:$36 sps:$4 sm:$0xff]   ;;  %v3791_v33 = vld [vmem:[%s4800_s1 + $0x1d0] sm:$0xff]  }
  0x32   : > { %3213 = vmatprep.subr.bf16.mxu1 %v3676_v31  ;;  %3325 = vmatprep.subr.bf16.mxu0 %v3701_v43  ;;  %v3746_v31 = vld [vmem:[%s3991_s9 + $0x28c] ss:$36 sps:$4 sm:$0xff]   ;;  %v3762_v43 = vld [vmem:[%s3991_s9 + $0x31c] ss:$36 sps:$4 sm:$0xff]  }
  0x34   : > { %1698 = vmatmul.mubr.bf16.gmra.mxu0 %v3674_v29  ;;  %1794 = vmatmul.mubr.bf16.gmra.mxu1 %v3675_v30  ;;  %v3778_v29 = vld [vmem:[%s4800_s1 + $0x238] sm:$0xff]   ;;  %v3741_v30 = vld [vmem:[%s3991_s9 + $0x128] ss:$36 sps:$4 sm:$0xff]  }
  0x35   : > { %3214 = vmatpush3.bf16.msra.mxu1 %v3677_v32  ;;  %1705 = vmatprep.mubr.bf16.mxu0 %v3680_v35  ;;  %v3748_v32 = vld [vmem:[%s3991_s9 + $0x174] ss:$36 sps:$4 sm:$0xff]  }
  0x36   : > { %3215 = vmatprep.subr.bf16.mxu1 %v3678_v34  ;;  %1801 = vmatprep.mubr.bf16.mxu1 %v3682_v36  ;;  %v3750_v34 = vld [vmem:[%s3991_s9 + $0x288] ss:$36 sps:$4 sm:$0xff]   ;;  %v3792_v35 = vld [vmem:[%s4800_s1 + $0x190] sm:$0xff]  }
  0x37   : > { %3326 = vmatpush3.bf16.msra.mxu0 %v3703_v46  ;;  %v3751_v36 = vld [vmem:[%s3991_s9 + $0x170] ss:$36 sps:$4 sm:$0xff]   ;;  %v3767_v46 = vld [vmem:[%s3991_s9 + $0x200] ss:$36 sps:$4 sm:$0xff]  }
  0x38   : > { %3327 = vmatprep.subr.bf16.mxu0 %v3718_v55  ;;  %v3793_v55 = vld [vmem:[%s4800_s1 + $0x230] sm:$0xff]  }
  0x39   : > { %3216 = vmatpush3.bf16.msra.mxu1 %v3679_v37  ;;  %v3754_v37 = vld [vmem:[%s3991_s9 + $0x2d4] ss:$36 sps:$4 sm:$0xff]  }
  0x3a   : > { %3217 = vmatprep.subr.bf16.mxu1 %v3686_v40  ;;  %v3759_v40 = vld [vmem:[%s3991_s9 + $0x1b8] ss:$36 sps:$4 sm:$0xff]  }
  0x3b   : > { %3328 = vmatpush3.bf16.msra.mxu0 %v3719_v56  ;;  %v3808_v56 = vld [vmem:[%s4800_s1 + $0x228] sm:$0xff]  }
  0x3c   : > { %1706 = vmatmul.mubr.bf16.gmra.mxu0 %v3684_v38  ;;  %1802 = vmatmul.mubr.bf16.gmra.mxu1 %v3685_v39  ;;  %v3756_v38 = vld [vmem:[%s3991_s9 + $0x1bc] ss:$36 sps:$4 sm:$0xff]   ;;  %v3758_v39 = vld [vmem:[%s3991_s9 + $0x2d0] ss:$36 sps:$4 sm:$0xff]  }
  0x3d   : > { %3218 = vmatpush3.bf16.msra.mxu1 %v3688_v41  ;;  %1713 = vmatprep.mubr.bf16.mxu0 %v3692_v44  ;;  %v3806_v41 = vld [vmem:[%s4800_s1 + $0x1c8] sm:$0xff]  }
  0x3e   : > { %3219 = vmatprep.subr.bf16.mxu1 %v3690_v42  ;;  %1809 = vmatprep.mubr.bf16.mxu1 %v3694_v45  ;;  %v3807_v42 = vld [vmem:[%s4800_s1 + $0x188] sm:$0xff]   ;;  %v3766_v45 = vld [vmem:[%s3991_s9 + $0x318] ss:$36 sps:$4 sm:$0xff]  }
  0x3f   : > { %3329 = vmatprep.subr.bf16.mxu0 %v3728_v0  ;;  %v3764_v44 = vld [vmem:[%s3991_s9 + $0x204] ss:$36 sps:$4 sm:$0xff]  }
  0x40   : > { %3330 = vmatpush3.bf16.msra.mxu0 %v3729_v2  ;;  %v3790_v0 = vld [vmem:[%s3991_s9 + $0xa0] ss:$36 sps:$4 sm:$0xff]   ;;  %v3796_v2 = vld [vmem:[%s3991_s9 + $0xec] ss:$36 sps:$4 sm:$0xff]  }
  0x41   : > { %3220 = vmatpush3.bf16.msra.mxu1 %v3691_v47  ;;  %3331 = vmatprep.subr.bf16.mxu0 %v3742_v8  ;;  %v3821_v47 = vld [vmem:[%s4800_s1 + $0x1c0] sm:$0xff]   ;;  %v3802_v8 = vld [vmem:[%s3991_s9 + $0x134] ss:$36 sps:$4 sm:$0xff]  }
  0x42   : > { %3221 = vmatprep.subr.bf16.mxu1 %v3698_v48  ;;  %v3822_v48 = vld [vmem:[%s4800_s1 + $0x180] sm:$0xff]  }
  0x44   : > { %1714 = vmatmul.mubr.bf16.gmra.mxu0 %v3696_v49  ;;  %1810 = vmatmul.mubr.bf16.gmra.mxu1 %v3697_v50  ;;  %v3770_v49 = vld [vmem:[%s3991_s9 + $0x24c] ss:$36 sps:$4 sm:$0xff]   ;;  %v3774_v50 = vld [vmem:[%s3991_s9 + $0x14] ss:$36 sps:$4 sm:$0xff]  }
  0x45   : > { %3222 = vmatpush3.bf16.msra.mxu1 %v3699_v51  ;;  %1721 = vmatprep.mubr.bf16.mxu0 %v3704_v53  ;;  %v3772_v51 = vld [vmem:[%s3991_s9 + $0x10] ss:$36 sps:$4 sm:$0xff]  }
  0x46   : > { %3223 = vmatprep.subr.bf16.mxu1 %v3700_v52  ;;  %1850 = vmatprep.mubr.bf16.mxu1 %v3708_v54  ;;  %v3775_v52 = vld [vmem:[%s3991_s9 + $0x248] ss:$36 sps:$4 sm:$0xff]   ;;  %v3779_v53 = vld [vmem:[%s3991_s9 + $0x294] ss:$36 sps:$4 sm:$0xff]   ;;  %v3781_v54 = vld [vmem:[%s3991_s9 + $0x5c] ss:$36 sps:$4 sm:$0xff]  }
  0x47   : > { %3332 = vmatpush3.bf16.msra.mxu0 %v3744_v10  ;;  %v3804_v10 = vld [vmem:[%s3991_s9 + $0x368] ss:$36 sps:$4 sm:$0xff]  }
  0x48   : > { %3333 = vmatprep.subr.bf16.mxu0 %v3752_v15  ;;  %v3814_v15 = vld [vmem:[%s3991_s9 + $0x178] ss:$36 sps:$4 sm:$0xff]  }
  0x49   : > { %3224 = vmatpush3.bf16.msra.mxu1 %v3702_v57  ;;  %v3783_v57 = vld [vmem:[%s3991_s9 + $0x290] ss:$36 sps:$4 sm:$0xff]  }
  0x4a   : > { %3433 = vmatprep.subr.bf16.mxu1 %v3710_v60  ;;  %v3787_v60 = vld [vmem:[%s3991_s9 + $0xa4] ss:$36 sps:$4 sm:$0xff]  }
  0x4b   : > { %3334 = vmatpush3.bf16.msra.mxu0 %v3753_v16  ;;  %v3815_v16 = vld [vmem:[%s3991_s9 + $0x3fc] ss:$36 sps:$4 sm:$0xff]  }
  0x4c   : > { %1722 = vmatmul.mubr.bf16.gmra.mxu0 %v3709_v59  ;;  %1851 = vmatmul.mubr.bf16.vlgmr.msra.gmra.mxu1 %v3706_v58  ;;  %v3784_v58 = vld [vmem:[%s3991_s9 + $0x58] ss:$36 sps:$4 sm:$0xff]  }
  0x4d   : > { %3434 = vmatpush3.bf16.msra.mxu1 %v3711_v61  ;;  %1729 = vmatprep.mubr.bf16.mxu0 %v3712_v62  ;;  %v3785_v59 = vld [vmem:[%s3991_s9 + $0x2dc] ss:$36 sps:$4 sm:$0xff]  }
  0x4e   : > { %1858 = vmatprep.mubr.bf16.mxu1 %v3714_v63  ;;  %3435 = vmatprep.subr.bf16.mxu1 %v3726_v1  ;;  %v3823_v61 = vld [vmem:[%s4800_s1 + $0x220] sm:$0xff]   ;;  %v3789_v62 = vld [vmem:[%s3991_s9 + $0x2d8] ss:$36 sps:$4 sm:$0xff]  }
  0x4f   : > { %3335 = vmatprep.subr.bf16.mxu0 %v3768_v24  ;;  %v3836_v63 = vld [vmem:[%s4800_s1 + $0x218] sm:$0xff]   ;;  %v3794_v1 = vld [vmem:[%s3991_s9 + $0x324] ss:$36 sps:$4 sm:$0xff]  }
  0x50   : > { %3336 = vmatpush3.bf16.msra.mxu0 %v3769_v25  ;;  %v3830_v24 = vld [vmem:[%s3991_s9 + $0x254] ss:$36 sps:$4 sm:$0xff]   ;;  %v3834_v25 = vld [vmem:[%s3991_s9 + $0x1c] ss:$36 sps:$4 sm:$0xff]  }
  0x51   : > { %3436 = vmatpush3.bf16.msra.mxu1 %v3727_v3  ;;  %3569 = vmatprep.subr.bf16.mxu0 %v3778_v29  ;;  %v3849_v3 = vld [vmem:[%s4800_s1 + $0x210] sm:$0xff]  }
  0x52   : > { %3437 = vmatprep.subr.bf16.mxu1 %v3743_v9  ;;  %v3875_v9 = vld [vmem:[%s4800_s1 + $0x200] sm:$0xff]  }
  0x54   : > { %1730 = vmatmul.mubr.bf16.gmra.mxu0 %v3716_v4  ;;  %1859 = vmatmul.mubr.bf16.gmra.mxu1 %v3717_v5  ;;  %v3798_v4 = vld [vmem:[%s3991_s9 + $0x320] ss:$36 sps:$4 sm:$0xff]   ;;  %v3862_v5 = vld [vmem:[%s4800_s1 + $0x208] sm:$0xff]  }
  0x55   : > { %1737 = vmatprep.mubr.bf16.mxu0 %v3720_v6  ;;  %1866 = vmatprep.mubr.bf16.mxu1 %v3722_v7  ;;  %v3799_v6 = vld [vmem:[%s3991_s9 + $0xe8] ss:$36 sps:$4 sm:$0xff]  }
  0x56   : > { %3438 = vmatpush3.bf16.msra.mxu1 %v3745_v11  ;;  %v3800_v7 = vld [vmem:[%s3991_s9 + $0x36c] ss:$36 sps:$4 sm:$0xff]  }
  0x57   : > { %3439 = vmatprep.subr.bf16.mxu1 %v3760_v18  ;;  %v3805_v11 = vld [vmem:[%s3991_s9 + $0x130] ss:$36 sps:$4 sm:$0xff]   ;;  %v3819_v18 = vld [vmem:[%s3991_s9 + $0x3f8] ss:$36 sps:$4 sm:$0xff]  }
  0x5a   : > { %3440 = vmatpush3.bf16.msra.mxu1 %v3761_v19  ;;  %v3820_v19 = vld [vmem:[%s3991_s9 + $0x1c0] ss:$36 sps:$4 sm:$0xff]  }
  0x5b   : > { %3441 = vmatprep.subr.bf16.mxu1 %v3776_v26  ;;  %v3832_v26 = vld [vmem:[%s3991_s9 + $0x18] ss:$36 sps:$4 sm:$0xff]  }
  0x5c   : > { %1738 = vmatmul.mubr.bf16.gmra.mxu0 %v3724_v12  ;;  %1867 = vmatmul.mubr.bf16.gmra.mxu1 %v3725_v13  ;;  %v3809_v12 = vld [vmem:[%s3991_s9 + $0x3b4] ss:$36 sps:$4 sm:$0xff]   ;;  %v3811_v13 = vld [vmem:[%s3991_s9 + $0x17c] ss:$36 sps:$4 sm:$0xff]  }
  0x5d   : > { %1745 = vmatprep.mubr.bf16.mxu0 %v3730_v14  ;;  %1874 = vmatprep.mubr.bf16.mxu1 %v3732_v17  ;;  %v3813_v14 = vld [vmem:[%s3991_s9 + $0x3b0] ss:$36 sps:$4 sm:$0xff]   ;;  %v3817_v17 = vld [vmem:[%s3991_s9 + $0x1c4] ss:$36 sps:$4 sm:$0xff]  }
  0x5e   : > { %3442 = vmatpush3.bf16.msra.mxu1 %v3777_v28  ;;  %v3837_v28 = vld [vmem:[%s3991_s9 + $0x29c] ss:$36 sps:$4 sm:$0xff]  }
  0x5f   : > { %3443 = vmatprep.subr.bf16.mxu1 %v3791_v33  ;;  %v3845_v33 = vld [vmem:[%s3991_s9 + $0xac] ss:$36 sps:$4 sm:$0xff]  }
  0x62   : > { %3444 = vmatpush3.bf16.msra.mxu1 %v3792_v35  ;;  %v3848_v35 = vld [vmem:[%s3991_s9 + $0xa8] ss:$36 sps:$4 sm:$0xff]  }
  0x63   : > { %3445 = vmatprep.subr.bf16.mxu1 %v3806_v41  ;;  %v3858_v41 = vld [vmem:[%s3991_s9 + $0x13c] ss:$36 sps:$4 sm:$0xff]  }
  0x64   : > { %1746 = vmatmul.mubr.bf16.gmra.mxu0 %v3734_v20  ;;  %1875 = vmatmul.mubr.bf16.gmra.mxu1 %v3735_v21  ;;  %v3824_v20 = vld [vmem:[%s3991_s9 + $0x444] ss:$36 sps:$4 sm:$0xff]   ;;  %v3826_v21 = vld [vmem:[%s3991_s9 + $0x20c] ss:$36 sps:$4 sm:$0xff]  }
  0x65   : > { %1753 = vmatprep.mubr.bf16.mxu0 %v3736_v22  ;;  %1882 = vmatprep.mubr.bf16.mxu1 %v3738_v23  ;;  %v3828_v22 = vld [vmem:[%s3991_s9 + $0x440] ss:$36 sps:$4 sm:$0xff]   ;;  %v3829_v23 = vld [vmem:[%s3991_s9 + $0x208] ss:$36 sps:$4 sm:$0xff]  }
  0x66   : > { %3446 = vmatpush3.bf16.msra.mxu1 %v3807_v42  ;;  %v3860_v42 = vld [vmem:[%s3991_s9 + $0x370] ss:$36 sps:$4 sm:$0xff]  }
  0x67   : > { %3447 = vmatprep.subr.bf16.mxu1 %v3821_v47 }
  0x6a   : > { %3448 = vmatpush3.bf16.msra.mxu1 %v3822_v48 }
  0x6c   : > { %1754 = vmatmul.mubr.bf16.gmra.mxu0 %v3740_v27  ;;  %1883 = vmatmul.mubr.bf16.gmra.mxu1 %v3741_v30  ;;  %v3835_v27 = vld [vmem:[%s3991_s9 + $0x250] ss:$36 sps:$4 sm:$0xff]   ;;  %v3841_v30 = vld [vmem:[%s3991_s9 + $0x298] ss:$36 sps:$4 sm:$0xff]  }
  0x6d   : > { %1761 = vmatprep.mubr.bf16.mxu0 %v3746_v31  ;;  %1890 = vmatprep.mubr.bf16.mxu1 %v3748_v32  ;;  %v3842_v31 = vld [vmem:[%s3991_s9 + $0x60] ss:$36 sps:$4 sm:$0xff]  }
  0x6e   : > { %v3843_v32 = vld [vmem:[%s3991_s9 + $0x2e4] ss:$36 sps:$4 sm:$0xff]  }
  0x74   : > { %1762 = vmatmul.mubr.bf16.gmra.mxu0 %v3750_v34  ;;  %1891 = vmatmul.mubr.bf16.gmra.mxu1 %v3751_v36  ;;  %v3847_v34 = vld [vmem:[%s3991_s9 + $0x2e0] ss:$36 sps:$4 sm:$0xff]   ;;  %v3850_v36 = vld [vmem:[%s3991_s9 + $0x32c] ss:$36 sps:$4 sm:$0xff]  }
  0x75   : > { %1769 = vmatprep.mubr.bf16.mxu0 %v3754_v37  ;;  %1898 = vmatprep.mubr.bf16.mxu1 %v3756_v38  ;;  %v3852_v37 = vld [vmem:[%s3991_s9 + $0xf4] ss:$36 sps:$4 sm:$0xff]   ;;  %v3854_v38 = vld [vmem:[%s3991_s9 + $0x328] ss:$36 sps:$4 sm:$0xff]  }
  0x7c   : > { %1770 = vmatmul.mubr.bf16.gmra.mxu0 %v3758_v39  ;;  %1899 = vmatmul.mubr.bf16.gmra.mxu1 %v3759_v40  ;;  %v3855_v39 = vld [vmem:[%s3991_s9 + $0xf0] ss:$36 sps:$4 sm:$0xff]  }
  0x7d   : > { %1777 = vmatprep.mubr.bf16.mxu0 %v3762_v43  ;;  %1906 = vmatprep.mubr.bf16.mxu1 %v3764_v44  ;;  %v3856_v40 = vld [vmem:[%s3991_s9 + $0x374] ss:$36 sps:$4 sm:$0xff]   ;;  %v3863_v44 = vld [vmem:[%s3991_s9 + $0x3bc] ss:$36 sps:$4 sm:$0xff]  }
  0x7e   : > { %v3861_v43 = vld [vmem:[%s3991_s9 + $0x138] ss:$36 sps:$4 sm:$0xff]  }
  0x84   : > { %1778 = vmatmul.mubr.bf16.gmra.mxu0 %v3766_v45  ;;  %1907 = vmatmul.mubr.bf16.gmra.mxu1 %v3767_v46  ;;  %v3865_v45 = vld [vmem:[%s3991_s9 + $0x184] ss:$36 sps:$4 sm:$0xff]  }
  0x85   : > { %1914 = vmatprep.mubr.bf16.mxu1 %v3770_v49  ;;  %2011 = vmatprep.mubr.bf16.mxu0 %v3774_v50 }
  0x8c   : > { %1915 = vmatmul.mubr.bf16.gmra.mxu1 %v3775_v52  ;;  %2012 = vmatmul.mubr.bf16.vlgmr.msra.gmra.mxu0 %v3772_v51 }
  0x8d   : > { %3570 = vmatpush3.bf16.msra.mxu0 %v3778_v29  ;;  %1922 = vmatprep.mubr.bf16.mxu1 %v3779_v53  ;;  %v3839_v29 = vld [vmem:[%s3991_s9 + $0x64] ss:$36 sps:$4 sm:$0xff]  }
  0x8e   : > { %2019 = vmatprep.mubr.bf16.mxu0 %v3781_v54  ;;  %3571 = vmatprep.subr.bf16.mxu0 %v3793_v55  ;;  %v3867_v54 = vld [vmem:[%s3991_s9 + $0x3b8] ss:$36 sps:$4 sm:$0xff]  }
  0x91   : > { %3572 = vmatpush3.bf16.msra.mxu0 %v3793_v55  ;;  %v3868_v55 = vld [vmem:[%s3991_s9 + $0x180] ss:$36 sps:$4 sm:$0xff]  }
  0x92   : > { %3573 = vmatprep.subr.bf16.mxu0 %v3808_v56 }
  0x94   : > { %1923 = vmatmul.mubr.bf16.gmra.mxu1 %v3783_v57  ;;  %2020 = vmatmul.mubr.bf16.gmra.mxu0 %v3784_v58  ;;  %v3871_v57 = vld [vmem:[%s3991_s9 + $0x1cc] ss:$36 sps:$4 sm:$0xff]  }
  0x95   : > { %1930 = vmatprep.mubr.bf16.mxu1 %v3785_v59  ;;  %2027 = vmatprep.mubr.bf16.mxu0 %v3787_v60 }
  0x96   : > { %3574 = vmatpush3.bf16.msra.mxu0 %v3808_v56  ;;  %v3869_v56 = vld [vmem:[%s3991_s9 + $0x404] ss:$36 sps:$4 sm:$0xff]  }
  0x97   : > { %3575 = vmatprep.subr.bf16.mxu0 %v3823_v61 }
  0x9a   : > { %3576 = vmatpush3.bf16.msra.mxu0 %v3823_v61 }
  0x9b   : > { %3577 = vmatprep.subr.bf16.mxu0 %v3836_v63 }
  0x9c   : > { %1931 = vmatmul.mubr.bf16.gmra.mxu1 %v3789_v62  ;;  %2028 = vmatmul.mubr.bf16.gmra.mxu0 %v3790_v0 }
  0x9d   : > { %1938 = vmatprep.mubr.bf16.mxu1 %v3794_v1  ;;  %2035 = vmatprep.mubr.bf16.mxu0 %v3796_v2 }
  0x9e   : > { %3578 = vmatpush3.bf16.msra.mxu0 %v3836_v63 }
  0x9f   : > { %3579 = vmatprep.subr.bf16.mxu0 %v3849_v3 }
  0xa2   : > { %3580 = vmatpush3.bf16.msra.mxu0 %v3849_v3 }
  0xa3   : > { %3581 = vmatprep.subr.bf16.mxu0 %v3862_v5 }
  0xa4   : > { %1939 = vmatmul.mubr.bf16.gmra.mxu1 %v3798_v4  ;;  %2036 = vmatmul.mubr.bf16.gmra.mxu0 %v3799_v6  ;;  %v3873_v6 = vld [vmem:[%s3991_s9 + $0x400] ss:$36 sps:$4 sm:$0xff]  }
  0xa5   : > { %1946 = vmatprep.mubr.bf16.mxu1 %v3800_v7  ;;  %2043 = vmatprep.mubr.bf16.mxu0 %v3802_v8  ;;  %v3874_v7 = vld [vmem:[%s3991_s9 + $0x1c8] ss:$36 sps:$4 sm:$0xff]  }
  0xa6   : > { %3582 = vmatpush3.bf16.msra.mxu0 %v3862_v5  ;;  %v3876_v8 = vld [vmem:[%s3991_s9 + $0x44c] ss:$36 sps:$4 sm:$0xff]  }
  0xa7   : > { %3583 = vmatprep.subr.bf16.mxu0 %v3875_v9 }
  0xaa   : > { %3584 = vmatpush3.bf16.msra.mxu0 %v3875_v9  ;;  %v3878_v9 = vld [vmem:[%s3991_s9 + $0x214] ss:$36 sps:$4 sm:$0xff]  }
  0xac   : > { %1947 = vmatmul.mubr.bf16.gmra.mxu1 %v3804_v10  ;;  %2044 = vmatmul.mubr.bf16.gmra.mxu0 %v3805_v11 }
  0xad   : > { %1954 = vmatprep.mubr.bf16.mxu1 %v3809_v12  ;;  %2051 = vmatprep.mubr.bf16.mxu0 %v3811_v13 }
  0xb4   : > { %1955 = vmatmul.mubr.bf16.gmra.mxu1 %v3813_v14  ;;  %2052 = vmatmul.mubr.bf16.gmra.mxu0 %v3814_v15 }
  0xb5   : > { %1962 = vmatprep.mubr.bf16.mxu1 %v3815_v16  ;;  %2059 = vmatprep.mubr.bf16.mxu0 %v3817_v17 }
  0xbc   : > { %1963 = vmatmul.mubr.bf16.gmra.mxu1 %v3819_v18  ;;  %2060 = vmatmul.mubr.bf16.gmra.mxu0 %v3820_v19 }
  0xbd   : > { %1970 = vmatprep.mubr.bf16.mxu1 %v3824_v20  ;;  %2067 = vmatprep.mubr.bf16.mxu0 %v3826_v21 }
  0xc4   : > { %1971 = vmatmul.mubr.bf16.gmra.mxu1 %v3828_v22  ;;  %2068 = vmatmul.mubr.bf16.gmra.mxu0 %v3829_v23  ;;  %v3880_v22 = vld [vmem:[%s3991_s9 + $0x448] ss:$36 sps:$4 sm:$0xff]   ;;  %v3881_v23 = vld [vmem:[%s3991_s9 + $0x210] ss:$36 sps:$4 sm:$0xff]  }
  0xc5   : > { %2075 = vmatprep.mubr.bf16.mxu0 %v3830_v24  ;;  %2172 = vmatprep.mubr.bf16.mxu1 %v3834_v25  ;;  %v3884_v24 = vld [vmem:[%s3991_s9 + $0x25c] ss:$36 sps:$4 sm:$0xff]  }
  0xc6   : > { %v3885_v25 = vld [vmem:[%s3991_s9 + $0x20] ss:$36 sps:$4 sm:$0xff]  }
  0xcc   : > { %2076 = vmatmul.mubr.bf16.gmra.mxu0 %v3835_v27  ;;  %2173 = vmatmul.mubr.bf16.vlgmr.msra.gmra.mxu1 %v3832_v26 }
  0xcd   : > { %2083 = vmatprep.mubr.bf16.mxu0 %v3837_v28  ;;  %2180 = vmatprep.mubr.bf16.mxu1 %v3839_v29 }
  0xd4   : > { %2084 = vmatmul.mubr.bf16.gmra.mxu0 %v3841_v30  ;;  %2181 = vmatmul.mubr.bf16.gmra.mxu1 %v3842_v31 }
  0xd5   : > { %2091 = vmatprep.mubr.bf16.mxu0 %v3843_v32  ;;  %2188 = vmatprep.mubr.bf16.mxu1 %v3845_v33 }
  0xdc   : > { %2092 = vmatmul.mubr.bf16.gmra.mxu0 %v3847_v34  ;;  %2189 = vmatmul.mubr.bf16.gmra.mxu1 %v3848_v35 }
  0xdd   : > { %2099 = vmatprep.mubr.bf16.mxu0 %v3850_v36  ;;  %2196 = vmatprep.mubr.bf16.mxu1 %v3852_v37 }
  0xe4   : > { %2100 = vmatmul.mubr.bf16.gmra.mxu0 %v3854_v38  ;;  %2197 = vmatmul.mubr.bf16.gmra.mxu1 %v3855_v39  ;;  %v3882_v38 = vld [vmem:[%s3991_s9 + $0x258] ss:$36 sps:$4 sm:$0xff]   ;;  %v3886_v39 = vld [vmem:[%s3991_s9 + $0x68] ss:$36 sps:$4 sm:$0xff]  }
  0xe5   : > { %2107 = vmatprep.mubr.bf16.mxu0 %v3856_v40  ;;  %2204 = vmatprep.mubr.bf16.mxu1 %v3858_v41  ;;  %v3889_v40 = vld [vmem:[%s3991_s9 + $0x2a4] ss:$36 sps:$4 sm:$0xff]   ;;  %v3890_v41 = vld [vmem:[%s3991_s9 + $0xb0] ss:$36 sps:$4 sm:$0xff]  }
  0xec   : > { %v3113_v46 = vpop.f32.mrf.mxu0  ;;  %v3185_v47 = vpop.f32.mrf.mxu1  ;;  %2108 = vmatmul.mubr.bf16.gmra.mxu0 %v3860_v42  ;;  %2205 = vmatmul.mubr.bf16.gmra.mxu1 %v3861_v43 }
  0xed   : > { %2115 = vmatprep.mubr.bf16.mxu0 %v3863_v44  ;;  %2212 = vmatprep.mubr.bf16.mxu1 %v3865_v45 }
  0xee   : > { %v3114_v48 = vpop.f32.mrf.mxu0  ;;  %v3186_v49 = vpop.f32.mrf.mxu1 }
  0xef   : > { %v4284_v50 = vadd.f32 %v3114_v48, %v3113_v46  ;;  %v4286_v51 = vadd.f32 %v3186_v49, %v3185_v47  ;;  %v4335_v48 = vld [vmem:[%s4801_s2] ss:$0 sm:$0xff] }
  0xf0   : > { %v3116_v52 = vpop.f32.mrf.mxu0  ;;  %v3188_v53 = vpop.f32.mrf.mxu1 }
  0xf2   : > { %v3117_v58 = vpop.f32.mrf.mxu0  ;;  %v3189_v59 = vpop.f32.mrf.mxu1 }
  0xf3   : > { %v4292_v60 = vadd.f32 %v3117_v58, %v3116_v52  ;;  %v4294_v61 = vadd.f32 %v3189_v59, %v3188_v53  ;;  %v1692_v53 = vadd.f32 %v4284_v50, %v4335_v48  ;;  %v3887_v58 = vld [vmem:[%s3991_s9 + $0x2a0] ss:$36 sps:$4 sm:$0xff]   ;;  %v3891_v59 = vld [vmem:[%s3991_s9 + $0xf8] ss:$36 sps:$4 sm:$0xff]  }
  0xf4   : > { %v3119_v62 = vpop.f32.mrf.mxu0  ;;  %v3191_v63 = vpop.f32.mrf.mxu1  ;;  %2116 = vmatmul.mubr.bf16.gmra.mxu0 %v3867_v54  ;;  %2213 = vmatmul.mubr.bf16.gmra.mxu1 %v3868_v55 }
  0xf5   : > { %2123 = vmatprep.mubr.bf16.mxu0 %v3869_v56  ;;  %2220 = vmatprep.mubr.bf16.mxu1 %v3871_v57 }
  0xf6   : > { %v3120_v0 = vpop.f32.mrf.mxu0  ;;  %v3192_v1 = vpop.f32.mrf.mxu1 }
  0xf7   : > { %v4296_v2 = vadd.f32 %v3120_v0, %v3119_v62  ;;  %v4298_v3 = vadd.f32 %v3192_v1, %v3191_v63  ;;  %v3894_v63 = vld [vmem:[%s3991_s9 + $0x2ec] ss:$36 sps:$4 sm:$0xff]   ;;  %v3895_v0 = vld [vmem:[%s3991_s9 + $0x140] ss:$36 sps:$4 sm:$0xff]  }
  0xf8   : > { %v3122_v4 = vpop.f32.mrf.mxu0  ;;  %v3194_v5 = vpop.f32.mrf.mxu1 }
  0xfa   : > { %v3123_v10 = vpop.f32.mrf.mxu0  ;;  %v3195_v11 = vpop.f32.mrf.mxu1 }
  0xfb   : > { %v4304_v12 = vadd.f32 %v3123_v10, %v3122_v4  ;;  %v4306_v13 = vadd.f32 %v3195_v11, %v3194_v5  ;;  %v1695_v5 = vadd.f32 %v4292_v60, %v4335_v48  ;;  %v1700_v60 = vadd.f32 %v4296_v2, %v4335_v48 }
  0xfc   : > { %v3125_v14 = vpop.f32.mrf.mxu0  ;;  %v3197_v15 = vpop.f32.mrf.mxu1  ;;  %2124 = vmatmul.mubr.bf16.gmra.mxu0 %v3873_v6  ;;  %2221 = vmatmul.mubr.bf16.gmra.mxu1 %v3874_v7 }
  0xfd   : > { %2131 = vmatprep.mubr.bf16.mxu0 %v3876_v8  ;;  %2228 = vmatprep.mubr.bf16.mxu1 %v3878_v9 }
  0xfe   : > { %v3126_v16 = vpop.f32.mrf.mxu0  ;;  %v3198_v17 = vpop.f32.mrf.mxu1 }
  0xff   : > { %v4308_v18 = vadd.f32 %v3126_v16, %v3125_v14  ;;  %v4310_v19 = vadd.f32 %v3198_v17, %v3197_v15 }
 0x100   : > { %v3128_v20 = vpop.f32.mrf.mxu0  ;;  %v3200_v21 = vpop.f32.mrf.mxu1 }
 0x102   : > { %v3129_v26 = vpop.f32.mrf.mxu0  ;;  %v3201_v27 = vpop.f32.mrf.mxu1 }
 0x103   : > { %v4316_v28 = vadd.f32 %v3129_v26, %v3128_v20  ;;  %v4318_v29 = vadd.f32 %v3201_v27, %v3200_v21  ;;  %v3892_v20 = vld [vmem:[%s3991_s9 + $0x2e8] ss:$36 sps:$4 sm:$0xff]   ;;  %v1703_v27 = vadd.f32 %v4304_v12, %v4335_v48  ;;  %v1708_v12 = vadd.f32 %v4308_v18, %v4335_v48 }
 0x104   : > { %v3131_v30 = vpop.f32.mrf.mxu0  ;;  %v3203_v31 = vpop.f32.mrf.mxu1  ;;  %2132 = vmatmul.mubr.bf16.gmra.mxu0 %v3880_v22  ;;  %2229 = vmatmul.mubr.bf16.gmra.mxu1 %v3881_v23  ;;  %v3896_v21 = vld [vmem:[%s3991_s9 + $0x188] ss:$36 sps:$4 sm:$0xff]   ;;  %v3899_v23 = vld [vmem:[%s3991_s9 + $0x334] ss:$36 sps:$4 sm:$0xff]  }
 0x105   : > { %2236 = vmatprep.mubr.bf16.mxu1 %v3884_v24  ;;  %3585 = vmatprep.mubr.bf16.mxu0 %v3885_v25  ;;  %v3900_v24 = vld [vmem:[%s3991_s9 + $0x1d0] ss:$36 sps:$4 sm:$0xff]  }
 0x106   : > { %v3132_v32 = vpop.f32.mrf.mxu0  ;;  %v3204_v33 = vpop.f32.mrf.mxu1 }
 0x107   : > { %v4320_v34 = vadd.f32 %v3132_v32, %v3131_v30  ;;  %v4322_v35 = vadd.f32 %v3204_v33, %v3203_v31 }
 0x108   : > { %v3134_v36 = vpop.f32.mrf.mxu0  ;;  %v3206_v37 = vpop.f32.mrf.mxu1 }
 0x10a   : > { %v3135_v42 = vpop.f32.mrf.mxu0  ;;  %v3207_v43 = vpop.f32.mrf.mxu1 }
 0x10b   : > { %v4328_v44 = vadd.f32 %v3135_v42, %v3134_v36  ;;  %v4330_v45 = vadd.f32 %v3207_v43, %v3206_v37  ;;  %v3897_v42 = vld [vmem:[%s3991_s9 + $0x330] ss:$36 sps:$4 sm:$0xff]   ;;  %v3901_v43 = vld [vmem:[%s3991_s9 + $0x218] ss:$36 sps:$4 sm:$0xff]  }
 0x10c   : > { %v3137_v46 = vpop.f32.mrf.mxu0  ;;  %v3225_v47 = vpop.f32.mrf.mxu1  ;;  %2237 = vmatmul.mubr.bf16.gmra.mxu1 %v3882_v38  ;;  %3586 = vmatmul.mubr.bf16.vlgmr.msra.gmra.mxu0 %v3886_v39 }
 0x10d   : > { %2244 = vmatprep.mubr.bf16.mxu1 %v3889_v40  ;;  %3589 = vmatprep.mubr.bf16.mxu0 %v3890_v41 }
 0x10e   : > { %v3138_v49 = vpop.f32.mrf.mxu0  ;;  %v3226_v52 = vpop.f32.mrf.mxu1 }
 0x10f   : > { %v4339_v54 = vadd.f32 %v3138_v49, %v3137_v46  ;;  %v3227_v55 = vadd.f32 %v3226_v52, %v3225_v47  ;;  %v3904_v47 = vld [vmem:[%s3991_s9 + $0x37c] ss:$36 sps:$4 sm:$0xff]  }
 0x110   : > { %v3140_v56 = vpop.f32.mrf.mxu0  ;;  %v3228_v57 = vpop.f32.mrf.mxu1  ;;  %v3905_v49 = vld [vmem:[%s3991_s9 + $0x260] ss:$36 sps:$4 sm:$0xff]  }
 0x111   : > { %v4343_v62 = vadd.f32 %v3227_v55, %v1692_v53  ;;  %v1711_v55 = vadd.f32 %v4316_v28, %v4335_v48  ;;  %v1716_v28 = vadd.f32 %v4320_v34, %v4335_v48 }
 0x112   : > { %v3141_v1 = vpop.f32.mrf.mxu0  ;;  %v3229_v4 = vpop.f32.mrf.mxu1 }
 0x113   : > { %v4349_v6 = vadd.f32 %v3141_v1, %v3140_v56  ;;  %v3230_v50 = vadd.f32 %v3229_v4, %v3228_v57 }
 0x114   : > { %v3143_v7 = vpop.f32.mrf.mxu0  ;;  %v3231_v8 = vpop.f32.mrf.mxu1  ;;  %2245 = vmatmul.mubr.bf16.gmra.mxu1 %v3887_v58  ;;  %3590 = vmatmul.mubr.bf16.gmra.mxu0 %v3891_v59 }
 0x115   : > { %v4351_v9 = vadd.f32 %v3230_v50, %v1695_v5  ;;  %2252 = vmatprep.mubr.bf16.mxu1 %v3894_v63  ;;  %3593 = vmatprep.mubr.bf16.mxu0 %v3895_v0 }
 0x116   : > { %v3144_v10 = vpop.f32.mrf.mxu0  ;;  %v3232_v11 = vpop.f32.mrf.mxu1 }
 0x117   : > { %v4355_v14 = vadd.f32 %v3144_v10, %v3143_v7  ;;  %v3233_v15 = vadd.f32 %v3232_v11, %v3231_v8  ;;  %v3902_v7 = vld [vmem:[%s3991_s9 + $0x378] ss:$36 sps:$4 sm:$0xff]   ;;  %v3906_v8 = vld [vmem:[%s3991_s9 + $0x2a8] ss:$36 sps:$4 sm:$0xff]  }
 0x118   : > { %v3146_v16 = vpop.f32.mrf.mxu0  ;;  %v3234_v17 = vpop.f32.mrf.mxu1  ;;  %v3909_v11 = vld [vmem:[%s3991_s9 + $0x3c4] ss:$36 sps:$4 sm:$0xff]  }
 0x119   : > { %v4359_v22 = vadd.f32 %v3233_v15, %v1700_v60  ;;  %v3910_v60 = vld [vmem:[%s3991_s9 + $0x2f0] ss:$36 sps:$4 sm:$0xff]  }
 0x11a   : > { %v3147_v25 = vpop.f32.mrf.mxu0  ;;  %v3235_v26 = vpop.f32.mrf.mxu1 }
 0x11b   : > { %v4365_v30 = vadd.f32 %v3147_v25, %v3146_v16  ;;  %v3236_v2 = vadd.f32 %v3235_v26, %v3234_v17  ;;  %v1719_v17 = vadd.f32 %v4328_v44, %v4335_v48  ;;  %v1724_v44 = vadd.f32 %v4339_v54, %v4335_v48 }
 0x11c   : > { %v3149_v31 = vpop.f32.mrf.mxu0  ;;  %v3237_v32 = vpop.f32.mrf.mxu1  ;;  %2253 = vmatmul.mubr.bf16.gmra.mxu1 %v3892_v20  ;;  %3594 = vmatmul.mubr.bf16.gmra.mxu0 %v3896_v21 }
 0x11d   : > { %v4367_v33 = vadd.f32 %v3236_v2, %v1703_v27  ;;  %2260 = vmatprep.mubr.bf16.mxu1 %v3899_v23  ;;  %3597 = vmatprep.mubr.bf16.mxu0 %v3900_v24 }
 0x11e   : > { %v3150_v36 = vpop.f32.mrf.mxu0  ;;  %v3238_v37 = vpop.f32.mrf.mxu1 }
 0x11f   : > { %v4371_v38 = vadd.f32 %v3150_v36, %v3149_v31  ;;  %v3239_v39 = vadd.f32 %v3238_v37, %v3237_v32  ;;  %v3907_v36 = vld [vmem:[%s3991_s9 + $0x3c0] ss:$36 sps:$4 sm:$0xff]   ;;  %v3911_v37 = vld [vmem:[%s3991_s9 + $0x338] ss:$36 sps:$4 sm:$0xff]  }
 0x120   : > { %v3152_v40 = vpop.f32.mrf.mxu0  ;;  %v3240_v41 = vpop.f32.mrf.mxu1 }
 0x121   : > { %v4375_v46 = vadd.f32 %v3239_v39, %v1708_v12  ;;  %v3914_v39 = vld [vmem:[%s3991_s9 + $0x40c] ss:$36 sps:$4 sm:$0xff]  }
 0x122   : > { %v3153_v52 = vpop.f32.mrf.mxu0  ;;  %v3241_v53 = vpop.f32.mrf.mxu1 }
 0x123   : > { %v4381_v56 = vadd.f32 %v3153_v52, %v3152_v40  ;;  %v3242_v18 = vadd.f32 %v3241_v53, %v3240_v41  ;;  %v3915_v40 = vld [vmem:[%s3991_s9 + $0x380] ss:$36 sps:$4 sm:$0xff]  }
 0x124   : > { %v3155_v57 = vpop.f32.mrf.mxu0  ;;  %v3243_v58 = vpop.f32.mrf.mxu1  ;;  %2261 = vmatmul.mubr.bf16.gmra.mxu1 %v3897_v42  ;;  %3598 = vmatmul.mubr.bf16.gmra.mxu0 %v3901_v43  ;;  %v1727_v43 = vadd.f32 %v4349_v6, %v4335_v48  ;;  %v1732_v6 = vadd.f32 %v4355_v14, %v4335_v48 }
 0x125   : > { %v4383_v59 = vadd.f32 %v3242_v18, %v1711_v55  ;;  %2268 = vmatprep.mubr.bf16.mxu1 %v3904_v47  ;;  %3601 = vmatprep.mubr.bf16.mxu0 %v3905_v49 }
 0x126   : > { %v3156_v63 = vpop.f32.mrf.mxu0  ;;  %v3244_v0 = vpop.f32.mrf.mxu1 }
 0x127   : > { %v4387_v1 = vadd.f32 %v3156_v63, %v3155_v57  ;;  %v3245_v4 = vadd.f32 %v3244_v0, %v3243_v58 }
 0x128   : > { %v3158_v5 = vpop.f32.mrf.mxu0  ;;  %v3246_v50 = vpop.f32.mrf.mxu1 }
 0x129   : > { %v4391_v10 = vadd.f32 %v3245_v4, %v1716_v28  ;;  %v3912_v28 = vld [vmem:[%s3991_s9 + $0x408] ss:$36 sps:$4 sm:$0xff]  }
 0x12a   : > { %v3159_v15 = vpop.f32.mrf.mxu0  ;;  %v3247_v16 = vpop.f32.mrf.mxu1  ;;  %v3916_v4 = vld [vmem:[%s3991_s9 + $0x3c8] ss:$36 sps:$4 sm:$0xff]  }
 0x12b   : > { %v4397_v20 = vadd.f32 %v3159_v15, %v3158_v5  ;;  %v3248_v34 = vadd.f32 %v3247_v16, %v3246_v50  ;;  %v3919_v50 = vld [vmem:[%s3991_s9 + $0x454] ss:$36 sps:$4 sm:$0xff]  }
 0x12c   : > { %v3161_v21 = vpop.f32.mrf.mxu0  ;;  %v3249_v23 = vpop.f32.mrf.mxu1  ;;  %2269 = vmatmul.mubr.bf16.gmra.mxu1 %v3902_v7  ;;  %3602 = vmatmul.mubr.bf16.gmra.mxu0 %v3906_v8  ;;  %v3920_v7 = vld [vmem:[%s3991_s9 + $0x410] ss:$36 sps:$4 sm:$0xff]  }
 0x12d   : > { %v4399_v24 = vadd.f32 %v3248_v34, %v1719_v17  ;;  %2276 = vmatprep.mubr.bf16.mxu1 %v3909_v11  ;;  %3605 = vmatprep.mubr.bf16.mxu0 %v3910_v60  ;;  %v1735_v60 = vadd.f32 %v4365_v30, %v4335_v48 }
 0x12e   : > { %v3162_v25 = vpop.f32.mrf.mxu0  ;;  %v3250_v26 = vpop.f32.mrf.mxu1 }
 0x12f   : > { %v4403_v27 = vadd.f32 %v3162_v25, %v3161_v21  ;;  %v3251_v2 = vadd.f32 %v3250_v26, %v3249_v23  ;;  %v1740_v25 = vadd.f32 %v4371_v38, %v4335_v48 }
 0x130   : > { %v3164_v31 = vpop.f32.mrf.mxu0  ;;  %v3252_v32 = vpop.f32.mrf.mxu1 }
 0x131   : > { %v4407_v12 = vadd.f32 %v3251_v2, %v1724_v44 }
 0x132   : > { %v3165_v41 = vpop.f32.mrf.mxu0  ;;  %v3253_v42 = vpop.f32.mrf.mxu1 }
 0x133   : > { %v4413_v47 = vadd.f32 %v3165_v41, %v3164_v31  ;;  %v3254_v54 = vadd.f32 %v3253_v42, %v3252_v32  ;;  %v3917_v31 = vld [vmem:[%s3991_s9 + $0x450] ss:$36 sps:$4 sm:$0xff]   ;;  %v3921_v32 = vld [vmem:[%s3991_s9 + $0x458] ss:$36 sps:$4 sm:$0xff]   ;;  %s2718_s9 = sshll.u32 %s4826_s16, 2 }
 0x134   : > { %v3167_v49 = vpop.f32.mrf.mxu0  ;;  %v3255_v52 = vpop.f32.mrf.mxu1  ;;  %2277 = vmatmul.mubr.bf16.gmra.mxu1 %v3907_v36  ;;  %3606 = vmatmul.mubr.bf16.gmra.mxu0 %v3911_v37  ;;  %s4712_s21 = scalar_lea.vmem %s4802_s3, %s2718_s9 }
 0x135   : > { %v4415_v53 = vadd.f32 %v3254_v54, %v1727_v43  ;;  %2284 = vmatprep.mubr.bf16.mxu1 %v3914_v39  ;;  %3609 = vmatprep.mubr.bf16.mxu0 %v3915_v40  ;;  %v1743_v40 = vadd.f32 %v4381_v56, %v4335_v48 }
 0x136   : > { %v3168_v55 = vpop.f32.mrf.mxu0  ;;  %v3256_v18 = vpop.f32.mrf.mxu1 }
 0x137   : > { %v4419_v57 = vadd.f32 %v3168_v55, %v3167_v49  ;;  %v3257_v58 = vadd.f32 %v3256_v18, %v3255_v52  ;;  %v1748_v55 = vadd.f32 %v4387_v1, %v4335_v48 }
 0x138   : > { %v3170_v63 = vpop.f32.mrf.mxu0  ;;  %v3258_v0 = vpop.f32.mrf.mxu1 }
 0x139   : > { %v4423_v5 = vadd.f32 %v3257_v58, %v1732_v6 }
 0x13a   : > { %v3171_v8 = vpop.f32.mrf.mxu0  ;;  %v3259_v11 = vpop.f32.mrf.mxu1 }
 0x13b   : > { %v4429_v15 = vadd.f32 %v3171_v8, %v3170_v63  ;;  %v3260_v14 = vadd.f32 %v3259_v11, %v3258_v0 }
 0x13c   : > { %v3173_v16 = vpop.f32.mrf.mxu0  ;;  %v3261_v17 = vpop.f32.mrf.mxu1  ;;  %2285 = vmatmul.mubr.bf16.gmra.mxu1 %v3912_v28  ;;  %3610 = vmatmul.mubr.bf16.gmra.mxu0 %v3916_v4  ;;  %v1751_v4 = vadd.f32 %v4397_v20, %v4335_v48 }
 0x13d   : > { %v4431_v34 = vadd.f32 %v3260_v14, %v1735_v60  ;;  %2292 = vmatprep.mubr.bf16.mxu1 %v3919_v50  ;;  %3613 = vmatprep.mubr.bf16.mxu0 %v3920_v7 }
 0x13e   : > { %v3174_v21 = vpop.f32.mrf.mxu0  ;;  %v3262_v23 = vpop.f32.mrf.mxu1 }
 0x13f   : > { %v4435_v26 = vadd.f32 %v3174_v21, %v3173_v16  ;;  %v3263_v30 = vadd.f32 %v3262_v23, %v3261_v17  ;;  %v1756_v16 = vadd.f32 %v4403_v27, %v4335_v48 }
 0x140   : > { %v3176_v44 = vpop.f32.mrf.mxu0  ;;  %v3264_v2 = vpop.f32.mrf.mxu1 }
 0x141   : > { %v4439_v36 = vadd.f32 %v3263_v30, %v1740_v25 }
 0x142   : > { %v3177_v37 = vpop.f32.mrf.mxu0  ;;  %v3265_v39 = vpop.f32.mrf.mxu1 }
 0x143   : > { %v4443_v41 = vadd.f32 %v3177_v37, %v3176_v44  ;;  %v3266_v42 = vadd.f32 %v3265_v39, %v3264_v2 }
 0x144   : > { %v3179_v43 = vpop.f32.mrf.mxu0  ;;  %v3267_v54 = vpop.f32.mrf.mxu1  ;;  %2293 = vmatmul.mubr.bf16.gmra.mxu1 %v3917_v31  ;;  %3614 = vmatmul.mubr.bf16.gmra.mxu0 %v3921_v32  ;;  %v1759_v31 = vadd.f32 %v4413_v47, %v4335_v48 }
 0x145   : > { %v4445_v38 = vadd.f32 %v3266_v42, %v1743_v40 }
 0x146   : > { %v3180_v49 = vpop.f32.mrf.mxu0  ;;  %v3268_v52 = vpop.f32.mrf.mxu1 }
 0x147   : > { %v4449_v18 = vadd.f32 %v3180_v49, %v3179_v43  ;;  %v3269_v6 = vadd.f32 %v3268_v52, %v3267_v54 }
 0x148   : > { %v3182_v58 = vpop.f32.mrf.mxu0  ;;  %v3270_v63 = vpop.f32.mrf.mxu1 }
 0x149   : > { %v4451_v56 = vadd.f32 %v3269_v6, %v1748_v55 }
 0x14a   : > { %v3183_v0 = vpop.f32.mrf.mxu0  ;;  %v3271_v28 = vpop.f32.mrf.mxu1 }
 0x14b   : > { %v4455_v50 = vadd.f32 %v3183_v0, %v3182_v58  ;;  %v3272_v7 = vadd.f32 %v3271_v28, %v3270_v63 }
 0x14c   : > { %v3273_v8 = vpop.f32.mrf.mxu1  ;;  %v3337_v11 = vpop.f32.mrf.mxu0 }
 0x14d   : > { %v4457_v60 = vadd.f32 %v3272_v7, %v1751_v4 }
 0x14e   : > { %v3274_v1 = vpop.f32.mrf.mxu1  ;;  %v3338_v14 = vpop.f32.mrf.mxu0 }
 0x14f   : > { %v3275_v17 = vadd.f32 %v3274_v1, %v3273_v8  ;;  %v3339_v21 = vadd.f32 %v3338_v14, %v3337_v11 }
 0x150   : > { %v3276_v23 = vpop.f32.mrf.mxu1  ;;  %v3340_v25 = vpop.f32.mrf.mxu0 }
 0x151   : > { %v4461_v30 = vadd.f32 %v3275_v17, %v1756_v16  ;;  %v4464_v20 = vadd.f32 %v3339_v21, %v4343_v62  ;;  %v1764_v62 = vadd.f32 %v4419_v57, %v4335_v48 }
 0x152   : > { %v3277_v44 = vpop.f32.mrf.mxu1  ;;  %v3341_v2 = vpop.f32.mrf.mxu0 }
 0x153   : > { %v3278_v32 = vadd.f32 %v3277_v44, %v3276_v23  ;;  %v3342_v37 = vadd.f32 %v3341_v2, %v3340_v25 }
 0x154   : > { %v3279_v39 = vpop.f32.mrf.mxu1  ;;  %v3343_v40 = vpop.f32.mrf.mxu0 }
 0x155   : > { %v4468_v42 = vadd.f32 %v3278_v32, %v1759_v31  ;;  %v4471_v27 = vadd.f32 %v3342_v37, %v4351_v9  ;;  %v1767_v9 = vadd.f32 %v4429_v15, %v4335_v48 }
 0x156   : > { %v3280_v43 = vpop.f32.mrf.mxu1  ;;  %v3344_v54 = vpop.f32.mrf.mxu0 }
 0x157   : > { %v3281_v49 = vadd.f32 %v3280_v43, %v3279_v39  ;;  %v3345_v52 = vadd.f32 %v3344_v54, %v3343_v40 }
 0x158   : > { %v3282_v55 = vpop.f32.mrf.mxu1  ;;  %v3346_v6 = vpop.f32.mrf.mxu0 }
 0x159   : > { %v4475_v58 = vadd.f32 %v3281_v49, %v1764_v62  ;;  %v4478_v47 = vadd.f32 %v3345_v52, %v4359_v22  ;;  %v1772_v22 = vadd.f32 %v4435_v26, %v4335_v48 }
 0x15a   : > { %v3283_v63 = vpop.f32.mrf.mxu1  ;;  %v3347_v0 = vpop.f32.mrf.mxu0 }
 0x15b   : > { %v3284_v28 = vadd.f32 %v3283_v63, %v3282_v55  ;;  %v3348_v4 = vadd.f32 %v3347_v0, %v3346_v6 }
 0x15c   : > { %v3285_v7 = vpop.f32.mrf.mxu1  ;;  %v3349_v8 = vpop.f32.mrf.mxu0 }
 0x15d   : > { %v4482_v11 = vadd.f32 %v3284_v28, %v1767_v9  ;;  %v4485_v57 = vadd.f32 %v3348_v4, %v4367_v33  ;;  %v1775_v33 = vadd.f32 %v4443_v41, %v4335_v48 }
 0x15e   : > { %v3286_v1 = vpop.f32.mrf.mxu1  ;;  %v3350_v14 = vpop.f32.mrf.mxu0 }
 0x15f   : > { %v3287_v16 = vadd.f32 %v3286_v1, %v3285_v7  ;;  %v3351_v17 = vadd.f32 %v3350_v14, %v3349_v8 }
 0x160   : > { %v3288_v21 = vpop.f32.mrf.mxu1  ;;  %v3352_v23 = vpop.f32.mrf.mxu0 }
 0x161   : > { %v4489_v25 = vadd.f32 %v3287_v16, %v1772_v22  ;;  %v4492_v15 = vadd.f32 %v3351_v17, %v4375_v46  ;;  %v1780_v46 = vadd.f32 %v4449_v18, %v4335_v48 }
 0x162   : > { %v3289_v44 = vpop.f32.mrf.mxu1  ;;  %v3353_v2 = vpop.f32.mrf.mxu0 }
 0x163   : > { %v3290_v31 = vadd.f32 %v3289_v44, %v3288_v21  ;;  %v3354_v32 = vadd.f32 %v3353_v2, %v3352_v23 }
 0x164   : > { %v3291_v37 = vpop.f32.mrf.mxu1  ;;  %v3355_v39 = vpop.f32.mrf.mxu0 }
 0x165   : > { %v4496_v40 = vadd.f32 %v3290_v31, %v1775_v33  ;;  %v4499_v26 = vadd.f32 %v3354_v32, %v4383_v59  ;;  %v1783_v59 = vadd.f32 %v4455_v50, %v4335_v48 }
 0x166   : > { %v3292_v43 = vpop.f32.mrf.mxu1  ;;  %v3356_v54 = vpop.f32.mrf.mxu0 }
 0x167   : > { %v3293_v62 = vadd.f32 %v3292_v43, %v3291_v37  ;;  %v3357_v49 = vadd.f32 %v3356_v54, %v3355_v39 }
 0x168   : > { %v3294_v52 = vpop.f32.mrf.mxu1  ;;  %v3358_v55 = vpop.f32.mrf.mxu0 }
 0x169   : > { %v4503_v6 = vadd.f32 %v3293_v62, %v1780_v46  ;;  %v4506_v41 = vadd.f32 %v3357_v49, %v4391_v10  ;;  %v1788_v10 = vadd.f32 %v4286_v51, %v4335_v48 }
 0x16a   : > { %v3295_v63 = vpop.f32.mrf.mxu1  ;;  %v3359_v0 = vpop.f32.mrf.mxu0 }
 0x16b   : > { %v3296_v9 = vadd.f32 %v3295_v63, %v3294_v52  ;;  %v3360_v28 = vadd.f32 %v3359_v0, %v3358_v55 }
 0x16c   : > { %v3297_v4 = vpop.f32.mrf.mxu1  ;;  %v3361_v7 = vpop.f32.mrf.mxu0 }
 0x16d   : > { %v4510_v8 = vadd.f32 %v3296_v9, %v1783_v59  ;;  %v4513_v18 = vadd.f32 %v3360_v28, %v4399_v24  ;;  %v1791_v24 = vadd.f32 %v4294_v61, %v4335_v48 }
 0x16e   : > { %v3298_v1 = vpop.f32.mrf.mxu1  ;;  %v3362_v14 = vpop.f32.mrf.mxu0 }
 0x16f   : > { %v3299_v22 = vadd.f32 %v3298_v1, %v3297_v4  ;;  %v3363_v16 = vadd.f32 %v3362_v14, %v3361_v7 }
 0x170   : > { %v3300_v17 = vpop.f32.mrf.mxu1  ;;  %v3364_v21 = vpop.f32.mrf.mxu0 }
 0x171   : > { %v4517_v23 = vadd.f32 %v3299_v22, %v1788_v10  ;;  %v4520_v50 = vadd.f32 %v3363_v16, %v4407_v12  ;;  %v1796_v12 = vadd.f32 %v4298_v3, %v4335_v48 }
 0x172   : > { %v3301_v44 = vpop.f32.mrf.mxu1  ;;  %v3365_v2 = vpop.f32.mrf.mxu0 }
 0x173   : > { %v3302_v33 = vadd.f32 %v3301_v44, %v3300_v17  ;;  %v3366_v31 = vadd.f32 %v3365_v2, %v3364_v21 }
 0x174   : > { %v3303_v32 = vpop.f32.mrf.mxu1  ;;  %v3367_v37 = vpop.f32.mrf.mxu0 }
 0x175   : > { %v4524_v39 = vadd.f32 %v3302_v33, %v1791_v24  ;;  %v4527_v51 = vadd.f32 %v3366_v31, %v4415_v53  ;;  %v1799_v53 = vadd.f32 %v4306_v13, %v4335_v48 }
 0x176   : > { %v3304_v43 = vpop.f32.mrf.mxu1  ;;  %v3368_v54 = vpop.f32.mrf.mxu0 }
 0x177   : > { %v3305_v46 = vadd.f32 %v3304_v43, %v3303_v32  ;;  %v3369_v62 = vadd.f32 %v3368_v54, %v3367_v37 }
 0x178   : > { %v3306_v49 = vpop.f32.mrf.mxu1  ;;  %v3370_v52 = vpop.f32.mrf.mxu0 }
 0x179   : > { %v4531_v55 = vadd.f32 %v3305_v46, %v1796_v12  ;;  %v4534_v61 = vadd.f32 %v3369_v62, %v4423_v5  ;;  %v1804_v5 = vadd.f32 %v4310_v19, %v4335_v48 }
 0x17a   : > { %v3307_v63 = vpop.f32.mrf.mxu1  ;;  %v3371_v0 = vpop.f32.mrf.mxu0 }
 0x17b   : > { %v3308_v59 = vadd.f32 %v3307_v63, %v3306_v49  ;;  %v3372_v9 = vadd.f32 %v3371_v0, %v3370_v52 }
 0x17c   : > { %v3309_v28 = vpop.f32.mrf.mxu1  ;;  %v3373_v4 = vpop.f32.mrf.mxu0 }
 0x17d   : > { %v4538_v7 = vadd.f32 %v3308_v59, %v1799_v53  ;;  %v4541_v3 = vadd.f32 %v3372_v9, %v4431_v34  ;;  %v1807_v34 = vadd.f32 %v4318_v29, %v4335_v48 }
 0x17e   : > { %v3310_v1 = vpop.f32.mrf.mxu1  ;;  %v3374_v14 = vpop.f32.mrf.mxu0 }
 0x17f   : > { %v3311_v10 = vadd.f32 %v3310_v1, %v3309_v28  ;;  %v3375_v22 = vadd.f32 %v3374_v14, %v3373_v4 }
 0x180   : > { %v3312_v16 = vpop.f32.mrf.mxu1  ;;  %v3376_v17 = vpop.f32.mrf.mxu0 }
 0x181   : > { %v4545_v21 = vadd.f32 %v3311_v10, %v1804_v5  ;;  %v4548_v13 = vadd.f32 %v3375_v22, %v4439_v36  ;;  %v1812_v36 = vadd.f32 %v4322_v35, %v4335_v48 }
 0x182   : > { %v3313_v44 = vpop.f32.mrf.mxu1  ;;  %v3377_v2 = vpop.f32.mrf.mxu0 }
 0x183   : > { %v3314_v24 = vadd.f32 %v3313_v44, %v3312_v16  ;;  %v3378_v33 = vadd.f32 %v3377_v2, %v3376_v17 }
 0x184   : > { %v3315_v31 = vpop.f32.mrf.mxu1  ;;  %v3379_v32 = vpop.f32.mrf.mxu0 }
 0x185   : > { %v4552_v37 = vadd.f32 %v3314_v24, %v1807_v34  ;;  %v4555_v19 = vadd.f32 %v3378_v33, %v4445_v38  ;;  %v1815_v38 = vadd.f32 %v4330_v45, %v4335_v48 }
 0x186   : > { %v3316_v43 = vpop.f32.mrf.mxu1  ;;  %v3380_v54 = vpop.f32.mrf.mxu0 }
 0x187   : > { %v3317_v12 = vadd.f32 %v3316_v43, %v3315_v31  ;;  %v3381_v46 = vadd.f32 %v3380_v54, %v3379_v32 }
 0x188   : > { %v3318_v62 = vpop.f32.mrf.mxu1  ;;  %v3382_v49 = vpop.f32.mrf.mxu0 }
 0x189   : > { %v4559_v52 = vadd.f32 %v3317_v12, %v1812_v36  ;;  %v4562_v29 = vadd.f32 %v3381_v46, %v4451_v56 }
 0x18a   : > { %v3319_v63 = vpop.f32.mrf.mxu1  ;;  %v3383_v0 = vpop.f32.mrf.mxu0 }
 0x18b   : > { %v3320_v53 = vadd.f32 %v3319_v63, %v3318_v62  ;;  %v3384_v59 = vadd.f32 %v3383_v0, %v3382_v49 }
 0x18c   : > { %v3385_v9 = vpop.f32.mrf.mxu0  ;;  %v3449_v28 = vpop.f32.mrf.mxu1 }
 0x18d   : > { %v4566_v4 = vadd.f32 %v3320_v53, %v1815_v38  ;;  %v4569_v35 = vadd.f32 %v3384_v59, %v4457_v60 }
 0x18e   : > { %v3386_v1 = vpop.f32.mrf.mxu0  ;;  %v3450_v14 = vpop.f32.mrf.mxu1 }
 0x18f   : > { %v3387_v5 = vadd.f32 %v3386_v1, %v3385_v9  ;;  %v3451_v10 = vadd.f32 %v3450_v14, %v3449_v28 }
 0x190   : > { %v3388_v56 = vpop.f32.mrf.mxu0  ;;  %v4571_v22 = vpop.f32.mrf.mxu1 }
 0x191   : > { %v4574_v16 = vadd.f32 %v3387_v5, %v4461_v30  ;;  %v4577_v45 = vadd.f32 %v3451_v10, %v4464_v20 }
 0x192   : > { %v3389_v48 = vpop.f32.mrf.mxu0  ;;  %v4579_v17 = vpop.f32.mrf.mxu1 }
 0x193   : > { %v3390_v44 = vadd.f32 %v3389_v48, %v3388_v56 }
 0x194   : > { %v3391_v2 = vpop.f32.mrf.mxu0  ;;  %v4581_v60 = vpop.f32.mrf.mxu1 }
 0x195   : > { %v4584_v34 = vadd.f32 %v3390_v44, %v4468_v42 }
 0x196   : > { %v3392_v24 = vpop.f32.mrf.mxu0  ;;  %v4586_v33 = vpop.f32.mrf.mxu1 }
 0x197   : > { %v3393_v31 = vadd.f32 %v3392_v24, %v3391_v2 }
 0x198   : > { %v3394_v32 = vpop.f32.mrf.mxu0  ;;  %v4588_v30 = vpop.f32.mrf.mxu1 }
 0x199   : > { %v4591_v20 = vadd.f32 %v3393_v31, %v4475_v58 }
 0x19a   : > { %v3395_v43 = vpop.f32.mrf.mxu0  ;;  %v4593_v54 = vpop.f32.mrf.mxu1 }
 0x19b   : > { %v3396_v36 = vadd.f32 %v3395_v43, %v3394_v32 }
 0x19c   : > { %v3397_v12 = vpop.f32.mrf.mxu0  ;;  %v4595_v46 = vpop.f32.mrf.mxu1 }
 0x19d   : > { %v4598_v42 = vadd.f32 %v3396_v36, %v4482_v11 }
 0x19e   : > { %v3398_v62 = vpop.f32.mrf.mxu0  ;;  %v4600_v49 = vpop.f32.mrf.mxu1 }
 0x19f   : > { %v3399_v63 = vadd.f32 %v3398_v62, %v3397_v12 }
 0x1a0   : > { %v3400_v0 = vpop.f32.mrf.mxu0  ;;  %v4602_v38 = vpop.f32.mrf.mxu1 }
 0x1a1   : > { %v4605_v58 = vadd.f32 %v3399_v63, %v4489_v25 }
 0x1a2   : > { %v3401_v53 = vpop.f32.mrf.mxu0  ;;  %v4607_v59 = vpop.f32.mrf.mxu1 }
 0x1a3   : > { %4803 = vst [vmem:[#allocation2_spill] sm:$0xff] %v4605_v58  ;;  %v3402_v9 = vadd.f32 %v3401_v53, %v3400_v0 }
 0x1a4   : > { %v3403_v28 = vpop.f32.mrf.mxu0  ;;  %v4609_v1 = vpop.f32.mrf.mxu1 }
 0x1a5   : > { %v4612_v11 = vadd.f32 %v3402_v9, %v4496_v40 }
 0x1a6   : > { %v3404_v14 = vpop.f32.mrf.mxu0  ;;  %v4614_v5 = vpop.f32.mrf.mxu1 }
 0x1a7   : > { %4804 = vst [vmem:[#allocation3_spill] sm:$0xff] %v4612_v11  ;;  %v3405_v10 = vadd.f32 %v3404_v14, %v3403_v28 }
 0x1a8   : > { %v3406_v56 = vpop.f32.mrf.mxu0  ;;  %v4616_v48 = vpop.f32.mrf.mxu1 }
 0x1a9   : > { %v4619_v25 = vadd.f32 %v3405_v10, %v4503_v6 }
 0x1aa   : > { %v3407_v44 = vpop.f32.mrf.mxu0  ;;  %v4621_v2 = vpop.f32.mrf.mxu1 }
 0x1ab   : > { %4805 = vst [vmem:[#allocation4_spill] sm:$0xff] %v4619_v25  ;;  %v3408_v24 = vadd.f32 %v3407_v44, %v3406_v56 }
 0x1ac   : > { %v3409_v31 = vpop.f32.mrf.mxu0  ;;  %v4623_v32 = vpop.f32.mrf.mxu1 }
 0x1ad   : > { %v4626_v40 = vadd.f32 %v3408_v24, %v4510_v8 }
 0x1ae   : > { %v3410_v43 = vpop.f32.mrf.mxu0  ;;  %v4628_v36 = vpop.f32.mrf.mxu1 }
 0x1af   : > { %4806 = vst [vmem:[#allocation5_spill] sm:$0xff] %v4626_v40  ;;  %v3411_v12 = vadd.f32 %v3410_v43, %v3409_v31 }
 0x1b0   : > { %v3412_v62 = vpop.f32.mrf.mxu0  ;;  %v4630_v63 = vpop.f32.mrf.mxu1 }
 0x1b1   : > { %v4633_v6 = vadd.f32 %v3411_v12, %v4517_v23 }
 0x1b2   : > { %v3413_v0 = vpop.f32.mrf.mxu0  ;;  %v4635_v53 = vpop.f32.mrf.mxu1 }
 0x1b3   : > { %4807 = vst [vmem:[#allocation6_spill] sm:$0xff] %v4633_v6  ;;  %v3414_v9 = vadd.f32 %v3413_v0, %v3412_v62 }
 0x1b4   : > { %v3415_v28 = vpop.f32.mrf.mxu0  ;;  %v4637_v14 = vpop.f32.mrf.mxu1 }
 0x1b5   : > { %v4640_v8 = vadd.f32 %v3414_v9, %v4524_v39 }
 0x1b6   : > { %v3416_v10 = vpop.f32.mrf.mxu0  ;;  %v4642_v56 = vpop.f32.mrf.mxu1 }
 0x1b7   : > { %4808 = vst [vmem:[#allocation7_spill] sm:$0xff] %v4640_v8  ;;  %v3417_v44 = vadd.f32 %v3416_v10, %v3415_v28 }
 0x1b8   : > { %v3418_v24 = vpop.f32.mrf.mxu0  ;;  %v4644_v31 = vpop.f32.mrf.mxu1 }
 0x1b9   : > { %v4647_v23 = vadd.f32 %v3417_v44, %v4531_v55 }
 0x1ba   : > { %v3419_v43 = vpop.f32.mrf.mxu0  ;;  %v4649_v12 = vpop.f32.mrf.mxu1 }
 0x1bb   : > { %4809 = vst [vmem:[#allocation8_spill] sm:$0xff] %v4647_v23  ;;  %v3420_v62 = vadd.f32 %v3419_v43, %v3418_v24 }
 0x1bc   : > { %v3421_v0 = vpop.f32.mrf.mxu0  ;;  %v4651_v6 = vpop.f32.mrf.mxu1 }
 0x1bd   : > { %v4654_v39 = vadd.f32 %v3420_v62, %v4538_v7 }
 0x1be   : > { %v3422_v9 = vpop.f32.mrf.mxu0  ;;  %v4656_v8 = vpop.f32.mrf.mxu1 }
 0x1bf   : > { %4810 = vst [vmem:[#allocation9_spill] sm:$0xff] %v4654_v39  ;;  %v3423_v28 = vadd.f32 %v3422_v9, %v3421_v0 }
 0x1c0   : > { %v3424_v10 = vpop.f32.mrf.mxu0  ;;  %v4658_v11 = vpop.f32.mrf.mxu1 }
 0x1c1   : > { %v4661_v55 = vadd.f32 %v3423_v28, %v4545_v21  ;;  %v3457_v21 = vadd.f32 %v4586_v33, %v4581_v60 }
 0x1c2   : > { %v3425_v44 = vpop.f32.mrf.mxu0  ;;  %v4663_v23 = vpop.f32.mrf.mxu1 }
 0x1c3   : > { %4811 = vst [vmem:[#allocation10_spill] sm:$0xff] %v4661_v55  ;;  %v3426_v24 = vadd.f32 %v3425_v44, %v3424_v10 }
 0x1c4   : > { %v3427_v43 = vpop.f32.mrf.mxu0  ;;  %v4665_v40 = vpop.f32.mrf.mxu1 }
 0x1c5   : > { %v4668_v7 = vadd.f32 %v3426_v24, %v4552_v37  ;;  %v3460_v37 = vadd.f32 %v4593_v54, %v4588_v30  ;;  %v3469_v54 = vadd.f32 %v4614_v5, %v4609_v1  ;;  %v3466_v1 = vadd.f32 %v4607_v59, %v4602_v38 }
 0x1c6   : > { %v3428_v62 = vpop.f32.mrf.mxu0  ;;  %v4670_v39 = vpop.f32.mrf.mxu1 }
 0x1c7   : > { %4812 = vst [vmem:[#allocation11_spill] sm:$0xff] %v4668_v7  ;;  %v3429_v0 = vadd.f32 %v3428_v62, %v3427_v43  ;;  %v3454_v62 = vadd.f32 %v4579_v17, %v4571_v22 }
 0x1c8   : > { %v3430_v9 = vpop.f32.mrf.mxu0  ;;  %v4672_v58 = vpop.f32.mrf.mxu1 }
 0x1c9   : > { %v4677_v28 = vadd.f32 %v3429_v0, %v4559_v52  ;;  %v2183_v52 = vadd.f32 %v3457_v21, %v4478_v47  ;;  %v3463_v47 = vadd.f32 %v4600_v49, %v4595_v46 }
 0x1ca   : > { %v3431_v10 = vpop.f32.mrf.mxu0  ;;  %v4679_v44 = vpop.f32.mrf.mxu1 }
 0x1cb   : > { %4813 = vst [vmem:[#allocation12_spill] sm:$0xff] %v4677_v28  ;;  %v3432_v24 = vadd.f32 %v3431_v10, %v3430_v9  ;;  %v2186_v28 = vadd.f32 %v3460_v37, %v4485_v57  ;;  %v3472_v57 = vadd.f32 %v4621_v2, %v4616_v48  ;;  %v2199_v48 = vadd.f32 %v3469_v54, %v4506_v41 }
 0x1cc   : > { %v4683_v7 = vpop.f32.mrf.mxu1  ;;  %v3587_v43 = vpop.f32.mrf.mxu0  ;;  %v2194_v41 = vadd.f32 %v3466_v1, %v4499_v26  ;;  %v3475_v54 = vadd.f32 %v4628_v36, %v4623_v32 }
 0x1cd   : > { %v4688_v55 = vadd.f32 %v3432_v24, %v4566_v4  ;;  %v2344_v0 = vadd.f32 %v3587_v43, %v2183_v52  ;;  %v2178_v4 = vadd.f32 %v3454_v62, %v4471_v27  ;;  %v2191_v43 = vadd.f32 %v3463_v47, %v4492_v15 }
 0x1ce   : > { %v4691_v60 = vpop.f32.mrf.mxu1  ;;  %v2335_v33 = vpop.f32.mrf.mxu0  ;;  %v2202_v62 = vadd.f32 %v3472_v57, %v4513_v18  ;;  %v3484_v15 = vadd.f32 %v4649_v12, %v4644_v31  ;;  %v2207_v1 = vadd.f32 %v3475_v54, %v4520_v50  ;;  %v3496_v50 = vadd.f32 %v4679_v44, %v4672_v58 }
 0x1cf   : > { %v2336_v9 = vadd.f32 %v2335_v33, %v4577_v45  ;;  %v2464_v10 = vmax.f32 %v2344_v0, 0.0  ;;  %v3481_v0 = vadd.f32 %v4642_v56, %v4637_v14  ;;  %v3478_v14 = vadd.f32 %v4635_v53, %v4630_v63 }
 0x1d0   : > { %v4694_v25 = vpop.f32.mrf.mxu1  ;;  %v3588_v30 = vpop.f32.mrf.mxu0  ;;  %v2234_v44 = vadd.f32 %v3496_v50, %v4569_v35 }
 0x1d1   : > { %v2347_v22 = vadd.f32 %v3588_v30, %v2186_v28  ;;  %v2462_v46 = vmax.f32 %v2336_v9, 0.0  ;;  %v2215_v32 = vadd.f32 %v3481_v0, %v4534_v61  ;;  %v2210_v61 = vadd.f32 %v3478_v14, %v4527_v51 }
 0x1d2   : > { %v4703_v17 = vpop.f32.mrf.mxu1  ;;  %v2338_v21 = vpop.f32.mrf.mxu0 }
 0x1d3   : > { %v2465_v37 = vmax.f32 %v2347_v22, 0.0  ;;  %v2339_v24 = vadd.f32 %v2338_v21, %v2178_v4 }
 0x1d4   : > { %v4714_v27 = vpop.f32.mrf.mxu1  ;;  %v3591_v45 = vpop.f32.mrf.mxu0 }
 0x1d5   : > { %v3010_v49 = vpack.c.bf16 %v2465_v37, %v2464_v10  ;;  %v2463_v5 = vmax.f32 %v2339_v24, 0.0  ;;  %v2360_v59 = vadd.f32 %v3591_v45, %v2199_v48  ;;  %v2218_v45 = vadd.f32 %v3484_v15, %v4541_v3 }
 0x1d6   : > { %v4717_v2 = vpop.f32.mrf.mxu1  ;;  %v2351_v28 = vpop.f32.mrf.mxu0  ;;  %v3487_v48 = vadd.f32 %v4656_v8, %v4651_v6 }
 0x1d7   : > { %3082 = vst [vmem:[%s4712_s21 + $0x8] sm:$0xff] %v3010_v49   ;;  %v3005_v38 = vpack.c.bf16 %v2463_v5, %v2462_v46  ;;  %v2352_v30 = vadd.f32 %v2351_v28, %v2191_v43  ;;  %v2468_v18 = vmax.f32 %v2360_v59, 0.0  ;;  %v3493_v46 = vadd.f32 %v4670_v39, %v4665_v40 }
 0x1d8   : > { %v4722_v52 = vpop.f32.mrf.mxu1  ;;  %v3592_v33 = vpop.f32.mrf.mxu0  ;;  %v3490_v40 = vadd.f32 %v4663_v23, %v4658_v11  ;;  %v2223_v58 = vadd.f32 %v3487_v48, %v4548_v13  ;;  %v3505_v11 = vadd.f32 %v4717_v2, %v4714_v27 }
 0x1d9   : > { %3006 = vst [vmem:[%s4712_s21] sm:$0xff] %v3005_v38   ;;  %v2363_v9 = vadd.f32 %v3592_v33, %v2202_v62  ;;  %v2466_v26 = vmax.f32 %v2352_v30, 0.0  ;;  %v2231_v6 = vadd.f32 %v3493_v46, %v4562_v29  ;;  %v3499_v29 = vadd.f32 %v4691_v60, %v4683_v7 }
 0x1da   : > { %v3507_v22 = vpop.f32.mrf.mxu1  ;;  %v2354_v4 = vpop.f32.mrf.mxu0 }
 0x1db   : > { %v2469_v47 = vmax.f32 %v2363_v9, 0.0  ;;  %v2355_v21 = vadd.f32 %v2354_v4, %v2194_v41  ;;  %v3508_v13 = vadd.f32 %v3507_v22, %v4722_v52  ;;  %v2239_v52 = vadd.f32 %v3499_v29, %v4574_v16 }
 0x1dc   : > { %v4734_v56 = vpop.f32.mrf.mxu1  ;;  %v3595_v57 = vpop.f32.mrf.mxu0 }
 0x1dd   : > { %v3020_v10 = vpack.c.bf16 %v2469_v47, %v2468_v18  ;;  %v2467_v37 = vmax.f32 %v2355_v21, 0.0  ;;  %v2376_v12 = vadd.f32 %v3595_v57, %v2215_v32  ;;  %v2226_v18 = vadd.f32 %v3490_v40, %v4555_v19  ;;  %v4814_v40 = vld [vmem:[#allocation4_spill] sm:$0xff] }
 0x1de   : > { %v4737_v36 = vpop.f32.mrf.mxu1  ;;  %v2367_v24 = vpop.f32.mrf.mxu0  ;;  %v2247_v32 = vadd.f32 %v3505_v11, %v4591_v20  ;;  %v2250_v22 = vadd.f32 %v3508_v13, %v4598_v42 }
 0x1df   : > { %3084 = vst [vmem:[%s4712_s21 + $0x18] sm:$0xff] %v3020_v10   ;;  %v3015_v31 = vpack.c.bf16 %v2467_v37, %v2466_v26  ;;  %v2368_v49 = vadd.f32 %v2367_v24, %v2207_v1  ;;  %v2472_v3 = vmax.f32 %v2376_v12, 0.0  ;;  %v3502_v26 = vadd.f32 %v4703_v17, %v4694_v25 }
 0x1e0   : > { %v4742_v63 = vpop.f32.mrf.mxu1  ;;  %v3596_v53 = vpop.f32.mrf.mxu0  ;;  %v3511_v20 = vadd.f32 %v4737_v36, %v4734_v56 }
 0x1e1   : > { %3083 = vst [vmem:[%s4712_s21 + $0x10] sm:$0xff] %v3015_v31   ;;  %v2379_v5 = vadd.f32 %v3596_v53, %v2218_v45  ;;  %v2470_v33 = vmax.f32 %v2368_v49, 0.0  ;;  %v2242_v53 = vadd.f32 %v3502_v26, %v4584_v34 }
 0x1e2   : > { %v3513_v28 = vpop.f32.mrf.mxu1  ;;  %v2370_v38 = vpop.f32.mrf.mxu0 }
 0x1e3   : > { %v2473_v59 = vmax.f32 %v2379_v5, 0.0  ;;  %v2371_v43 = vadd.f32 %v2370_v38, %v2210_v61  ;;  %v3514_v42 = vadd.f32 %v3513_v28, %v4742_v63 }
 0x1e4   : > { %v3515_v39 = vpop.f32.mrf.mxu1  ;;  %v3599_v62 = vpop.f32.mrf.mxu0 }
 0x1e5   : > { %v3030_v51 = vpack.c.bf16 %v2473_v59, %v2472_v3  ;;  %v2471_v0 = vmax.f32 %v2371_v43, 0.0  ;;  %v2392_v41 = vadd.f32 %v3599_v62, %v2231_v6 }
 0x1e6   : > { %v3516_v8 = vpop.f32.mrf.mxu1  ;;  %v2383_v30 = vpop.f32.mrf.mxu0 }
 0x1e7   : > { %3086 = vst [vmem:[%s4712_s21 + $0x28] sm:$0xff] %v3030_v51   ;;  %v3025_v9 = vpack.c.bf16 %v2471_v0, %v2470_v33  ;;  %v2384_v23 = vadd.f32 %v2383_v30, %v2223_v58  ;;  %v2476_v14 = vmax.f32 %v2392_v41, 0.0  ;;  %v3517_v25 = vadd.f32 %v3516_v8, %v3515_v39  ;;  %v4815_v33 = vld [vmem:[#allocation2_spill] sm:$0xff]  ;;  %v4816_v0 = vld [vmem:[#allocation5_spill] sm:$0xff]  ;;  %v4817_v41 = vld [vmem:[#allocation3_spill] sm:$0xff] }
 0x1e8   : > { %v3518_v54 = vpop.f32.mrf.mxu1  ;;  %v3600_v4 = vpop.f32.mrf.mxu0  ;;  %v2255_v51 = vadd.f32 %v3511_v20, %v4815_v33  ;;  %v2258_v58 = vadd.f32 %v3514_v42, %v4817_v41  ;;  %v4824_v33 = vld [vmem:[#allocation11_spill] sm:$0xff] }
 0x1e9   : > { %3085 = vst [vmem:[%s4712_s21 + $0x20] sm:$0xff] %v3025_v9   ;;  %v2395_v15 = vadd.f32 %v3600_v4, %v2234_v44  ;;  %v2474_v10 = vmax.f32 %v2384_v23, 0.0  ;;  %v2263_v34 = vadd.f32 %v3517_v25, %v4814_v40 }
 0x1ea   : > { %v3519_v47 = vpop.f32.mrf.mxu1  ;;  %v2386_v21 = vpop.f32.mrf.mxu0 }
 0x1eb   : > { %v2477_v35 = vmax.f32 %v2395_v15, 0.0  ;;  %v2387_v57 = vadd.f32 %v2386_v21, %v2226_v18  ;;  %v3520_v5 = vadd.f32 %v3519_v47, %v3518_v54 }
 0x1ec   : > { %v3521_v27 = vpop.f32.mrf.mxu1  ;;  %v3603_v2 = vpop.f32.mrf.mxu0 }
 0x1ed   : > { %v3040_v37 = vpack.c.bf16 %v2477_v35, %v2476_v14  ;;  %v2475_v19 = vmax.f32 %v2387_v57, 0.0  ;;  %v2408_v31 = vadd.f32 %v3603_v2, %v2247_v32  ;;  %v2266_v6 = vadd.f32 %v3520_v5, %v4816_v0  ;;  %v4818_v57 = vld [vmem:[#allocation8_spill] sm:$0xff] }
 0x1ee   : > { %v3522_v7 = vpop.f32.mrf.mxu1  ;;  %v2399_v60 = vpop.f32.mrf.mxu0 }
 0x1ef   : > { %3088 = vst [vmem:[%s4712_s21 + $0x38] sm:$0xff] %v3040_v37   ;;  %v3035_v24 = vpack.c.bf16 %v2475_v19, %v2474_v10  ;;  %v2400_v17 = vadd.f32 %v2399_v60, %v2239_v52  ;;  %v2480_v61 = vmax.f32 %v2408_v31, 0.0  ;;  %v3523_v44 = vadd.f32 %v3522_v7, %v3521_v27  ;;  %v4819_v19 = vld [vmem:[#allocation6_spill] sm:$0xff]  ;;  %v4820_v7 = vld [vmem:[#allocation9_spill] sm:$0xff] }
 0x1f0   : > { %v3524_v12 = vpop.f32.mrf.mxu1  ;;  %v3604_v1 = vpop.f32.mrf.mxu0 }
 0x1f1   : > { %3087 = vst [vmem:[%s4712_s21 + $0x30] sm:$0xff] %v3035_v24   ;;  %v2411_v45 = vadd.f32 %v3604_v1, %v2250_v22  ;;  %v2478_v3 = vmax.f32 %v2400_v17, 0.0  ;;  %v2271_v32 = vadd.f32 %v3523_v44, %v4819_v19 }
 0x1f2   : > { %v3525_v46 = vpop.f32.mrf.mxu1  ;;  %v2402_v49 = vpop.f32.mrf.mxu0 }
 0x1f3   : > { %v2481_v48 = vmax.f32 %v2411_v45, 0.0  ;;  %v2403_v16 = vadd.f32 %v2402_v49, %v2242_v53  ;;  %v3526_v29 = vadd.f32 %v3525_v46, %v3524_v12  ;;  %v4821_v12 = vld [vmem:[#allocation7_spill] sm:$0xff] }
 0x1f4   : > { %v3527_v38 = vpop.f32.mrf.mxu1  ;;  %v3607_v50 = vpop.f32.mrf.mxu0 }
 0x1f5   : > { %v3050_v59 = vpack.c.bf16 %v2481_v48, %v2480_v61  ;;  %v2479_v43 = vmax.f32 %v2403_v16, 0.0  ;;  %v2424_v36 = vadd.f32 %v3607_v50, %v2263_v34  ;;  %v2274_v1 = vadd.f32 %v3526_v29, %v4821_v12 }
 0x1f6   : > { %v3528_v39 = vpop.f32.mrf.mxu1  ;;  %v2415_v62 = vpop.f32.mrf.mxu0 }
 0x1f7   : > { %3090 = vst [vmem:[%s4712_s21 + $0x48] sm:$0xff] %v3050_v59   ;;  %v3045_v56 = vpack.c.bf16 %v2479_v43, %v2478_v3  ;;  %v3529_v63 = vadd.f32 %v3528_v39, %v3527_v38  ;;  %v2416_v28 = vadd.f32 %v2415_v62, %v2255_v51  ;;  %v2484_v11 = vmax.f32 %v2424_v36, 0.0  ;;  %v4822_v43 = vld [vmem:[#allocation10_spill] sm:$0xff]  ;;  %v4823_v62 = vld [vmem:[#allocation12_spill] sm:$0xff] }
 0x1f8   : > { %v3530_v8 = vpop.f32.mrf.mxu1  ;;  %v3608_v30 = vpop.f32.mrf.mxu0 }
 0x1f9   : > { %3089 = vst [vmem:[%s4712_s21 + $0x40] sm:$0xff] %v3045_v56   ;;  %v2427_v9 = vadd.f32 %v3608_v30, %v2266_v6  ;;  %v2482_v13 = vmax.f32 %v2416_v28, 0.0  ;;  %v2279_v26 = vadd.f32 %v3529_v63, %v4818_v57 }
 0x1fa   : > { %v3531_v54 = vpop.f32.mrf.mxu1  ;;  %v2418_v4 = vpop.f32.mrf.mxu0 }
 0x1fb   : > { %v2485_v23 = vmax.f32 %v2427_v9, 0.0  ;;  %v3532_v15 = vadd.f32 %v3531_v54, %v3530_v8  ;;  %v2419_v18 = vadd.f32 %v2418_v4, %v2258_v58 }
 0x1fc   : > { %v3533_v47 = vpop.f32.mrf.mxu1  ;;  %v3611_v21 = vpop.f32.mrf.mxu0 }
 0x1fd   : > { %v3060_v14 = vpack.c.bf16 %v2485_v23, %v2484_v11  ;;  %v2483_v35 = vmax.f32 %v2419_v18, 0.0  ;;  %v2440_v37 = vadd.f32 %v3611_v21, %v2279_v26  ;;  %v2282_v60 = vadd.f32 %v3532_v15, %v4820_v7 }
 0x1fe   : > { %v3534_v2 = vpop.f32.mrf.mxu1  ;;  %v2431_v10 = vpop.f32.mrf.mxu0 }
 0x1ff   : > { %3092 = vst [vmem:[%s4712_s21 + $0x58] sm:$0xff] %v3060_v14   ;;  %v3055_v27 = vpack.c.bf16 %v2483_v35, %v2482_v13  ;;  %v2432_v52 = vadd.f32 %v2431_v10, %v2271_v32  ;;  %v2488_v45 = vmax.f32 %v2440_v37, 0.0  ;;  %v3535_v53 = vadd.f32 %v3534_v2, %v3533_v47 }
 0x200   : > { %v3536_v24 = vpop.f32.mrf.mxu1  ;;  %v3612_v31 = vpop.f32.mrf.mxu0 }
 0x201   : > { %3091 = vst [vmem:[%s4712_s21 + $0x50] sm:$0xff] %v3055_v27   ;;  %v2443_v22 = vadd.f32 %v3612_v31, %v2282_v60  ;;  %v2486_v61 = vmax.f32 %v2432_v52, 0.0  ;;  %v2287_v40 = vadd.f32 %v3535_v53, %v4822_v43 }
 0x202   : > { %v3537_v25 = vpop.f32.mrf.mxu1  ;;  %v2434_v17 = vpop.f32.mrf.mxu0 }
 0x203   : > { %v2489_v20 = vmax.f32 %v2443_v22, 0.0  ;;  %v2435_v46 = vadd.f32 %v2434_v17, %v2274_v1  ;;  %v3538_v16 = vadd.f32 %v3537_v25, %v3536_v24 }
 0x204   : > { %v3539_v49 = vpop.f32.mrf.mxu1  ;;  %v3615_v5 = vpop.f32.mrf.mxu0 }
 0x205   : > { %v3070_v48 = vpack.c.bf16 %v2489_v20, %v2488_v45  ;;  %v2487_v42 = vmax.f32 %v2435_v46, 0.0  ;;  %v2290_v51 = vadd.f32 %v3538_v16, %v4824_v33 }
 0x206   : > { %v3540_v38 = vpop.f32.mrf.mxu1  ;;  %v2447_v50 = vpop.f32.mrf.mxu0 }
 0x207   : > { %3094 = vst [vmem:[%s4712_s21 + $0x68] sm:$0xff] %v3070_v48   ;;  %v3065_v3 = vpack.c.bf16 %v2487_v42, %v2486_v61  ;;  %v3541_v59 = vadd.f32 %v3540_v38, %v3539_v49  ;;  %v2448_v36 = vadd.f32 %v2447_v50, %v2287_v40 }
 0x208   : > { %v3542_v34 = vpop.f32.mrf.mxu1  ;;  %v3616_v39 = vpop.f32.mrf.mxu0 }
 0x209   : > { %3093 = vst [vmem:[%s4712_s21 + $0x60] sm:$0xff] %v3065_v3   ;;  %v2295_v56 = vadd.f32 %v3541_v59, %v4823_v62  ;;  %v2490_v28 = vmax.f32 %v2448_v36, 0.0 }
 0x20a   : > { %v3543_v0 = vpop.f32.mrf.mxu1  ;;  %v2450_v6 = vpop.f32.mrf.mxu0 }
 0x20b   : > { %v3544_v8 = vadd.f32 %v3543_v0, %v3542_v34  ;;  %v2451_v30 = vadd.f32 %v2450_v6, %v2290_v51  ;;  %v2456_v63 = vadd.f32 %v3615_v5, %v2295_v56 }
 0x20d   : > { %v2298_v9 = vadd.f32 %v3544_v8, %v4688_v55  ;;  %v2491_v41 = vmax.f32 %v2451_v30, 0.0  ;;  %v2492_v54 = vmax.f32 %v2456_v63, 0.0 }
 0x20f   : > { %v2459_v58 = vadd.f32 %v3616_v39, %v2298_v9  ;;  %v3075_v44 = vpack.c.bf16 %v2491_v41, %v2490_v28 }
 0x211   : > { %v2493_v4 = vmax.f32 %v2459_v58, 0.0  ;;  %3095 = vst [vmem:[%s4712_s21 + $0x70] sm:$0xff] %v3075_v44  }
 0x213   : > { %v3080_v11 = vpack.c.bf16 %v2493_v4, %v2492_v54 }
 0x215   : > { %3096 = vst [vmem:[%s4712_s21 + $0x78] sm:$0xff] %v3080_v11  }
 0x216 PF: > { %s13_s12 = sadd.s32 1, %s3928_s12  }
 0x217   : > { %p10_p4 = scmp.ge.s32.totalorder %s13_s12, 4  }
 0x219   :  { %12 = sbr.rel (!%p10_p4) target bundleno = 1 (0x1), region = 62 }

// kernel: decoder_forward.17
= control target key start
LH: loop header
LB: loop body
LE: loop exit
PB: predicated region body
PF: predicated region fallthrough
CT: control target
= control target key end

     0   :  { %s1632_s1 = inlined_call_operand.vmem [shape: bf16[1152,128], index: 1, kind: input, shape index: {}]   ;;  %s1633_s0 = inlined_call_operand.vmem [shape: bf16[32,1152], index: 0, kind: input, shape index: {}]   ;;  %s1634_s2 = inlined_call_operand.vmem [shape: f32[1,128], index: 2, kind: input, shape index: {}]   ;;  %s1635_s3 = inlined_call_operand.vmem [shape: bf16[32,128], index: 3, kind: output, shape index: {}]  }
   0x1   :  { %v1235_v0 = vld [vmem:[%s1632_s1 + $0x78] sm:$0xff]   ;;  %v1239_v4 = vld [vmem:[%s1632_s1 + $0x70] sm:$0xff]   ;;  %v1243_v8 = vld [vmem:[%s1632_s1 + $0x68] sm:$0xff]  }
   0x2   :  { %v1236_v1 = vld [vmem:[%s1632_s1 + $0x38] sm:$0xff]   ;;  %1093 = vmatprep.subr.bf16.mxu0 %v1235_v0  ;;  %v1240_v5 = vld [vmem:[%s1632_s1 + $0x30] sm:$0xff]   ;;  %v1244_v9 = vld [vmem:[%s1632_s1 + $0x28] sm:$0xff]  }
   0x3   :  { %v1237_v2 = vld [vmem:[%s1632_s1 + $0xf8] sm:$0xff]   ;;  %1094 = vmatpush3.bf16.msra.mxu0 %v1236_v1  ;;  %v1241_v6 = vld [vmem:[%s1632_s1 + $0xf0] sm:$0xff]   ;;  %v1245_v10 = vld [vmem:[%s1632_s1 + $0xe8] sm:$0xff]  }
   0x4   :  { %v1238_v3 = vld [vmem:[%s1632_s1 + $0xb8] sm:$0xff]   ;;  %1121 = vmatprep.subr.bf16.mxu1 %v1237_v2  ;;  %1095 = vmatprep.subr.bf16.mxu0 %v1239_v4  ;;  %v1242_v7 = vld [vmem:[%s1632_s1 + $0xb0] sm:$0xff]   ;;  %v1246_v11 = vld [vmem:[%s1632_s1 + $0xa8] sm:$0xff]  }
   0x5   :  { %1122 = vmatpush3.bf16.msra.mxu1 %v1238_v3  ;;  %v1247_v12 = vld [vmem:[%s1632_s1 + $0x60] sm:$0xff]   ;;  %v1251_v16 = vld [vmem:[%s1632_s1 + $0x58] sm:$0xff]   ;;  %v1255_v20 = vld [vmem:[%s1632_s1 + $0x50] sm:$0xff]  }
   0x6   :  { %1123 = vmatprep.subr.bf16.mxu1 %v1241_v6  ;;  %v1248_v13 = vld [vmem:[%s1632_s1 + $0x20] sm:$0xff]   ;;  %v1252_v17 = vld [vmem:[%s1632_s1 + $0x18] sm:$0xff]   ;;  %v1256_v21 = vld [vmem:[%s1632_s1 + $0x10] sm:$0xff]  }
   0x7   :  { %1096 = vmatpush3.bf16.msra.mxu0 %v1240_v5  ;;  %v1249_v14 = vld [vmem:[%s1632_s1 + $0xe0] sm:$0xff]   ;;  %v1253_v18 = vld [vmem:[%s1632_s1 + $0xd8] sm:$0xff]   ;;  %v1257_v22 = vld [vmem:[%s1632_s1 + $0xd0] sm:$0xff]  }
   0x8   :  { %1097 = vmatprep.subr.bf16.mxu0 %v1243_v8  ;;  %v1250_v15 = vld [vmem:[%s1632_s1 + $0xa0] sm:$0xff]   ;;  %v1254_v19 = vld [vmem:[%s1632_s1 + $0x98] sm:$0xff]   ;;  %v1258_v23 = vld [vmem:[%s1632_s1 + $0x90] sm:$0xff]  }
   0x9   :  { %1124 = vmatpush3.bf16.msra.mxu1 %v1242_v7  ;;  %v1259_v24 = vld [vmem:[%s1632_s1 + $0x48] sm:$0xff]   ;;  %v1263_v28 = vld [vmem:[%s1632_s1 + $0x40] sm:$0xff]   ;;  %v1270_v34 = vld [vmem:[%s1632_s1 + $0x178] sm:$0xff]  }
   0xa   :  { %1125 = vmatprep.subr.bf16.mxu1 %v1245_v10  ;;  %v1260_v25 = vld [vmem:[%s1632_s1 + $0x8] sm:$0xff]   ;;  %v1264_v29 = vld [vmem:[%s1632_s1] sm:$0xff]   ;;  %v1274_v37 = vld [vmem:[%s1632_s1 + $0x138] sm:$0xff]  }
   0xb   :  { %1098 = vmatpush3.bf16.msra.mxu0 %v1244_v9  ;;  %v1261_v26 = vld [vmem:[%s1632_s1 + $0xc8] sm:$0xff]   ;;  %v1265_v30 = vld [vmem:[%s1632_s1 + $0xc0] sm:$0xff]   ;;  %v1275_v38 = vld [vmem:[%s1632_s1 + $0x1f8] sm:$0xff]  }
   0xc   :  { %1099 = vmatprep.subr.bf16.mxu0 %v1247_v12  ;;  %v1262_v27 = vld [vmem:[%s1632_s1 + $0x88] sm:$0xff]   ;;  %v1266_v31 = vld [vmem:[%s1633_s0] ss:$36 sps:$4 sm:$0xff]   ;;  %v1276_v39 = vld [vmem:[%s1632_s1 + $0x1b8] sm:$0xff]  }
   0xd   :  { %1126 = vmatpush3.bf16.msra.mxu1 %v1246_v11  ;;  %v1268_v32 = vld [vmem:[%s1633_s0 + $0x4] ss:$36 sps:$4 sm:$0xff]   ;;  %v1273_v36 = vld [vmem:[%s1633_s0 + $0xc] ss:$36 sps:$4 sm:$0xff]   ;;  %v1289_v52 = vld [vmem:[%s1632_s1 + $0x158] sm:$0xff]  }
   0xe   :  { %1127 = vmatprep.subr.bf16.mxu1 %v1249_v14  ;;  %v1269_v33 = vld [vmem:[%s1632_s1 + $0x80] sm:$0xff]   ;;  %742 = vmatprep.mubr.bf16.mxu0 %v1268_v32  ;;  %v1271_v35 = vld [vmem:[%s1633_s0 + $0x8] ss:$36 sps:$4 sm:$0xff]   ;;  %v1277_v40 = vld [vmem:[%s1632_s1 + $0x170] sm:$0xff]  }
   0xf   :  { %1100 = vmatpush3.bf16.msra.mxu0 %v1248_v13  ;;  %791 = vmatprep.mubr.bf16.mxu1 %v1273_v36  ;;  %v1278_v41 = vld [vmem:[%s1632_s1 + $0x130] sm:$0xff]   ;;  %v1281_v44 = vld [vmem:[%s1632_s1 + $0x168] sm:$0xff]   ;;  %v1285_v48 = vld [vmem:[%s1632_s1 + $0x160] sm:$0xff]  }
  0x10   :  { %1101 = vmatprep.subr.bf16.mxu0 %v1251_v16  ;;  %v1279_v42 = vld [vmem:[%s1632_s1 + $0x1f0] sm:$0xff]   ;;  %v1282_v45 = vld [vmem:[%s1632_s1 + $0x128] sm:$0xff]   ;;  %v1286_v49 = vld [vmem:[%s1632_s1 + $0x120] sm:$0xff]  }
  0x11   :  { %1128 = vmatpush3.bf16.msra.mxu1 %v1250_v15  ;;  %v1280_v43 = vld [vmem:[%s1632_s1 + $0x1b0] sm:$0xff]   ;;  %v1283_v46 = vld [vmem:[%s1632_s1 + $0x1e8] sm:$0xff]   ;;  %v1287_v50 = vld [vmem:[%s1632_s1 + $0x1e0] sm:$0xff]  }
  0x12   :  { %1129 = vmatprep.subr.bf16.mxu1 %v1253_v18  ;;  %v1284_v47 = vld [vmem:[%s1632_s1 + $0x1a8] sm:$0xff]   ;;  %v1288_v51 = vld [vmem:[%s1632_s1 + $0x1a0] sm:$0xff]   ;;  %v1290_v53 = vld [vmem:[%s1632_s1 + $0x118] sm:$0xff]  }
  0x13   :  { %1102 = vmatpush3.bf16.msra.mxu0 %v1252_v17  ;;  %v1291_v54 = vld [vmem:[%s1633_s0 + $0x4c] ss:$36 sps:$4 sm:$0xff]   ;;  %v1293_v55 = vld [vmem:[%s1632_s1 + $0x1d8] sm:$0xff]   ;;  %v1307_v4 = vld [vmem:[%s1632_s1 + $0x140] sm:$0xff]  }
  0x14   :  { %1103 = vmatprep.subr.bf16.mxu0 %v1255_v20  ;;  %v1294_v56 = vld [vmem:[%s1633_s0 + $0x48] ss:$36 sps:$4 sm:$0xff]   ;;  %v1295_v57 = vld [vmem:[%s1632_s1 + $0x198] sm:$0xff]   ;;  %v1298_v59 = vld [vmem:[%s1632_s1 + $0x150] sm:$0xff]  }
  0x15   :  { %1130 = vmatpush3.bf16.msra.mxu1 %v1254_v19  ;;  %v1296_v58 = vld [vmem:[%s1633_s0 + $0x54] ss:$36 sps:$4 sm:$0xff]   ;;  %v1303_v0 = vld [vmem:[%s1632_s1 + $0x148] sm:$0xff]   ;;  %v1308_v5 = vld [vmem:[%s1632_s1 + $0x100] sm:$0xff]  }
  0x16   :  { %1131 = vmatprep.subr.bf16.mxu1 %v1257_v22  ;;  %v1299_v60 = vld [vmem:[%s1633_s0 + $0x50] ss:$36 sps:$4 sm:$0xff]   ;;  %v1304_v1 = vld [vmem:[%s1632_s1 + $0x108] sm:$0xff]   ;;  %v1309_v6 = vld [vmem:[%s1632_s1 + $0x1c0] sm:$0xff]  }
  0x17   :  { %1104 = vmatpush3.bf16.msra.mxu0 %v1256_v21  ;;  %v1300_v61 = vld [vmem:[%s1632_s1 + $0x110] sm:$0xff]   ;;  %v1305_v2 = vld [vmem:[%s1632_s1 + $0x1c8] sm:$0xff]   ;;  %v1313_v9 = vld [vmem:[%s1632_s1 + $0x180] sm:$0xff]  }
  0x18   :  { %1105 = vmatprep.subr.bf16.mxu0 %v1259_v24  ;;  %v1301_v62 = vld [vmem:[%s1632_s1 + $0x1d0] sm:$0xff]   ;;  %v1306_v3 = vld [vmem:[%s1632_s1 + $0x188] sm:$0xff]   ;;  %v1314_v10 = vld [vmem:[%s1632_s1 + $0x238] sm:$0xff]  }
  0x19   :  { %1132 = vmatpush3.bf16.msra.mxu1 %v1258_v23  ;;  %v1302_v63 = vld [vmem:[%s1632_s1 + $0x190] sm:$0xff]   ;;  %v1315_v11 = vld [vmem:[%s1633_s0 + $0x18] ss:$36 sps:$4 sm:$0xff]   ;;  %v1322_v16 = vld [vmem:[%s1632_s1 + $0x228] sm:$0xff]  }
  0x1a   :  { %1133 = vmatprep.subr.bf16.mxu1 %v1261_v26  ;;  %v1310_v7 = vld [vmem:[%s1633_s0 + $0x10] ss:$36 sps:$4 sm:$0xff]   ;;  %v1317_v12 = vld [vmem:[%s1633_s0 + $0x1c] ss:$36 sps:$4 sm:$0xff]   ;;  %v1323_v17 = vld [vmem:[%s1633_s0 + $0x64] ss:$36 sps:$4 sm:$0xff]  }
  0x1b   :  { %1106 = vmatpush3.bf16.msra.mxu0 %v1260_v25  ;;  %v1312_v8 = vld [vmem:[%s1633_s0 + $0x14] ss:$36 sps:$4 sm:$0xff]   ;;  %v1319_v14 = vld [vmem:[%s1633_s0 + $0x5c] ss:$36 sps:$4 sm:$0xff]   ;;  %v1329_v23 = vld [vmem:[%s1632_s1 + $0x208] sm:$0xff]  }
  0x1c   :  { %1107 = vmatprep.subr.bf16.mxu0 %v1263_v28  ;;  %v1318_v13 = vld [vmem:[%s1632_s1 + $0x230] sm:$0xff]   ;;  %v1321_v15 = vld [vmem:[%s1633_s0 + $0x58] ss:$36 sps:$4 sm:$0xff]   ;;  %v1325_v18 = vld [vmem:[%s1633_s0 + $0x60] ss:$36 sps:$4 sm:$0xff]  }
  0x1d   :  { %1134 = vmatpush3.bf16.msra.mxu1 %v1262_v27  ;;  %v1326_v19 = vld [vmem:[%s1632_s1 + $0x220] sm:$0xff]   ;;  %v1327_v20 = vld [vmem:[%s1632_s1 + $0x218] sm:$0xff]   ;;  %v1328_v22 = vld [vmem:[%s1632_s1 + $0x210] sm:$0xff]  }
  0x1e   :  { %1135 = vmatprep.subr.bf16.mxu1 %v1265_v30  ;;  %v1331_v21 = vld [vmem:[%s1633_s0 + $0x20] ss:$36 sps:$4 sm:$0xff]   ;;  %v1332_v25 = vld [vmem:[%s1633_s0 + $0x68] ss:$36 sps:$4 sm:$0xff]  }
  0x1f   :  { %1108 = vmatpush3.bf16.msra.mxu0 %v1264_v29  ;;  %v1330_v24 = vld [vmem:[%s1632_s1 + $0x200] sm:$0xff]  }
  0x20   :  { %1149 = vmatprep.subr.bf16.mxu0 %v1270_v34 }
  0x21   :  { %1136 = vmatpush3.bf16.msra.mxu1 %v1269_v33 }
  0x22   :  { %743 = vmatmul.mubr.bf16.vlgmr.msra.gmra.mxu0 %v1266_v31  ;;  %1177 = vmatprep.subr.bf16.mxu1 %v1275_v38 }
  0x23   :  { %1150 = vmatpush3.bf16.msra.mxu0 %v1274_v37  ;;  %750 = vmatprep.mubr.bf16.mxu0 %v1291_v54 }
  0x24   :  { %792 = vmatmul.mubr.bf16.vlgmr.msra.gmra.mxu1 %v1271_v35  ;;  %1151 = vmatprep.subr.bf16.mxu0 %v1277_v40 }
  0x25   :  { %1178 = vmatpush3.bf16.msra.mxu1 %v1276_v39  ;;  %799 = vmatprep.mubr.bf16.mxu1 %v1296_v58 }
  0x26   :  { %1179 = vmatprep.subr.bf16.mxu1 %v1279_v42 }
  0x27   :  { %1152 = vmatpush3.bf16.msra.mxu0 %v1278_v41 }
  0x28   :  { %1153 = vmatprep.subr.bf16.mxu0 %v1281_v44 }
  0x29   :  { %1180 = vmatpush3.bf16.msra.mxu1 %v1280_v43 }
  0x2a   :  { %1181 = vmatprep.subr.bf16.mxu1 %v1283_v46  ;;  %751 = vmatmul.mubr.bf16.gmra.mxu0 %v1294_v56 }
  0x2b   :  { %1154 = vmatpush3.bf16.msra.mxu0 %v1282_v45  ;;  %840 = vmatprep.mubr.bf16.mxu0 %v1312_v8 }
  0x2c   :  { %1155 = vmatprep.subr.bf16.mxu0 %v1285_v48  ;;  %800 = vmatmul.mubr.bf16.gmra.mxu1 %v1299_v60 }
  0x2d   :  { %1182 = vmatpush3.bf16.msra.mxu1 %v1284_v47  ;;  %889 = vmatprep.mubr.bf16.mxu1 %v1317_v12 }
  0x2e   :  { %1183 = vmatprep.subr.bf16.mxu1 %v1287_v50 }
  0x2f   :  { %1156 = vmatpush3.bf16.msra.mxu0 %v1286_v49 }
  0x30   :  { %1157 = vmatprep.subr.bf16.mxu0 %v1289_v52 }
  0x31   :  { %1184 = vmatpush3.bf16.msra.mxu1 %v1288_v51 }
  0x32   :  { %1185 = vmatprep.subr.bf16.mxu1 %v1293_v55 }
  0x33   :  { %1158 = vmatpush3.bf16.msra.mxu0 %v1290_v53 }
  0x34   :  { %1159 = vmatprep.subr.bf16.mxu0 %v1298_v59 }
  0x35   :  { %1186 = vmatpush3.bf16.msra.mxu1 %v1295_v57  ;;  %v983_v57 = vld [vmem:[%s1634_s2] ss:$0 sm:$0xff] }
  0x36   :  { %1187 = vmatprep.subr.bf16.mxu1 %v1301_v62 }
  0x37   :  { %1160 = vmatpush3.bf16.msra.mxu0 %v1300_v61 }
  0x38   :  { %1161 = vmatprep.subr.bf16.mxu0 %v1303_v0 }
  0x39   :  { %1188 = vmatpush3.bf16.msra.mxu1 %v1302_v63 }
  0x3a   :  { %1189 = vmatprep.subr.bf16.mxu1 %v1305_v2 }
  0x3b   :  { %1162 = vmatpush3.bf16.msra.mxu0 %v1304_v1 }
  0x3c   :  { %1163 = vmatprep.subr.bf16.mxu0 %v1307_v4 }
  0x3d   :  { %1190 = vmatpush3.bf16.msra.mxu1 %v1306_v3 }
  0x3e   :  { %1191 = vmatprep.subr.bf16.mxu1 %v1309_v6 }
  0x3f   :  { %1164 = vmatpush3.bf16.msra.mxu0 %v1308_v5 }
  0x40   :  { %1215 = vmatprep.subr.bf16.mxu0 %v1314_v10 }
  0x41   :  { %1192 = vmatpush3.bf16.msra.mxu1 %v1313_v9 }
  0x42   :  { %841 = vmatmul.mubr.bf16.vlgmr.msra.gmra.mxu0 %v1310_v7 }
  0x43   :  { %1216 = vmatpush3.bf16.msra.mxu0 %v1314_v10  ;;  %848 = vmatprep.mubr.bf16.mxu0 %v1319_v14 }
  0x44   :  { %890 = vmatmul.mubr.bf16.vlgmr.msra.gmra.mxu1 %v1315_v11  ;;  %1217 = vmatprep.subr.bf16.mxu0 %v1318_v13 }
  0x45   :  { %897 = vmatprep.mubr.bf16.mxu1 %v1323_v17 }
  0x47   :  { %1218 = vmatpush3.bf16.msra.mxu0 %v1318_v13 }
  0x48   :  { %1219 = vmatprep.subr.bf16.mxu0 %v1322_v16 }
  0x4a   :  { %849 = vmatmul.mubr.bf16.gmra.mxu0 %v1321_v15 }
  0x4b   :  { %1220 = vmatpush3.bf16.msra.mxu0 %v1322_v16  ;;  %1231 = vmatprep.mubr.bf16.mxu0 %v1331_v21 }
  0x4c   :  { %898 = vmatmul.mubr.bf16.gmra.mxu1 %v1325_v18  ;;  %1221 = vmatprep.subr.bf16.mxu0 %v1326_v19 }
  0x4f   :  { %1222 = vmatpush3.bf16.msra.mxu0 %v1326_v19 }
  0x50   :  { %1223 = vmatprep.subr.bf16.mxu0 %v1327_v20 }
  0x53   :  { %1224 = vmatpush3.bf16.msra.mxu0 %v1327_v20 }
  0x54   :  { %1225 = vmatprep.subr.bf16.mxu0 %v1328_v22 }
  0x57   :  { %1226 = vmatpush3.bf16.msra.mxu0 %v1328_v22 }
  0x58   :  { %1227 = vmatprep.subr.bf16.mxu0 %v1329_v23 }
  0x5b   :  { %1228 = vmatpush3.bf16.msra.mxu0 %v1329_v23 }
  0x5c   :  { %1229 = vmatprep.subr.bf16.mxu0 %v1330_v24 }
  0x5f   :  { %1230 = vmatpush3.bf16.msra.mxu0 %v1330_v24 }
  0x62   :  { %1232 = vmatmul.mubr.bf16.vlgmr.msra.gmra.mxu0 %v1332_v25 }
  0xe2   :  { %v1109_v26 = vpop.f32.mrf.mxu0 }
  0xe4   :  { %v1137_v27 = vpop.f32.mrf.mxu1  ;;  %v1110_v28 = vpop.f32.mrf.mxu0 }
  0xe5   :  { %v1111_v54 = vadd.f32 %v1110_v28, %v1109_v26 }
  0xe6   :  { %v1138_v29 = vpop.f32.mrf.mxu1  ;;  %v1112_v30 = vpop.f32.mrf.mxu0 }
  0xe7   :  { %v745_v62 = vadd.f32 %v1111_v54, %v983_v57  ;;  %v1139_v63 = vadd.f32 %v1138_v29, %v1137_v27 }
  0xe8   :  { %v1140_v31 = vpop.f32.mrf.mxu1  ;;  %v1113_v32 = vpop.f32.mrf.mxu0 }
  0xe9   :  { %v1114_v59 = vadd.f32 %v1113_v32, %v1112_v30  ;;  %v794_v10 = vadd.f32 %v1139_v63, %v745_v62 }
  0xea   :  { %v1115_v33 = vpop.f32.mrf.mxu0  ;;  %v1141_v34 = vpop.f32.mrf.mxu1 }
  0xeb   :  { %v748_v5 = vadd.f32 %v1114_v59, %v983_v57  ;;  %v1142_v6 = vadd.f32 %v1141_v34, %v1140_v31 }
  0xec   :  { %v1143_v35 = vpop.f32.mrf.mxu1  ;;  %v1116_v36 = vpop.f32.mrf.mxu0 }
  0xed   :  { %v1117_v53 = vadd.f32 %v1116_v36, %v1115_v33  ;;  %v797_v16 = vadd.f32 %v1142_v6, %v748_v5 }
  0xee   :  { %v1144_v37 = vpop.f32.mrf.mxu1  ;;  %v1118_v38 = vpop.f32.mrf.mxu0 }
  0xef   :  { %v753_v60 = vadd.f32 %v1117_v53, %v983_v57  ;;  %v1145_v61 = vadd.f32 %v1144_v37, %v1143_v35 }
  0xf0   :  { %v1146_v39 = vpop.f32.mrf.mxu1  ;;  %v1119_v40 = vpop.f32.mrf.mxu0 }
  0xf1   :  { %v1120_v58 = vadd.f32 %v1119_v40, %v1118_v38  ;;  %v802_v7 = vadd.f32 %v1145_v61, %v753_v60 }
  0xf2   :  { %v1147_v42 = vpop.f32.mrf.mxu1 }
  0xf3   :  { %v756_v2 = vadd.f32 %v1120_v58, %v983_v57  ;;  %v1148_v3 = vadd.f32 %v1147_v42, %v1146_v39 }
  0xf5   :  { %v805_v12 = vadd.f32 %v1148_v3, %v756_v2 }
 0x102   :  { %v1165_v41 = vpop.f32.mrf.mxu0 }
 0x104   :  { %v1166_v43 = vpop.f32.mrf.mxu0  ;;  %v1193_v44 = vpop.f32.mrf.mxu1 }
 0x105   :  { %v1167_v8 = vadd.f32 %v1166_v43, %v1165_v41 }
 0x106   :  { %v1168_v45 = vpop.f32.mrf.mxu0  ;;  %v1194_v46 = vpop.f32.mrf.mxu1 }
 0x107   :  { %v843_v17 = vadd.f32 %v1167_v8, %v794_v10  ;;  %v1195_v18 = vadd.f32 %v1194_v46, %v1193_v44 }
 0x108   :  { %v1169_v47 = vpop.f32.mrf.mxu0  ;;  %v1196_v48 = vpop.f32.mrf.mxu1 }
 0x109   :  { %v1170_v13 = vadd.f32 %v1169_v47, %v1168_v45  ;;  %v892_v27 = vadd.f32 %v1195_v18, %v843_v17 }
 0x10a   :  { %v1171_v49 = vpop.f32.mrf.mxu0  ;;  %v1197_v50 = vpop.f32.mrf.mxu1 }
 0x10b   :  { %v846_v22 = vadd.f32 %v1170_v13, %v797_v16  ;;  %v1198_v23 = vadd.f32 %v1197_v50, %v1196_v48 }
 0x10c   :  { %v1172_v51 = vpop.f32.mrf.mxu0  ;;  %v1199_v52 = vpop.f32.mrf.mxu1 }
 0x10d   :  { %v1173_v4 = vadd.f32 %v1172_v51, %v1171_v49  ;;  %v895_v32 = vadd.f32 %v1198_v23, %v846_v22 }
 0x10e   :  { %v1174_v55 = vpop.f32.mrf.mxu0  ;;  %v1200_v56 = vpop.f32.mrf.mxu1 }
 0x10f   :  { %v851_v14 = vadd.f32 %v1173_v4, %v802_v7  ;;  %v1201_v15 = vadd.f32 %v1200_v56, %v1199_v52 }
 0x110   :  { %v1175_v0 = vpop.f32.mrf.mxu0  ;;  %v1202_v1 = vpop.f32.mrf.mxu1 }
 0x111   :  { %v1176_v9 = vadd.f32 %v1175_v0, %v1174_v55  ;;  %v900_v24 = vadd.f32 %v1201_v15, %v851_v14 }
 0x112   :  { %v1203_v11 = vpop.f32.mrf.mxu1 }
 0x113   :  { %v854_v19 = vadd.f32 %v1176_v9, %v805_v12  ;;  %v1204_v20 = vadd.f32 %v1203_v11, %v1202_v1 }
 0x115   :  { %v903_v28 = vadd.f32 %v1204_v20, %v854_v19 }
 0x122   :  { %v1233_v21 = vpop.f32.mrf.mxu0 }
 0x123   :  { %v949_v26 = vadd.f32 %v1233_v21, %v900_v24 }
 0x124   :  { %v940_v25 = vpop.f32.mrf.mxu0 }
 0x125   :  { %v941_v30 = vadd.f32 %v940_v25, %v892_v27  ;;  %v957_v34 = vmax.f32 %v949_v26, 0.0 }
 0x126   :  { %v1234_v29 = vpop.f32.mrf.mxu0 }
 0x127   :  { %v952_v31 = vadd.f32 %v1234_v29, %v903_v28  ;;  %v955_v37 = vmax.f32 %v941_v30, 0.0 }
 0x128   :  { %v943_v33 = vpop.f32.mrf.mxu0 }
 0x129   :  { %v958_v35 = vmax.f32 %v952_v31, 0.0  ;;  %v944_v36 = vadd.f32 %v943_v33, %v895_v32 }
 0x12b   :  { %v1090_v38 = vpack.c.bf16 %v958_v35, %v957_v34  ;;  %v956_v39 = vmax.f32 %v944_v36, 0.0 }
 0x12d   :  { %1092 = vst [vmem:[%s1635_s3 + $0x8] sm:$0xff] %v1090_v38   ;;  %v1085_v40 = vpack.c.bf16 %v956_v39, %v955_v37 }
 0x12f   :  { %1086 = vst [vmem:[%s1635_s3] sm:$0xff] %v1085_v40  }

// kernel: decoder_forward.18
= control target key start
LH: loop header
LB: loop body
LE: loop exit
PB: predicated region body
PF: predicated region fallthrough
CT: control target
= control target key end

     0   :  { %vm1125_vm0 = vmmov 0   ;;  %s1383_s1 = inlined_call_operand.vmem [shape: bf16[1152,128], index: 1, kind: input, shape index: {}]   ;;  %s1384_s0 = inlined_call_operand.vmem [shape: bf16[8,1152], index: 0, kind: input, shape index: {}]   ;;  %s1385_s2 = inlined_call_operand.vmem [shape: f32[1,128], index: 2, kind: input, shape index: {}]   ;;  %s1386_s3 = inlined_call_operand.vmem [shape: bf16[8,128], index: 3, kind: output, shape index: {}]  }
   0x1   :  { %v1043_v0 = vld [vmem:[%s1383_s1 + $0x78] sm:$0xff]   ;;  %v1047_v4 = vld [vmem:[%s1383_s1 + $0x70] sm:$0xff]   ;;  %v1051_v8 = vld [vmem:[%s1383_s1 + $0x68] sm:$0xff]  }
   0x2   :  { %v1044_v1 = vld [vmem:[%s1383_s1 + $0x38] sm:$0xff]   ;;  %924 = vmatprep.subr.bf16.mxu0 %v1043_v0  ;;  %v1048_v5 = vld [vmem:[%s1383_s1 + $0x30] sm:$0xff]   ;;  %v1052_v9 = vld [vmem:[%s1383_s1 + $0x28] sm:$0xff]  }
   0x3   :  { %v1045_v2 = vld [vmem:[%s1383_s1 + $0xf8] sm:$0xff]   ;;  %925 = vmatpush3.bf16.msra.mxu0 %v1044_v1  ;;  %v1049_v6 = vld [vmem:[%s1383_s1 + $0xf0] sm:$0xff]   ;;  %v1053_v10 = vld [vmem:[%s1383_s1 + $0xe8] sm:$0xff]  }
   0x4   :  { %v1046_v3 = vld [vmem:[%s1383_s1 + $0xb8] sm:$0xff]   ;;  %946 = vmatprep.subr.bf16.mxu1 %v1045_v2  ;;  %926 = vmatprep.subr.bf16.mxu0 %v1047_v4  ;;  %v1050_v7 = vld [vmem:[%s1383_s1 + $0xb0] sm:$0xff]   ;;  %v1054_v11 = vld [vmem:[%s1383_s1 + $0xa8] sm:$0xff]  }
   0x5   :  { %947 = vmatpush3.bf16.msra.mxu1 %v1046_v3  ;;  %v1055_v12 = vld [vmem:[%s1383_s1 + $0x60] sm:$0xff]   ;;  %v1059_v16 = vld [vmem:[%s1383_s1 + $0x58] sm:$0xff]   ;;  %v1063_v20 = vld [vmem:[%s1383_s1 + $0x50] sm:$0xff]  }
   0x6   :  { %948 = vmatprep.subr.bf16.mxu1 %v1049_v6  ;;  %v1056_v13 = vld [vmem:[%s1383_s1 + $0x20] sm:$0xff]   ;;  %v1060_v17 = vld [vmem:[%s1383_s1 + $0x18] sm:$0xff]   ;;  %v1064_v21 = vld [vmem:[%s1383_s1 + $0x10] sm:$0xff]  }
   0x7   :  { %927 = vmatpush3.bf16.msra.mxu0 %v1048_v5  ;;  %v1057_v14 = vld [vmem:[%s1383_s1 + $0xe0] sm:$0xff]   ;;  %v1061_v18 = vld [vmem:[%s1383_s1 + $0xd8] sm:$0xff]   ;;  %v1065_v22 = vld [vmem:[%s1383_s1 + $0xd0] sm:$0xff]  }
   0x8   :  { %928 = vmatprep.subr.bf16.mxu0 %v1051_v8  ;;  %v1058_v15 = vld [vmem:[%s1383_s1 + $0xa0] sm:$0xff]   ;;  %v1062_v19 = vld [vmem:[%s1383_s1 + $0x98] sm:$0xff]   ;;  %v1066_v23 = vld [vmem:[%s1383_s1 + $0x90] sm:$0xff]  }
   0x9   :  { %949 = vmatpush3.bf16.msra.mxu1 %v1050_v7  ;;  %v1067_v24 = vld [vmem:[%s1383_s1 + $0x48] sm:$0xff]   ;;  %v1071_v28 = vld [vmem:[%s1383_s1 + $0x40] sm:$0xff]   ;;  %v1077_v35 = vld [vmem:[%s1383_s1 + $0x178] sm:$0xff]  }
   0xa   :  { %950 = vmatprep.subr.bf16.mxu1 %v1053_v10  ;;  %v1068_v25 = vld [vmem:[%s1383_s1 + $0x8] sm:$0xff]   ;;  %v1072_v29 = vld [vmem:[%s1383_s1] sm:$0xff]   ;;  %v1080_v39 = vld [vmem:[%s1383_s1 + $0x138] sm:$0xff]  }
   0xb   :  { %929 = vmatpush3.bf16.msra.mxu0 %v1052_v9  ;;  %v1069_v26 = vld [vmem:[%s1383_s1 + $0xc8] sm:$0xff]   ;;  %v1073_v30 = vld [vmem:[%s1383_s1 + $0xc0] sm:$0xff]   ;;  %v1081_v40 = vld [vmem:[%s1383_s1 + $0x1f8] sm:$0xff]   ;;  %v1124_v9 = vmov 0.0  }
   0xc   :  { %930 = vmatprep.subr.bf16.mxu0 %v1055_v12  ;;  %v1070_v27 = vld [vmem:[%s1383_s1 + $0x88] sm:$0xff]   ;;  %v15_v31 = vld [vmem:[%s1384_s0] sm:$0xff]  ;;  %v1082_v41 = vld [vmem:[%s1383_s1 + $0x1b8] sm:$0xff]  }
   0xd   :  { %951 = vmatpush3.bf16.msra.mxu1 %v1054_v11  ;;  %v843_v32 = vcombine.low %v15_v31, %v15_v31  ;;  %v844_v33 = vcombine.high %v15_v31, %v15_v31  ;;  %v1076_v34 = vld [vmem:[%s1383_s1 + $0x80] sm:$0xff]   ;;  %v16_v36 = vld [vmem:[%s1384_s0 + $0x8] sm:$0xff]  ;;  %v1083_v42 = vld [vmem:[%s1383_s1 + $0x170] sm:$0xff]  }
   0xe   :  { %952 = vmatprep.subr.bf16.mxu1 %v1057_v14  ;;  %v845_v37 = vcombine.low %v16_v36, %v16_v36  ;;  %v846_v38 = vcombine.high %v16_v36, %v16_v36  ;;  %v1084_v43 = vld [vmem:[%s1383_s1 + $0x130] sm:$0xff]   ;;  %v1087_v46 = vld [vmem:[%s1383_s1 + $0x168] sm:$0xff]   ;;  %v1091_v50 = vld [vmem:[%s1383_s1 + $0x160] sm:$0xff]  }
   0xf   :  { %931 = vmatpush3.bf16.msra.mxu0 %v1056_v13  ;;  %667 = vmatprep.mubr.bf16.mxu0 %v844_v33  ;;  %v1085_v44 = vld [vmem:[%s1383_s1 + $0x1f0] sm:$0xff]   ;;  %v1088_v47 = vld [vmem:[%s1383_s1 + $0x128] sm:$0xff]   ;;  %v1092_v51 = vld [vmem:[%s1383_s1 + $0x120] sm:$0xff]  }
  0x10   :  { %932 = vmatprep.subr.bf16.mxu0 %v1059_v16  ;;  %707 = vmatprep.mubr.bf16.mxu1 %v846_v38  ;;  %v1086_v45 = vld [vmem:[%s1383_s1 + $0x1b0] sm:$0xff]   ;;  %v1089_v48 = vld [vmem:[%s1383_s1 + $0x1e8] sm:$0xff]   ;;  %v1093_v52 = vld [vmem:[%s1383_s1 + $0x1e0] sm:$0xff]  }
  0x11   :  { %953 = vmatpush3.bf16.msra.mxu1 %v1058_v15  ;;  %v1090_v49 = vld [vmem:[%s1383_s1 + $0x1a8] sm:$0xff]   ;;  %v1094_v53 = vld [vmem:[%s1383_s1 + $0x1a0] sm:$0xff]   ;;  %v1095_v54 = vld [vmem:[%s1383_s1 + $0x158] sm:$0xff]  }
  0x12   :  { %954 = vmatprep.subr.bf16.mxu1 %v1061_v18  ;;  %v1096_v55 = vld [vmem:[%s1383_s1 + $0x118] sm:$0xff]   ;;  %v1099_v58 = vld [vmem:[%s1383_s1 + $0x150] sm:$0xff]   ;;  %v1103_v62 = vld [vmem:[%s1383_s1 + $0x148] sm:$0xff]  }
  0x13   :  { %933 = vmatpush3.bf16.msra.mxu0 %v1060_v17  ;;  %v1097_v56 = vld [vmem:[%s1383_s1 + $0x1d8] sm:$0xff]   ;;  %v1100_v59 = vld [vmem:[%s1383_s1 + $0x110] sm:$0xff]   ;;  %v1104_v63 = vld [vmem:[%s1383_s1 + $0x108] sm:$0xff]  }
  0x14   :  { %934 = vmatprep.subr.bf16.mxu0 %v1063_v20  ;;  %v1098_v57 = vld [vmem:[%s1383_s1 + $0x198] sm:$0xff]   ;;  %v1101_v60 = vld [vmem:[%s1383_s1 + $0x1d0] sm:$0xff]   ;;  %v1105_v0 = vld [vmem:[%s1383_s1 + $0x1c8] sm:$0xff]  }
  0x15   :  { %955 = vmatpush3.bf16.msra.mxu1 %v1062_v19  ;;  %v1102_v61 = vld [vmem:[%s1383_s1 + $0x190] sm:$0xff]   ;;  %v1106_v1 = vld [vmem:[%s1383_s1 + $0x188] sm:$0xff]   ;;  %v1107_v2 = vld [vmem:[%s1383_s1 + $0x140] sm:$0xff]  }
  0x16   :  { %956 = vmatprep.subr.bf16.mxu1 %v1065_v22  ;;  %v1108_v3 = vld [vmem:[%s1383_s1 + $0x100] sm:$0xff]   ;;  %v17_v5 = vld [vmem:[%s1384_s0 + $0x10] sm:$0xff]  ;;  %v18_v10 = vld [vmem:[%s1384_s0 + $0x18] sm:$0xff] }
  0x17   :  { %935 = vmatpush3.bf16.msra.mxu0 %v1064_v21  ;;  %v1109_v4 = vld [vmem:[%s1383_s1 + $0x1c0] sm:$0xff]   ;;  %v847_v6 = vcombine.low %v17_v5, %v17_v5  ;;  %v848_v7 = vcombine.high %v17_v5, %v17_v5  ;;  %v849_v11 = vcombine.low %v18_v10, %v18_v10  ;;  %v850_v12 = vcombine.high %v18_v10, %v18_v10  ;;  %v1115_v13 = vld [vmem:[%s1383_s1 + $0x238] sm:$0xff]   ;;  %v1116_v14 = vld [vmem:[%s1383_s1 + $0x230] sm:$0xff]  }
  0x18   :  { %936 = vmatprep.subr.bf16.mxu0 %v1067_v24  ;;  %v1112_v8 = vld [vmem:[%s1383_s1 + $0x180] sm:$0xff]   ;;  %v1117_v15 = vld [vmem:[%s1383_s1 + $0x228] sm:$0xff]   ;;  %v1119_v17 = vld [vmem:[%s1383_s1 + $0x218] sm:$0xff]  }
  0x19   :  { %957 = vmatpush3.bf16.msra.mxu1 %v1066_v23  ;;  %v1118_v16 = vld [vmem:[%s1383_s1 + $0x220] sm:$0xff]   ;;  %v1120_v18 = vld [vmem:[%s1383_s1 + $0x210] sm:$0xff]   ;;  %v1121_v19 = vld [vmem:[%s1383_s1 + $0x208] sm:$0xff]  }
  0x1a   :  { %958 = vmatprep.subr.bf16.mxu1 %v1069_v26  ;;  %v1122_v20 = vld [vmem:[%s1383_s1 + $0x200] sm:$0xff]  }
  0x1b   :  { %937 = vmatpush3.bf16.msra.mxu0 %v1068_v25  ;;  %v1123_v21 = vld [vmem:[%s1384_s0 + $0x20] ss:$0 sps:$4 sm:$0xff]  }
  0x1c   :  { %938 = vmatprep.subr.bf16.mxu0 %v1071_v28 }
  0x1d   :  { %959 = vmatpush3.bf16.msra.mxu1 %v1070_v27 }
  0x1e   :  { %960 = vmatprep.subr.bf16.mxu1 %v1073_v30 }
  0x1f   :  { %939 = vmatpush3.bf16.msra.mxu0 %v1072_v29 }
  0x20   :  { %968 = vmatprep.subr.bf16.mxu0 %v1077_v35 }
  0x21   :  { %961 = vmatpush3.bf16.msra.mxu1 %v1076_v34 }
  0x22   :  { %668 = vmatmul.mubr.bf16.vlgmr.msra.gmra.mxu0 %v843_v32  ;;  %990 = vmatprep.subr.bf16.mxu1 %v1081_v40 }
  0x23   :  { %969 = vmatpush3.bf16.msra.mxu0 %v1080_v39  ;;  %747 = vmatprep.mubr.bf16.mxu0 %v848_v7  ;;  %v842_v39 = vld [vmem:[%s1385_s2] ss:$0 sm:$0xff] }
  0x24   :  { %708 = vmatmul.mubr.bf16.vlgmr.msra.gmra.mxu1 %v845_v37  ;;  %970 = vmatprep.subr.bf16.mxu0 %v1083_v42 }
  0x25   :  { %991 = vmatpush3.bf16.msra.mxu1 %v1082_v41  ;;  %787 = vmatprep.mubr.bf16.mxu1 %v850_v12 }
  0x26   :  { %992 = vmatprep.subr.bf16.mxu1 %v1085_v44 }
  0x27   :  { %971 = vmatpush3.bf16.msra.mxu0 %v1084_v43 }
  0x28   :  { %972 = vmatprep.subr.bf16.mxu0 %v1087_v46 }
  0x29   :  { %993 = vmatpush3.bf16.msra.mxu1 %v1086_v45 }
  0x2a   :  { %994 = vmatprep.subr.bf16.mxu1 %v1089_v48 }
  0x2b   :  { %973 = vmatpush3.bf16.msra.mxu0 %v1088_v47 }
  0x2c   :  { %974 = vmatprep.subr.bf16.mxu0 %v1091_v50 }
  0x2d   :  { %995 = vmatpush3.bf16.msra.mxu1 %v1090_v49 }
  0x2e   :  { %996 = vmatprep.subr.bf16.mxu1 %v1093_v52 }
  0x2f   :  { %975 = vmatpush3.bf16.msra.mxu0 %v1092_v51 }
  0x30   :  { %976 = vmatprep.subr.bf16.mxu0 %v1095_v54 }
  0x31   :  { %997 = vmatpush3.bf16.msra.mxu1 %v1094_v53 }
  0x32   :  { %998 = vmatprep.subr.bf16.mxu1 %v1097_v56 }
  0x33   :  { %977 = vmatpush3.bf16.msra.mxu0 %v1096_v55 }
  0x34   :  { %978 = vmatprep.subr.bf16.mxu0 %v1099_v58 }
  0x35   :  { %999 = vmatpush3.bf16.msra.mxu1 %v1098_v57 }
  0x36   :  { %1000 = vmatprep.subr.bf16.mxu1 %v1101_v60 }
  0x37   :  { %979 = vmatpush3.bf16.msra.mxu0 %v1100_v59 }
  0x38   :  { %980 = vmatprep.subr.bf16.mxu0 %v1103_v62 }
  0x39   :  { %1001 = vmatpush3.bf16.msra.mxu1 %v1102_v61 }
  0x3a   :  { %1002 = vmatprep.subr.bf16.mxu1 %v1105_v0 }
  0x3b   :  { %981 = vmatpush3.bf16.msra.mxu0 %v1104_v63 }
  0x3c   :  { %982 = vmatprep.subr.bf16.mxu0 %v1107_v2 }
  0x3d   :  { %1003 = vmatpush3.bf16.msra.mxu1 %v1106_v1 }
  0x3e   :  { %1004 = vmatprep.subr.bf16.mxu1 %v1109_v4 }
  0x3f   :  { %983 = vmatpush3.bf16.msra.mxu0 %v1108_v3 }
  0x40   :  { %1021 = vmatprep.subr.bf16.mxu0 %v1124_v9 }
  0x41   :  { %1005 = vmatpush3.bf16.msra.mxu1 %v1112_v8 }
  0x42   :  { %748 = vmatmul.mubr.bf16.vlgmr.msra.gmra.mxu0 %v847_v6 }
  0x43   :  { %1022 = vmatpush3.bf16.msra.mxu0 %v1115_v13  ;;  %1037 = vmatprep.mubr.msk.bf16.mxu0 %vm1125_vm0, %v1124_v9 }
  0x44   :  { %788 = vmatmul.mubr.bf16.vlgmr.msra.gmra.mxu1 %v849_v11  ;;  %1023 = vmatprep.subr.bf16.mxu0 %v1124_v9 }
  0x47   :  { %1024 = vmatpush3.bf16.msra.mxu0 %v1116_v14 }
  0x48   :  { %1025 = vmatprep.subr.bf16.mxu0 %v1124_v9 }
  0x4b   :  { %1026 = vmatpush3.bf16.msra.mxu0 %v1117_v15 }
  0x4c   :  { %1027 = vmatprep.subr.bf16.mxu0 %v1124_v9 }
  0x4f   :  { %1028 = vmatpush3.bf16.msra.mxu0 %v1118_v16 }
  0x50   :  { %1029 = vmatprep.subr.bf16.mxu0 %v1124_v9 }
  0x53   :  { %1030 = vmatpush3.bf16.msra.mxu0 %v1119_v17 }
  0x54   :  { %1031 = vmatprep.subr.bf16.mxu0 %v1124_v9 }
  0x57   :  { %1032 = vmatpush3.bf16.msra.mxu0 %v1120_v18 }
  0x58   :  { %1033 = vmatprep.subr.bf16.mxu0 %v1124_v9 }
  0x5b   :  { %1034 = vmatpush3.bf16.msra.mxu0 %v1121_v19 }
  0x5c   :  { %1035 = vmatprep.subr.bf16.mxu0 %v1124_v9 }
  0x5f   :  { %1036 = vmatpush3.bf16.msra.mxu0 %v1122_v20 }
  0x62   :  { %1038 = vmatmul.mubr.bf16.vlgmr.msra.gmra.mxu0 %v1123_v21 }
  0xe2   :  { %v940_v22 = vpop.f32.mrf.mxu0 }
  0xe4   :  { %v941_v23 = vpop.f32.mrf.mxu0  ;;  %v962_v24 = vpop.f32.mrf.mxu1 }
  0xe5   :  { %v942_v38 = vadd.f32 %v941_v23, %v940_v22 }
  0xe6   :  { %v943_v25 = vpop.f32.mrf.mxu0  ;;  %v963_v26 = vpop.f32.mrf.mxu1 }
  0xe7   :  { %v670_v40 = vadd.f32 %v942_v38, %v842_v39  ;;  %v964_v41 = vadd.f32 %v963_v26, %v962_v24 }
  0xe8   :  { %v944_v27 = vpop.f32.mrf.mxu0  ;;  %v965_v28 = vpop.f32.mrf.mxu1 }
  0xe9   :  { %v710_v43 = vadd.f32 %v964_v41, %v670_v40 }
  0xea   :  { %v966_v29 = vpop.f32.mrf.mxu1 }
 0x102   :  { %v984_v30 = vpop.f32.mrf.mxu0 }
 0x104   :  { %v985_v31 = vpop.f32.mrf.mxu0  ;;  %v1006_v32 = vpop.f32.mrf.mxu1 }
 0x105   :  { %v986_v42 = vadd.f32 %v985_v31, %v984_v30 }
 0x106   :  { %v987_v33 = vpop.f32.mrf.mxu0  ;;  %v1007_v34 = vpop.f32.mrf.mxu1 }
 0x107   :  { %v750_v44 = vadd.f32 %v986_v42, %v710_v43  ;;  %v1008_v45 = vadd.f32 %v1007_v34, %v1006_v32 }
 0x108   :  { %v988_v35 = vpop.f32.mrf.mxu0  ;;  %v1009_v36 = vpop.f32.mrf.mxu1 }
 0x109   :  { %v790_v46 = vadd.f32 %v1008_v45, %v750_v44 }
 0x10a   :  { %v1010_v37 = vpop.f32.mrf.mxu1 }
 0x122   :  { %v829_v47 = vpop.f32.mrf.mxu0 }
 0x123   :  { %v830_v48 = vadd.f32 %v829_v47, %v790_v46 }
 0x124   :  { %v1039_v49 = vpop.f32.mrf.mxu0 }
 0x125   :  { %v835_v50 = vmax.f32 %v830_v48, 0.0 }
 0x126   :  { %v832_v51 = vpop.f32.mrf.mxu0 }
 0x127   :  { %v836_v52 = vpack.c.bf16 %v835_v50, %v835_v50 }
 0x128   :  { %v1040_v53 = vpop.f32.mrf.mxu0 }
 0x129   :  { %837 = vst [vmem:[%s1386_s3] sm:$0xf] %v836_v52 }

// kernel: decoder_forward.19
= control target key start
LH: loop header
LB: loop body
LE: loop exit
PB: predicated region body
PF: predicated region fallthrough
CT: control target
= control target key end

     0   :  { %v187_v27 = vlaneseq  ;;  %v1476_v35 = vmov 1966171168   ;;  %vm1478_vm0 = vmmov 0   ;;  %s1830_s0 = inlined_call_operand.vmem [shape: bf16[1,2,1152], index: 0, kind: input, shape index: {}]   ;;  %s1831_s1 = inlined_call_operand.vmem [shape: bf16[1152,128], index: 1, kind: input, shape index: {}]   ;;  %s1832_s2 = inlined_call_operand.vmem [shape: f32[1,128], index: 2, kind: input, shape index: {}]   ;;  %s1833_s3 = inlined_call_operand.vmem [shape: bf16[128,64], index: 3, kind: input, shape index: {}]   ;;  %s1834_s4 = inlined_call_operand.vmem [shape: f32[1,64], index: 4, kind: input, shape index: {}]   ;;  %s1835_s5 = inlined_call_operand.vmem [shape: bf16[64,30], index: 5, kind: input, shape index: {}]   ;;  %s1836_s6 = inlined_call_operand.vmem [shape: f32[1,30], index: 6, kind: input, shape index: {}]   ;;  %s1837_s7 = inlined_call_operand.hbm [shape: f32[2,30], index: 7, kind: output, shape index: {}]  }
   0x1   :  { %v1365_v0 = vld [vmem:[%s1831_s1 + $0x78] sm:$0xff]   ;;  %v1369_v4 = vld [vmem:[%s1831_s1 + $0x70] sm:$0xff]   ;;  %v1373_v8 = vld [vmem:[%s1831_s1 + $0x68] sm:$0xff]   ;;  %v185_v36 = vunpack.c.l.s4 %v1476_v35 }
   0x2   :  { %v1366_v1 = vld [vmem:[%s1831_s1 + $0x38] sm:$0xff]   ;;  %1198 = vmatprep.subr.bf16.mxu0 %v1365_v0  ;;  %v1370_v5 = vld [vmem:[%s1831_s1 + $0x30] sm:$0xff]   ;;  %v1374_v9 = vld [vmem:[%s1831_s1 + $0x28] sm:$0xff]   ;;  %v188_v32 = vshrl.u32 %v187_v27, 7 }
   0x3   :  { %v1367_v2 = vld [vmem:[%s1831_s1 + $0xf8] sm:$0xff]   ;;  %1199 = vmatpush3.bf16.msra.mxu0 %v1366_v1  ;;  %v1371_v6 = vld [vmem:[%s1831_s1 + $0xf0] sm:$0xff]   ;;  %v1375_v10 = vld [vmem:[%s1831_s1 + $0xe8] sm:$0xff]   ;;  %v186_v39 = vunpack.c.0.s8 %v185_v36 }
   0x4   :  { %v1368_v3 = vld [vmem:[%s1831_s1 + $0xb8] sm:$0xff]   ;;  %1220 = vmatprep.subr.bf16.mxu1 %v1367_v2  ;;  %1200 = vmatprep.subr.bf16.mxu0 %v1369_v4  ;;  %v1372_v7 = vld [vmem:[%s1831_s1 + $0xb0] sm:$0xff]   ;;  %v1376_v11 = vld [vmem:[%s1831_s1 + $0xa8] sm:$0xff]  }
   0x5   :  { %1221 = vmatpush3.bf16.msra.mxu1 %v1368_v3  ;;  %v1377_v12 = vld [vmem:[%s1831_s1 + $0x60] sm:$0xff]   ;;  %v1381_v16 = vld [vmem:[%s1831_s1 + $0x58] sm:$0xff]   ;;  %v1385_v20 = vld [vmem:[%s1831_s1 + $0x50] sm:$0xff]   ;;  %v1625_v41 = vsub.s32 %v186_v39, %v188_v32 }
   0x6   :  { %1222 = vmatprep.subr.bf16.mxu1 %v1371_v6  ;;  %v1378_v13 = vld [vmem:[%s1831_s1 + $0x20] sm:$0xff]   ;;  %v1382_v17 = vld [vmem:[%s1831_s1 + $0x18] sm:$0xff]   ;;  %v1386_v21 = vld [vmem:[%s1831_s1 + $0x10] sm:$0xff]  }
   0x7   :  { %1201 = vmatpush3.bf16.msra.mxu0 %v1370_v5  ;;  %v1379_v14 = vld [vmem:[%s1831_s1 + $0xe0] sm:$0xff]   ;;  %v1383_v18 = vld [vmem:[%s1831_s1 + $0xd8] sm:$0xff]   ;;  %v1387_v22 = vld [vmem:[%s1831_s1 + $0xd0] sm:$0xff]  }
   0x8   :  { %1202 = vmatprep.subr.bf16.mxu0 %v1373_v8  ;;  %v1380_v15 = vld [vmem:[%s1831_s1 + $0xa0] sm:$0xff]   ;;  %v1384_v19 = vld [vmem:[%s1831_s1 + $0x98] sm:$0xff]   ;;  %v1388_v23 = vld [vmem:[%s1831_s1 + $0x90] sm:$0xff]  }
   0x9   :  { %1223 = vmatpush3.bf16.msra.mxu1 %v1372_v7  ;;  %v1389_v24 = vld [vmem:[%s1831_s1 + $0x48] sm:$0xff]   ;;  %v1393_v29 = vld [vmem:[%s1831_s1 + $0x40] sm:$0xff]   ;;  %v1398_v37 = vld [vmem:[%s1831_s1 + $0x178] sm:$0xff]  }
   0xa   :  { %1224 = vmatprep.subr.bf16.mxu1 %v1375_v10  ;;  %v1390_v25 = vld [vmem:[%s1831_s1 + $0x8] sm:$0xff]   ;;  %v1394_v30 = vld [vmem:[%s1831_s1] sm:$0xff]   ;;  %v1400_v40 = vld [vmem:[%s1831_s1 + $0x1f8] sm:$0xff]  }
   0xb   :  { %1203 = vmatpush3.bf16.msra.mxu0 %v1374_v9  ;;  %v1391_v26 = vld [vmem:[%s1831_s1 + $0xc8] sm:$0xff]   ;;  %v1395_v31 = vld [vmem:[%s1831_s1 + $0xc0] sm:$0xff]   ;;  %v1399_v48 = vld [vmem:[%s1831_s1 + $0x138] sm:$0xff]  }
   0xc   :  { %1204 = vmatprep.subr.bf16.mxu0 %v1377_v12  ;;  %v1392_v28 = vld [vmem:[%s1831_s1 + $0x88] sm:$0xff]   ;;  %v28_v33 = vld [vmem:[%s1830_s0] sm:$0xff]  ;;  %v1402_v51 = vld [vmem:[%s1831_s1 + $0x170] sm:$0xff]  }
   0xd   :  { %1225 = vmatpush3.bf16.msra.mxu1 %v1376_v11  ;;  %v1397_v34 = vld [vmem:[%s1831_s1 + $0x80] sm:$0xff]   ;;  %v183_v38 = vcombine.high %v28_v33, %v28_v33  ;;  %v190_v42 = vrot.slane %v28_v33, %v1625_v41  ;;  %v1401_v53 = vld [vmem:[%s1831_s1 + $0x1b8] sm:$0xff]   ;;  %v1404_v54 = vld [vmem:[%s1831_s1 + $0x1f0] sm:$0xff]  }
   0xe   :  { %1226 = vmatprep.subr.bf16.mxu1 %v1379_v14  ;;  %v1403_v56 = vld [vmem:[%s1831_s1 + $0x130] sm:$0xff]   ;;  %v1406_v57 = vld [vmem:[%s1831_s1 + $0x168] sm:$0xff]   ;;  %v1410_v61 = vld [vmem:[%s1831_s1 + $0x160] sm:$0xff]  }
   0xf   :  { %1205 = vmatpush3.bf16.msra.mxu0 %v1378_v13  ;;  %v1629_v43 = vrot.slane %v183_v38, %v1625_v41  ;;  %v198_v44 = vcombine.high %v190_v42, %v190_v42  ;;  %v206_v45 = vrot.slane %v190_v42, %v1625_v41  ;;  %v1405_v58 = vld [vmem:[%s1831_s1 + $0x1b0] sm:$0xff]   ;;  %v1408_v59 = vld [vmem:[%s1831_s1 + $0x1e8] sm:$0xff]   ;;  %v1412_v63 = vld [vmem:[%s1831_s1 + $0x1e0] sm:$0xff]  }
  0x10   :  { %1206 = vmatprep.subr.bf16.mxu0 %v1381_v16  ;;  %v1407_v60 = vld [vmem:[%s1831_s1 + $0x128] sm:$0xff]   ;;  %v1411_v0 = vld [vmem:[%s1831_s1 + $0x120] sm:$0xff]   ;;  %v1414_v1 = vld [vmem:[%s1831_s1 + $0x158] sm:$0xff]  }
  0x11   :  { %1227 = vmatpush3.bf16.msra.mxu1 %v1380_v15  ;;  %v199_v46 = vcombine.high %v1629_v43, %v1629_v43  ;;  %v220_v47 = vrot.slane %v198_v44, %v1625_v41  ;;  %v228_v50 = vcombine.high %v206_v45, %v206_v45  ;;  %v1409_v62 = vld [vmem:[%s1831_s1 + $0x1a8] sm:$0xff]   ;;  %v1413_v2 = vld [vmem:[%s1831_s1 + $0x1a0] sm:$0xff]   ;;  %v1416_v3 = vld [vmem:[%s1831_s1 + $0x1d8] sm:$0xff]  }
  0x12   :  { %1228 = vmatprep.subr.bf16.mxu1 %v1383_v18  ;;  %v1415_v4 = vld [vmem:[%s1831_s1 + $0x118] sm:$0xff]   ;;  %v1418_v5 = vld [vmem:[%s1831_s1 + $0x150] sm:$0xff]   ;;  %v1422_v9 = vld [vmem:[%s1831_s1 + $0x148] sm:$0xff]  }
  0x13   :  { %1207 = vmatpush3.bf16.msra.mxu0 %v1382_v17  ;;  %v227_v49 = vrot.slane %v199_v46, %v1625_v41  ;;  %719 = vmatprep.mubr.bf16.mxu0 %v220_v47  ;;  %v230_v52 = vcombine.high %v220_v47, %v220_v47  ;;  %v1417_v6 = vld [vmem:[%s1831_s1 + $0x198] sm:$0xff]   ;;  %v1420_v7 = vld [vmem:[%s1831_s1 + $0x1d0] sm:$0xff]   ;;  %v1424_v11 = vld [vmem:[%s1831_s1 + $0x1c8] sm:$0xff]   ;;  %v213_v17 = vrot.slane %v1629_v43, %v1625_v41 }
  0x14   :  { %1208 = vmatprep.subr.bf16.mxu0 %v1385_v20  ;;  %v1419_v8 = vld [vmem:[%s1831_s1 + $0x110] sm:$0xff]   ;;  %v1423_v12 = vld [vmem:[%s1831_s1 + $0x108] sm:$0xff]   ;;  %v1426_v13 = vld [vmem:[%s1831_s1 + $0x140] sm:$0xff]   ;;  %v1477_v20 = vmov 0.0  }
  0x15   :  { %1229 = vmatpush3.bf16.msra.mxu1 %v1384_v19  ;;  %v231_v55 = vcombine.high %v227_v49, %v227_v49  ;;  %759 = vmatprep.mubr.bf16.mxu1 %v230_v52  ;;  %v1421_v10 = vld [vmem:[%s1831_s1 + $0x190] sm:$0xff]   ;;  %v1425_v14 = vld [vmem:[%s1831_s1 + $0x188] sm:$0xff]   ;;  %v1428_v15 = vld [vmem:[%s1831_s1 + $0x1c0] sm:$0xff]  }
  0x16   :  { %1230 = vmatprep.subr.bf16.mxu1 %v1387_v22  ;;  %v1427_v16 = vld [vmem:[%s1831_s1 + $0x100] sm:$0xff]   ;;  %v1430_v19 = vld [vmem:[%s1831_s1 + $0x238] sm:$0xff]   ;;  %v1431_v22 = vld [vmem:[%s1831_s1 + $0x230] sm:$0xff]  }
  0x17   :  { %1209 = vmatpush3.bf16.msra.mxu0 %v1386_v21  ;;  %v1429_v18 = vld [vmem:[%s1831_s1 + $0x180] sm:$0xff]   ;;  %v229_v21 = vcombine.high %v213_v17, %v213_v17 }
  0x18   :  { %1210 = vmatprep.subr.bf16.mxu0 %v1389_v24 }
  0x19   :  { %1231 = vmatpush3.bf16.msra.mxu1 %v1388_v23 }
  0x1a   :  { %1232 = vmatprep.subr.bf16.mxu1 %v1391_v26 }
  0x1b   :  { %1211 = vmatpush3.bf16.msra.mxu0 %v1390_v25 }
  0x1c   :  { %1212 = vmatprep.subr.bf16.mxu0 %v1393_v29 }
  0x1d   :  { %1233 = vmatpush3.bf16.msra.mxu1 %v1392_v28 }
  0x1e   :  { %1234 = vmatprep.subr.bf16.mxu1 %v1395_v31 }
  0x1f   :  { %1213 = vmatpush3.bf16.msra.mxu0 %v1394_v30 }
  0x20   :  { %1242 = vmatprep.subr.bf16.mxu0 %v1398_v37 }
  0x21   :  { %1235 = vmatpush3.bf16.msra.mxu1 %v1397_v34 }
  0x22   :  { %1264 = vmatprep.subr.bf16.mxu1 %v1400_v40  ;;  %720 = vmatmul.mubr.bf16.vlgmr.msra.gmra.mxu0 %v206_v45 }
  0x23   :  { %1243 = vmatpush3.bf16.msra.mxu0 %v1399_v48  ;;  %799 = vmatprep.mubr.bf16.mxu0 %v227_v49 }
  0x24   :  { %760 = vmatmul.mubr.bf16.vlgmr.msra.gmra.mxu1 %v228_v50  ;;  %1244 = vmatprep.subr.bf16.mxu0 %v1402_v51 }
  0x25   :  { %1265 = vmatpush3.bf16.msra.mxu1 %v1401_v53  ;;  %839 = vmatprep.mubr.bf16.mxu1 %v231_v55 }
  0x26   :  { %1266 = vmatprep.subr.bf16.mxu1 %v1404_v54 }
  0x27   :  { %1245 = vmatpush3.bf16.msra.mxu0 %v1403_v56 }
  0x28   :  { %1246 = vmatprep.subr.bf16.mxu0 %v1406_v57 }
  0x29   :  { %1267 = vmatpush3.bf16.msra.mxu1 %v1405_v58 }
  0x2a   :  { %1268 = vmatprep.subr.bf16.mxu1 %v1408_v59 }
  0x2b   :  { %1247 = vmatpush3.bf16.msra.mxu0 %v1407_v60 }
  0x2c   :  { %1248 = vmatprep.subr.bf16.mxu0 %v1410_v61 }
  0x2d   :  { %1269 = vmatpush3.bf16.msra.mxu1 %v1409_v62 }
  0x2e   :  { %1270 = vmatprep.subr.bf16.mxu1 %v1412_v63 }
  0x2f   :  { %1249 = vmatpush3.bf16.msra.mxu0 %v1411_v0 }
  0x30   :  { %1250 = vmatprep.subr.bf16.mxu0 %v1414_v1 }
  0x31   :  { %1271 = vmatpush3.bf16.msra.mxu1 %v1413_v2 }
  0x32   :  { %1272 = vmatprep.subr.bf16.mxu1 %v1416_v3 }
  0x33   :  { %1251 = vmatpush3.bf16.msra.mxu0 %v1415_v4 }
  0x34   :  { %1252 = vmatprep.subr.bf16.mxu0 %v1418_v5 }
  0x35   :  { %1273 = vmatpush3.bf16.msra.mxu1 %v1417_v6 }
  0x36   :  { %1274 = vmatprep.subr.bf16.mxu1 %v1420_v7 }
  0x37   :  { %1253 = vmatpush3.bf16.msra.mxu0 %v1419_v8 }
  0x38   :  { %1254 = vmatprep.subr.bf16.mxu0 %v1422_v9 }
  0x39   :  { %1275 = vmatpush3.bf16.msra.mxu1 %v1421_v10 }
  0x3a   :  { %1276 = vmatprep.subr.bf16.mxu1 %v1424_v11 }
  0x3b   :  { %1255 = vmatpush3.bf16.msra.mxu0 %v1423_v12 }
  0x3c   :  { %1256 = vmatprep.subr.bf16.mxu0 %v1426_v13 }
  0x3d   :  { %1277 = vmatpush3.bf16.msra.mxu1 %v1425_v14 }
  0x3e   :  { %1278 = vmatprep.subr.bf16.mxu1 %v1428_v15 }
  0x3f   :  { %1257 = vmatpush3.bf16.msra.mxu0 %v1427_v16 }
  0x40   :  { %1309 = vmatprep.subr.bf16.mxu0 %v1477_v20 }
  0x41   :  { %1279 = vmatpush3.bf16.msra.mxu1 %v1429_v18 }
  0x42   :  { %800 = vmatmul.mubr.bf16.vlgmr.msra.gmra.mxu0 %v213_v17  ;;  %1329 = vmatprep.subr.bf16.mxu1 %v1477_v20 }
  0x43   :  { %1310 = vmatpush3.bf16.msra.mxu0 %v1430_v19  ;;  %1325 = vmatprep.mubr.msk.bf16.mxu0 %vm1478_vm0, %v1477_v20 }
  0x44   :  { %840 = vmatmul.mubr.bf16.vlgmr.msra.gmra.mxu1 %v229_v21  ;;  %1311 = vmatprep.subr.bf16.mxu0 %v1477_v20 }
  0x45   :  { %1345 = vmatprep.mubr.msk.bf16.mxu1 %vm1478_vm0, %v1477_v20 }
  0x46   :  { %12 = vsyncpa [#allocation3], 0  ;;  %v1432_v23 = vld [vmem:[%s1831_s1 + $0x228] sm:$0xff]   ;;  %v1433_v24 = vld [vmem:[%s1831_s1 + $0x220] sm:$0xff]   ;;  %vm1042_vm1 = vcmask 523264   ;;  %vm1092_vm2 = vcmask 238592  }
  0x47   :  { %1312 = vmatpush3.bf16.msra.mxu0 %v1431_v22  ;;  %v1434_v25 = vld [vmem:[%s1831_s1 + $0x218] sm:$0xff]   ;;  %v1435_v26 = vld [vmem:[%s1831_s1 + $0x210] sm:$0xff]   ;;  %v1436_v27 = vld [vmem:[%s1831_s1 + $0x208] sm:$0xff]  }
  0x48   :  { %1313 = vmatprep.subr.bf16.mxu0 %v1477_v20  ;;  %v1437_v28 = vld [vmem:[%s1831_s1 + $0x200] sm:$0xff]   ;;  %v1109_v29 = vld.sshfl [vmem:[%s1830_s0 + $0x8] sm:$0x1 pattern:$0x75316420]  ;;  %v1438_v31 = vld [vmem:[%s1833_s3 + $0x38] sm:$0xff]  }
  0x49   :  { %v245_v30 = vrot.slane %v1109_v29, %v1625_v41  ;;  %1330 = vmatpush3.bf16.msra.mxu1 %v1438_v31  ;;  %v1439_v32 = vld [vmem:[%s1833_s3 + $0x30] sm:$0xff]   ;;  %v1440_v33 = vld [vmem:[%s1833_s3 + $0x28] sm:$0xff]   ;;  %v1441_v34 = vld [vmem:[%s1833_s3 + $0x20] sm:$0xff]  }
  0x4a   :  { %1331 = vmatprep.subr.bf16.mxu1 %v1477_v20  ;;  %v1442_v35 = vld [vmem:[%s1833_s3 + $0x18] sm:$0xff]   ;;  %v1443_v36 = vld [vmem:[%s1833_s3 + $0x10] sm:$0xff]   ;;  %v1444_v37 = vld [vmem:[%s1833_s3 + $0x8] sm:$0xff]  }
  0x4b   :  { %1314 = vmatpush3.bf16.msra.mxu0 %v1432_v23  ;;  %v1445_v38 = vld [vmem:[%s1833_s3] sm:$0xff]   ;;  %v1446_v39 = vld [vmem:[%s1835_s5 + $0x18] sm:$0xff]   ;;  %v1447_v40 = vld [vmem:[%s1835_s5 + $0x10] sm:$0xff]  }
  0x4c   :  { %1315 = vmatprep.subr.bf16.mxu0 %v1477_v20  ;;  %v1108_v58 = vld [vmem:[%s1832_s2] ss:$0 sm:$0xff]  ;;  %v1448_v9 = vld [vmem:[%s1835_s5 + $0x8] sm:$0xff]  }
  0x4d   :  { %1332 = vmatpush3.bf16.msra.mxu1 %v1439_v32  ;;  %v1449_v10 = vld [vmem:[%s1835_s5] sm:$0xff]  }
  0x4e   :  { %1333 = vmatprep.subr.bf16.mxu1 %v1477_v20  ;;  %v1182_v11 = vld [vmem:[%s1834_s4] ss:$0 sm:$0xff]  ;;  %s1479_s4 = smov [#allocation2]  }
  0x4f   :  { %1316 = vmatpush3.bf16.msra.mxu0 %v1433_v24  ;;  %v1191_v19 = vld [vmem:[%s1836_s6] ss:$0 sm:$0xff]  ;;  %s1100_s5 = sshll.u32 %s1479_s4, 4  ;;  %s1101_s5 = int_to_ptr.vmem [resolvable:$true] %s1100_s5 }
  0x50   :  { %1317 = vmatprep.subr.bf16.mxu0 %v1477_v20  ;;  %s1454_s13 = scalar_lea.vmem %s1101_s5, 32  ;;  %p1459_p1 = scmp.lt.s32.totalorder %s1101_s5, %s1101_s5 }
  0x51   :  { %1334 = vmatpush3.bf16.msra.mxu1 %v1440_v33  ;;  %p1455_p0 = scmp.ne.s32.totalorder %s1101_s5, %s1454_s13  ;;  %p1460_p2 = scmp.lt.s32.totalorder %s1454_s13, %s1454_s13 }
  0x52   :  { %1335 = vmatprep.subr.bf16.mxu1 %v1477_v20 }
  0x53   :  { %1318 = vmatpush3.bf16.msra.mxu0 %v1434_v25  ;;  %p1461_p3 = por %p1460_p2, %p1459_p1 }
  0x54   :  { %1319 = vmatprep.subr.bf16.mxu0 %v1477_v20 }
  0x55   :  { %1336 = vmatpush3.bf16.msra.mxu1 %v1441_v34  ;;  %p1462_p4 = pnand %p1461_p3, %p1455_p0 }
  0x56   :  { %1337 = vmatprep.subr.bf16.mxu1 %v1477_v20 }
  0x57   :  { %1320 = vmatpush3.bf16.msra.mxu0 %v1435_v26 }
  0x58   :  { %1321 = vmatprep.subr.bf16.mxu0 %v1477_v20 }
  0x59   :  { %1338 = vmatpush3.bf16.msra.mxu1 %v1442_v35 }
  0x5a   :  { %1339 = vmatprep.subr.bf16.mxu1 %v1477_v20 }
  0x5b   :  { %1322 = vmatpush3.bf16.msra.mxu0 %v1436_v27 }
  0x5c   :  { %1323 = vmatprep.subr.bf16.mxu0 %v1477_v20 }
  0x5d   :  { %1340 = vmatpush3.bf16.msra.mxu1 %v1443_v36 }
  0x5e   :  { %1341 = vmatprep.subr.bf16.mxu1 %v1477_v20 }
  0x5f   :  { %1324 = vmatpush3.bf16.msra.mxu0 %v1437_v28 }
  0x60   :  { %1349 = vmatprep.subr.bf16.mxu0 %v1477_v20 }
  0x61   :  { %1342 = vmatpush3.bf16.msra.mxu1 %v1444_v37 }
  0x62   :  { %1326 = vmatmul.mubr.bf16.vlgmr.msra.gmra.mxu0 %v245_v30  ;;  %1343 = vmatprep.subr.bf16.mxu1 %v1477_v20 }
  0x63   :  { %1357 = vmatprep.mubr.msk.bf16.mxu0 %vm1478_vm0, %v1477_v20  ;;  %1350 = vmatpush3.bf16.msra.mxu0 %v1446_v39 }
  0x64   :  { %1351 = vmatprep.subr.bf16.mxu0 %v1477_v20 }
  0x65   :  { %1344 = vmatpush3.bf16.msra.mxu1 %v1445_v38 }
  0x67   :  { %1352 = vmatpush3.bf16.msra.mxu0 %v1447_v40 }
  0x68   :  { %1353 = vmatprep.subr.bf16.mxu0 %v1477_v20 }
  0x6b   :  { %1354 = vmatpush3.bf16.msra.mxu0 %v1448_v9 }
  0x6c   :  { %1355 = vmatprep.subr.bf16.mxu0 %v1477_v20 }
  0x6f   :  { %1356 = vmatpush3.bf16.msra.mxu0 %v1449_v10 }
  0xe2   :  { %v1214_v41 = vpop.f32.mrf.mxu0 }
  0xe4   :  { %v1215_v42 = vpop.f32.mrf.mxu0  ;;  %v1236_v43 = vpop.f32.mrf.mxu1 }
  0xe5   :  { %v1216_v57 = vadd.f32 %v1215_v42, %v1214_v41 }
  0xe6   :  { %v1217_v44 = vpop.f32.mrf.mxu0  ;;  %v1237_v45 = vpop.f32.mrf.mxu1 }
  0xe7   :  { %v722_v59 = vadd.f32 %v1216_v57, %v1108_v58  ;;  %v1238_v60 = vadd.f32 %v1237_v45, %v1236_v43 }
  0xe8   :  { %v1218_v46 = vpop.f32.mrf.mxu0  ;;  %v1239_v47 = vpop.f32.mrf.mxu1 }
  0xe9   :  { %v762_v62 = vadd.f32 %v1238_v60, %v722_v59 }
  0xea   :  { %v1240_v48 = vpop.f32.mrf.mxu1 }
 0x102   :  { %v1258_v49 = vpop.f32.mrf.mxu0 }
 0x104   :  { %v1259_v50 = vpop.f32.mrf.mxu0  ;;  %v1280_v51 = vpop.f32.mrf.mxu1 }
 0x105   :  { %v1260_v61 = vadd.f32 %v1259_v50, %v1258_v49 }
 0x106   :  { %v1261_v52 = vpop.f32.mrf.mxu0  ;;  %v1281_v53 = vpop.f32.mrf.mxu1 }
 0x107   :  { %v802_v63 = vadd.f32 %v1260_v61, %v762_v62  ;;  %v1282_v0 = vadd.f32 %v1281_v53, %v1280_v51 }
 0x108   :  { %v1262_v54 = vpop.f32.mrf.mxu0  ;;  %v1283_v55 = vpop.f32.mrf.mxu1 }
 0x109   :  { %v842_v1 = vadd.f32 %v1282_v0, %v802_v63 }
 0x10a   :  { %v1284_v56 = vpop.f32.mrf.mxu1 }
 0x122   :  { %v881_v2 = vpop.f32.mrf.mxu0 }
 0x123   :  { %v882_v3 = vadd.f32 %v881_v2, %v842_v1 }
 0x124   :  { %v1327_v4 = vpop.f32.mrf.mxu0 }
 0x125   :  { %v887_v5 = vmax.f32 %v882_v3, 0.0 }
 0x126   :  { %v884_v6 = vpop.f32.mrf.mxu0 }
 0x127   :  { %v889_v7 = vpack.c.bf16 %v887_v5, %v887_v5 }
 0x128   :  { %v1328_v8 = vpop.f32.mrf.mxu0 }
 0x129   :  { %1346 = vmatmul.mubr.bf16.vlgmr.msra.gmra.mxu1 %v889_v7 }
 0x1e9   :  { %v995_v12 = vpop.f32.mrf.mxu1 }
 0x1ea   :  { %v996_v13 = vadd.f32 %v1182_v11, %v995_v12 }
 0x1eb   :  { %v1347_v14 = vpop.f32.mrf.mxu1 }
 0x1ec   :  { %v1001_v15 = vmax.f32 %v996_v13, 0.0 }
 0x1ed   :  { %v998_v16 = vpop.f32.mrf.mxu1 }
 0x1ee   :  { %v1002_v17 = vpack.c.bf16 %v1001_v15, %v1001_v15 }
 0x1ef   :  { %v1348_v18 = vpop.f32.mrf.mxu1 }
 0x1f0   :  { %1358 = vmatmul.mubr.msk.bf16.vlgmr.msra.gmra.mxu0 %vm1042_vm1, %v1002_v17 }
 0x2b0   :  { %v1080_v20 = vpop.f32.mrf.mxu0 }
 0x2b1   :  { %v1081_v21 = vadd.f32 %v1191_v19, %v1080_v20 }
 0x2b2   :  { %v1359_v22 = vpop.f32.mrf.mxu0 }
 0x2b3   :  { %v1197_v23 = vmul.f32 -1.442695, %v1081_v21 }
 0x2b4   :  { %v1083_v24 = vpop.f32.mrf.mxu0 }
 0x2b5   :  { %1450 = vpow2.f32 %v1197_v23 }
 0x2b6   :  { %v1360_v25 = vpop.f32.mrf.mxu0 }
 0x2c2   :  { %v1451_v26 = vpop.eup %1450 }
 0x2c3   :  { %v1089_v27 = vadd.f32 1.0, %v1451_v26 }
 0x2c5   :  { %1452 = vrcp.f32 %v1089_v27 }
 0x2d2   :  { %v1453_v28 = vpop.eup %1452 }
 0x2d3   :  { %1093 = vst.msk [vmem:[#allocation2] sm:$0x3] %vm1092_vm2, %v1453_v28 }
 0x2d4   :  { %1465 = shalt.err (!%p1462_p4)
}
 0x2d5   :  { %1103 = dma.vmem_to_hbm [thread:$0]  %s1101_s5, 32, %s1837_s7, [#allocation3]  }
 0x2d6   :  { %1474 = dma.done.wait [#allocation3], 32  }
 0x2d7   :  { %1475 = vsyncadd [#allocation3], 4294967264 }
 0x2d8   :  { %1107 = vsyncpa [#allocation3], 1 }

</bundles_post_ra>
